<compile_context>
chip_gen: v6e
topology: v6e:2x2x1
jax: 0.10.0
libtpu: 0.0.40
codegen_flags: <defaults>
</compile_context>

<pallas_src>
import numpy as np
import jax
import jax.numpy as jnp
from jax import lax
from jax.experimental import pallas as pl
from jax.experimental.pallas import tpu as pltpu


# ----------------------------------------------------------------------------
# helpers mirroring the PyTorch module's glue
# ----------------------------------------------------------------------------
def get_window_size(x_size, window_size, shift_size=None):
    use_window_size = list(window_size)
    if shift_size is not None:
        use_shift_size = list(shift_size)
    for i in range(len(x_size)):
        if x_size[i] <= window_size[i]:
            use_window_size[i] = x_size[i]
            if shift_size is not None:
                use_shift_size[i] = 0
    if shift_size is None:
        return tuple(use_window_size)
    return tuple(use_window_size), tuple(use_shift_size)


def window_partition(x, window_size):
    b, d, h, w, c = x.shape
    w1, w2, w3 = window_size
    x = x.reshape(b, d // w1, w1, h // w2, w2, w // w3, w3, c)
    x = x.transpose(0, 1, 3, 5, 2, 4, 6, 7)
    return x.reshape(-1, w1 * w2 * w3, c)


def window_reverse(windows, window_size, d, h, w):
    # windows: (num_windows_total, w1, w2, w3, c)
    w1, w2, w3 = window_size
    dw, hw, ww = d // w1, h // w2, w // w3
    b = windows.shape[0] // (dw * hw * ww)
    x = windows.reshape(b, dw, hw, ww, w1, w2, w3, -1)
    x = x.transpose(0, 1, 4, 2, 5, 3, 6, 7)
    return x.reshape(b, d, h, w, -1)


def relative_position_index(window_size):
    wd, wh, ww = window_size
    coords = np.stack(np.meshgrid(np.arange(wd), np.arange(wh), np.arange(ww),
                                  indexing="ij"))
    coords = coords.reshape(3, -1)
    rel = coords[:, :, None] - coords[:, None, :]
    rel = rel.transpose(1, 2, 0).astype(np.int64)
    rel[:, :, 0] += wd - 1
    rel[:, :, 1] += wh - 1
    rel[:, :, 2] += ww - 1
    rel[:, :, 0] *= (2 * wh - 1) * (2 * ww - 1)
    rel[:, :, 1] *= (2 * ww - 1)
    return rel.sum(-1)  # (n, n)


# ----------------------------------------------------------------------------
# tiling helpers
# ----------------------------------------------------------------------------
def _row_tile(n_rows, cap=512):
    # cap=512 (not 1024): keeps the (tm, tk) f32 GELU intermediate small enough
    # for v7x's 64 MiB VMEM while already reaching ~85% of HBM roofline.
    for tm in (1024, 512, 256, 128, 64, 32, 16, 8):
        if tm <= min(n_rows, cap) and n_rows % tm == 0:
            return tm
    return n_rows


def _hidden_tile(hidden, cap=512):
    # hidden tile must be a multiple of 128 (lane dim of the w1 block) or the
    # full hidden dim.
    for tk in (2048, 1024, 768, 512, 384, 256, 128):
        if tk <= cap and hidden % tk == 0:
            return tk
    return hidden


def _pick_window_batch(n_win, n, c, target_rows=512, max_bytes=2 << 20,
                       min_steps=2):
    """Largest divisor of n_win giving ~target_rows rows per matmul while the
    per-step x block stays under max_bytes; then backs off (keeping >=256 rows
    where possible) so the 'parallel' grid has at least `min_steps` steps
    (megacore / 2-TC balance on v7x).  Decoupled from the mask shape."""
    byte_cap = max(1, max_bytes // max(1, n * c * 4))
    want = max(1, -(-target_rows // n))                    # ceil(target / n)
    cap = max(1, min(n_win, byte_cap, want))
    wb = 1
    for d_ in range(1, cap + 1):
        if n_win % d_ == 0:
            wb = d_
    while n_win // wb < min_steps:
        smaller = [d_ for d_ in range(1, wb) if n_win % d_ == 0]
        if not smaller:
            break
        nxt = smaller[-1]
        if wb * n >= 256 and nxt * n < 256:
            break        # don't shrink the matmul below ~256 rows for megacore
        wb = nxt
    return wb


def _maybe_vmem_limit(est_bytes):
    # Default scoped VMEM is 16/32 MiB (v5e / v6e+v7x); raise it only when the
    # estimated working set needs it (never at the small test shapes).
    if est_bytes > 24 * 1024 * 1024:
        return int(min(2 * est_bytes, 96 * 1024 * 1024))
    return None


# ----------------------------------------------------------------------------
# Pallas kernels
# ----------------------------------------------------------------------------
def layernorm_pallas(x2d, gamma, beta, eps=1e-5):
    """Standalone LN (only used on the padded fallback path)."""
    n_rows, c = x2d.shape
    tm = _row_tile(n_rows)

    def kernel(x_ref, g_ref, b_ref, o_ref):
        x = x_ref[...].astype(jnp.float32)
        mu = jnp.mean(x, axis=-1, keepdims=True)
        var = jnp.mean(jnp.square(x - mu), axis=-1, keepdims=True)
        y = (x - mu) * lax.rsqrt(var + eps)
        o_ref[...] = (y * g_ref[...] + b_ref[...]).astype(o_ref.dtype)

    return pl.pallas_call(
        kernel,
        out_shape=jax.ShapeDtypeStruct((n_rows, c), x2d.dtype),
        grid=(n_rows // tm,),
        in_specs=[pl.BlockSpec((tm, c), lambda i: (i, 0)),
                  pl.BlockSpec((1, c), lambda i: (0, 0)),
                  pl.BlockSpec((1, c), lambda i: (0, 0))],
        out_specs=pl.BlockSpec((tm, c), lambda i: (i, 0)),
        compiler_params=pltpu.CompilerParams(dimension_semantics=("parallel",)),
    )(x2d, gamma, beta)


def window_attention_pallas(x_windows, mask, rel_bias, ln_g, ln_b,
                            qkv_w, qkv_b, proj_w, proj_b,
                            heads, scale, fuse_ln, eps=1e-5,
                            out_dtype=jnp.bfloat16):
    """(optional LN) + qkv + per-head scaled attention (+bias, +mask) + proj.

    x_windows : (n_win, n, c) f32   (pre-LN when fuse_ln, post-LN otherwise)
    mask      : None or (nW, n, n) f32
    qkv_w / proj_w are bf16; all accumulation is f32; output is bf16.
    """
    n_win, n, c = x_windows.shape
    dh = c // heads
    use_mask = mask is not None

    wb = _pick_window_batch(n_win, n, c)                    # windows per step
    grid = (n_win // wb,)

    if use_mask:
        nW = mask.shape[0]
        assert n_win % nW == 0, "mask must hold one (n, n) slab per window"
        if nW % wb == 0:
            n_mask_blocks = nW // wb
            mask_arr = mask
            m_spec = pl.BlockSpec((wb, n, n),
                                  lambda i: (i % n_mask_blocks, 0, 0))
        else:
            # wb does not divide nW -> pre-tile the mask to n_win windows so
            # indexing stays trivially correct (review: decouple wb from nW).
            mask_arr = jnp.tile(mask, (n_win // nW, 1, 1))
            m_spec = pl.BlockSpec((wb, n, n), lambda i: (i, 0, 0))

    def kernel(*refs):
        if use_mask:
            (x_ref, m_ref, bias_ref, g_ref, b_ref,
             qw_ref, qb_ref, pw_ref, pb_ref, o_ref, hacc_ref) = refs
        else:
            (x_ref, bias_ref, g_ref, b_ref,
             qw_ref, qb_ref, pw_ref, pb_ref, o_ref, hacc_ref) = refs
            m_ref = None

        x = x_ref[...].astype(jnp.float32).reshape(wb * n, c)
        if fuse_ln:                                         # fused norm1
            mu = jnp.mean(x, axis=-1, keepdims=True)
            var = jnp.mean(jnp.square(x - mu), axis=-1, keepdims=True)
            xn = (x - mu) * lax.rsqrt(var + eps) * g_ref[...] + b_ref[...]
        else:
            xn = x

        # one (wb*n, c) x (c, 3c) MXU matmul; result cast to bf16 immediately
        # so only a single bf16 copy of qkv stays live (no f32 spill traffic).
        qkv = (jnp.dot(xn.astype(jnp.bfloat16), qw_ref[...],
                       preferred_element_type=jnp.float32)
               + qb_ref[...]).astype(jnp.bfloat16)
        qkv = qkv.reshape(wb, n, 3 * c)

        # Per-head scores / AV.  Each head writes its (wb*n, dh) output slab
        # directly into the bf16 VMEM scratch (no concatenate, no f32
        # head_outs live values); the projection below stays one full-width
        # K=c MXU matmul.
        for hd in range(heads):
            qh = qkv[:, :, hd * dh:(hd + 1) * dh]
            kh = qkv[:, :, c + hd * dh:c + (hd + 1) * dh]
            vh = qkv[:, :, 2 * c + hd * dh:2 * c + (hd + 1) * dh]
            a = jnp.einsum('bnd,bmd->bnm', qh, kh,
                           preferred_element_type=jnp.float32)
            a = a * scale + bias_ref[hd][None]
            if use_mask:
                a = a + m_ref[...]
            a = a - jnp.max(a, axis=-1, keepdims=True)
            e = jnp.exp(a)
            p = e * pl.reciprocal(jnp.sum(e, axis=-1, keepdims=True),
                                  approx=True)
            o_h = jnp.einsum('bnm,bmd->bnd', p.astype(jnp.bfloat16), vh,
                             preferred_element_type=jnp.float32)
            hacc_ref[:, hd * dh:(hd + 1) * dh] = (
                o_h.reshape(wb * n, dh).astype(jnp.bfloat16))

        proj = jnp.dot(hacc_ref[...], pw_ref[...],
                       preferred_element_type=jnp.float32) + pb_ref[...]
        o_ref[...] = proj.reshape(wb, n, c).astype(o_ref.dtype)

    const_specs = [
        pl.BlockSpec((heads, n, n), lambda i: (0, 0, 0)),    # rel pos bias
        pl.BlockSpec((1, c), lambda i: (0, 0)),              # ln1 gamma
        pl.BlockSpec((1, c), lambda i: (0, 0)),              # ln1 beta
        pl.BlockSpec((c, 3 * c), lambda i: (0, 0)),          # qkv_w (bf16)
        pl.BlockSpec((1, 3 * c), lambda i: (0, 0)),          # qkv_b
        pl.BlockSpec((c, c), lambda i: (0, 0)),              # proj_w (bf16)
        pl.BlockSpec((1, c), lambda i: (0, 0)),              # proj_b
    ]
    x_spec = pl.BlockSpec((wb, n, c), lambda i: (i, 0, 0))
    if use_mask:
        in_specs = [x_spec, m_spec] + const_specs
        args = (x_windows, mask_arr, rel_bias, ln_g, ln_b,
                qkv_w, qkv_b, proj_w, proj_b)
    else:
        in_specs = [x_spec] + const_specs
        args = (x_windows, rel_bias, ln_g, ln_b,
                qkv_w, qkv_b, proj_w, proj_b)

    est = (2 * (wb * n * c * 4 + wb * n * c * 2
                + (wb * n * n * 4 if use_mask else 0))
           + 2 * 2 * (c * 3 * c + c * c)                      # bf16 weights, 2-buf
           + heads * n * n * 4
           + wb * n * c * 2                                   # scratch
           + 4 * (wb * n * 3 * c))                            # live values slack

    return pl.pallas_call(
        kernel,
        out_shape=jax.ShapeDtypeStruct((n_win, n, c), out_dtype),
        grid=grid,
        in_specs=in_specs,
        out_specs=pl.BlockSpec((wb, n, c), lambda i: (i, 0, 0)),
        scratch_shapes=[pltpu.VMEM((wb * n, c), jnp.bfloat16)],
        compiler_params=pltpu.CompilerParams(
            dimension_semantics=("parallel",),
            vmem_limit_bytes=_maybe_vmem_limit(est)),
    )(*args)


def ffn_residual_pallas(shortcut2d, attn2d, gamma, beta, w1, b1, w2, b2,
                        eps=1e-5, tm_cap=512, tk_cap=512):
    """out = x3 + FF(norm2(x3)), x3 = shortcut + attn (both residuals fused).

    The hidden dim is tiled on an 'arbitrary' grid axis with the output block
    as the resident f32 accumulator, so w1/w2 are streamed slice-by-slice and
    never fully VMEM-resident (fits v7x's 64 MiB / default scoped limits)."""
    n_rows, c = shortcut2d.shape
    hidden = w1.shape[1]
    tm = _row_tile(n_rows, cap=tm_cap)
    tk = _hidden_tile(hidden, cap=tk_cap)
    nk = hidden // tk

    def kernel(s_ref, a_ref, g_ref, b_ref, w1_ref, b1_ref, w2_ref, b2_ref,
               o_ref, y_scr):
        k = pl.program_id(1)

        @pl.when(k == 0)
        def _():
            x = s_ref[...].astype(jnp.float32) + a_ref[...].astype(jnp.float32)
            mu = jnp.mean(x, axis=-1, keepdims=True)
            var = jnp.mean(jnp.square(x - mu), axis=-1, keepdims=True)
            y = (x - mu) * lax.rsqrt(var + eps) * g_ref[...] + b_ref[...]
            y_scr[...] = y.astype(jnp.bfloat16)              # bf16 matmul input
            # residual + final bias written once; o_ref accumulates across k.
            o_ref[...] = (x + b2_ref[...]).astype(o_ref.dtype)

        h = jnp.dot(y_scr[...], w1_ref[...],
                    preferred_element_type=jnp.float32) + b1_ref[...]
        h = jax.nn.gelu(h, approximate=False)                # nn.GELU default (erf)
        o_ref[...] += jnp.dot(h.astype(jnp.bfloat16), w2_ref[...],
                              preferred_element_type=jnp.float32
                              ).astype(o_ref.dtype)

    est = (2 * (tm * c * 4 + tm * c * 2 + tm * c * 4)
           + 2 * 2 * (c * tk + tk * c)                        # bf16 weight slices
           + tm * tk * 4                                      # GELU intermediate
           + tm * c * 2)                                      # scratch

    return pl.pallas_call(
        kernel,
        out_shape=jax.ShapeDtypeStruct((n_rows, c), shortcut2d.dtype),
        grid=(n_rows // tm, nk),
        in_specs=[pl.BlockSpec((tm, c), lambda i, k: (i, 0)),
                  pl.BlockSpec((tm, c), lambda i, k: (i, 0)),
                  pl.BlockSpec((1, c), lambda i, k: (0, 0)),
                  pl.BlockSpec((1, c), lambda i, k: (0, 0)),
                  pl.BlockSpec((c, tk), lambda i, k: (0, k)),
                  pl.BlockSpec((1, tk), lambda i, k: (0, k)),
                  pl.BlockSpec((tk, c), lambda i, k: (k, 0)),
                  pl.BlockSpec((1, c), lambda i, k: (0, 0))],
        out_specs=pl.BlockSpec((tm, c), lambda i, k: (i, 0)),
        scratch_shapes=[pltpu.VMEM((tm, c), jnp.bfloat16)],
        compiler_params=pltpu.CompilerParams(
            dimension_semantics=("parallel", "arbitrary"),
            vmem_limit_bytes=_maybe_vmem_limit(est)),
    )(shortcut2d, attn2d, gamma, beta, w1, b1, w2, b2)


# ----------------------------------------------------------------------------
# pure-JAX references (f32, for correctness check only)
# ----------------------------------------------------------------------------
def _ln_ref(x2d, g, b, eps=1e-5):
    mu = jnp.mean(x2d, axis=-1, keepdims=True)
    var = jnp.mean(jnp.square(x2d - mu), axis=-1, keepdims=True)
    return (x2d - mu) / jnp.sqrt(var + eps) * g[0] + b[0]


def _attn_ref(xw, mask_full, rel_bias, qkv_w, qkv_b, proj_w, proj_b, heads, scale):
    n_win, n, c = xw.shape
    qkv = xw @ qkv_w + qkv_b
    q, k, v = jnp.split(qkv, 3, axis=-1)

    def to_heads(t):
        return t.reshape(n_win, n, heads, c // heads).transpose(0, 2, 1, 3)

    q, k, v = to_heads(q), to_heads(k), to_heads(v)
    a = jnp.einsum('bhnd,bhmd->bhnm', scale * q, k)
    a = a + rel_bias[None] + mask_full[:, None]
    a = jax.nn.softmax(a, axis=-1)
    o = jnp.einsum('bhnm,bhmd->bhnd', a, v).transpose(0, 2, 1, 3).reshape(n_win, n, c)
    return o @ proj_w + proj_b


def _ffn_ref(x2d, g, b, w1, b1, w2, b2):
    y = _ln_ref(x2d, g, b)
    h = jax.nn.gelu(y @ w1 + b1[0], approximate=False)
    return x2d + (h @ w2 + b2[0])


# ----------------------------------------------------------------------------
# SwinTransformerBlock3D forward
# ----------------------------------------------------------------------------
def swin_block_forward(x, mask, params, cfg, use_pallas=True):
    dim, heads = cfg['dim'], cfg['heads']
    b, d, h, w, c = x.shape
    window_size, shift_size = get_window_size((d, h, w), cfg['window_size'],
                                              cfg['shift_size'])
    wd, wh, ww = window_size
    sd, sh, sw = shift_size

    scale = cfg.get('scale')
    if scale is None:                      # strict parity (0.0 is a valid scale)
        scale = (dim // heads) ** (-0.5)

    shortcut = x

    pad_d1 = (wd - d % wd) % wd
    pad_b_ = (wh - h % wh) % wh
    pad_r = (ww - w % ww) % ww
    pad_needed = (pad_d1 > 0) or (pad_b_ > 0) or (pad_r > 0)
    d_p, h_p, w_p = d + pad_d1, h + pad_b_, w + pad_r

    # ----- norm1: fused into the attention kernel when no padding is needed
    # (padding with zeros must happen *after* LayerNorm to match the module).
    fuse_ln = use_pallas and not pad_needed
    if fuse_ln:
        xn = x
    else:
        if use_pallas:
            xn = layernorm_pallas(x.reshape(-1, c), params['ln1_g'], params['ln1_b'])
        else:
            xn = _ln_ref(x.reshape(-1, c), params['ln1_g'], params['ln1_b'])
        xn = xn.reshape(b, d, h, w, c)
        xn = jnp.pad(xn, ((0, 0), (0, pad_d1), (0, pad_b_), (0, pad_r), (0, 0)))

    # ----- cyclic shift: mirrors the module source verbatim:
    # torch.roll(shifts=(-s_d, -s_w, -s_h), dims=(1, 2, 3))  (H gets -s_w and
    # W gets -s_h, exactly as written in the PyTorch spec).
    if any(s > 0 for s in shift_size):
        shifted_x = jnp.roll(xn, shift=(-sd, -sw, -sh), axis=(1, 2, 3))
        attn_mask = mask
    else:
        shifted_x = xn
        attn_mask = None

    # ----- window partition (XLA transpose; see TODO at top of file) -----
    x_windows = window_partition(shifted_x, window_size)        # (nWtot, n, c)
    n_win_tot, n, _ = x_windows.shape

    # relative position bias gather (tiny -> plain JAX)
    rpi = np.asarray(cfg['rpi'])[:n, :n].reshape(-1)
    rel_bias = params['pbt'][rpi].reshape(n, n, heads).transpose(2, 0, 1)  # (H,n,n)

    # ----- window attention -----
    if use_pallas:
        # bf16 weights cast once outside the per-call path when provided.
        qkv_w = params.get('qkv_w_bf16', params['qkv_w'].astype(jnp.bfloat16))
        proj_w = params.get('proj_w_bf16', params['proj_w'].astype(jnp.bfloat16))
        ff_w1 = params.get('ff_w1_bf16', params['ff_w1'].astype(jnp.bfloat16))
        ff_w2 = params.get('ff_w2_bf16', params['ff_w2'].astype(jnp.bfloat16))
        if attn_mask is not None:
            assert n_win_tot % attn_mask.shape[0] == 0, (
                "mask must hold one (n, n) slab per window of a batch element")
            attn_mask_f32 = attn_mask.astype(jnp.float32)
        else:
            attn_mask_f32 = None
        attn_windows = window_attention_pallas(
            x_windows, attn_mask_f32, rel_bias,
            params['ln1_g'], params['ln1_b'],
            qkv_w, params['qkv_b'], proj_w, params['proj_b'],
            heads, scale, fuse_ln)          # bf16 output (halved HBM traffic)
    else:
        if attn_mask is None:
            mask_full = jnp.zeros((n_win_tot, n, n), jnp.float32)
        else:
            reps = n_win_tot // attn_mask.shape[0]
            mask_full = jnp.tile(attn_mask.astype(jnp.float32), (reps, 1, 1))
        attn_windows = _attn_ref(
            x_windows, mask_full, rel_bias,
            params['qkv_w'], params['qkv_b'][0], params['proj_w'],
            params['proj_b'][0], heads, scale)

    # ----- window reverse / un-shift / un-pad -----
    attn_windows = attn_windows.reshape(-1, wd, wh, ww, c)
    # (uses padded dims; identical to the module whenever padding is zero,
    #  which is the only case the module's own window_reverse supports)
    shifted_back = window_reverse(attn_windows, window_size, d_p, h_p, w_p)
    if any(s > 0 for s in shift_size):
        x2 = jnp.roll(shifted_back, shift=(sd, sw, sh), axis=(1, 2, 3))
    else:
        x2 = shifted_back
    if pad_needed:
        x2 = x2[:, :d, :h, :w, :]

    # ----- residual-1 + norm2 + FeedForward + residual-2 (fused kernel) -----
    if use_pallas:
        out = ffn_residual_pallas(
            shortcut.reshape(-1, c), x2.reshape(-1, c),
            params['ln2_g'], params['ln2_b'],
            ff_w1, params['ff_b1'], ff_w2, params['ff_b2'])
    else:
        x3 = (shortcut + x2).reshape(-1, c)
        out = _ffn_ref(x3, params['ln2_g'], params['ln2_b'],
                       params['ff_w1'], params['ff_b1'],
                       params['ff_w2'], params['ff_b2'])
    return out.reshape(b, d, h, w, c)


# ----------------------------------------------------------------------------
# deterministic parameter init (synthetic, matches module shapes)
# ----------------------------------------------------------------------------
def init_params(key, dim, heads, window_size, ff_ratio=4.0):
    wd, wh, ww = window_size
    hidden = int(dim * ff_ratio)
    ks = jax.random.split(key, 9)

    def nrm(k, shape, std=0.05):
        return (std * jax.random.normal(k, shape)).astype(jnp.float32)

    return dict(
        ln1_g=jnp.ones((1, dim), jnp.float32),
        ln1_b=jnp.zeros((1, dim), jnp.float32),
        ln2_g=jnp.ones((1, dim), jnp.float32),
        ln2_b=jnp.zeros((1, dim), jnp.float32),
        qkv_w=nrm(ks[0], (dim, 3 * dim)),
        qkv_b=nrm(ks[1], (1, 3 * dim)),          # qkv_bias=True (module default)
        proj_w=nrm(ks[2], (dim, dim)),
        proj_b=nrm(ks[3], (1, dim)),
        ff_w1=nrm(ks[4], (dim, hidden)),
        ff_b1=nrm(ks[5], (1, hidden)),
        ff_w2=nrm(ks[6], (hidden, dim)),
        ff_b2=nrm(ks[7], (1, dim)),
        pbt=nrm(ks[8], ((2 * wd - 1) * (2 * wh - 1) * (2 * ww - 1), heads), std=0.02),
    )


def with_bf16_weights(params):
    """Cast matmul weights to bf16 ONCE (hoisted out of the per-call path)."""
    p = dict(params)
    for k in ('qkv_w', 'proj_w', 'ff_w1', 'ff_w2'):
        p[k + '_bf16'] = params[k].astype(jnp.bfloat16)
    return p


if __name__ == "__main__":
    key = jax.random.PRNGKey(0)
    dim, heads = 32, 4
    window_size = (2, 4, 4)
    b, d, h, w = 2, 4, 8, 8

    kx, km, kp = jax.random.split(key, 3)
    x = jax.random.normal(kx, (b, d, h, w, dim), jnp.float32)
    params = with_bf16_weights(init_params(kp, dim, heads, window_size))
    rpi = relative_position_index(window_size)

    # Case 1: default block (shift_size=(0,0,0)); mask is ignored on this path.
    cfg0 = dict(dim=dim, heads=heads, window_size=window_size,
                shift_size=(0, 0, 0), rpi=rpi, scale=None)
    out0 = swin_block_forward(x, None, params, cfg0, use_pallas=True)
    ref0 = swin_block_forward(x, None, params, cfg0, use_pallas=False)

    # Case 2: shifted windows with an additive attention mask (nW, n, n).
    n = window_size[0] * window_size[1] * window_size[2]
    nW = (d // window_size[0]) * (h // window_size[1]) * (w // window_size[2])
    mask = 0.5 * jax.random.normal(km, (nW, n, n), jnp.float32)
    cfg1 = dict(dim=dim, heads=heads, window_size=window_size,
                shift_size=(1, 2, 2), rpi=rpi, scale=None)
    out1 = swin_block_forward(x, mask, params, cfg1, use_pallas=True)
    ref1 = swin_block_forward(x, mask, params, cfg1, use_pallas=False)

    jax.block_until_ready((out0, out1, ref0, ref1))
    assert out0.shape == x.shape and out1.shape == x.shape
    # Pallas path uses bf16 MXU inputs / bf16 attn intermediate (f32 accum) +
    # approx reciprocal; reference is pure f32 -> allow a small tolerance.
    for o, r in ((out0, ref0), (out1, ref1)):
        err = float(jnp.max(jnp.abs(o - r)))
        if not np.isfinite(err) or err > 5e-2:
            raise SystemExit(f"mismatch vs reference: max abs err = {err}")
    print("KERNEL_OK")
</pallas_src>

<mosaic_0001>
module attributes {stable_mosaic.version = 11 : i64} {
  func.func @kernel(%arg0: i32, %arg1: memref<8x32x32xf32, #tpu.memory_space<vmem>>, %arg2: memref<4x32x32xf32, #tpu.memory_space<vmem>>, %arg3: memref<1x32xf32, #tpu.memory_space<vmem>>, %arg4: memref<1x32xf32, #tpu.memory_space<vmem>>, %arg5: memref<32x96xbf16, #tpu.memory_space<vmem>>, %arg6: memref<1x96xf32, #tpu.memory_space<vmem>>, %arg7: memref<32x32xbf16, #tpu.memory_space<vmem>>, %arg8: memref<1x32xf32, #tpu.memory_space<vmem>>, %arg9: memref<8x32x32xbf16, #tpu.memory_space<vmem>>, %arg10: memref<256x32xbf16, #tpu.memory_space<vmem>>) attributes {dimension_semantics = [#tpu.dimension_semantics<parallel>], iteration_bounds = array<i64: 2>, scalar_prefetch = 0 : i64, scratch_operands = 1 : i64, tpu.core_type = #tpu.core_type<tc>, window_params = [{transform_indices = @transform_0, window_bounds = array<i64: 8, 32, 32>}, {pipeline_mode = #tpu.pipeline_mode<synchronous>, transform_indices = @transform_1, window_bounds = array<i64: 4, 32, 32>}, {pipeline_mode = #tpu.pipeline_mode<synchronous>, transform_indices = @transform_2, window_bounds = array<i64: 1, 32>}, {pipeline_mode = #tpu.pipeline_mode<synchronous>, transform_indices = @transform_3, window_bounds = array<i64: 1, 32>}, {pipeline_mode = #tpu.pipeline_mode<synchronous>, transform_indices = @transform_4, window_bounds = array<i64: 32, 96>}, {pipeline_mode = #tpu.pipeline_mode<synchronous>, transform_indices = @transform_5, window_bounds = array<i64: 1, 96>}, {pipeline_mode = #tpu.pipeline_mode<synchronous>, transform_indices = @transform_6, window_bounds = array<i64: 32, 32>}, {pipeline_mode = #tpu.pipeline_mode<synchronous>, transform_indices = @transform_7, window_bounds = array<i64: 1, 32>}, {transform_indices = @transform_8, window_bounds = array<i64: 8, 32, 32>}]} {
    %c0 = arith.constant 0 : index
    %c0_0 = arith.constant 0 : index
    %c0_1 = arith.constant 0 : index
    %0 = vector.load %arg1[%c0, %c0_0, %c0_1] : memref<8x32x32xf32, #tpu.memory_space<vmem>>, vector<8x32x32xf32>
    %1 = vector.shape_cast %0 : vector<8x32x32xf32> to vector<256x32xf32>
    %cst = arith.constant dense<0.000000e+00> : vector<256xf32>
    %2 = vector.multi_reduction <add>, %1, %cst [1] : vector<256x32xf32> to vector<256xf32>
    %3 = vector.shape_cast %2 : vector<256xf32> to vector<256x1xf32>
    %cst_2 = arith.constant 3.200000e+01 : f32
    %4 = vector.broadcast %cst_2 : f32 to vector<256x1xf32>
    %5 = arith.divf %3, %4 : vector<256x1xf32>
    %6 = vector.broadcast %5 : vector<256x1xf32> to vector<256x32xf32>
    %7 = arith.subf %1, %6 : vector<256x32xf32>
    %8 = arith.mulf %7, %7 : vector<256x32xf32>
    %cst_3 = arith.constant dense<0.000000e+00> : vector<256xf32>
    %9 = vector.multi_reduction <add>, %8, %cst_3 [1] : vector<256x32xf32> to vector<256xf32>
    %10 = vector.shape_cast %9 : vector<256xf32> to vector<256x1xf32>
    %cst_4 = arith.constant 3.200000e+01 : f32
    %11 = vector.broadcast %cst_4 : f32 to vector<256x1xf32>
    %12 = arith.divf %10, %11 : vector<256x1xf32>
    %13 = vector.broadcast %5 : vector<256x1xf32> to vector<256x32xf32>
    %14 = arith.subf %1, %13 : vector<256x32xf32>
    %cst_5 = arith.constant 9.99999974E-6 : f32
    %15 = vector.broadcast %cst_5 : f32 to vector<256x1xf32>
    %16 = arith.addf %12, %15 : vector<256x1xf32>
    %17 = math.rsqrt %16 : vector<256x1xf32>
    %18 = vector.broadcast %17 : vector<256x1xf32> to vector<256x32xf32>
    %19 = arith.mulf %14, %18 : vector<256x32xf32>
    %c0_6 = arith.constant 0 : index
    %c0_7 = arith.constant 0 : index
    %20 = vector.load %arg3[%c0_6, %c0_7] : memref<1x32xf32, #tpu.memory_space<vmem>>, vector<1x32xf32>
    %21 = vector.broadcast %20 : vector<1x32xf32> to vector<256x32xf32>
    %22 = arith.mulf %19, %21 : vector<256x32xf32>
    %c0_8 = arith.constant 0 : index
    %c0_9 = arith.constant 0 : index
    %23 = vector.load %arg4[%c0_8, %c0_9] : memref<1x32xf32, #tpu.memory_space<vmem>>, vector<1x32xf32>
    %24 = vector.broadcast %23 : vector<1x32xf32> to vector<256x32xf32>
    %25 = arith.addf %22, %24 : vector<256x32xf32>
    %26 = arith.truncf %25 : vector<256x32xf32> to vector<256x32xbf16>
    %c0_10 = arith.constant 0 : index
    %c0_11 = arith.constant 0 : index
    %27 = vector.load %arg5[%c0_10, %c0_11] : memref<32x96xbf16, #tpu.memory_space<vmem>>, vector<32x96xbf16>
    %cst_12 = arith.constant dense<0.000000e+00> : vector<256x96xf32>
    %28 = tpu.matmul %26, %27, %cst_12 {dimension_numbers = #tpu.dot_dimension_numbers<[1], [0], [0], [1], [0, 0, 1, 1], [], []>} : vector<256x32xbf16>, vector<32x96xbf16>, vector<256x96xf32> -> vector<256x96xf32>
    %c0_13 = arith.constant 0 : index
    %c0_14 = arith.constant 0 : index
    %29 = vector.load %arg6[%c0_13, %c0_14] : memref<1x96xf32, #tpu.memory_space<vmem>>, vector<1x96xf32>
    %30 = vector.broadcast %29 : vector<1x96xf32> to vector<256x96xf32>
    %31 = arith.addf %28, %30 : vector<256x96xf32>
    %32 = arith.truncf %31 : vector<256x96xf32> to vector<256x96xbf16>
    %33 = vector.shape_cast %32 : vector<256x96xbf16> to vector<8x32x96xbf16>
    %34 = vector.extract_strided_slice %33 {offsets = [0, 0, 0], sizes = [8, 32, 8], strides = [1, 1, 1]} : vector<8x32x96xbf16> to vector<8x32x8xbf16>
    %35 = vector.extract_strided_slice %33 {offsets = [0, 0, 32], sizes = [8, 32, 8], strides = [1, 1, 1]} : vector<8x32x96xbf16> to vector<8x32x8xbf16>
    %36 = vector.extract_strided_slice %33 {offsets = [0, 0, 64], sizes = [8, 32, 8], strides = [1, 1, 1]} : vector<8x32x96xbf16> to vector<8x32x8xbf16>
    "tpu.trace_start"() <{level = 10 : i32, message = "bnd,bmd->bnm"}> : () -> ()
    %cst_15 = arith.constant dense<0.000000e+00> : vector<8x32x32xf32>
    %37 = tpu.matmul %34, %35, %cst_15 {dimension_numbers = #tpu.dot_dimension_numbers<[2], [2], [1], [1], [0, 0, 0, 1, 1, 1], [0], [0]>} : vector<8x32x8xbf16>, vector<8x32x8xbf16>, vector<8x32x32xf32> -> vector<8x32x32xf32>
    "tpu.trace_stop"() : () -> ()
    %cst_16 = arith.constant 0.353553385 : f32
    %38 = vector.broadcast %cst_16 : f32 to vector<8x32x32xf32>
    %39 = arith.mulf %37, %38 : vector<8x32x32xf32>
    %c0_17 = arith.constant 0 : index
    %c0_18 = arith.constant 0 : index
    %c0_19 = arith.constant 0 : index
    %40 = vector.load %arg2[%c0_17, %c0_18, %c0_19] : memref<4x32x32xf32, #tpu.memory_space<vmem>>, vector<1x32x32xf32>
    %41 = vector.shape_cast %40 : vector<1x32x32xf32> to vector<32x32xf32>
    %42 = vector.shape_cast %41 : vector<32x32xf32> to vector<1x32x32xf32>
    %43 = vector.broadcast %42 : vector<1x32x32xf32> to vector<8x32x32xf32>
    %44 = arith.addf %39, %43 : vector<8x32x32xf32>
    %cst_20 = arith.constant dense<0xFF800000> : vector<8x32xf32>
    %45 = vector.multi_reduction <maximumf>, %44, %cst_20 [2] : vector<8x32x32xf32> to vector<8x32xf32>
    %46 = vector.shape_cast %45 : vector<8x32xf32> to vector<8x32x1xf32>
    %47 = vector.broadcast %46 : vector<8x32x1xf32> to vector<8x32x32xf32>
    %48 = arith.subf %44, %47 : vector<8x32x32xf32>
    %49 = math.exp %48 : vector<8x32x32xf32>
    %cst_21 = arith.constant dense<0.000000e+00> : vector<8x32xf32>
    %50 = vector.multi_reduction <add>, %49, %cst_21 [2] : vector<8x32x32xf32> to vector<8x32xf32>
    %51 = vector.shape_cast %50 : vector<8x32xf32> to vector<8x32x1xf32>
    %52 = tpu.reciprocal %51 {approx = true} : vector<8x32x1xf32> -> vector<8x32x1xf32>
    %53 = vector.broadcast %52 : vector<8x32x1xf32> to vector<8x32x32xf32>
    %54 = arith.mulf %49, %53 : vector<8x32x32xf32>
    %55 = arith.truncf %54 : vector<8x32x32xf32> to vector<8x32x32xbf16>
    "tpu.trace_start"() <{level = 10 : i32, message = "bnm,bmd->bnd"}> : () -> ()
    %cst_22 = arith.constant dense<0.000000e+00> : vector<8x32x8xf32>
    %56 = tpu.matmul %55, %36, %cst_22 {dimension_numbers = #tpu.dot_dimension_numbers<[2], [1], [1], [2], [0, 0, 0, 1, 1, 2], [0], [0]>} : vector<8x32x32xbf16>, vector<8x32x8xbf16>, vector<8x32x8xf32> -> vector<8x32x8xf32>
    "tpu.trace_stop"() : () -> ()
    %57 = vector.shape_cast %56 : vector<8x32x8xf32> to vector<256x8xf32>
    %58 = arith.truncf %57 : vector<256x8xf32> to vector<256x8xbf16>
    %c0_23 = arith.constant 0 : index
    %c0_24 = arith.constant 0 : index
    %59 = vector.load %arg10[%c0_23, %c0_24] : memref<256x32xbf16, #tpu.memory_space<vmem>>, vector<256x8xbf16>
    tpu.vector_store %arg10[%c0_23, %c0_24], %58 {strides = array<i32>} : memref<256x32xbf16, #tpu.memory_space<vmem>>, vector<256x8xbf16>,
    %60 = vector.extract_strided_slice %33 {offsets = [0, 0, 8], sizes = [8, 32, 8], strides = [1, 1, 1]} : vector<8x32x96xbf16> to vector<8x32x8xbf16>
    %61 = vector.extract_strided_slice %33 {offsets = [0, 0, 40], sizes = [8, 32, 8], strides = [1, 1, 1]} : vector<8x32x96xbf16> to vector<8x32x8xbf16>
    %62 = vector.extract_strided_slice %33 {offsets = [0, 0, 72], sizes = [8, 32, 8], strides = [1, 1, 1]} : vector<8x32x96xbf16> to vector<8x32x8xbf16>
    "tpu.trace_start"() <{level = 10 : i32, message = "bnd,bmd->bnm"}> : () -> ()
    %cst_25 = arith.constant dense<0.000000e+00> : vector<8x32x32xf32>
    %63 = tpu.matmul %60, %61, %cst_25 {dimension_numbers = #tpu.dot_dimension_numbers<[2], [2], [1], [1], [0, 0, 0, 1, 1, 1], [0], [0]>} : vector<8x32x8xbf16>, vector<8x32x8xbf16>, vector<8x32x32xf32> -> vector<8x32x32xf32>
    "tpu.trace_stop"() : () -> ()
    %cst_26 = arith.constant 0.353553385 : f32
    %64 = vector.broadcast %cst_26 : f32 to vector<8x32x32xf32>
    %65 = arith.mulf %63, %64 : vector<8x32x32xf32>
    %c1 = arith.constant 1 : index
    %c0_27 = arith.constant 0 : index
    %c0_28 = arith.constant 0 : index
    %66 = vector.load %arg2[%c1, %c0_27, %c0_28] : memref<4x32x32xf32, #tpu.memory_space<vmem>>, vector<1x32x32xf32>
    %67 = vector.shape_cast %66 : vector<1x32x32xf32> to vector<32x32xf32>
    %68 = vector.shape_cast %67 : vector<32x32xf32> to vector<1x32x32xf32>
    %69 = vector.broadcast %68 : vector<1x32x32xf32> to vector<8x32x32xf32>
    %70 = arith.addf %65, %69 : vector<8x32x32xf32>
    %cst_29 = arith.constant dense<0xFF800000> : vector<8x32xf32>
    %71 = vector.multi_reduction <maximumf>, %70, %cst_29 [2] : vector<8x32x32xf32> to vector<8x32xf32>
    %72 = vector.shape_cast %71 : vector<8x32xf32> to vector<8x32x1xf32>
    %73 = vector.broadcast %72 : vector<8x32x1xf32> to vector<8x32x32xf32>
    %74 = arith.subf %70, %73 : vector<8x32x32xf32>
    %75 = math.exp %74 : vector<8x32x32xf32>
    %cst_30 = arith.constant dense<0.000000e+00> : vector<8x32xf32>
    %76 = vector.multi_reduction <add>, %75, %cst_30 [2] : vector<8x32x32xf32> to vector<8x32xf32>
    %77 = vector.shape_cast %76 : vector<8x32xf32> to vector<8x32x1xf32>
    %78 = tpu.reciprocal %77 {approx = true} : vector<8x32x1xf32> -> vector<8x32x1xf32>
    %79 = vector.broadcast %78 : vector<8x32x1xf32> to vector<8x32x32xf32>
    %80 = arith.mulf %75, %79 : vector<8x32x32xf32>
    %81 = arith.truncf %80 : vector<8x32x32xf32> to vector<8x32x32xbf16>
    "tpu.trace_start"() <{level = 10 : i32, message = "bnm,bmd->bnd"}> : () -> ()
    %cst_31 = arith.constant dense<0.000000e+00> : vector<8x32x8xf32>
    %82 = tpu.matmul %81, %62, %cst_31 {dimension_numbers = #tpu.dot_dimension_numbers<[2], [1], [1], [2], [0, 0, 0, 1, 1, 2], [0], [0]>} : vector<8x32x32xbf16>, vector<8x32x8xbf16>, vector<8x32x8xf32> -> vector<8x32x8xf32>
    "tpu.trace_stop"() : () -> ()
    %83 = vector.shape_cast %82 : vector<8x32x8xf32> to vector<256x8xf32>
    %84 = arith.truncf %83 : vector<256x8xf32> to vector<256x8xbf16>
    %c0_32 = arith.constant 0 : index
    %c8 = arith.constant 8 : index
    %85 = vector.load %arg10[%c0_32, %c8] : memref<256x32xbf16, #tpu.memory_space<vmem>>, vector<256x8xbf16>
    tpu.vector_store %arg10[%c0_32, %c8], %84 {strides = array<i32>} : memref<256x32xbf16, #tpu.memory_space<vmem>>, vector<256x8xbf16>,
    %86 = vector.extract_strided_slice %33 {offsets = [0, 0, 16], sizes = [8, 32, 8], strides = [1, 1, 1]} : vector<8x32x96xbf16> to vector<8x32x8xbf16>
    %87 = vector.extract_strided_slice %33 {offsets = [0, 0, 48], sizes = [8, 32, 8], strides = [1, 1, 1]} : vector<8x32x96xbf16> to vector<8x32x8xbf16>
    %88 = vector.extract_strided_slice %33 {offsets = [0, 0, 80], sizes = [8, 32, 8], strides = [1, 1, 1]} : vector<8x32x96xbf16> to vector<8x32x8xbf16>
    "tpu.trace_start"() <{level = 10 : i32, message = "bnd,bmd->bnm"}> : () -> ()
    %cst_33 = arith.constant dense<0.000000e+00> : vector<8x32x32xf32>
    %89 = tpu.matmul %86, %87, %cst_33 {dimension_numbers = #tpu.dot_dimension_numbers<[2], [2], [1], [1], [0, 0, 0, 1, 1, 1], [0], [0]>} : vector<8x32x8xbf16>, vector<8x32x8xbf16>, vector<8x32x32xf32> -> vector<8x32x32xf32>
    "tpu.trace_stop"() : () -> ()
    %cst_34 = arith.constant 0.353553385 : f32
    %90 = vector.broadcast %cst_34 : f32 to vector<8x32x32xf32>
    %91 = arith.mulf %89, %90 : vector<8x32x32xf32>
    %c2 = arith.constant 2 : index
    %c0_35 = arith.constant 0 : index
    %c0_36 = arith.constant 0 : index
    %92 = vector.load %arg2[%c2, %c0_35, %c0_36] : memref<4x32x32xf32, #tpu.memory_space<vmem>>, vector<1x32x32xf32>
    %93 = vector.shape_cast %92 : vector<1x32x32xf32> to vector<32x32xf32>
    %94 = vector.shape_cast %93 : vector<32x32xf32> to vector<1x32x32xf32>
    %95 = vector.broadcast %94 : vector<1x32x32xf32> to vector<8x32x32xf32>
    %96 = arith.addf %91, %95 : vector<8x32x32xf32>
    %cst_37 = arith.constant dense<0xFF800000> : vector<8x32xf32>
    %97 = vector.multi_reduction <maximumf>, %96, %cst_37 [2] : vector<8x32x32xf32> to vector<8x32xf32>
    %98 = vector.shape_cast %97 : vector<8x32xf32> to vector<8x32x1xf32>
    %99 = vector.broadcast %98 : vector<8x32x1xf32> to vector<8x32x32xf32>
    %100 = arith.subf %96, %99 : vector<8x32x32xf32>
    %101 = math.exp %100 : vector<8x32x32xf32>
    %cst_38 = arith.constant dense<0.000000e+00> : vector<8x32xf32>
    %102 = vector.multi_reduction <add>, %101, %cst_38 [2] : vector<8x32x32xf32> to vector<8x32xf32>
    %103 = vector.shape_cast %102 : vector<8x32xf32> to vector<8x32x1xf32>
    %104 = tpu.reciprocal %103 {approx = true} : vector<8x32x1xf32> -> vector<8x32x1xf32>
    %105 = vector.broadcast %104 : vector<8x32x1xf32> to vector<8x32x32xf32>
    %106 = arith.mulf %101, %105 : vector<8x32x32xf32>
    %107 = arith.truncf %106 : vector<8x32x32xf32> to vector<8x32x32xbf16>
    "tpu.trace_start"() <{level = 10 : i32, message = "bnm,bmd->bnd"}> : () -> ()
    %cst_39 = arith.constant dense<0.000000e+00> : vector<8x32x8xf32>
    %108 = tpu.matmul %107, %88, %cst_39 {dimension_numbers = #tpu.dot_dimension_numbers<[2], [1], [1], [2], [0, 0, 0, 1, 1, 2], [0], [0]>} : vector<8x32x32xbf16>, vector<8x32x8xbf16>, vector<8x32x8xf32> -> vector<8x32x8xf32>
    "tpu.trace_stop"() : () -> ()
    %109 = vector.shape_cast %108 : vector<8x32x8xf32> to vector<256x8xf32>
    %110 = arith.truncf %109 : vector<256x8xf32> to vector<256x8xbf16>
    %c0_40 = arith.constant 0 : index
    %c16 = arith.constant 16 : index
    %111 = vector.load %arg10[%c0_40, %c16] : memref<256x32xbf16, #tpu.memory_space<vmem>>, vector<256x8xbf16>
    tpu.vector_store %arg10[%c0_40, %c16], %110 {strides = array<i32>} : memref<256x32xbf16, #tpu.memory_space<vmem>>, vector<256x8xbf16>,
    %112 = vector.extract_strided_slice %33 {offsets = [0, 0, 24], sizes = [8, 32, 8], strides = [1, 1, 1]} : vector<8x32x96xbf16> to vector<8x32x8xbf16>
    %113 = vector.extract_strided_slice %33 {offsets = [0, 0, 56], sizes = [8, 32, 8], strides = [1, 1, 1]} : vector<8x32x96xbf16> to vector<8x32x8xbf16>
    %114 = vector.extract_strided_slice %33 {offsets = [0, 0, 88], sizes = [8, 32, 8], strides = [1, 1, 1]} : vector<8x32x96xbf16> to vector<8x32x8xbf16>
    "tpu.trace_start"() <{level = 10 : i32, message = "bnd,bmd->bnm"}> : () -> ()
    %cst_41 = arith.constant dense<0.000000e+00> : vector<8x32x32xf32>
    %115 = tpu.matmul %112, %113, %cst_41 {dimension_numbers = #tpu.dot_dimension_numbers<[2], [2], [1], [1], [0, 0, 0, 1, 1, 1], [0], [0]>} : vector<8x32x8xbf16>, vector<8x32x8xbf16>, vector<8x32x32xf32> -> vector<8x32x32xf32>
    "tpu.trace_stop"() : () -> ()
    %cst_42 = arith.constant 0.353553385 : f32
    %116 = vector.broadcast %cst_42 : f32 to vector<8x32x32xf32>
    %117 = arith.mulf %115, %116 : vector<8x32x32xf32>
    %c3 = arith.constant 3 : index
    %c0_43 = arith.constant 0 : index
    %c0_44 = arith.constant 0 : index
    %118 = vector.load %arg2[%c3, %c0_43, %c0_44] : memref<4x32x32xf32, #tpu.memory_space<vmem>>, vector<1x32x32xf32>
    %119 = vector.shape_cast %118 : vector<1x32x32xf32> to vector<32x32xf32>
    %120 = vector.shape_cast %119 : vector<32x32xf32> to vector<1x32x32xf32>
    %121 = vector.broadcast %120 : vector<1x32x32xf32> to vector<8x32x32xf32>
    %122 = arith.addf %117, %121 : vector<8x32x32xf32>
    %cst_45 = arith.constant dense<0xFF800000> : vector<8x32xf32>
    %123 = vector.multi_reduction <maximumf>, %122, %cst_45 [2] : vector<8x32x32xf32> to vector<8x32xf32>
    %124 = vector.shape_cast %123 : vector<8x32xf32> to vector<8x32x1xf32>
    %125 = vector.broadcast %124 : vector<8x32x1xf32> to vector<8x32x32xf32>
    %126 = arith.subf %122, %125 : vector<8x32x32xf32>
    %127 = math.exp %126 : vector<8x32x32xf32>
    %cst_46 = arith.constant dense<0.000000e+00> : vector<8x32xf32>
    %128 = vector.multi_reduction <add>, %127, %cst_46 [2] : vector<8x32x32xf32> to vector<8x32xf32>
    %129 = vector.shape_cast %128 : vector<8x32xf32> to vector<8x32x1xf32>
    %130 = tpu.reciprocal %129 {approx = true} : vector<8x32x1xf32> -> vector<8x32x1xf32>
    %131 = vector.broadcast %130 : vector<8x32x1xf32> to vector<8x32x32xf32>
    %132 = arith.mulf %127, %131 : vector<8x32x32xf32>
    %133 = arith.truncf %132 : vector<8x32x32xf32> to vector<8x32x32xbf16>
    "tpu.trace_start"() <{level = 10 : i32, message = "bnm,bmd->bnd"}> : () -> ()
    %cst_47 = arith.constant dense<0.000000e+00> : vector<8x32x8xf32>
    %134 = tpu.matmul %133, %114, %cst_47 {dimension_numbers = #tpu.dot_dimension_numbers<[2], [1], [1], [2], [0, 0, 0, 1, 1, 2], [0], [0]>} : vector<8x32x32xbf16>, vector<8x32x8xbf16>, vector<8x32x8xf32> -> vector<8x32x8xf32>
    "tpu.trace_stop"() : () -> ()
    %135 = vector.shape_cast %134 : vector<8x32x8xf32> to vector<256x8xf32>
    %136 = arith.truncf %135 : vector<256x8xf32> to vector<256x8xbf16>
    %c0_48 = arith.constant 0 : index
    %c24 = arith.constant 24 : index
    %137 = vector.load %arg10[%c0_48, %c24] : memref<256x32xbf16, #tpu.memory_space<vmem>>, vector<256x8xbf16>
    tpu.vector_store %arg10[%c0_48, %c24], %136 {strides = array<i32>} : memref<256x32xbf16, #tpu.memory_space<vmem>>, vector<256x8xbf16>,
    %c0_49 = arith.constant 0 : index
    %c0_50 = arith.constant 0 : index
    %138 = vector.load %arg10[%c0_49, %c0_50] : memref<256x32xbf16, #tpu.memory_space<vmem>>, vector<256x32xbf16>
    %c0_51 = arith.constant 0 : index
    %c0_52 = arith.constant 0 : index
    %139 = vector.load %arg7[%c0_51, %c0_52] : memref<32x32xbf16, #tpu.memory_space<vmem>>, vector<32x32xbf16>
    %cst_53 = arith.constant dense<0.000000e+00> : vector<256x32xf32>
    %140 = tpu.matmul %138, %139, %cst_53 {dimension_numbers = #tpu.dot_dimension_numbers<[1], [0], [0], [1], [0, 0, 1, 1], [], []>} : vector<256x32xbf16>, vector<32x32xbf16>, vector<256x32xf32> -> vector<256x32xf32>
    %c0_54 = arith.constant 0 : index
    %c0_55 = arith.constant 0 : index
    %141 = vector.load %arg8[%c0_54, %c0_55] : memref<1x32xf32, #tpu.memory_space<vmem>>, vector<1x32xf32>
    %142 = vector.broadcast %141 : vector<1x32xf32> to vector<256x32xf32>
    %143 = arith.addf %140, %142 : vector<256x32xf32>
    %144 = vector.shape_cast %143 : vector<256x32xf32> to vector<8x32x32xf32>
    %145 = arith.truncf %144 : vector<8x32x32xf32> to vector<8x32x32xbf16>
    %c0_56 = arith.constant 0 : index
    %c0_57 = arith.constant 0 : index
    %c0_58 = arith.constant 0 : index
    %146 = vector.load %arg9[%c0_56, %c0_57, %c0_58] : memref<8x32x32xbf16, #tpu.memory_space<vmem>>, vector<8x32x32xbf16>
    tpu.vector_store %arg9[%c0_56, %c0_57, %c0_58], %145 {strides = array<i32>} : memref<8x32x32xbf16, #tpu.memory_space<vmem>>, vector<8x32x32xbf16>,
    return
  }
  func.func @transform_0(%arg0: i32) -> (i32, i32, i32) {
    %c0_i32 = arith.constant 0 : i32
    %c0_i32_0 = arith.constant 0 : i32
    %c0_i32_1 = arith.constant 0 : i32
    return %arg0, %c0_i32, %c0_i32_0 : i32, i32, i32
  }
  func.func @transform_1(%arg0: i32) -> (i32, i32, i32) {
    %c0_i32 = arith.constant 0 : i32
    %c0_i32_0 = arith.constant 0 : i32
    %c0_i32_1 = arith.constant 0 : i32
    %c0_i32_2 = arith.constant 0 : i32
    return %c0_i32, %c0_i32_0, %c0_i32_1 : i32, i32, i32
  }
  func.func @transform_2(%arg0: i32) -> (i32, i32) {
    %c0_i32 = arith.constant 0 : i32
    %c0_i32_0 = arith.constant 0 : i32
    %c0_i32_1 = arith.constant 0 : i32
    return %c0_i32, %c0_i32_0 : i32, i32
  }
  func.func @transform_3(%arg0: i32) -> (i32, i32) {
    %c0_i32 = arith.constant 0 : i32
    %c0_i32_0 = arith.constant 0 : i32
    %c0_i32_1 = arith.constant 0 : i32
    return %c0_i32, %c0_i32_0 : i32, i32
  }
  func.func @transform_4(%arg0: i32) -> (i32, i32) {
    %c0_i32 = arith.constant 0 : i32
    %c0_i32_0 = arith.constant 0 : i32
    %c0_i32_1 = arith.constant 0 : i32
    return %c0_i32, %c0_i32_0 : i32, i32
  }
  func.func @transform_5(%arg0: i32) -> (i32, i32) {
    %c0_i32 = arith.constant 0 : i32
    %c0_i32_0 = arith.constant 0 : i32
    %c0_i32_1 = arith.constant 0 : i32
    return %c0_i32, %c0_i32_0 : i32, i32
  }
  func.func @transform_6(%arg0: i32) -> (i32, i32) {
    %c0_i32 = arith.constant 0 : i32
    %c0_i32_0 = arith.constant 0 : i32
    %c0_i32_1 = arith.constant 0 : i32
    return %c0_i32, %c0_i32_0 : i32, i32
  }
  func.func @transform_7(%arg0: i32) -> (i32, i32) {
    %c0_i32 = arith.constant 0 : i32
    %c0_i32_0 = arith.constant 0 : i32
    %c0_i32_1 = arith.constant 0 : i32
    return %c0_i32, %c0_i32_0 : i32, i32
  }
  func.func @transform_8(%arg0: i32) -> (i32, i32, i32) {
    %c0_i32 = arith.constant 0 : i32
    %c0_i32_0 = arith.constant 0 : i32
    %c0_i32_1 = arith.constant 0 : i32
    return %arg0, %c0_i32, %c0_i32_0 : i32, i32, i32
  }
}

</mosaic_0001>

<bundles_post_ra>
// kernel: tpu_custom_call.1
= control target key start
LH: loop header
LB: loop body
LE: loop exit
PB: predicated region body
PF: predicated region fallthrough
CT: control target
= control target key end

     0   :  { %s14565_s0 = inlined_call_operand.hbm [shape: f32[16,32,32], index: 0, kind: input, shape index: {}]   ;;  %s14566_s1 = inlined_call_operand.hbm [shape: f32[4,32,32], index: 1, kind: input, shape index: {}]   ;;  %s14567_s2 = inlined_call_operand.vmem [shape: f32[1,32], index: 2, kind: input, shape index: {}]   ;;  %s14568_s3 = inlined_call_operand.vmem [shape: f32[1,32], index: 3, kind: input, shape index: {}]   ;;  %s14569_s4 = inlined_call_operand.hbm [shape: bf16[32,96], index: 4, kind: input, shape index: {}]   ;;  %s14570_s5 = inlined_call_operand.vmem [shape: f32[1,96], index: 5, kind: input, shape index: {}]   ;;  %s14571_s6 = inlined_call_operand.hbm [shape: bf16[32,32], index: 6, kind: input, shape index: {}]   ;;  %s14572_s7 = inlined_call_operand.vmem [shape: f32[1,32], index: 7, kind: input, shape index: {}]   ;;  %s14573_s8 = inlined_call_operand.hbm [shape: bf16[16,32,32], index: 8, kind: output, shape index: {}]  }
   0x1   :  { %14616 = sst [smem:[#allocation72_spill]] %s14566_s1 }
   0x2   :  { %14617 = sst [smem:[#allocation73_spill]] %s14569_s4 }
   0x3   :  { %13 = vsyncpa [#allocation4], 0 }
   0x4   :  { %15 = vsyncpa [#allocation4 + $0x1], 0 }
   0x5   :  { %16 = vsyncpa [#allocation7], 0 }
   0x6   :  { %17 = vsyncpa [#allocation10], 0 }
   0x7   :  { %18 = vsyncpa [#allocation5], 0 }
   0x8   :  { %20 = vsyncpa [#allocation5 + $0x1], 0  ;;  %s10929_s27 = smov 0   ;;  %s10931_s28 = smov 0  }
   0x9   :  { %s10933_s29 = smov 0   ;;  %s10935_s30 = smov 0  }
   0xa LB: > { %s10950_s9 = sadd.s32 4294967295, %s10858_s30   ;;  %s8514_s10 = sadd.s32 4294967294, %s10858_s30   ;;  %s10858_s30 = sphi %s10935_s30, %s14802_s30   ;;  %s10854_s29 = sphi %s10933_s29, %s14801_s29   ;;  %s10850_s28 = sphi %s10931_s28, %s14800_s28   ;;  %s10846_s27 = sphi %s10929_s27, %s14799_s27  }
   0xb   : > { %p46_p0 = scmp.ne.s32.totalorder %s10850_s28, %s10846_s27  ;;  %p14576_p1 = scmp.eq.s32.totalorder %s10950_s9, 0 }
   0xc   : > { %p217_p2 = scmp.eq.s32.totalorder %s10950_s9, 1  ;;  %p223_p3 = scmp.eq.s32.totalorder %s8514_s10, 1 }
   0xd   : > { %p10959_p4 = por %p14576_p1, %p46_p0  ;;  %p8515_p5 = scmp.ge.s32.totalorder %s10858_s30, 1 }
   0xe   : > { %p10964_p6 = por %p223_p3, %p46_p0  ;;  %p230_p7 = scmp.lt.s32.totalorder %s10858_s30, 3 }
   0xf   : > { %s14618_s11 = scalar_select %p10959_p4, 1, 0 }
  0x10   : > { %s14619_s12 = scalar_select %p10964_p6, 1, 0 }
  0x11   : > { %p10969_p8 = pnand %p8515_p5, %p230_p7  ;;  %s10860_s14 = smov [#allocation6]  }
  0x12   : > { %s242_s15 = sshll.u32 %s10860_s14, 4  ;;  %s10861_s17 = smov [#allocation8]   ;;  %s243_s15 = int_to_ptr.vmem [resolvable:$true] %s242_s15 }
  0x13   : > { %s14620_s13 = scalar_select %p10969_p8, 1, 0 }
  0x14   : > { %p10004_p9 = pneg %p10969_p8  ;;  %s261_s18 = sshll.u32 %s10861_s17, 4  ;;  %s262_s18 = int_to_ptr.vmem [resolvable:$true] %s261_s18 }
  0x15   : > { %s10691_s19 = scalar_lea.vmem %s243_s15, 2048  ;;  %p10699_p5 = scmp.lt.s32.totalorder %s243_s15, %s243_s15 }
  0x16   : > { %p10978_p11 = pnand %p10004_p9, %p14576_p1  ;;  %p10692_p13 = scmp.ne.s32.totalorder %s243_s15, %s10691_s19 }
  0x17   : > { %p10700_p7 = scmp.lt.s32.totalorder %s10691_s19, %s10691_s19 }
  0x18   : > { %p10682_p12 = pneg %p10978_p11 }
  0x19   : > { %p10701_p10 = por %p10700_p7, %p10699_p5 }
  0x1a   : > { %p10694_p0 = pnand %p10692_p13, %p10682_p12 }
  0x1c   : > { %p10695_p3 = pneg %p10694_p0 }
  0x1e   : > { %p10702_p9 = pnand %p10701_p10, %p10695_p3 }
  0x20   : > { %10705 = shalt.err (!%p10702_p9)
}
  0x21   : > { %s14574_s20 = smov 128   ;;  %s14575_s21 = smov 8  }
  0x22   : > { %s14622_s1 = sld [smem:[#allocation72_spill]]  ;;  %s10717_s24 = scalar_lea.vmem %s262_s18, 256 }
  0x23   : > { %p10718_p13 = scmp.ne.s32.totalorder %s262_s18, %s10717_s24  ;;  %p10725_p10 = scmp.lt.s32.totalorder %s262_s18, %s262_s18 }
  0x24   : > { %p10726_p3 = scmp.lt.s32.totalorder %s10717_s24, %s10717_s24 }
  0x25   : > { %p10720_p0 = pnand %p10718_p13, %p10682_p12 }
  0x26   : > { %p10727_p7 = por %p10726_p3, %p10725_p10 }
  0x27   : > { %p10721_p5 = pneg %p10720_p0 }
  0x28   : > { %10007 = dma.hbm_to_vmem [thread:$0]  (!%p10978_p11), %s14622_s1, 2048, %s243_s15, [#allocation7], %s14574_s20, %s14574_s20, %s14575_s21  }
  0x29   : > { %p10728_p9 = pnand %p10727_p7, %p10721_p5 }
  0x2b   : > { %10731 = shalt.err (!%p10728_p9)
}
  0x2c   : > { %s10864_s25 = smov 64   ;;  %s10865_s26 = smov 4  }
  0x2d   : > { %s14623_s4 = sld [smem:[#allocation73_spill]]  ;;  %s10866_s15 = smov [#allocation9]  }
  0x2e   : > { %s277_s17 = sshll.u32 %s10866_s15, 4  ;;  %s11004_s19 = sadd.s32 1, %s10858_s30   ;;  %s278_s17 = int_to_ptr.vmem [resolvable:$true] %s277_s17 }
  0x2f   : > { %s10743_s22 = scalar_lea.vmem %s278_s17, 256  ;;  %p10751_p10 = scmp.lt.s32.totalorder %s278_s17, %s278_s17 }
  0x30   : > { %p10744_p13 = scmp.ne.s32.totalorder %s278_s17, %s10743_s22  ;;  %p10752_p3 = scmp.lt.s32.totalorder %s10743_s22, %s10743_s22 }
  0x32   : > { %p10746_p0 = pnand %p10744_p13, %p10682_p12  ;;  %p10753_p7 = por %p10752_p3, %p10751_p10 }
  0x33   : > { %10010 = dma.hbm_to_vmem [thread:$0]  (!%p10978_p11), %s14623_s4, 256, %s262_s18, [#allocation7], %s10864_s25, %s10864_s25, %s10865_s26  }
  0x34   : > { %p10747_p5 = pneg %p10746_p0 }
  0x36   : > { %p10754_p9 = pnand %p10753_p7, %p10747_p5 }
  0x38   : > { %10757 = shalt.err (!%p10754_p9)
}
  0x39   : > { %10013 = dma.hbm_to_vmem [thread:$0]  (!%p10978_p11), %s14571_s6, 256, %s278_s17, [#allocation10], %s10864_s25, %s10864_s25, %s10865_s26  }
  0x3a   : > { %s30_s24 = ssub.s32 %s10858_s30, %s11004_s19  ;;  %s33_s10 = sadd.s32 1, %s10854_s29 }
  0x3b   : > { %p31_p12 = scmp.eq.s32.totalorder %s30_s24, 0  ;;  %p40_p13 = scmp.ne.s32.totalorder %s10854_s29, %s10850_s28 }
  0x3c   : > { %p41_p0 = scmp.eq.s32.totalorder %s10858_s30, 0  ;;  %p10025_p5 = scmp.lt.s32.totalorder %s10858_s30, 2 }
  0x3d   : > { %s11022_s16 = scalar_select %p31_p12, %s10854_s29, %s33_s10  }
  0x3e   : > { %p42_p10 = por %p41_p0, %p40_p13  ;;  %p11026_p3 = por %p217_p2, %p40_p13 }
  0x3f   : > { %s294_s15 = sand.u32 1, %s10854_s29   ;;  %s8881_s22 = sshll.u32 %s10858_s30, 12 }
  0x40   : > { %s14624_s14 = scalar_select %p11026_p3, 1, 0 }
  0x41   : > { %s8520_s23 = sshll.u32 %s294_s15, 8  ;;  %s11035_s25 = scalar_lea.hbm %s14565_s0, %s8881_s22 }
  0x42   : > { %s298_s26 = scalar_lea.vmem [#allocation3], %s8520_s23  ;;  %p11037_p11 = pnand %p10025_p5, %p42_p10 }
  0x43   : > { %s306_s17 = sshll.u32 %s298_s26, 4  ;;  %s11043_s10 = scalar_lea.sflag [#allocation4], %s294_s15  ;;  %s11041_s17 = int_to_ptr.vmem [resolvable:$true] %s306_s17 }
  0x44   : > { %s10758_s21 = scalar_lea.hbm %s11035_s25, 4096  ;;  %p10760_p7 = pneg %p11037_p11 }
  0x45   : > { %p10759_p2 = scmp.ne.s32.totalorder %s11035_s25, %s10758_s21  ;;  %s10763_s23 = scalar_lea.hbm %s14565_s0, 8192 }
  0x46   : > { %p10764_p13 = scmp.lt.s32.totalorder %s11035_s25, %s14565_s0  ;;  %p10765_p0 = scmp.lt.s32.totalorder %s10763_s23, %s10758_s21 }
  0x47   : > { %p10761_p9 = pnand %p10760_p7, %p10759_p2 }
  0x48   : > { %p10766_p5 = por %p10765_p0, %p10764_p13 }
  0x49   : > { %p10762_p12 = pneg %p10761_p9 }
  0x4b   : > { %p10767_p10 = pnand %p10766_p5, %p10762_p12 }
  0x4d   : > { %10770 = shalt.err (!%p10767_p10)
}
  0x4e   : > { %s10771_s15 = scalar_lea.vmem %s11041_s17, 4096  ;;  %s10867_s1 = smov [#allocation3]  }
  0x4f   : > { %p10772_p1 = scmp.ne.s32.totalorder %s11041_s17, %s10771_s15  ;;  %s10776_s4 = sshll.u32 %s10867_s1, 4  ;;  %s10777_s4 = int_to_ptr.vmem [resolvable:$false] %s10776_s4 }
  0x50   : > { %s10778_s20 = scalar_lea.vmem %s10777_s4, 8192  ;;  %p10779_p9 = scmp.lt.s32.totalorder %s11041_s17, %s10777_s4 }
  0x51   : > { %p10774_p6 = pnand %p10772_p1, %p10760_p7  ;;  %p10780_p3 = scmp.lt.s32.totalorder %s10778_s20, %s10771_s15 }
  0x53   : > { %p10775_p2 = pneg %p10774_p6  ;;  %p10781_p4 = por %p10780_p3, %p10779_p9 }
  0x55   : > { %p10782_p8 = pnand %p10781_p4, %p10775_p2 }
  0x57   : > { %10785 = shalt.err (!%p10782_p8)
}
  0x58   : > { %s14626_s21 = smov 8   ;;  %s14627_s22 = smov 128  }
  0x59   : > { %10017 = dma.hbm_to_vmem [thread:$0]  (!%p11037_p11), %s11035_s25, 4096, %s11041_s17, %s11043_s10, %s14627_s22, %s14627_s22, %s14626_s21  }
  0x5a   : > { %p14628_p1 = scmp.ne.s32.totalorder %s14620_s13, 0 }
  0x5c   : > { %318 = sbr.rel (%p14628_p1) target bundleno = 3892 (0xf34), region = 52 }
  0x61   : > { %s11070_s1 = sand.u32 1, %s10850_s28   ;;  %p14629_p4 = scmp.ne.s32.totalorder %s14618_s11, 0 }
  0x62   : > { %s8525_s4 = sshll.u32 %s11070_s1, 8  ;;  %s321_s23 = scalar_lea.sflag [#allocation4], %s11070_s1 }
  0x63   : > { %s11074_s18 = scalar_lea.vmem [#allocation3], %s8525_s4 }
  0x64   : > { %10829 = dma.done.wait (%p14629_p4), %s321_s23, 4096  }
  0x65   : > { %10831 = vsyncadd (%p14629_p4), %s321_s23, 4294963200  ;;  %p14630_p6 = scmp.eq.s32.totalorder %s10950_s9, 0 }
  0x67   : > { %10833 = dma.done.wait (%p14630_p6), [#allocation7], 2304   ;;  %p14631_p8 = pmov %p14630_p6 }
  0x68   : > { %p14632_p3 = pmov %p14630_p6 }
  0x69   : > { %10835 = vsyncadd (%p14631_p8), [#allocation7], 4294964992 }
  0x6a   : > { %10837 = dma.done.wait (%p14632_p3), [#allocation10], 256   ;;  %p14633_p11 = pmov %p14632_p3 }
  0x6b   : > { %vm404_vm0 = vcmask 261120   ;;  %v11089_v0 = vld [vmem:[%s11074_s18] sm:$0xff]  ;;  %v11092_v1 = vld [vmem:[%s11074_s18 + $0x10] sm:$0xff]  ;;  %v11095_v2 = vld [vmem:[%s11074_s18 + $0x8] sm:$0xff]  ;;  %vm1170_vm1 = vcmask 64512   ;;  %s10868_s26 = smov 96  }
  0x6c   : > { %10839 = vsyncadd (%p14633_p11), [#allocation10], 4294967040  ;;  %v405_v3 = vsel %vm404_vm0, %v11089_v0, 0.0  ;;  %v411_v4 = vsel %vm404_vm0, %v11092_v1, 0.0  ;;  %v11102_v5 = vld [vmem:[%s11074_s18 + $0x18] sm:$0xff]  ;;  %v408_v6 = vsel %vm404_vm0, %v11095_v2, 0.0 }
  0x6d   : > { %406 = vadd.xlane.f32.xlu0 %v405_v3  ;;  %412 = vadd.xlane.f32.xlu1 %v411_v4  ;;  %v414_v7 = vsel %vm404_vm0, %v11102_v5, 0.0  ;;  %v11109_v8 = vld [vmem:[%s11074_s18 + $0x20] sm:$0xff]  ;;  %v11112_v9 = vld [vmem:[%s11074_s18 + $0x28] sm:$0xff]  ;;  %v11119_v12 = vld [vmem:[%s11074_s18 + $0x30] sm:$0xff]  ;;  %s10869_s15 = smov 64   ;;  %s10870_s20 = smov 88  }
  0x6e   : > { %v417_v10 = vsel %vm404_vm0, %v11109_v8, 0.0  ;;  %v420_v11 = vsel %vm404_vm0, %v11112_v9, 0.0  ;;  %v11122_v13 = vld [vmem:[%s11074_s18 + $0x38] sm:$0xff]  ;;  %v423_v14 = vsel %vm404_vm0, %v11119_v12, 0.0  ;;  %v11129_v16 = vld [vmem:[%s11074_s18 + $0x40] sm:$0xff]  ;;  %v11132_v17 = vld [vmem:[%s11074_s18 + $0x48] sm:$0xff] }
  0x6f   : > { %v426_v15 = vsel %vm404_vm0, %v11122_v13, 0.0  ;;  %v429_v18 = vsel %vm404_vm0, %v11129_v16, 0.0  ;;  %v432_v19 = vsel %vm404_vm0, %v11132_v17, 0.0  ;;  %v11139_v20 = vld [vmem:[%s11074_s18 + $0x50] sm:$0xff]  ;;  %v11142_v21 = vld [vmem:[%s11074_s18 + $0x58] sm:$0xff]  ;;  %v11149_v24 = vld [vmem:[%s11074_s18 + $0x60] sm:$0xff] }
  0x70   : > { %v435_v22 = vsel %vm404_vm0, %v11139_v20, 0.0  ;;  %v438_v23 = vsel %vm404_vm0, %v11142_v21, 0.0  ;;  %v11152_v25 = vld [vmem:[%s11074_s18 + $0x68] sm:$0xff]  ;;  %v441_v26 = vsel %vm404_vm0, %v11149_v24, 0.0  ;;  %v11159_v28 = vld [vmem:[%s11074_s18 + $0x70] sm:$0xff]  ;;  %v11162_v29 = vld [vmem:[%s11074_s18 + $0x78] sm:$0xff] }
  0x71   : > { %409 = vadd.xlane.f32.xlu0 %v408_v6  ;;  %415 = vadd.xlane.f32.xlu1 %v414_v7  ;;  %v444_v27 = vsel %vm404_vm0, %v11152_v25, 0.0  ;;  %v447_v30 = vsel %vm404_vm0, %v11159_v28, 0.0  ;;  %v450_v31 = vsel %vm404_vm0, %v11162_v29, 0.0  ;;  %v11169_v32 = vld [vmem:[%s11074_s18 + $0x80] sm:$0xff]  ;;  %v11172_v33 = vld [vmem:[%s11074_s18 + $0x88] sm:$0xff]  ;;  %v11179_v36 = vld [vmem:[%s11074_s18 + $0x90] sm:$0xff] }
  0x72   : > { %v453_v34 = vsel %vm404_vm0, %v11169_v32, 0.0  ;;  %v456_v35 = vsel %vm404_vm0, %v11172_v33, 0.0  ;;  %v11182_v37 = vld [vmem:[%s11074_s18 + $0x98] sm:$0xff]  ;;  %v459_v38 = vsel %vm404_vm0, %v11179_v36, 0.0  ;;  %v11189_v40 = vld [vmem:[%s11074_s18 + $0xa0] sm:$0xff]  ;;  %v11192_v41 = vld [vmem:[%s11074_s18 + $0xa8] sm:$0xff] }
  0x73   : > { %v462_v39 = vsel %vm404_vm0, %v11182_v37, 0.0  ;;  %v465_v42 = vsel %vm404_vm0, %v11189_v40, 0.0  ;;  %v468_v43 = vsel %vm404_vm0, %v11192_v41, 0.0  ;;  %v11199_v44 = vld [vmem:[%s11074_s18 + $0xb0] sm:$0xff]  ;;  %v11202_v45 = vld [vmem:[%s11074_s18 + $0xb8] sm:$0xff]  ;;  %v11209_v48 = vld [vmem:[%s11074_s18 + $0xc0] sm:$0xff] }
  0x74   : > { %v471_v46 = vsel %vm404_vm0, %v11199_v44, 0.0  ;;  %v474_v47 = vsel %vm404_vm0, %v11202_v45, 0.0  ;;  %v11212_v49 = vld [vmem:[%s11074_s18 + $0xc8] sm:$0xff]  ;;  %v477_v50 = vsel %vm404_vm0, %v11209_v48, 0.0  ;;  %v11219_v52 = vld [vmem:[%s11074_s18 + $0xd0] sm:$0xff]  ;;  %v11222_v53 = vld [vmem:[%s11074_s18 + $0xd8] sm:$0xff] }
  0x75   : > { %418 = vadd.xlane.f32.xlu0 %v417_v10  ;;  %421 = vadd.xlane.f32.xlu1 %v420_v11  ;;  %v480_v51 = vsel %vm404_vm0, %v11212_v49, 0.0  ;;  %v483_v54 = vsel %vm404_vm0, %v11219_v52, 0.0  ;;  %v486_v55 = vsel %vm404_vm0, %v11222_v53, 0.0  ;;  %v11229_v56 = vld [vmem:[%s11074_s18 + $0xe0] sm:$0xff]  ;;  %v11232_v57 = vld [vmem:[%s11074_s18 + $0xe8] sm:$0xff]  ;;  %s10871_s21 = smov 120  }
  0x76   : > { %v489_v58 = vsel %vm404_vm0, %v11229_v56, 0.0  ;;  %v492_v59 = vsel %vm404_vm0, %v11232_v57, 0.0  ;;  %s10872_s22 = smov 56   ;;  %s10873_s4 = smov 80   ;;  %vm2753_vm2 = vcmask 60416   ;;  %vm4455_vm3 = vcmask 126016  }
  0x77   : > { %s10874_s23 = smov 112   ;;  %s10876_s11 = smov 72   ;;  %vm6157_vm4 = vcmask 191616   ;;  %vm7859_vm5 = vcmask 257216   ;;  %vm8364_vm6 = vcmask 257024  }
  0x78   : > { %s10877_s13 = smov 104   ;;  %s10878_s25 = smov 40  }
  0x79   : > { %424 = vadd.xlane.f32.xlu0 %v423_v14  ;;  %427 = vadd.xlane.f32.xlu1 %v426_v15  ;;  %s10879_s17 = smov 8   ;;  %s10880_s24 = smov 16  }
  0x7a   : > { %s10881_s10 = smov 24   ;;  %p14796_p12 = scmp.ne.s32.totalorder %s14624_s14, 0 }
  0x7d   : > { %430 = vadd.xlane.f32.xlu0 %v429_v18  ;;  %433 = vadd.xlane.f32.xlu1 %v432_v19 }
  0x81   : > { %436 = vadd.xlane.f32.xlu0 %v435_v22  ;;  %439 = vadd.xlane.f32.xlu1 %v438_v23 }
  0x85   : > { %442 = vadd.xlane.f32.xlu0 %v441_v26  ;;  %445 = vadd.xlane.f32.xlu1 %v444_v27 }
  0x89   : > { %448 = vadd.xlane.f32.xlu0 %v447_v30  ;;  %451 = vadd.xlane.f32.xlu1 %v450_v31  ;;  %v11259_v31 = vld [vmem:[%s11074_s18 + $0xf0] sm:$0xff] }
  0x8d   : > { %454 = vadd.xlane.f32.xlu0 %v453_v34  ;;  %457 = vadd.xlane.f32.xlu1 %v456_v35 }
  0x91   : > { %460 = vadd.xlane.f32.xlu0 %v459_v38  ;;  %463 = vadd.xlane.f32.xlu1 %v462_v39  ;;  %v495_v38 = vsel %vm404_vm0, %v11259_v31, 0.0 }
  0x95   : > { %466 = vadd.xlane.f32.xlu0 %v465_v42  ;;  %469 = vadd.xlane.f32.xlu1 %v468_v43 }
  0x99   : > { %472 = vadd.xlane.f32.xlu0 %v471_v46  ;;  %475 = vadd.xlane.f32.xlu1 %v474_v47 }
  0x9d   : > { %478 = vadd.xlane.f32.xlu0 %v477_v50  ;;  %481 = vadd.xlane.f32.xlu1 %v480_v51  ;;  %v11274_v50 = vld [vmem:[%s11074_s18 + $0xf8] sm:$0xff]  ;;  %s10875_s18 = smov 48  }
  0xa1   : > { %484 = vadd.xlane.f32.xlu0 %v483_v54  ;;  %487 = vadd.xlane.f32.xlu1 %v486_v55  ;;  %v498_v54 = vsel %vm404_vm0, %v11274_v50, 0.0 }
  0xa5   : > { %490 = vadd.xlane.f32.xlu0 %v489_v58  ;;  %493 = vadd.xlane.f32.xlu1 %v492_v59 }
  0xf6   : > { %v407_v60 = vpop.xlane.xlu0 %406  ;;  %v413_v61 = vpop.xlane.xlu1 %412 }
  0xf7   : > { %v502_v62 = vmul.f32 0.03125, %v407_v60  ;;  %v504_v63 = vmul.f32 0.03125, %v413_v61 }
  0xf9   : > { %v11239_v3 = vsub.f32 %v11089_v0, %v502_v62  ;;  %v11242_v4 = vsub.f32 %v11092_v1, %v504_v63 }
  0xfa   : > { %v410_v6 = vpop.xlane.xlu0 %409  ;;  %v416_v7 = vpop.xlane.xlu1 %415 }
  0xfb   : > { %v503_v10 = vmul.f32 0.03125, %v410_v6  ;;  %v505_v11 = vmul.f32 0.03125, %v416_v7  ;;  %v566_v14 = vmul.f32 %v11239_v3, %v11239_v3  ;;  %v568_v15 = vmul.f32 %v11242_v4, %v11242_v4 }
  0xfd   : > { %v11249_v18 = vsub.f32 %v11095_v2, %v503_v10  ;;  %v11252_v0 = vsub.f32 %v11102_v5, %v505_v11  ;;  %v598_v1 = vsel %vm404_vm0, %v566_v14, 0.0  ;;  %v604_v19 = vsel %vm404_vm0, %v568_v15, 0.0 }
  0xfe   : > { %599 = vadd.xlane.f32.xlu0 %v598_v1  ;;  %v419_v22 = vpop.xlane.xlu0 %418  ;;  %v422_v23 = vpop.xlane.xlu1 %421 }
  0xff   : > { %v567_v26 = vmul.f32 %v11249_v18, %v11249_v18  ;;  %v506_v27 = vmul.f32 0.03125, %v419_v22  ;;  %v507_v30 = vmul.f32 0.03125, %v422_v23  ;;  %v569_v2 = vmul.f32 %v11252_v0, %v11252_v0 }
 0x101   : > { %v601_v5 = vsel %vm404_vm0, %v567_v26, 0.0  ;;  %v11265_v34 = vsub.f32 %v11109_v8, %v506_v27  ;;  %v11268_v35 = vsub.f32 %v11112_v9, %v507_v30  ;;  %v607_v43 = vsel %vm404_vm0, %v569_v2, 0.0 }
 0x102   : > { %605 = vadd.xlane.f32.xlu0 %v604_v19  ;;  %602 = vadd.xlane.f32.xlu1 %v601_v5  ;;  %v425_v39 = vpop.xlane.xlu0 %424  ;;  %v428_v42 = vpop.xlane.xlu1 %427 }
 0x103   : > { %v508_v46 = vmul.f32 0.03125, %v425_v39  ;;  %v509_v47 = vmul.f32 0.03125, %v428_v42  ;;  %v570_v8 = vmul.f32 %v11265_v34, %v11265_v34  ;;  %v571_v59 = vmul.f32 %v11268_v35, %v11268_v35 }
 0x105   : > { %v11279_v51 = vsub.f32 %v11119_v12, %v508_v46  ;;  %v11282_v9 = vsub.f32 %v11122_v13, %v509_v47  ;;  %v610_v60 = vsel %vm404_vm0, %v570_v8, 0.0  ;;  %v613_v6 = vsel %vm404_vm0, %v571_v59, 0.0 }
 0x106   : > { %496 = vadd.xlane.f32.xlu0 %v495_v38  ;;  %608 = vadd.xlane.f32.xlu1 %v607_v43  ;;  %v431_v55 = vpop.xlane.xlu0 %430  ;;  %v434_v58 = vpop.xlane.xlu1 %433 }
 0x107   : > { %v510_v61 = vmul.f32 0.03125, %v431_v55  ;;  %v511_v62 = vmul.f32 0.03125, %v434_v58  ;;  %v572_v12 = vmul.f32 %v11279_v51, %v11279_v51  ;;  %v573_v11 = vmul.f32 %v11282_v9, %v11282_v9 }
 0x109   : > { %v11292_v63 = vsub.f32 %v11129_v16, %v510_v61  ;;  %v11295_v13 = vsub.f32 %v11132_v17, %v511_v62  ;;  %v616_v14 = vsel %vm404_vm0, %v572_v12, 0.0  ;;  %v619_v22 = vsel %vm404_vm0, %v573_v11, 0.0 }
 0x10a   : > { %499 = vadd.xlane.f32.xlu1 %v498_v54  ;;  %611 = vadd.xlane.f32.xlu0 %v610_v60  ;;  %v437_v7 = vpop.xlane.xlu0 %436  ;;  %v440_v10 = vpop.xlane.xlu1 %439 }
 0x10b   : > { %v512_v15 = vmul.f32 0.03125, %v437_v7  ;;  %v513_v1 = vmul.f32 0.03125, %v440_v10  ;;  %v574_v16 = vmul.f32 %v11292_v63, %v11292_v63  ;;  %v575_v27 = vmul.f32 %v11295_v13, %v11295_v13 }
 0x10d   : > { %v11304_v19 = vsub.f32 %v11139_v20, %v512_v15  ;;  %v11307_v17 = vsub.f32 %v11142_v21, %v513_v1  ;;  %v622_v30 = vsel %vm404_vm0, %v574_v16, 0.0  ;;  %v625_v39 = vsel %vm404_vm0, %v575_v27, 0.0 }
 0x10e   : > { %614 = vadd.xlane.f32.xlu1 %v613_v6  ;;  %617 = vadd.xlane.f32.xlu0 %v616_v14  ;;  %v443_v23 = vpop.xlane.xlu0 %442  ;;  %v446_v26 = vpop.xlane.xlu1 %445 }
 0x10f   : > { %v514_v2 = vmul.f32 0.03125, %v443_v23  ;;  %v515_v5 = vmul.f32 0.03125, %v446_v26  ;;  %v576_v20 = vmul.f32 %v11304_v19, %v11304_v19  ;;  %v577_v46 = vmul.f32 %v11307_v17, %v11307_v17 }
 0x111   : > { %v11316_v38 = vsub.f32 %v11149_v24, %v514_v2  ;;  %v11319_v21 = vsub.f32 %v11152_v25, %v515_v5  ;;  %v628_v47 = vsel %vm404_vm0, %v576_v20, 0.0  ;;  %v631_v58 = vsel %vm404_vm0, %v577_v46, 0.0 }
 0x112   : > { %620 = vadd.xlane.f32.xlu1 %v619_v22  ;;  %623 = vadd.xlane.f32.xlu0 %v622_v30  ;;  %v449_v42 = vpop.xlane.xlu0 %448  ;;  %v452_v43 = vpop.xlane.xlu1 %451 }
 0x113   : > { %v516_v8 = vmul.f32 0.03125, %v449_v42  ;;  %v517_v54 = vmul.f32 0.03125, %v452_v43  ;;  %v578_v24 = vmul.f32 %v11316_v38, %v11316_v38  ;;  %v579_v61 = vmul.f32 %v11319_v21, %v11319_v21  ;;  %v10084_v43 = vld [vmem:[#allocation8 + $0x8] sm:$0xff]  }
 0x114   : > { %9336 = vmatprep.subr.bf16.mxu0 %v10084_v43 }
 0x115   : > { %v11328_v55 = vsub.f32 %v11159_v28, %v516_v8  ;;  %v11331_v25 = vsub.f32 %v11162_v29, %v517_v54  ;;  %v634_v62 = vsel %vm404_vm0, %v578_v24, 0.0  ;;  %v637_v10 = vsel %vm404_vm0, %v579_v61, 0.0  ;;  %9337 = vmatpush3.bf16.msra.mxu0 %v10084_v43 }
 0x116   : > { %626 = vadd.xlane.f32.xlu1 %v625_v39  ;;  %629 = vadd.xlane.f32.xlu0 %v628_v47  ;;  %v455_v59 = vpop.xlane.xlu0 %454  ;;  %v458_v60 = vpop.xlane.xlu1 %457 }
 0x117   : > { %v518_v12 = vmul.f32 0.03125, %v455_v59  ;;  %v519_v6 = vmul.f32 0.03125, %v458_v60  ;;  %v580_v28 = vmul.f32 %v11328_v55, %v11328_v55  ;;  %v581_v15 = vmul.f32 %v11331_v25, %v11331_v25 }
 0x119   : > { %v11340_v7 = vsub.f32 %v11169_v32, %v518_v12  ;;  %v11343_v29 = vsub.f32 %v11172_v33, %v519_v6  ;;  %v640_v1 = vsel %vm404_vm0, %v580_v28, 0.0  ;;  %v643_v26 = vsel %vm404_vm0, %v581_v15, 0.0 }
 0x11a   : > { %632 = vadd.xlane.f32.xlu1 %v631_v58  ;;  %635 = vadd.xlane.f32.xlu0 %v634_v62  ;;  %v461_v11 = vpop.xlane.xlu0 %460  ;;  %v464_v14 = vpop.xlane.xlu1 %463 }
 0x11b   : > { %v520_v16 = vmul.f32 0.03125, %v461_v11  ;;  %v521_v22 = vmul.f32 0.03125, %v464_v14  ;;  %v582_v32 = vmul.f32 %v11340_v7, %v11340_v7  ;;  %v583_v2 = vmul.f32 %v11343_v29, %v11343_v29 }
 0x11d   : > { %v11352_v23 = vsub.f32 %v11179_v36, %v520_v16  ;;  %v11355_v33 = vsub.f32 %v11182_v37, %v521_v22  ;;  %v646_v5 = vsel %vm404_vm0, %v582_v32, 0.0  ;;  %v649_v46 = vsel %vm404_vm0, %v583_v2, 0.0 }
 0x11e   : > { %638 = vadd.xlane.f32.xlu1 %v637_v10  ;;  %641 = vadd.xlane.f32.xlu0 %v640_v1  ;;  %v467_v27 = vpop.xlane.xlu0 %466  ;;  %v470_v30 = vpop.xlane.xlu1 %469 }
 0x11f   : > { %v522_v20 = vmul.f32 0.03125, %v467_v27  ;;  %v523_v39 = vmul.f32 0.03125, %v470_v30  ;;  %v584_v36 = vmul.f32 %v11352_v23, %v11352_v23  ;;  %v585_v54 = vmul.f32 %v11355_v33, %v11355_v33 }
 0x121   : > { %v11364_v42 = vsub.f32 %v11189_v40, %v522_v20  ;;  %v11367_v37 = vsub.f32 %v11192_v41, %v523_v39  ;;  %v652_v24 = vsel %vm404_vm0, %v584_v36, 0.0  ;;  %v10085_v41 = vld [vmem:[#allocation8] sm:$0xff]   ;;  %v655_v62 = vsel %vm404_vm0, %v585_v54, 0.0 }
 0x122   : > { %644 = vadd.xlane.f32.xlu1 %v643_v26  ;;  %647 = vadd.xlane.f32.xlu0 %v646_v5  ;;  %v473_v47 = vpop.xlane.xlu0 %472  ;;  %v476_v8 = vpop.xlane.xlu1 %475 }
 0x123   : > { %v524_v58 = vmul.f32 0.03125, %v473_v47  ;;  %v525_v59 = vmul.f32 0.03125, %v476_v8  ;;  %v586_v40 = vmul.f32 %v11364_v42, %v11364_v42  ;;  %v587_v28 = vmul.f32 %v11367_v37, %v11367_v37  ;;  %9338 = vmatprep.subr.bf16.mxu0 %v10085_v41 }
 0x124   : > { %9339 = vmatpush3.bf16.msra.mxu0 %v10085_v41 }
 0x125   : > { %v11376_v60 = vsub.f32 %v11199_v44, %v524_v58  ;;  %v11379_v61 = vsub.f32 %v11202_v45, %v525_v59  ;;  %v658_v10 = vsel %vm404_vm0, %v586_v40, 0.0  ;;  %v661_v1 = vsel %vm404_vm0, %v587_v28, 0.0 }
 0x126   : > { %650 = vadd.xlane.f32.xlu1 %v649_v46  ;;  %653 = vadd.xlane.f32.xlu0 %v652_v24  ;;  %v479_v12 = vpop.xlane.xlu0 %478  ;;  %v482_v6 = vpop.xlane.xlu1 %481 }
 0x127   : > { %v526_v11 = vmul.f32 0.03125, %v479_v12  ;;  %v527_v14 = vmul.f32 0.03125, %v482_v6  ;;  %v588_v44 = vmul.f32 %v11376_v60, %v11376_v60  ;;  %v589_v32 = vmul.f32 %v11379_v61, %v11379_v61 }
 0x129   : > { %v11388_v15 = vsub.f32 %v11209_v48, %v526_v11  ;;  %v11391_v45 = vsub.f32 %v11212_v49, %v527_v14  ;;  %v664_v26 = vsel %vm404_vm0, %v588_v44, 0.0  ;;  %v667_v5 = vsel %vm404_vm0, %v589_v32, 0.0 }
 0x12a   : > { %656 = vadd.xlane.f32.xlu1 %v655_v62  ;;  %659 = vadd.xlane.f32.xlu0 %v658_v10  ;;  %v485_v16 = vpop.xlane.xlu0 %484  ;;  %v488_v22 = vpop.xlane.xlu1 %487 }
 0x12b   : > { %v528_v27 = vmul.f32 0.03125, %v485_v16  ;;  %v529_v30 = vmul.f32 0.03125, %v488_v22  ;;  %v590_v48 = vmul.f32 %v11388_v15, %v11388_v15  ;;  %v591_v36 = vmul.f32 %v11391_v45, %v11391_v45 }
 0x12d   : > { %v11400_v2 = vsub.f32 %v11219_v52, %v528_v27  ;;  %v11403_v49 = vsub.f32 %v11222_v53, %v529_v30  ;;  %v670_v43 = vsel %vm404_vm0, %v590_v48, 0.0  ;;  %v673_v53 = vsel %vm404_vm0, %v591_v36, 0.0 }
 0x12e   : > { %662 = vadd.xlane.f32.xlu1 %v661_v1  ;;  %665 = vadd.xlane.f32.xlu0 %v664_v26  ;;  %v491_v20 = vpop.xlane.xlu0 %490  ;;  %v494_v39 = vpop.xlane.xlu1 %493 }
 0x12f   : > { %v530_v46 = vmul.f32 0.03125, %v491_v20  ;;  %v531_v47 = vmul.f32 0.03125, %v494_v39  ;;  %v592_v52 = vmul.f32 %v11400_v2, %v11400_v2  ;;  %v593_v58 = vmul.f32 %v11403_v49, %v11403_v49 }
 0x131   : > { %v11412_v8 = vsub.f32 %v11229_v56, %v530_v46  ;;  %v11416_v54 = vsub.f32 %v11232_v57, %v531_v47  ;;  %v676_v24 = vsel %vm404_vm0, %v592_v52, 0.0  ;;  %v679_v56 = vsel %vm404_vm0, %v593_v58, 0.0 }
 0x132   : > { %668 = vadd.xlane.f32.xlu1 %v667_v5  ;;  %671 = vadd.xlane.f32.xlu0 %v670_v43 }
 0x133   : > { %v594_v59 = vmul.f32 %v11412_v8, %v11412_v8  ;;  %v595_v41 = vmul.f32 %v11416_v54, %v11416_v54 }
 0x135   : > { %v682_v40 = vsel %vm404_vm0, %v594_v59, 0.0  ;;  %v685_v57 = vsel %vm404_vm0, %v595_v41, 0.0 }
 0x136   : > { %674 = vadd.xlane.f32.xlu1 %v673_v53  ;;  %677 = vadd.xlane.f32.xlu0 %v676_v24 }
 0x13a   : > { %680 = vadd.xlane.f32.xlu1 %v679_v56  ;;  %683 = vadd.xlane.f32.xlu0 %v682_v40  ;;  %v11442_v56 = vld [vmem:[%s14567_s2] ss:$0 sm:$0xff] }
 0x13e   : > { %686 = vadd.xlane.f32.xlu1 %v685_v57 }
 0x187   : > { %v600_v62 = vpop.xlane.xlu0 %599 }
 0x188   : > { %v694_v12 = vmul.f32 0.03125, %v600_v62 }
 0x18a   : > { %v726_v6 = vadd.f32 1e-05, %v694_v12 }
 0x18b   : > { %v603_v28 = vpop.xlane.xlu1 %602  ;;  %v606_v10 = vpop.xlane.xlu0 %605 }
 0x18c   : > { %10104 = vrsqrt.f32 %v726_v6  ;;  %v695_v11 = vmul.f32 0.03125, %v603_v28  ;;  %v696_v14 = vmul.f32 0.03125, %v606_v10 }
 0x18e   : > { %v727_v44 = vadd.f32 1e-05, %v695_v11  ;;  %v728_v1 = vadd.f32 1e-05, %v696_v14 }
 0x18f   : > { %v609_v16 = vpop.xlane.xlu1 %608  ;;  %v497_v22 = vpop.xlane.xlu0 %496 }
 0x190   : > { %10106 = vrsqrt.f32 %v727_v44  ;;  %v697_v32 = vmul.f32 0.03125, %v609_v16  ;;  %v532_v26 = vmul.f32 0.03125, %v497_v22  ;;  %v11451_v22 = vld [vmem:[%s14568_s3] ss:$0 sm:$0xff] }
 0x191   : > { %10108 = vrsqrt.f32 %v728_v1 }
 0x192   : > { %v729_v27 = vadd.f32 1e-05, %v697_v32  ;;  %v11429_v30 = vsub.f32 %v11259_v31, %v532_v26 }
 0x193   : > { %v500_v48 = vpop.xlane.xlu1 %499  ;;  %v612_v5 = vpop.xlane.xlu0 %611 }
 0x194   : > { %10110 = vrsqrt.f32 %v729_v27  ;;  %v533_v20 = vmul.f32 0.03125, %v500_v48  ;;  %v698_v39 = vmul.f32 0.03125, %v612_v5  ;;  %v596_v36 = vmul.f32 %v11429_v30, %v11429_v30 }
 0x196   : > { %v11434_v43 = vsub.f32 %v11274_v50, %v533_v20  ;;  %v730_v46 = vadd.f32 1e-05, %v698_v39  ;;  %v688_v47 = vsel %vm404_vm0, %v596_v36, 0.0 }
 0x197   : > { %v615_v52 = vpop.xlane.xlu1 %614  ;;  %689 = vadd.xlane.f32.xlu0 %v688_v47  ;;  %v618_v53 = vpop.xlane.xlu0 %617 }
 0x198   : > { %10112 = vrsqrt.f32 %v730_v46  ;;  %v699_v31 = vmul.f32 0.03125, %v615_v52  ;;  %v700_v24 = vmul.f32 0.03125, %v618_v53  ;;  %v597_v58 = vmul.f32 %v11434_v43, %v11434_v43 }
 0x199   : > { %v10105_v59 = vpop.eup %10104 }
 0x19a   : > { %v731_v50 = vadd.f32 1e-05, %v699_v31  ;;  %v732_v40 = vadd.f32 1e-05, %v700_v24  ;;  %v691_v41 = vsel %vm404_vm0, %v597_v58, 0.0  ;;  %v790_v57 = vmul.f32 %v10105_v59, %v11239_v3 }
 0x19b   : > { %692 = vadd.xlane.f32.xlu1 %v691_v41  ;;  %v621_v62 = vpop.xlane.xlu1 %620  ;;  %v624_v12 = vpop.xlane.xlu0 %623 }
 0x19c   : > { %10114 = vrsqrt.f32 %v731_v50  ;;  %v701_v6 = vmul.f32 0.03125, %v621_v62  ;;  %v702_v28 = vmul.f32 0.03125, %v624_v12  ;;  %v829_v11 = vmul.f32 %v11442_v56, %v790_v57 }
 0x19d   : > { %v10107_v10 = vpop.eup %10106  ;;  %10116 = vrsqrt.f32 %v732_v40 }
 0x19e   : > { %v10109_v14 = vpop.eup %10108  ;;  %v733_v44 = vadd.f32 1e-05, %v701_v6  ;;  %v734_v1 = vadd.f32 1e-05, %v702_v28  ;;  %v791_v16 = vmul.f32 %v10107_v10, %v11249_v18  ;;  %v868_v39 = vadd.f32 %v11451_v22, %v829_v11 }
 0x19f   : > { %v627_v3 = vpop.xlane.xlu1 %626  ;;  %v630_v32 = vpop.xlane.xlu0 %629  ;;  %v792_v26 = vmul.f32 %v10109_v14, %v11242_v4 }
 0x1a0   : > { %10118 = vrsqrt.f32 %v733_v44  ;;  %v703_v27 = vmul.f32 0.03125, %v627_v3  ;;  %v704_v48 = vmul.f32 0.03125, %v630_v32  ;;  %v830_v5 = vmul.f32 %v11442_v56, %v791_v16 }
 0x1a1   : > { %v10111_v20 = vpop.eup %10110  ;;  %10120 = vrsqrt.f32 %v734_v1  ;;  %v831_v31 = vmul.f32 %v11442_v56, %v792_v26 }
 0x1a2   : > { %v735_v36 = vadd.f32 1e-05, %v703_v27  ;;  %v736_v18 = vadd.f32 1e-05, %v704_v48  ;;  %v869_v46 = vadd.f32 %v11451_v22, %v830_v5  ;;  %v793_v47 = vmul.f32 %v10111_v20, %v11252_v0 }
 0x1a3   : > { %v633_v52 = vpop.xlane.xlu1 %632  ;;  %v636_v53 = vpop.xlane.xlu0 %635  ;;  %v870_v12 = vadd.f32 %v11451_v22, %v831_v31 }
 0x1a4   : > { %10122 = vrsqrt.f32 %v735_v36  ;;  %v705_v4 = vmul.f32 0.03125, %v633_v52  ;;  %v706_v24 = vmul.f32 0.03125, %v636_v53  ;;  %v900_v58 = vpack.c.bf16 %v869_v46, %v868_v39 }
 0x1a5   : > { %v10113_v59 = vpop.eup %10112  ;;  %10124 = vrsqrt.f32 %v736_v18  ;;  %v832_v50 = vmul.f32 %v11442_v56, %v793_v47 }
 0x1a6   : > { %v737_v40 = vadd.f32 1e-05, %v705_v4  ;;  %v738_v41 = vadd.f32 1e-05, %v706_v24  ;;  %9340 = vmatprep.mubr.msk.bf16.mxu0 %vm404_vm0, %v900_v58  ;;  %v794_v57 = vmul.f32 %v10113_v59, %v11265_v34 }
 0x1a7   : > { %v639_v62 = vpop.xlane.xlu1 %638  ;;  %v642_v0 = vpop.xlane.xlu0 %641  ;;  %v871_v6 = vadd.f32 %v11451_v22, %v832_v50 }
 0x1a8   : > { %10126 = vrsqrt.f32 %v737_v40  ;;  %v707_v28 = vmul.f32 0.03125, %v639_v62  ;;  %v708_v10 = vmul.f32 0.03125, %v642_v0  ;;  %v833_v44 = vmul.f32 %v11442_v56, %v794_v57 }
 0x1a9   : > { %v10115_v11 = vpop.eup %10114  ;;  %10128 = vrsqrt.f32 %v738_v41  ;;  %v901_v14 = vpack.c.bf16 %v871_v6, %v870_v12 }
 0x1aa   : > { %v10117_v1 = vpop.eup %10116  ;;  %v739_v16 = vadd.f32 1e-05, %v707_v28  ;;  %v740_v3 = vadd.f32 1e-05, %v708_v10  ;;  %v795_v32 = vmul.f32 %v10115_v11, %v11268_v35  ;;  %v872_v36 = vadd.f32 %v11451_v22, %v833_v44 }
 0x1ab   : > { %9341 = vmatmul.mubr.msk.bf16.vlgmr.msra.gmra.mxu0 %vm404_vm0, %v901_v14  ;;  %v645_v34 = vpop.xlane.xlu1 %644  ;;  %v648_v26 = vpop.xlane.xlu0 %647  ;;  %v796_v27 = vmul.f32 %v10117_v1, %v11279_v51 }
 0x1ac   : > { %10130 = vrsqrt.f32 %v739_v16  ;;  %v709_v48 = vmul.f32 0.03125, %v645_v34  ;;  %v710_v5 = vmul.f32 0.03125, %v648_v26  ;;  %v834_v20 = vmul.f32 %v11442_v56, %v795_v32 }
 0x1ad   : > { %v10119_v39 = vpop.eup %10118  ;;  %10132 = vrsqrt.f32 %v740_v3  ;;  %v835_v51 = vmul.f32 %v11442_v56, %v796_v27 }
 0x1ae   : > { %v10121_v18 = vpop.eup %10120  ;;  %v741_v46 = vadd.f32 1e-05, %v709_v48  ;;  %v742_v47 = vadd.f32 1e-05, %v710_v5  ;;  %v873_v35 = vadd.f32 %v11451_v22, %v834_v20  ;;  %v797_v52 = vmul.f32 %v10119_v39, %v11282_v9 }
 0x1af   : > { %v651_v53 = vpop.xlane.xlu1 %650  ;;  %v654_v31 = vpop.xlane.xlu0 %653  ;;  %v798_v4 = vmul.f32 %v10121_v18, %v11292_v63  ;;  %v874_v63 = vadd.f32 %v11451_v22, %v835_v51 }
 0x1b0   : > { %10134 = vrsqrt.f32 %v741_v46  ;;  %v711_v24 = vmul.f32 0.03125, %v651_v53  ;;  %v712_v58 = vmul.f32 0.03125, %v654_v31  ;;  %v902_v59 = vpack.c.bf16 %v873_v35, %v872_v36 }
 0x1b1   : > { %v10123_v50 = vpop.eup %10122  ;;  %10136 = vrsqrt.f32 %v742_v47  ;;  %v836_v40 = vmul.f32 %v11442_v56, %v797_v52  ;;  %v837_v41 = vmul.f32 %v11442_v56, %v798_v4 }
 0x1b2   : > { %v10125_v57 = vpop.eup %10124  ;;  %v743_v62 = vadd.f32 1e-05, %v711_v24  ;;  %v744_v0 = vadd.f32 1e-05, %v712_v58  ;;  %9344 = vmatprep.mubr.msk.bf16.mxu0 %vm404_vm0, %v902_v59  ;;  %v799_v9 = vmul.f32 %v10123_v50, %v11295_v13 }
 0x1b3   : > { %v657_v12 = vpop.xlane.xlu1 %656  ;;  %v660_v6 = vpop.xlane.xlu0 %659  ;;  %v875_v28 = vadd.f32 %v11451_v22, %v836_v40  ;;  %v800_v10 = vmul.f32 %v10125_v57, %v11304_v19  ;;  %v876_v3 = vadd.f32 %v11451_v22, %v837_v41 }
 0x1b4   : > { %10138 = vrsqrt.f32 %v743_v62  ;;  %v713_v11 = vmul.f32 0.03125, %v657_v12  ;;  %v714_v14 = vmul.f32 0.03125, %v660_v6  ;;  %v838_v44 = vmul.f32 %v11442_v56, %v799_v9 }
 0x1b5   : > { %v10127_v1 = vpop.eup %10126  ;;  %10140 = vrsqrt.f32 %v744_v0  ;;  %v903_v16 = vpack.c.bf16 %v875_v28, %v874_v63  ;;  %v839_v5 = vmul.f32 %v11442_v56, %v800_v10 }
 0x1b6   : > { %v10129_v32 = vpop.eup %10128  ;;  %v745_v13 = vadd.f32 1e-05, %v713_v11  ;;  %v746_v34 = vadd.f32 1e-05, %v714_v14  ;;  %v877_v26 = vadd.f32 %v11451_v22, %v838_v44  ;;  %v801_v27 = vmul.f32 %v10127_v1, %v11307_v17 }
 0x1b7   : > { %9345 = vmatmul.mubr.msk.bf16.gmra.mxu0 %vm404_vm0, %v903_v16  ;;  %v663_v19 = vpop.xlane.xlu1 %662  ;;  %v666_v48 = vpop.xlane.xlu0 %665  ;;  %v802_v20 = vmul.f32 %v10129_v32, %v11316_v38  ;;  %v878_v38 = vadd.f32 %v11451_v22, %v839_v5 }
 0x1b8   : > { %10142 = vrsqrt.f32 %v745_v13  ;;  %v715_v39 = vmul.f32 0.03125, %v663_v19  ;;  %v716_v36 = vmul.f32 0.03125, %v666_v48  ;;  %v904_v18 = vpack.c.bf16 %v877_v26, %v876_v3 }
 0x1b9   : > { %v10131_v46 = vpop.eup %10130  ;;  %10144 = vrsqrt.f32 %v746_v34  ;;  %v840_v47 = vmul.f32 %v11442_v56, %v801_v27  ;;  %v841_v35 = vmul.f32 %v11442_v56, %v802_v20 }
 0x1ba   : > { %v10133_v52 = vpop.eup %10132  ;;  %v747_v17 = vadd.f32 1e-05, %v715_v39  ;;  %v748_v53 = vadd.f32 1e-05, %v716_v36  ;;  %9348 = vmatprep.mubr.msk.bf16.mxu0 %vm404_vm0, %v904_v18  ;;  %v803_v31 = vmul.f32 %v10131_v46, %v11319_v21 }
 0x1bb   : > { %v669_v51 = vpop.xlane.xlu1 %668  ;;  %v672_v4 = vpop.xlane.xlu0 %671  ;;  %v879_v24 = vadd.f32 %v11451_v22, %v840_v47  ;;  %v804_v58 = vmul.f32 %v10133_v52, %v11328_v55  ;;  %v880_v62 = vadd.f32 %v11451_v22, %v841_v35 }
 0x1bc   : > { %10146 = vrsqrt.f32 %v747_v17  ;;  %v717_v59 = vmul.f32 0.03125, %v669_v51  ;;  %v718_v50 = vmul.f32 0.03125, %v672_v4  ;;  %v842_v40 = vmul.f32 %v11442_v56, %v803_v31 }
 0x1bd   : > { %v10135_v41 = vpop.eup %10134  ;;  %10148 = vrsqrt.f32 %v748_v53  ;;  %v905_v57 = vpack.c.bf16 %v879_v24, %v878_v38  ;;  %v843_v28 = vmul.f32 %v11442_v56, %v804_v58 }
 0x1be   : > { %v10137_v0 = vpop.eup %10136  ;;  %v749_v21 = vadd.f32 1e-05, %v717_v59  ;;  %v750_v9 = vadd.f32 1e-05, %v718_v50  ;;  %v881_v12 = vadd.f32 %v11451_v22, %v842_v40  ;;  %v805_v6 = vmul.f32 %v10135_v41, %v11331_v25 }
 0x1bf   : > { %9349 = vmatmul.mubr.msk.bf16.gmra.mxu0 %vm404_vm0, %v905_v57  ;;  %v675_v55 = vpop.xlane.xlu1 %674  ;;  %v678_v63 = vpop.xlane.xlu0 %677  ;;  %v806_v10 = vmul.f32 %v10137_v0, %v11340_v7  ;;  %v882_v7 = vadd.f32 %v11451_v22, %v843_v28 }
 0x1c0   : > { %10150 = vrsqrt.f32 %v749_v21  ;;  %v719_v11 = vmul.f32 0.03125, %v675_v55  ;;  %v720_v14 = vmul.f32 0.03125, %v678_v63  ;;  %v906_v44 = vpack.c.bf16 %v881_v12, %v880_v62 }
 0x1c1   : > { %v10139_v1 = vpop.eup %10138  ;;  %10152 = vrsqrt.f32 %v750_v9  ;;  %v844_v16 = vmul.f32 %v11442_v56, %v805_v6  ;;  %v845_v3 = vmul.f32 %v11442_v56, %v806_v10 }
 0x1c2   : > { %v10141_v32 = vpop.eup %10140  ;;  %v751_v25 = vadd.f32 1e-05, %v719_v11  ;;  %v752_v13 = vadd.f32 1e-05, %v720_v14  ;;  %9352 = vmatprep.mubr.msk.bf16.mxu0 %vm404_vm0, %v906_v44  ;;  %v807_v34 = vmul.f32 %v10139_v1, %v11343_v29 }
 0x1c3   : > { %v681_v26 = vpop.xlane.xlu1 %680  ;;  %v684_v27 = vpop.xlane.xlu0 %683  ;;  %v883_v19 = vadd.f32 %v11451_v22, %v844_v16  ;;  %v808_v48 = vmul.f32 %v10141_v32, %v11352_v23  ;;  %v884_v46 = vadd.f32 %v11451_v22, %v845_v3 }
 0x1c4   : > { %10154 = vrsqrt.f32 %v751_v25  ;;  %v721_v5 = vmul.f32 0.03125, %v681_v26  ;;  %v722_v20 = vmul.f32 0.03125, %v684_v27  ;;  %v846_v39 = vmul.f32 %v11442_v56, %v807_v34 }
 0x1c5   : > { %v10143_v36 = vpop.eup %10142  ;;  %10156 = vrsqrt.f32 %v752_v13  ;;  %v907_v18 = vpack.c.bf16 %v883_v19, %v882_v7  ;;  %v847_v29 = vmul.f32 %v11442_v56, %v808_v48 }
 0x1c6   : > { %v10145_v47 = vpop.eup %10144  ;;  %v753_v35 = vadd.f32 1e-05, %v721_v5  ;;  %v754_v52 = vadd.f32 1e-05, %v722_v20  ;;  %v885_v17 = vadd.f32 %v11451_v22, %v846_v39  ;;  %v809_v53 = vmul.f32 %v10143_v36, %v11355_v33 }
 0x1c7   : > { %9353 = vmatmul.mubr.msk.bf16.gmra.mxu0 %vm404_vm0, %v907_v18  ;;  %v687_v23 = vpop.xlane.xlu1 %686  ;;  %v810_v31 = vmul.f32 %v10145_v47, %v11364_v42  ;;  %v886_v58 = vadd.f32 %v11451_v22, %v847_v29 }
 0x1c8   : > { %10158 = vrsqrt.f32 %v753_v35  ;;  %v723_v51 = vmul.f32 0.03125, %v687_v23  ;;  %v908_v4 = vpack.c.bf16 %v885_v17, %v884_v46  ;;  %v848_v38 = vmul.f32 %v11442_v56, %v809_v53 }
 0x1c9   : > { %v10147_v24 = vpop.eup %10146  ;;  %10160 = vrsqrt.f32 %v754_v52  ;;  %v849_v41 = vmul.f32 %v11442_v56, %v810_v31 }
 0x1ca   : > { %v10149_v59 = vpop.eup %10148  ;;  %v755_v50 = vadd.f32 1e-05, %v723_v51  ;;  %9356 = vmatprep.mubr.msk.bf16.mxu0 %vm404_vm0, %v908_v4  ;;  %v887_v33 = vadd.f32 %v11451_v22, %v848_v38  ;;  %v811_v40 = vmul.f32 %v10147_v24, %v11367_v37 }
 0x1cb   : > { %v812_v42 = vmul.f32 %v10149_v59, %v11376_v60  ;;  %v888_v9 = vadd.f32 %v11451_v22, %v849_v41 }
 0x1cc   : > { %10162 = vrsqrt.f32 %v755_v50  ;;  %v909_v57 = vpack.c.bf16 %v887_v33, %v886_v58  ;;  %v850_v62 = vmul.f32 %v11442_v56, %v811_v40  ;;  %v11565_v50 = vld [vmem:[%s14570_s5] ss:$0 sm:$0xff] }
 0x1cd   : > { %v10151_v0 = vpop.eup %10150  ;;  %v851_v55 = vmul.f32 %v11442_v56, %v812_v42 }
 0x1ce   : > { %v10153_v21 = vpop.eup %10152  ;;  %v889_v12 = vadd.f32 %v11451_v22, %v850_v62  ;;  %v813_v6 = vmul.f32 %v10151_v0, %v11379_v61 }
 0x1cf   : > { %9357 = vmatmul.mubr.msk.bf16.gmra.mxu0 %vm404_vm0, %v909_v57  ;;  %v814_v37 = vmul.f32 %v10153_v21, %v11388_v15  ;;  %v890_v11 = vadd.f32 %v11451_v22, %v851_v55 }
 0x1d0   : > { %v910_v63 = vpack.c.bf16 %v889_v12, %v888_v9  ;;  %v852_v60 = vmul.f32 %v11442_v56, %v813_v6 }
 0x1d1   : > { %v10155_v28 = vpop.eup %10154  ;;  %v853_v61 = vmul.f32 %v11442_v56, %v814_v37 }
 0x1d2   : > { %v10157_v10 = vpop.eup %10156  ;;  %9360 = vmatprep.mubr.msk.bf16.mxu0 %vm404_vm0, %v910_v63  ;;  %v891_v14 = vadd.f32 %v11451_v22, %v852_v60  ;;  %v815_v44 = vmul.f32 %v10155_v28, %v11391_v45 }
 0x1d3   : > { %v816_v1 = vmul.f32 %v10157_v10, %v11400_v2  ;;  %v892_v25 = vadd.f32 %v11451_v22, %v853_v61 }
 0x1d4   : > { %v911_v16 = vpack.c.bf16 %v891_v14, %v890_v11  ;;  %v854_v15 = vmul.f32 %v11442_v56, %v815_v44 }
 0x1d5   : > { %v10159_v3 = vpop.eup %10158  ;;  %v855_v26 = vmul.f32 %v11442_v56, %v816_v1 }
 0x1d6   : > { %v10161_v32 = vpop.eup %10160  ;;  %v893_v13 = vadd.f32 %v11451_v22, %v854_v15  ;;  %v817_v34 = vmul.f32 %v10159_v3, %v11403_v49 }
 0x1d7   : > { %9361 = vmatmul.mubr.msk.bf16.gmra.mxu0 %vm404_vm0, %v911_v16  ;;  %v818_v45 = vmul.f32 %v10161_v32, %v11412_v8  ;;  %v894_v19 = vadd.f32 %v11451_v22, %v855_v26 }
 0x1d8   : > { %v912_v27 = vpack.c.bf16 %v893_v13, %v892_v25  ;;  %v856_v2 = vmul.f32 %v11442_v56, %v817_v34 }
 0x1d9   : > { %v10163_v7 = vpop.eup %10162  ;;  %v857_v49 = vmul.f32 %v11442_v56, %v818_v45 }
 0x1da   : > { %9364 = vmatprep.mubr.msk.bf16.mxu0 %vm404_vm0, %v912_v27  ;;  %v895_v48 = vadd.f32 %v11451_v22, %v856_v2  ;;  %v819_v5 = vmul.f32 %v10163_v7, %v11416_v54 }
 0x1db   : > { %v896_v36 = vadd.f32 %v11451_v22, %v857_v49 }
 0x1dc   : > { %v913_v20 = vpack.c.bf16 %v895_v48, %v894_v19  ;;  %v858_v39 = vmul.f32 %v11442_v56, %v819_v5 }
 0x1de   : > { %v897_v8 = vadd.f32 %v11451_v22, %v858_v39 }
 0x1df   : > { %9365 = vmatmul.mubr.msk.bf16.gmra.mxu0 %vm404_vm0, %v913_v20 }
 0x1e0   : > { %v914_v18 = vpack.c.bf16 %v897_v8, %v896_v36 }
 0x1e2   : > { %9368 = vmatprep.mubr.msk.bf16.mxu0 %vm404_vm0, %v914_v18 }
 0x220   : > { %v690_v46 = vpop.xlane.xlu0 %689 }
 0x221   : > { %v724_v29 = vmul.f32 0.03125, %v690_v46 }
 0x223   : > { %v756_v47 = vadd.f32 1e-05, %v724_v29 }
 0x224   : > { %v693_v35 = vpop.xlane.xlu1 %692 }
 0x225   : > { %10164 = vrsqrt.f32 %v756_v47  ;;  %v725_v54 = vmul.f32 0.03125, %v693_v35 }
 0x227   : > { %v757_v52 = vadd.f32 1e-05, %v725_v54 }
 0x229   : > { %10166 = vrsqrt.f32 %v757_v52 }
 0x232   : > { %v10165_v17 = vpop.eup %10164 }
 0x233   : > { %v820_v53 = vmul.f32 %v10165_v17, %v11429_v30 }
 0x235   : > { %v859_v51 = vmul.f32 %v11442_v56, %v820_v53 }
 0x236   : > { %v10167_v23 = vpop.eup %10166 }
 0x237   : > { %v821_v31 = vmul.f32 %v10167_v23, %v11434_v43  ;;  %v898_v38 = vadd.f32 %v11451_v22, %v859_v51 }
 0x239   : > { %v860_v4 = vmul.f32 %v11442_v56, %v821_v31 }
 0x23b   : > { %v899_v24 = vadd.f32 %v11451_v22, %v860_v4 }
 0x23d   : > { %v915_v58 = vpack.c.bf16 %v899_v24, %v898_v38 }
 0x23f   : > { %9369 = vmatmul.mubr.msk.bf16.gmra.mxu0 %vm404_vm0, %v915_v58 }
 0x26b   : > { %v9342_v59 = vpop.f32.mrf.mxu0 }
 0x26c   : > { %v1030_v43 = vadd.f32 %v9342_v59, %v11565_v50 }
 0x26d   : > { %v1021_v30 = vpop.f32.mrf.mxu0 }
 0x26e   : > { %v1022_v41 = vadd.f32 %v11565_v50, %v1021_v30 }
 0x26f   : > { %v9343_v33 = vpop.f32.mrf.mxu0 }
 0x270   : > { %v1033_v40 = vadd.f32 %v9343_v33, %v11565_v50 }
 0x271   : > { %v1024_v56 = vpop.f32.mrf.mxu0 }
 0x272   : > { %v11570_v42 = vpack.c.bf16 %v1033_v40, %v1030_v43  ;;  %v1025_v22 = vadd.f32 %v11565_v50, %v1024_v56 }
 0x274   : > { %v11573_v57 = vpack.c.bf16 %v1025_v22, %v1022_v41  ;;  %1168 = vrot.lane.b32.xlu0 %v11570_v42, %s10868_s26 }
 0x276   : > { %1166 = vrot.lane.b32.xlu1 %v11573_v57, %s10868_s26  ;;  %9376 = vmatprep.mubr.msk.bf16.mxu1 %vm1170_vm1, %v11573_v57 }
 0x277   : > { %v9346_v62 = vpop.f32.mrf.mxu0 }
 0x278   : > { %v1046_v9 = vadd.f32 %v9346_v62, %v11565_v50 }
 0x279   : > { %v1037_v0 = vpop.f32.mrf.mxu0 }
 0x27a   : > { %v1038_v60 = vadd.f32 %v11565_v50, %v1037_v0 }
 0x27b   : > { %v9347_v21 = vpop.f32.mrf.mxu0 }
 0x27c   : > { %v1049_v12 = vadd.f32 %v9347_v21, %v11565_v50 }
 0x27d   : > { %v1040_v6 = vpop.f32.mrf.mxu0 }
 0x27e   : > { %v11583_v55 = vpack.c.bf16 %v1049_v12, %v1046_v9  ;;  %v1041_v37 = vadd.f32 %v11565_v50, %v1040_v6 }
 0x27f   : > { %v9350_v63 = vpop.f32.mrf.mxu0 }
 0x280   : > { %1236 = vrot.lane.b32.xlu1 %v11583_v55, %s10868_s26  ;;  %v11589_v10 = vpack.c.bf16 %v1041_v37, %v1038_v60  ;;  %v1062_v14 = vadd.f32 %v9350_v63, %v11565_v50 }
 0x281   : > { %v1053_v28 = vpop.f32.mrf.mxu0 }
 0x282   : > { %v1054_v1 = vadd.f32 %v11565_v50, %v1053_v28 }
 0x283   : > { %v9351_v11 = vpop.f32.mrf.mxu0 }
 0x284   : > { %v1065_v44 = vadd.f32 %v9351_v11, %v11565_v50  ;;  %1234 = vrot.lane.b32.xlu1 %v11589_v10, %s10868_s26 }
 0x285   : > { %v1056_v61 = vpop.f32.mrf.mxu0 }
 0x286   : > { %v11596_v16 = vpack.c.bf16 %v1065_v44, %v1062_v14  ;;  %v1057_v15 = vadd.f32 %v11565_v50, %v1056_v61 }
 0x287   : > { %v9354_v3 = vpop.f32.mrf.mxu0 }
 0x288   : > { %v11599_v32 = vpack.c.bf16 %v1057_v15, %v1054_v1  ;;  %1303 = vrot.lane.b32.xlu0 %v11596_v16, %s10868_s26  ;;  %v1078_v34 = vadd.f32 %v9354_v3, %v11565_v50 }
 0x289   : > { %v1069_v25 = vpop.f32.mrf.mxu0 }
 0x28a   : > { %1301 = vrot.lane.b32.xlu1 %v11599_v32, %s10868_s26  ;;  %v1070_v27 = vadd.f32 %v11565_v50, %v1069_v25 }
 0x28b   : > { %v9355_v13 = vpop.f32.mrf.mxu0 }
 0x28c   : > { %v1081_v26 = vadd.f32 %v9355_v13, %v11565_v50 }
 0x28d   : > { %v1072_v45 = vpop.f32.mrf.mxu0 }
 0x28e   : > { %v11608_v2 = vpack.c.bf16 %v1081_v26, %v1078_v34  ;;  %v1073_v7 = vadd.f32 %v11565_v50, %v1072_v45 }
 0x28f   : > { %v9358_v19 = vpop.f32.mrf.mxu0 }
 0x290   : > { %v11611_v48 = vpack.c.bf16 %v1073_v7, %v1070_v27  ;;  %1370 = vrot.lane.b32.xlu0 %v11608_v2, %s10868_s26  ;;  %v1094_v20 = vadd.f32 %v9358_v19, %v11565_v50 }
 0x291   : > { %v1085_v5 = vpop.f32.mrf.mxu0 }
 0x292   : > { %1368 = vrot.lane.b32.xlu1 %v11611_v48, %s10868_s26  ;;  %v1086_v8 = vadd.f32 %v11565_v50, %v1085_v5 }
 0x293   : > { %v9359_v49 = vpop.f32.mrf.mxu0 }
 0x294   : > { %v1097_v39 = vadd.f32 %v9359_v49, %v11565_v50 }
 0x295   : > { %v1088_v36 = vpop.f32.mrf.mxu0 }
 0x296   : > { %v11620_v18 = vpack.c.bf16 %v1097_v39, %v1094_v20  ;;  %v1089_v46 = vadd.f32 %v11565_v50, %v1088_v36 }
 0x297   : > { %v9362_v29 = vpop.f32.mrf.mxu0 }
 0x298   : > { %v11623_v47 = vpack.c.bf16 %v1089_v46, %v1086_v8  ;;  %1437 = vrot.lane.b32.xlu0 %v11620_v18, %s10868_s26  ;;  %v1110_v52 = vadd.f32 %v9362_v29, %v11565_v50 }
 0x299   : > { %v1101_v35 = vpop.f32.mrf.mxu0 }
 0x29a   : > { %14634 = vst [vmem:[#allocation16_spill] sm:$0xff] %v11623_v47  ;;  %1435 = vrot.lane.b32.xlu1 %v11623_v47, %s10868_s26  ;;  %9408 = vmatprep.mubr.msk.bf16.mxu0 %vm1170_vm1, %v11623_v47  ;;  %v1102_v23 = vadd.f32 %v11565_v50, %v1101_v35 }
 0x29b   : > { %v9363_v54 = vpop.f32.mrf.mxu0 }
 0x29c   : > { %v1113_v17 = vadd.f32 %v9363_v54, %v11565_v50 }
 0x29d   : > { %v1104_v53 = vpop.f32.mrf.mxu0 }
 0x29e   : > { %v11634_v31 = vpack.c.bf16 %v1113_v17, %v1110_v52  ;;  %v1105_v51 = vadd.f32 %v11565_v50, %v1104_v53 }
 0x29f   : > { %v9366_v4 = vpop.f32.mrf.mxu0 }
 0x2a0   : > { %v11637_v38 = vpack.c.bf16 %v1105_v51, %v1102_v23  ;;  %1504 = vrot.lane.b32.xlu0 %v11634_v31, %s10868_s26  ;;  %v1126_v59 = vadd.f32 %v9366_v4, %v11565_v50 }
 0x2a1   : > { %v1117_v24 = vpop.f32.mrf.mxu0 }
 0x2a2   : > { %14635 = vst [vmem:[#allocation17_spill] sm:$0xff] %v11637_v38  ;;  %1502 = vrot.lane.b32.xlu1 %v11637_v38, %s10868_s26  ;;  %v1118_v43 = vadd.f32 %v11565_v50, %v1117_v24 }
 0x2a3   : > { %v9367_v58 = vpop.f32.mrf.mxu0 }
 0x2a4   : > { %v1129_v30 = vadd.f32 %v9367_v58, %v11565_v50 }
 0x2a5   : > { %v1120_v33 = vpop.f32.mrf.mxu0 }
 0x2a6   : > { %v11646_v40 = vpack.c.bf16 %v1129_v30, %v1126_v59  ;;  %v1121_v56 = vadd.f32 %v11565_v50, %v1120_v33 }
 0x2a8   : > { %14636 = vst [vmem:[#allocation18_spill] sm:$0xff] %v11646_v40  ;;  %v11649_v41 = vpack.c.bf16 %v1121_v56, %v1118_v43  ;;  %1571 = vrot.lane.b32.xlu0 %v11646_v40, %s10868_s26 }
 0x2aa   : > { %14637 = vst [vmem:[#allocation19_spill] sm:$0xff] %v11649_v41  ;;  %1569 = vrot.lane.b32.xlu1 %v11649_v41, %s10868_s26 }
 0x2e6   : > { %v1169_v22 = vpop.permute.xlu0 %1168 }
 0x2e7   : > { %9924 = vmatprep.subr.msk.bf16.mxu1 %vm1170_vm1, %v1169_v22  ;;  %v1181_v62 = vsel %vm1170_vm1, %v1169_v22, 0  ;;  %v11767_v22 = vld [vmem:[#allocation6 + $0x10] sm:$0xff] }
 0x2e8   : > { %v1167_v0 = vpop.permute.xlu1 %1166  ;;  %9373 = vmatpush3.bf16.xpose.msra.mxu1 %v1181_v62 }
 0x2e9   : > { %9925 = vmatprep.subr.msk.bf16.mxu1 %vm1170_vm1, %v1167_v0  ;;  %v1178_v21 = vsel %vm1170_vm1, %v1167_v0, 0 }
 0x2f0   : > { %9375 = vmatpush3.bf16.xpose.msra.mxu1 %v1178_v21  ;;  %v11769_v21 = vld [vmem:[#allocation6] sm:$0xff] }
 0x2f2   : > { %v1237_v9 = vpop.permute.xlu1 %1236 }
 0x2f3   : > { %9926 = vmatprep.subr.msk.bf16.mxu1 %vm1170_vm1, %v1237_v9  ;;  %v1248_v12 = vsel %vm1170_vm1, %v1237_v9, 0 }
 0x2f6   : > { %v1235_v6 = vpop.permute.xlu1 %1234 }
 0x2f7   : > { %9377 = vmatmul.mubr.msk.bf16.vlgmr.msra.gmra.mxu1 %vm1170_vm1, %v11570_v42  ;;  %v1245_v63 = vsel %vm1170_vm1, %v1235_v6, 0 }
 0x2f8   : > { %9381 = vmatpush3.bf16.xpose.msra.mxu1 %v1248_v12  ;;  %9384 = vmatprep.mubr.msk.bf16.mxu1 %vm1170_vm1, %v11589_v10 }
 0x2f9   : > { %9927 = vmatprep.subr.msk.bf16.mxu1 %vm1170_vm1, %v1235_v6 }
 0x2fa   : > { %v1304_v60 = vpop.permute.xlu0 %1303 }
 0x2fb   : > { %v1315_v34 = vsel %vm1170_vm1, %v1304_v60, 0 }
 0x2fc   : > { %v1302_v14 = vpop.permute.xlu1 %1301 }
 0x2fd   : > { %v1312_v19 = vsel %vm1170_vm1, %v1302_v14, 0 }
 0x2ff   : > { %v9370_v37 = vpop.f32.mrf.mxu0 }
 0x300   : > { %9383 = vmatpush3.bf16.xpose.msra.mxu1 %v1245_v63  ;;  %v1142_v44 = vadd.f32 %v9370_v37, %v11565_v50 }
 0x301   : > { %9928 = vmatprep.subr.msk.bf16.mxu1 %vm1170_vm1, %v1304_v60  ;;  %v1133_v28 = vpop.f32.mrf.mxu0 }
 0x302   : > { %v1134_v15 = vadd.f32 %v11565_v50, %v1133_v28  ;;  %v1371_v3 = vpop.permute.xlu0 %1370  ;;  %v11779_v28 = vld [vmem:[#allocation6 + $0x18] sm:$0xff] }
 0x303   : > { %v9371_v11 = vpop.f32.mrf.mxu0  ;;  %v1382_v20 = vsel %vm1170_vm1, %v1371_v3, 0 }
 0x304   : > { %v1145_v61 = vadd.f32 %v9371_v11, %v11565_v50  ;;  %v1369_v26 = vpop.permute.xlu1 %1368 }
 0x305   : > { %v1136_v1 = vpop.f32.mrf.mxu0  ;;  %v1379_v29 = vsel %vm1170_vm1, %v1369_v26, 0 }
 0x306   : > { %v11671_v25 = vpack.c.bf16 %v1145_v61, %v1142_v44  ;;  %v1137_v13 = vadd.f32 %v11565_v50, %v1136_v1 }
 0x307   : > { %9385 = vmatmul.mubr.msk.bf16.vlgmr.msra.gmra.mxu1 %vm1170_vm1, %v11583_v55 }
 0x308   : > { %14638 = vst [vmem:[#allocation20_spill] sm:$0xff] %v11671_v25  ;;  %v11677_v45 = vpack.c.bf16 %v1137_v13, %v1134_v15  ;;  %9389 = vmatpush3.bf16.xpose.msra.mxu1 %v1315_v34  ;;  %9392 = vmatprep.mubr.msk.bf16.mxu1 %vm1170_vm1, %v11599_v32 }
 0x309   : > { %1638 = vrot.lane.b32.xlu0 %v11671_v25, %s10868_s26  ;;  %9929 = vmatprep.subr.msk.bf16.mxu1 %vm1170_vm1, %v1302_v14  ;;  %v11781_v14 = vld [vmem:[#allocation6 + $0x8] sm:$0xff] }
 0x30a   : > { %v1438_v27 = vpop.permute.xlu0 %1437  ;;  %1636 = vrot.lane.b32.xlu1 %v11677_v45, %s10868_s26 }
 0x30b   : > { %9932 = vmatprep.subr.msk.bf16.mxu0 %vm1170_vm1, %v1438_v27  ;;  %v1449_v50 = vsel %vm1170_vm1, %v1438_v27, 0 }
 0x30c   : > { %v1436_v7 = vpop.permute.xlu1 %1435  ;;  %9405 = vmatpush3.bf16.xpose.msra.mxu0 %v1449_v50 }
 0x30d   : > { %2139 = vrot.lane.b32.xlu0 %v11570_v42, %s10869_s15  ;;  %9933 = vmatprep.subr.msk.bf16.mxu0 %vm1170_vm1, %v1436_v7  ;;  %v1446_v5 = vsel %vm1170_vm1, %v1436_v7, 0 }
 0x30e   : > { %2137 = vrot.lane.b32.xlu1 %v11573_v57, %s10869_s15 }
 0x310   : > { %9391 = vmatpush3.bf16.xpose.msra.mxu1 %v1312_v19 }
 0x311   : > { %2198 = vrot.lane.b32.xlu0 %v11589_v10, %s10869_s15  ;;  %9930 = vmatprep.subr.msk.bf16.mxu1 %vm1170_vm1, %v1371_v3 }
 0x312   : > { %2200 = vrot.lane.b32.xlu1 %v11583_v55, %s10869_s15  ;;  %v1505_v49 = vpop.permute.xlu0 %1504 }
 0x313   : > { %v1516_v54 = vsel %vm1170_vm1, %v1505_v49, 0 }
 0x314   : > { %9407 = vmatpush3.bf16.xpose.msra.mxu0 %v1446_v5  ;;  %v1503_v39 = vpop.permute.xlu1 %1502 }
 0x315   : > { %2259 = vrot.lane.b32.xlu0 %v11599_v32, %s10869_s15  ;;  %v1513_v52 = vsel %vm1170_vm1, %v1503_v39, 0 }
 0x316   : > { %2261 = vrot.lane.b32.xlu1 %v11596_v16, %s10869_s15 }
 0x317   : > { %9393 = vmatmul.mubr.msk.bf16.vlgmr.msra.gmra.mxu1 %vm1170_vm1, %v11596_v16 }
 0x318   : > { %9397 = vmatpush3.bf16.xpose.msra.mxu1 %v1382_v20  ;;  %9400 = vmatprep.mubr.msk.bf16.mxu1 %vm1170_vm1, %v11611_v48 }
 0x319   : > { %2383 = vrot.lane.b32.xlu0 %v11620_v18, %s10869_s15  ;;  %9931 = vmatprep.subr.msk.bf16.mxu1 %vm1170_vm1, %v1369_v26 }
 0x31a   : > { %v1572_v36 = vpop.permute.xlu0 %1571  ;;  %2322 = vrot.lane.b32.xlu1 %v11608_v2, %s10869_s15 }
 0x31b   : > { %9409 = vmatmul.mubr.msk.bf16.vlgmr.msra.gmra.mxu0 %vm1170_vm1, %v11620_v18  ;;  %9936 = vmatprep.subr.msk.bf16.mxu0 %vm1170_vm1, %v1572_v36  ;;  %v1583_v8 = vsel %vm1170_vm1, %v1572_v36, 0 }
 0x31c   : > { %v1570_v46 = vpop.permute.xlu1 %1569  ;;  %9421 = vmatpush3.bf16.xpose.msra.mxu0 %v1583_v8  ;;  %9424 = vmatprep.mubr.msk.bf16.mxu0 %vm1170_vm1, %v11649_v41 }
 0x31d   : > { %2320 = vrot.lane.b32.xlu0 %v11611_v48, %s10869_s15  ;;  %9937 = vmatprep.subr.msk.bf16.mxu0 %vm1170_vm1, %v1570_v46  ;;  %v1580_v35 = vsel %vm1170_vm1, %v1570_v46, 0 }
 0x31e   : > { %2505 = vrot.lane.b32.xlu1 %v11646_v40, %s10869_s15 }
 0x320   : > { %9399 = vmatpush3.bf16.xpose.msra.mxu1 %v1379_v29 }
 0x321   : > { %2381 = vrot.lane.b32.xlu0 %v11623_v47, %s10869_s15  ;;  %9934 = vmatprep.subr.msk.bf16.mxu1 %vm1170_vm1, %v1505_v49 }
 0x322   : > { %2503 = vrot.lane.b32.xlu1 %v11649_v41, %s10869_s15 }
 0x324   : > { %9423 = vmatpush3.bf16.xpose.msra.mxu0 %v1580_v35 }
 0x325   : > { %2444 = vrot.lane.b32.xlu0 %v11634_v31, %s10869_s15 }
 0x326   : > { %2792 = vrot.lane.b32.xlu1 %v11570_v42, %s10870_s20 }
 0x327   : > { %9401 = vmatmul.mubr.msk.bf16.vlgmr.msra.gmra.mxu1 %vm1170_vm1, %v11608_v2 }
 0x328   : > { %9413 = vmatpush3.bf16.xpose.msra.mxu1 %v1516_v54  ;;  %9416 = vmatprep.mubr.msk.bf16.mxu1 %vm1170_vm1, %v11637_v38 }
 0x329   : > { %2442 = vrot.lane.b32.xlu0 %v11637_v38, %s10869_s15  ;;  %9935 = vmatprep.subr.msk.bf16.mxu1 %vm1170_vm1, %v1503_v39 }
 0x32b   : > { %9425 = vmatmul.mubr.msk.bf16.vlgmr.msra.gmra.mxu0 %vm1170_vm1, %v11646_v40 }
 0x32d   : > { %2566 = vrot.lane.b32.xlu0 %v11671_v25, %s10869_s15 }
 0x330   : > { %9415 = vmatpush3.bf16.xpose.msra.mxu1 %v1513_v52 }
 0x337   : > { %9417 = vmatmul.mubr.msk.bf16.vlgmr.msra.gmra.mxu1 %vm1170_vm1, %v11634_v31 }
 0x338   : > { %9432 = vmatprep.mubr.msk.bf16.mxu1 %vm1170_vm1, %v11677_v45 }
 0x37b   : > { %v1639_v17 = vpop.permute.xlu0 %1638 }
 0x37c   : > { %9938 = vmatprep.subr.msk.bf16.mxu1 %vm1170_vm1, %v1639_v17  ;;  %v1637_v53 = vpop.permute.xlu1 %1636  ;;  %v1650_v23 = vsel %vm1170_vm1, %v1639_v17, 0 }
 0x37d   : > { %9429 = vmatpush3.bf16.xpose.msra.mxu1 %v1650_v23  ;;  %v1647_v58 = vsel %vm1170_vm1, %v1637_v53, 0 }
 0x37e   : > { %9939 = vmatprep.subr.msk.bf16.mxu1 %vm1170_vm1, %v1637_v53 }
 0x37f   : > { %v2140_v51 = vpop.permute.xlu0 %2139 }
 0x380   : > { %9436 = vmatprep.subr.bf16.mxu0 %v2140_v51  ;;  %v2138_v4 = vpop.permute.xlu1 %2137 }
 0x381   : > { %9437 = vmatpush3.bf16.msra.mxu0 %v2140_v51 }
 0x382   : > { %9438 = vmatprep.subr.bf16.mxu0 %v2138_v4 }
 0x383   : > { %v11759_v59 = vpop.permute.xlu0 %2198 }
 0x384   : > { %v11756_v24 = vpop.permute.xlu1 %2200 }
 0x385   : > { %9431 = vmatpush3.bf16.xpose.msra.mxu1 %v1647_v58  ;;  %9439 = vmatpush3.bf16.msra.mxu0 %v2138_v4 }
 0x386   : > { %9444 = vmatprep.subr.bf16.mxu0 %v11756_v24 }
 0x387   : > { %v2260_v33 = vpop.permute.xlu0 %2259 }
 0x388   : > { %v2262_v30 = vpop.permute.xlu1 %2261 }
 0x389   : > { %9452 = vmatprep.subr.bf16.mxu1 %v2262_v30 }
 0x38b   : > { %v11764_v43 = vpop.permute.xlu0 %2383 }
 0x38c   : > { %9433 = vmatmul.mubr.msk.bf16.vlgmr.msra.gmra.mxu1 %vm1170_vm1, %v11671_v25 }
 0x38d   : > { %9453 = vmatpush3.bf16.msra.mxu1 %v2262_v30 }
 0x38e   : > { %9454 = vmatprep.subr.bf16.mxu1 %v2260_v33 }
 0x391   : > { %9455 = vmatpush3.bf16.msra.mxu1 %v2260_v33 }
 0x392   : > { %9468 = vmatprep.subr.bf16.mxu1 %v11764_v43 }
 0x3b7   : > { %v9378_v56 = vpop.f32.mrf.mxu1 }
 0x3b8   : > { %v1703_v62 = vmul.f32 0.35355338, %v9378_v56 }
 0x3b9   : > { %v1217_v0 = vpop.f32.mrf.mxu1 }
 0x3ba   : > { %v1701_v9 = vmul.f32 0.35355338, %v1217_v0  ;;  %v11772_v12 = vadd.f32 %v11767_v22, %v1703_v62 }
 0x3bb   : > { %v9379_v6 = vpop.f32.mrf.mxu1 }
 0x3bc   : > { %v11775_v37 = vadd.f32 %v11769_v21, %v1701_v9  ;;  %v1704_v63 = vmul.f32 0.35355338, %v9379_v6  ;;  %v1775_v60 = vsel %vm404_vm0, %v11772_v12, -inf }
 0x3bd   : > { %1776 = vmax.xlane.f32.xlu0 %v1775_v60  ;;  %v1220_v11 = vpop.f32.mrf.mxu1 }
 0x3be   : > { %v1702_v44 = vmul.f32 0.35355338, %v1220_v11  ;;  %v11784_v61 = vadd.f32 %v11779_v28, %v1704_v63  ;;  %v1769_v1 = vsel %vm404_vm0, %v11775_v37, -inf }
 0x3c0   : > { %v11789_v15 = vadd.f32 %v11781_v14, %v1702_v44  ;;  %v1778_v13 = vsel %vm404_vm0, %v11784_v61, -inf }
 0x3c1   : > { %1770 = vmax.xlane.f32.xlu0 %v1769_v1 }
 0x3c2   : > { %v1772_v3 = vsel %vm404_vm0, %v11789_v15, -inf }
 0x3c3   : > { %1773 = vmax.xlane.f32.xlu1 %v1772_v3 }
 0x3c5   : > { %1779 = vmax.xlane.f32.xlu0 %v1778_v13 }
 0x3c7   : > { %v9386_v34 = vpop.f32.mrf.mxu1 }
 0x3c8   : > { %v1707_v26 = vmul.f32 0.35355338, %v9386_v34 }
 0x3c9   : > { %v1284_v27 = vpop.f32.mrf.mxu1 }
 0x3ca   : > { %v11796_v50 = vadd.f32 %v11767_v22, %v1707_v26  ;;  %v1705_v7 = vmul.f32 0.35355338, %v1284_v27 }
 0x3cb   : > { %v9387_v19 = vpop.f32.mrf.mxu1 }
 0x3cc   : > { %v11799_v5 = vadd.f32 %v11769_v21, %v1705_v7  ;;  %v1708_v49 = vmul.f32 0.35355338, %v9387_v19  ;;  %v1787_v20 = vsel %vm404_vm0, %v11796_v50, -inf }
 0x3cd   : > { %1788 = vmax.xlane.f32.xlu0 %v1787_v20  ;;  %v1287_v39 = vpop.f32.mrf.mxu1 }
 0x3ce   : > { %v11804_v36 = vadd.f32 %v11779_v28, %v1708_v49  ;;  %v1706_v8 = vmul.f32 0.35355338, %v1287_v39  ;;  %v1781_v46 = vsel %vm404_vm0, %v11799_v5, -inf }
 0x3d0   : > { %v1790_v29 = vsel %vm404_vm0, %v11804_v36, -inf  ;;  %v11811_v35 = vadd.f32 %v11781_v14, %v1706_v8 }
 0x3d1   : > { %1782 = vmax.xlane.f32.xlu0 %v1781_v46  ;;  %1791 = vmax.xlane.f32.xlu1 %v1790_v29 }
 0x3d2   : > { %v1784_v54 = vsel %vm404_vm0, %v11811_v35, -inf }
 0x3d5   : > { %1785 = vmax.xlane.f32.xlu1 %v1784_v54 }
 0x3d7   : > { %v9394_v52 = vpop.f32.mrf.mxu1 }
 0x3d8   : > { %v1711_v17 = vmul.f32 0.35355338, %v9394_v52 }
 0x3d9   : > { %v1351_v53 = vpop.f32.mrf.mxu1 }
 0x3da   : > { %v11816_v23 = vadd.f32 %v11767_v22, %v1711_v17  ;;  %v1709_v51 = vmul.f32 0.35355338, %v1351_v53 }
 0x3db   : > { %v9395_v4 = vpop.f32.mrf.mxu1  ;;  %v9410_v58 = vpop.f32.mrf.mxu0 }
 0x3dc   : > { %v1712_v30 = vmul.f32 0.35355338, %v9395_v4  ;;  %v1719_v33 = vmul.f32 0.35355338, %v9410_v58  ;;  %v1799_v56 = vsel %vm404_vm0, %v11816_v23, -inf  ;;  %v11827_v63 = vadd.f32 %v11769_v21, %v1709_v51 }
 0x3dd   : > { %1800 = vmax.xlane.f32.xlu0 %v1799_v56  ;;  %v1354_v62 = vpop.f32.mrf.mxu1  ;;  %v1485_v0 = vpop.f32.mrf.mxu0 }
 0x3de   : > { %v11821_v9 = vadd.f32 %v11779_v28, %v1712_v30  ;;  %v11824_v6 = vadd.f32 %v11767_v22, %v1719_v33  ;;  %v1710_v60 = vmul.f32 0.35355338, %v1354_v62  ;;  %v1717_v44 = vmul.f32 0.35355338, %v1485_v0 }
 0x3df   : > { %v9411_v11 = vpop.f32.mrf.mxu0  ;;  %v1793_v27 = vsel %vm404_vm0, %v11827_v63, -inf }
 0x3e0   : > { %v1720_v1 = vmul.f32 0.35355338, %v9411_v11  ;;  %v1802_v3 = vsel %vm404_vm0, %v11821_v9, -inf  ;;  %v1823_v13 = vsel %vm404_vm0, %v11824_v6, -inf  ;;  %v11839_v7 = vadd.f32 %v11769_v21, %v1717_v44 }
 0x3e1   : > { %1803 = vmax.xlane.f32.xlu1 %v1802_v3  ;;  %1824 = vmax.xlane.f32.xlu0 %v1823_v13  ;;  %v1488_v34 = vpop.f32.mrf.mxu0  ;;  %v11844_v20 = vadd.f32 %v11781_v14, %v1710_v60 }
 0x3e2   : > { %v11834_v26 = vadd.f32 %v11779_v28, %v1720_v1  ;;  %v1718_v19 = vmul.f32 0.35355338, %v1488_v34  ;;  %v1817_v46 = vsel %vm404_vm0, %v11839_v7, -inf }
 0x3e3   : > { %v1796_v29 = vsel %vm404_vm0, %v11844_v20, -inf }
 0x3e4   : > { %v1826_v49 = vsel %vm404_vm0, %v11834_v26, -inf  ;;  %v11851_v54 = vadd.f32 %v11781_v14, %v1718_v19 }
 0x3e5   : > { %1794 = vmax.xlane.f32.xlu0 %v1793_v27  ;;  %1827 = vmax.xlane.f32.xlu1 %v1826_v49 }
 0x3e6   : > { %v1820_v56 = vsel %vm404_vm0, %v11851_v54, -inf }
 0x3e7   : > { %v9402_v39 = vpop.f32.mrf.mxu1 }
 0x3e8   : > { %v1715_v8 = vmul.f32 0.35355338, %v9402_v39 }
 0x3e9   : > { %v1418_v52 = vpop.f32.mrf.mxu1  ;;  %1818 = vmax.xlane.f32.xlu0 %v1817_v46  ;;  %1797 = vmax.xlane.f32.xlu1 %v1796_v29 }
 0x3ea   : > { %v11854_v17 = vadd.f32 %v11767_v22, %v1715_v8  ;;  %v1713_v53 = vmul.f32 0.35355338, %v1418_v52 }
 0x3eb   : > { %v9403_v51 = vpop.f32.mrf.mxu1  ;;  %v9426_v4 = vpop.f32.mrf.mxu0 }
 0x3ec   : > { %v1716_v58 = vmul.f32 0.35355338, %v9403_v51  ;;  %v1727_v30 = vmul.f32 0.35355338, %v9426_v4  ;;  %v1811_v33 = vsel %vm404_vm0, %v11854_v17, -inf  ;;  %v11867_v44 = vadd.f32 %v11769_v21, %v1713_v53 }
 0x3ed   : > { %v1421_v62 = vpop.f32.mrf.mxu1  ;;  %1812 = vmax.xlane.f32.xlu0 %v1811_v33  ;;  %1821 = vmax.xlane.f32.xlu1 %v1820_v56  ;;  %v1619_v0 = vpop.f32.mrf.mxu0 }
 0x3ee   : > { %v11861_v60 = vadd.f32 %v11779_v28, %v1716_v58  ;;  %v11864_v11 = vadd.f32 %v11767_v22, %v1727_v30  ;;  %v1714_v1 = vmul.f32 0.35355338, %v1421_v62  ;;  %v1725_v13 = vmul.f32 0.35355338, %v1619_v0 }
 0x3ef   : > { %v9427_v3 = vpop.f32.mrf.mxu0  ;;  %v1805_v8 = vsel %vm404_vm0, %v11867_v44, -inf }
 0x3f0   : > { %v1728_v34 = vmul.f32 0.35355338, %v9427_v3  ;;  %v1814_v27 = vsel %vm404_vm0, %v11861_v60, -inf  ;;  %v1847_v19 = vsel %vm404_vm0, %v11864_v11, -inf  ;;  %v11879_v46 = vadd.f32 %v11769_v21, %v1725_v13 }
 0x3f1   : > { %1815 = vmax.xlane.f32.xlu1 %v1814_v27  ;;  %1848 = vmax.xlane.f32.xlu0 %v1847_v19  ;;  %v1622_v49 = vpop.f32.mrf.mxu0  ;;  %v11884_v53 = vadd.f32 %v11781_v14, %v1714_v1 }
 0x3f2   : > { %v11874_v39 = vadd.f32 %v11779_v28, %v1728_v34  ;;  %v1726_v29 = vmul.f32 0.35355338, %v1622_v49  ;;  %v1841_v58 = vsel %vm404_vm0, %v11879_v46, -inf }
 0x3f3   : > { %v1808_v30 = vsel %vm404_vm0, %v11884_v53, -inf }
 0x3f4   : > { %v1850_v52 = vsel %vm404_vm0, %v11874_v39, -inf  ;;  %v11891_v33 = vadd.f32 %v11781_v14, %v1726_v29 }
 0x3f5   : > { %1806 = vmax.xlane.f32.xlu0 %v1805_v8  ;;  %1851 = vmax.xlane.f32.xlu1 %v1850_v52 }
 0x3f6   : > { %v1844_v27 = vsel %vm404_vm0, %v11891_v33, -inf }
 0x3f7   : > { %v9418_v51 = vpop.f32.mrf.mxu1 }
 0x3f8   : > { %v1723_v4 = vmul.f32 0.35355338, %v9418_v51 }
 0x3f9   : > { %v1552_v56 = vpop.f32.mrf.mxu1  ;;  %1842 = vmax.xlane.f32.xlu0 %v1841_v58  ;;  %1809 = vmax.xlane.f32.xlu1 %v1808_v30  ;;  %v11915_v58 = vpop.permute.xlu0 %2320 }
 0x3fa   : > { %v11894_v62 = vadd.f32 %v11767_v22, %v1723_v4  ;;  %v1721_v0 = vmul.f32 0.35355338, %v1552_v56  ;;  %v11919_v56 = vpop.permute.xlu1 %2322 }
 0x3fb   : > { %v9419_v1 = vpop.f32.mrf.mxu1 }
 0x3fc   : > { %v11897_v3 = vadd.f32 %v11769_v21, %v1721_v0  ;;  %v1724_v13 = vmul.f32 0.35355338, %v9419_v1  ;;  %v1835_v34 = vsel %vm404_vm0, %v11894_v62, -inf }
 0x3fd   : > { %v1555_v19 = vpop.f32.mrf.mxu1  ;;  %1836 = vmax.xlane.f32.xlu0 %v1835_v34  ;;  %1845 = vmax.xlane.f32.xlu1 %v1844_v27  ;;  %v11917_v30 = vpop.permute.xlu0 %2381 }
 0x3fe   : > { %v11904_v49 = vadd.f32 %v11779_v28, %v1724_v13  ;;  %v1722_v8 = vmul.f32 0.35355338, %v1555_v19  ;;  %v1829_v29 = vsel %vm404_vm0, %v11897_v3, -inf  ;;  %v11923_v1 = vpop.permute.xlu1 %2505 }
 0x3ff   : > { %14639 = vst [vmem:[#allocation21_spill] sm:$0xff] %v11923_v1 }
 0x400   : > { %v1838_v52 = vsel %vm404_vm0, %v11904_v49, -inf  ;;  %v11911_v51 = vadd.f32 %v11781_v14, %v1722_v8 }
 0x401   : > { %1830 = vmax.xlane.f32.xlu0 %v1829_v29  ;;  %1839 = vmax.xlane.f32.xlu1 %v1838_v52  ;;  %v11921_v0 = vpop.permute.xlu0 %2444 }
 0x402   : > { %v1832_v4 = vsel %vm404_vm0, %v11911_v51, -inf  ;;  %v11927_v34 = vpop.permute.xlu1 %2503 }
 0x403   : > { %14641 = vst [vmem:[#allocation23_spill] sm:$0xff] %v11927_v34 }
 0x405   : > { %1833 = vmax.xlane.f32.xlu1 %v1832_v4  ;;  %v11925_v13 = vpop.permute.xlu0 %2442 }
 0x406   : > { %14640 = vst [vmem:[#allocation22_spill] sm:$0xff] %v11925_v13  ;;  %v11932_v29 = vpop.permute.xlu1 %2792 }
 0x409   : > { %v11929_v27 = vpop.permute.xlu0 %2566 }
 0x40a   : > { %14642 = vst [vmem:[#allocation24_spill] sm:$0xff] %v11929_v27 }
 0x446   : > { %v1777_v19 = vpop.xlane.xlu0 %1776 }
 0x447   : > { %v1867_v8 = vsub.f32 %v11772_v12, %v1777_v19 }
 0x449   : > { %v1901_v52 = vmul.f32 1.442695, %v1867_v8 }
 0x44a   : > { %v1771_v4 = vpop.xlane.xlu0 %1770 }
 0x44b   : > { %10168 = vpow2.f32 %v1901_v52  ;;  %v1865_v41 = vsub.f32 %v11775_v37, %v1771_v4 }
 0x44c   : > { %v1774_v25 = vpop.xlane.xlu1 %1773  ;;  %v9434_v38 = vpop.f32.mrf.mxu1 }
 0x44d   : > { %v1897_v40 = vmul.f32 1.442695, %v1865_v41  ;;  %v1731_v1 = vmul.f32 0.35355338, %v9434_v38  ;;  %v1866_v13 = vsub.f32 %v11789_v15, %v1774_v25 }
 0x44e   : > { %v1686_v47 = vpop.f32.mrf.mxu1  ;;  %v1780_v34 = vpop.xlane.xlu0 %1779 }
 0x44f   : > { %10170 = vpow2.f32 %v1897_v40  ;;  %v11937_v27 = vadd.f32 %v11767_v22, %v1731_v1  ;;  %v1729_v12 = vmul.f32 0.35355338, %v1686_v47  ;;  %v1868_v19 = vsub.f32 %v11784_v61, %v1780_v34 }
 0x450   : > { %v9435_v8 = vpop.f32.mrf.mxu1  ;;  %v1899_v38 = vmul.f32 1.442695, %v1866_v13 }
 0x451   : > { %v11941_v52 = vadd.f32 %v11769_v21, %v1729_v12  ;;  %v1732_v37 = vmul.f32 0.35355338, %v9435_v8  ;;  %v1859_v41 = vsel %vm404_vm0, %v11937_v27, -inf  ;;  %v1903_v4 = vmul.f32 1.442695, %v1868_v19 }
 0x452   : > { %1860 = vmax.xlane.f32.xlu0 %v1859_v41  ;;  %v1689_v25 = vpop.f32.mrf.mxu1 }
 0x453   : > { %v11946_v40 = vadd.f32 %v11779_v28, %v1732_v37  ;;  %v1730_v22 = vmul.f32 0.35355338, %v1689_v25  ;;  %10172 = vpow2.f32 %v1903_v4  ;;  %v1853_v47 = vsel %vm404_vm0, %v11941_v52, -inf }
 0x454   : > { %10174 = vpow2.f32 %v1899_v38 }
 0x455   : > { %v1862_v21 = vsel %vm404_vm0, %v11946_v40, -inf  ;;  %v11953_v61 = vadd.f32 %v11781_v14, %v1730_v22 }
 0x456   : > { %1854 = vmax.xlane.f32.xlu0 %v1853_v47  ;;  %1863 = vmax.xlane.f32.xlu1 %v1862_v21  ;;  %v1789_v15 = vpop.xlane.xlu0 %1788 }
 0x457   : > { %v1871_v1 = vsub.f32 %v11796_v50, %v1789_v15  ;;  %v1856_v34 = vsel %vm404_vm0, %v11953_v61, -inf }
 0x458   : > { %v11956_v13 = vpop.eup %10168 }
 0x459   : > { %v1909_v28 = vmul.f32 1.442695, %v1871_v1  ;;  %v1967_v12 = vsel %vm404_vm0, %v11956_v13, 0.0 }
 0x45a   : > { %v1792_v19 = vpop.xlane.xlu1 %1791  ;;  %1857 = vmax.xlane.f32.xlu1 %v1856_v34  ;;  %1968 = vadd.xlane.f32.xlu0 %v1967_v12  ;;  %v1783_v14 = vpop.xlane.xlu0 %1782 }
 0x45b   : > { %10176 = vpow2.f32 %v1909_v28  ;;  %v1872_v8 = vsub.f32 %v11804_v36, %v1792_v19  ;;  %v1869_v37 = vsub.f32 %v11799_v5, %v1783_v14 }
 0x45c   : > { %v11964_v41 = vpop.eup %10170 }
 0x45d   : > { %v1911_v50 = vmul.f32 1.442695, %v1872_v8  ;;  %v1905_v38 = vmul.f32 1.442695, %v1869_v37  ;;  %v1961_v4 = vsel %vm404_vm0, %v11964_v41, 0.0 }
 0x45e   : > { %v1786_v25 = vpop.xlane.xlu1 %1785  ;;  %1962 = vadd.xlane.f32.xlu0 %v1961_v4 }
 0x45f   : > { %10178 = vpow2.f32 %v1911_v50  ;;  %v1870_v22 = vsub.f32 %v11811_v35, %v1786_v25 }
 0x460   : > { %10180 = vpow2.f32 %v1905_v38  ;;  %v11969_v47 = vpop.eup %10172 }
 0x461   : > { %v1907_v21 = vmul.f32 1.442695, %v1870_v22  ;;  %v1970_v36 = vsel %vm404_vm0, %v11969_v47, 0.0  ;;  %v11973_v5 = vpop.eup %10174 }
 0x462   : > { %1971 = vadd.xlane.f32.xlu1 %v1970_v36  ;;  %v1964_v15 = vsel %vm404_vm0, %v11973_v5, 0.0 }
 0x463   : > { %10182 = vpow2.f32 %v1907_v21 }
 0x466   : > { %v1801_v1 = vpop.xlane.xlu0 %1800  ;;  %1965 = vadd.xlane.f32.xlu1 %v1964_v15 }
 0x467   : > { %v1875_v28 = vsub.f32 %v11816_v23, %v1801_v1 }
 0x468   : > { %v11978_v34 = vpop.eup %10176 }
 0x469   : > { %v1917_v35 = vmul.f32 1.442695, %v1875_v28  ;;  %v1979_v12 = vsel %vm404_vm0, %v11978_v34, 0.0 }
 0x46a   : > { %v1804_v19 = vpop.xlane.xlu1 %1803  ;;  %1980 = vadd.xlane.f32.xlu0 %v1979_v12  ;;  %v1825_v14 = vpop.xlane.xlu0 %1824 }
 0x46b   : > { %10184 = vpow2.f32 %v1917_v35  ;;  %v1876_v8 = vsub.f32 %v11821_v9, %v1804_v19  ;;  %v1883_v37 = vsub.f32 %v11824_v6, %v1825_v14 }
 0x46c   : > { %v11984_v50 = vpop.eup %10178 }
 0x46d   : > { %v11986_v38 = vpop.eup %10180  ;;  %v1919_v4 = vmul.f32 1.442695, %v1876_v8  ;;  %v1933_v23 = vmul.f32 1.442695, %v1883_v37  ;;  %v1982_v25 = vsel %vm404_vm0, %v11984_v50, 0.0 }
 0x46e   : > { %v1828_v22 = vpop.xlane.xlu1 %1827  ;;  %1983 = vadd.xlane.f32.xlu1 %v1982_v25  ;;  %v1973_v21 = vsel %vm404_vm0, %v11986_v38, 0.0  ;;  %v1795_v36 = vpop.xlane.xlu0 %1794 }
 0x46f   : > { %10186 = vpow2.f32 %v1919_v4  ;;  %v1884_v9 = vsub.f32 %v11834_v26, %v1828_v22  ;;  %1974 = vadd.xlane.f32.xlu0 %v1973_v21  ;;  %v1873_v6 = vsub.f32 %v11827_v63, %v1795_v36 }
 0x470   : > { %v11994_v15 = vpop.eup %10182  ;;  %10188 = vpow2.f32 %v1933_v23 }
 0x471   : > { %v1935_v1 = vmul.f32 1.442695, %v1884_v9  ;;  %v1913_v28 = vmul.f32 1.442695, %v1873_v6  ;;  %v1976_v35 = vsel %vm404_vm0, %v11994_v15, 0.0 }
 0x472   : > { %v1798_v12 = vpop.xlane.xlu1 %1797  ;;  %1977 = vadd.xlane.f32.xlu1 %v1976_v35  ;;  %v1819_v19 = vpop.xlane.xlu0 %1818 }
 0x473   : > { %10190 = vpow2.f32 %v1935_v1  ;;  %v1874_v14 = vsub.f32 %v11844_v20, %v1798_v12  ;;  %v1881_v8 = vsub.f32 %v11839_v7, %v1819_v19 }
 0x474   : > { %10192 = vpow2.f32 %v1913_v28 }
 0x475   : > { %v1915_v26 = vmul.f32 1.442695, %v1874_v14  ;;  %v1929_v37 = vmul.f32 1.442695, %v1881_v8 }
 0x476   : > { %v1822_v63 = vpop.xlane.xlu1 %1821  ;;  %v1813_v4 = vpop.xlane.xlu0 %1812 }
 0x477   : > { %10194 = vpow2.f32 %v1915_v26  ;;  %v1882_v23 = vsub.f32 %v11851_v54, %v1822_v63  ;;  %v1879_v25 = vsub.f32 %v11854_v17, %v1813_v4 }
 0x478   : > { %v12002_v22 = vpop.eup %10184  ;;  %10196 = vpow2.f32 %v1929_v37 }
 0x479   : > { %v1931_v21 = vmul.f32 1.442695, %v1882_v23  ;;  %v1925_v36 = vmul.f32 1.442695, %v1879_v25  ;;  %v1991_v20 = vsel %vm404_vm0, %v12002_v22, 0.0 }
 0x47a   : > { %v1816_v9 = vpop.xlane.xlu1 %1815  ;;  %1992 = vadd.xlane.f32.xlu0 %v1991_v20  ;;  %v1849_v7 = vpop.xlane.xlu0 %1848 }
 0x47b   : > { %10198 = vpow2.f32 %v1931_v21  ;;  %v1891_v6 = vsub.f32 %v11864_v11, %v1849_v7  ;;  %v1880_v63 = vsub.f32 %v11861_v60, %v1816_v9 }
 0x47c   : > { %v12007_v1 = vpop.eup %10186  ;;  %10200 = vpow2.f32 %v1925_v36 }
 0x47d   : > { %v12009_v54 = vpop.eup %10188  ;;  %v1949_v17 = vmul.f32 1.442695, %v1891_v6  ;;  %v1994_v28 = vsel %vm404_vm0, %v12007_v1, 0.0  ;;  %v1927_v6 = vmul.f32 1.442695, %v1880_v63 }
 0x47e   : > { %1995 = vadd.xlane.f32.xlu1 %v1994_v28  ;;  %v2015_v35 = vsel %vm404_vm0, %v12009_v54, 0.0  ;;  %v1807_v12 = vpop.xlane.xlu0 %1806  ;;  %v1852_v19 = vpop.xlane.xlu1 %1851 }
 0x47f   : > { %2016 = vadd.xlane.f32.xlu0 %v2015_v35  ;;  %v1877_v14 = vsub.f32 %v11867_v44, %v1807_v12  ;;  %10202 = vpow2.f32 %v1949_v17  ;;  %v1892_v60 = vsub.f32 %v11874_v39, %v1852_v19 }
 0x480   : > { %v12016_v8 = vpop.eup %10190 }
 0x481   : > { %v12018_v11 = vpop.eup %10192  ;;  %v1921_v26 = vmul.f32 1.442695, %v1877_v14  ;;  %v2018_v37 = vsel %vm404_vm0, %v12016_v8, 0.0  ;;  %v1951_v35 = vmul.f32 1.442695, %v1892_v60 }
 0x482   : > { %2019 = vadd.xlane.f32.xlu1 %v2018_v37  ;;  %v1985_v4 = vsel %vm404_vm0, %v12018_v11, 0.0  ;;  %v1843_v23 = vpop.xlane.xlu0 %1842  ;;  %v1810_v36 = vpop.xlane.xlu1 %1809 }
 0x483   : > { %1986 = vadd.xlane.f32.xlu0 %v1985_v4  ;;  %v1889_v25 = vsub.f32 %v11879_v46, %v1843_v23  ;;  %10204 = vpow2.f32 %v1921_v26  ;;  %v1878_v12 = vsub.f32 %v11884_v53, %v1810_v36 }
 0x484   : > { %v12026_v44 = vpop.eup %10194 }
 0x485   : > { %v12028_v21 = vpop.eup %10196  ;;  %v1945_v20 = vmul.f32 1.442695, %v1889_v25  ;;  %v1988_v7 = vsel %vm404_vm0, %v12026_v44, 0.0  ;;  %v1923_v37 = vmul.f32 1.442695, %v1878_v12 }
 0x486   : > { %1989 = vadd.xlane.f32.xlu1 %v1988_v7  ;;  %v2009_v9 = vsel %vm404_vm0, %v12028_v21, 0.0  ;;  %v1846_v19 = vpop.xlane.xlu1 %1845  ;;  %v1837_v26 = vpop.xlane.xlu0 %1836 }
 0x487   : > { %2010 = vadd.xlane.f32.xlu0 %v2009_v9  ;;  %10206 = vpow2.f32 %v1945_v20  ;;  %v1890_v63 = vsub.f32 %v11891_v33, %v1846_v19  ;;  %v1887_v25 = vsub.f32 %v11894_v62, %v1837_v26 }
 0x488   : > { %v12035_v17 = vpop.eup %10198  ;;  %10208 = vpow2.f32 %v1927_v6 }
 0x489   : > { %v12037_v46 = vpop.eup %10200  ;;  %v2012_v28 = vsel %vm404_vm0, %v12035_v17, 0.0  ;;  %10210 = vpow2.f32 %v1951_v35  ;;  %v1947_v53 = vmul.f32 1.442695, %v1890_v63  ;;  %v1941_v33 = vmul.f32 1.442695, %v1887_v25 }
 0x48a   : > { %2013 = vadd.xlane.f32.xlu1 %v2012_v28  ;;  %v2003_v39 = vsel %vm404_vm0, %v12037_v46, 0.0  ;;  %10212 = vpow2.f32 %v1923_v37  ;;  %v1831_v20 = vpop.xlane.xlu0 %1830  ;;  %v1840_v6 = vpop.xlane.xlu1 %1839 }
 0x48b   : > { %2004 = vadd.xlane.f32.xlu0 %v2003_v39  ;;  %10214 = vpow2.f32 %v1947_v53  ;;  %v1885_v60 = vsub.f32 %v11897_v3, %v1831_v20  ;;  %v1888_v62 = vsub.f32 %v11904_v49, %v1840_v6 }
 0x48c   : > { %v12044_v14 = vpop.eup %10202  ;;  %10216 = vpow2.f32 %v1941_v33 }
 0x48d   : > { %v2039_v4 = vsel %vm404_vm0, %v12044_v14, 0.0  ;;  %v1937_v35 = vmul.f32 1.442695, %v1885_v60  ;;  %v1943_v26 = vmul.f32 1.442695, %v1888_v62 }
 0x48e   : > { %v1834_v19 = vpop.xlane.xlu1 %1833 }
 0x48f   : > { %2040 = vadd.xlane.f32.xlu0 %v2039_v4  ;;  %10218 = vpow2.f32 %v1937_v35  ;;  %v1886_v3 = vsub.f32 %v11911_v51, %v1834_v19 }
 0x490   : > { %v12049_v23 = vpop.eup %10204  ;;  %10220 = vpow2.f32 %v1943_v26 }
 0x491   : > { %v1997_v36 = vsel %vm404_vm0, %v12049_v23, 0.0  ;;  %v1939_v49 = vmul.f32 1.442695, %v1886_v3 }
 0x493   : > { %1998 = vadd.xlane.f32.xlu0 %v1997_v36  ;;  %10222 = vpow2.f32 %v1939_v49 }
 0x494   : > { %v12054_v7 = vpop.eup %10206 }
 0x495   : > { %v2033_v9 = vsel %vm404_vm0, %v12054_v7, 0.0  ;;  %v12059_v28 = vpop.eup %10208 }
 0x496   : > { %2034 = vadd.xlane.f32.xlu1 %v2033_v9  ;;  %v2006_v12 = vsel %vm404_vm0, %v12059_v28, 0.0  ;;  %v12064_v39 = vpop.eup %10210 }
 0x497   : > { %v2042_v37 = vsel %vm404_vm0, %v12064_v39, 0.0  ;;  %v12069_v63 = vpop.eup %10212 }
 0x498   : > { %v2000_v4 = vsel %vm404_vm0, %v12069_v63, 0.0  ;;  %v12073_v53 = vpop.eup %10214 }
 0x499   : > { %v2036_v25 = vsel %vm404_vm0, %v12073_v53, 0.0  ;;  %v12077_v36 = vpop.eup %10216 }
 0x49a   : > { %2007 = vadd.xlane.f32.xlu1 %v2006_v12  ;;  %14643 = vst [vmem:[#allocation25_spill] sm:$0xff] %v12077_v36  ;;  %v2027_v51 = vsel %vm404_vm0, %v12077_v36, 0.0 }
 0x49c   : > { %v12083_v20 = vpop.eup %10218 }
 0x49d   : > { %v2021_v6 = vsel %vm404_vm0, %v12083_v20, 0.0  ;;  %v12087_v33 = vpop.eup %10220 }
 0x49e   : > { %2043 = vadd.xlane.f32.xlu1 %v2042_v37  ;;  %v2030_v60 = vsel %vm404_vm0, %v12087_v33, 0.0 }
 0x4a0   : > { %v12091_v9 = vpop.eup %10222 }
 0x4a1   : > { %v2024_v62 = vsel %vm404_vm0, %v12091_v9, 0.0 }
 0x4a2   : > { %2001 = vadd.xlane.f32.xlu1 %v2000_v4 }
 0x4a6   : > { %2037 = vadd.xlane.f32.xlu1 %v2036_v25 }
 0x4a9   : > { %2564 = vrot.lane.b32.xlu0 %v11677_v45, %s10869_s15 }
 0x4aa   : > { %2028 = vadd.xlane.f32.xlu1 %v2027_v51 }
 0x4ae   : > { %2022 = vadd.xlane.f32.xlu1 %v2021_v6 }
 0x4b2   : > { %2031 = vadd.xlane.f32.xlu1 %v2030_v60 }
 0x4b6   : > { %2025 = vadd.xlane.f32.xlu1 %v2024_v62 }
 0x4c7   : > { %2790 = vrot.lane.b32.xlu1 %v11573_v57, %s10870_s20 }
 0x4db   : > { %v1861_v35 = vpop.xlane.xlu0 %1860 }
 0x4dc   : > { %v1895_v12 = vsub.f32 %v11937_v27, %v1861_v35 }
 0x4de   : > { %v1957_v19 = vmul.f32 1.442695, %v1895_v12 }
 0x4df   : > { %v1864_v26 = vpop.xlane.xlu1 %1863  ;;  %v1855_v3 = vpop.xlane.xlu0 %1854 }
 0x4e0   : > { %10224 = vpow2.f32 %v1957_v19  ;;  %v1896_v37 = vsub.f32 %v11946_v40, %v1864_v26  ;;  %v1893_v49 = vsub.f32 %v11941_v52, %v1855_v3 }
 0x4e2   : > { %v1953_v4 = vmul.f32 1.442695, %v1893_v49  ;;  %v1959_v25 = vmul.f32 1.442695, %v1896_v37 }
 0x4e3   : > { %v1858_v51 = vpop.xlane.xlu1 %1857  ;;  %v1969_v62 = vpop.xlane.xlu0 %1968 }
 0x4e4   : > { %v1894_v6 = vsub.f32 %v11953_v61, %v1858_v51  ;;  %10226 = vpow2.f32 %v1953_v4 }
 0x4e5   : > { %10228 = vpow2.f32 %v1959_v25 }
 0x4e6   : > { %v1955_v60 = vmul.f32 1.442695, %v1894_v6 }
 0x4e7   : > { %v1963_v36 = vpop.xlane.xlu0 %1962 }
 0x4e8   : > { %10230 = vpow2.f32 %v1955_v60 }
 0x4eb   : > { %v1972_v27 = vpop.xlane.xlu1 %1971 }
 0x4ec   : > { %10232 = vrcp.f32 %v1972_v27 }
 0x4ed   : > { %v12101_v35 = vpop.eup %10224  ;;  %10234 = vrcp.f32 %v1963_v36 }
 0x4ee   : > { %v2051_v40 = vsel %vm404_vm0, %v12101_v35, 0.0  ;;  %10236 = vrcp.f32 %v1969_v62 }
 0x4ef   : > { %2052 = vadd.xlane.f32.xlu0 %v2051_v40  ;;  %v1966_v52 = vpop.xlane.xlu1 %1965 }
 0x4f0   : > { %10238 = vrcp.f32 %v1966_v52 }
 0x4f1   : > { %v12105_v12 = vpop.eup %10226 }
 0x4f2   : > { %v2045_v61 = vsel %vm404_vm0, %v12105_v12, 0.0  ;;  %v12109_v26 = vpop.eup %10228 }
 0x4f3   : > { %v1981_v19 = vpop.xlane.xlu0 %1980  ;;  %2046 = vadd.xlane.f32.xlu0 %v2045_v61  ;;  %v2054_v36 = vsel %vm404_vm0, %v12109_v26, 0.0 }
 0x4f5   : > { %v12111_v3 = vpop.eup %10230 }
 0x4f6   : > { %v2048_v37 = vsel %vm404_vm0, %v12111_v3, 0.0 }
 0x4f7   : > { %v1984_v49 = vpop.xlane.xlu1 %1983  ;;  %2049 = vadd.xlane.f32.xlu1 %v2048_v37  ;;  %2055 = vadd.xlane.f32.xlu0 %v2054_v36 }
 0x4f8   : > { %v1975_v4 = vpop.xlane.xlu0 %1974  ;;  %10240 = vrcp.f32 %v1984_v49 }
 0x4f9   : > { %10242 = vrcp.f32 %v1975_v4  ;;  %v10233_v25 = vpop.eup %10232 }
 0x4fa   : > { %10244 = vrcp.f32 %v1981_v19  ;;  %v10235_v6 = vpop.eup %10234  ;;  %v2092_v27 = vmul.f32 %v10233_v25, %v11969_v47 }
 0x4fb   : > { %v1978_v51 = vpop.xlane.xlu1 %1977  ;;  %v10237_v60 = vpop.eup %10236  ;;  %v2089_v40 = vmul.f32 %v10235_v6, %v11964_v41 }
 0x4fc   : > { %10246 = vrcp.f32 %v1978_v51  ;;  %v2091_v61 = vmul.f32 %v10237_v60, %v11956_v13 }
 0x4fd   : > { %v10239_v62 = vpop.eup %10238 }
 0x4fe   : > { %v2090_v52 = vmul.f32 %v10239_v62, %v11973_v5  ;;  %v2122_v36 = vpack.c.bf16 %v2092_v27, %v2091_v61 }
 0x500   : > { %v2121_v37 = vpack.c.bf16 %v2090_v52, %v2089_v40 }
 0x502   : > { %9440 = vmatprep.mubr.msk.bf16.mxu0 %vm404_vm0, %v2121_v37 }
 0x503   : > { %v1993_v49 = vpop.xlane.xlu0 %1992  ;;  %9441 = vmatmul.mubr.msk.bf16.vlgmr.msra.gmra.mxu0 %vm404_vm0, %v2122_v36 }
 0x504   : > { %9445 = vmatpush3.bf16.msra.mxu0 %v11756_v24 }
 0x505   : > { %v10241_v19 = vpop.eup %10240  ;;  %9446 = vmatprep.subr.bf16.mxu0 %v11759_v59 }
 0x506   : > { %v10243_v4 = vpop.eup %10242  ;;  %v2096_v5 = vmul.f32 %v10241_v19, %v11984_v50 }
 0x507   : > { %v1996_v47 = vpop.xlane.xlu1 %1995  ;;  %v10245_v25 = vpop.eup %10244  ;;  %v2093_v24 = vmul.f32 %v10243_v4, %v11986_v38 }
 0x508   : > { %v2017_v41 = vpop.xlane.xlu0 %2016  ;;  %2786 = vrot.lane.b32.xlu1 %v11573_v57, %s10871_s21  ;;  %9447 = vmatpush3.bf16.msra.mxu0 %v11759_v59  ;;  %v2095_v60 = vmul.f32 %v10245_v25, %v11978_v34  ;;  %10248 = vrcp.f32 %v1996_v47 }
 0x509   : > { %v10247_v13 = vpop.eup %10246  ;;  %9460 = vmatprep.subr.bf16.mxu0 %v11919_v56 }
 0x50a   : > { %v2094_v51 = vmul.f32 %v10247_v13, %v11994_v15  ;;  %v2124_v40 = vpack.c.bf16 %v2096_v5, %v2095_v60  ;;  %v14645_v60 = vld [vmem:[#allocation21_spill] sm:$0xff] }
 0x50b   : > { %v2020_v6 = vpop.xlane.xlu1 %2019 }
 0x50c   : > { %v1987_v62 = vpop.xlane.xlu0 %1986  ;;  %2930 = vrot.lane.b32.xlu1 %v11596_v16, %s10870_s20  ;;  %v2123_v27 = vpack.c.bf16 %v2094_v51, %v2093_v24 }
 0x50d   : > { %10250 = vrcp.f32 %v1987_v62  ;;  %2861 = vrot.lane.b32.xlu0 %v11583_v55, %s10870_s20 }
 0x50e   : > { %9448 = vmatprep.mubr.msk.bf16.mxu0 %vm404_vm0, %v2123_v27  ;;  %10252 = vrcp.f32 %v1993_v49 }
 0x50f   : > { %v1990_v59 = vpop.xlane.xlu1 %1989  ;;  %9449 = vmatmul.mubr.msk.bf16.vlgmr.msra.gmra.mxu0 %vm404_vm0, %v2124_v40  ;;  %v14648_v40 = vld [vmem:[#allocation17_spill] sm:$0xff] }
 0x510   : > { %10254 = vrcp.f32 %v1990_v59  ;;  %9461 = vmatpush3.bf16.msra.mxu0 %v11919_v56  ;;  %v2011_v34 = vpop.xlane.xlu0 %2010  ;;  %2855 = vrot.lane.b32.xlu1 %v11589_v10, %s10871_s21 }
 0x511   : > { %9462 = vmatprep.subr.bf16.mxu0 %v11915_v58  ;;  %10256 = vrcp.f32 %v2011_v34  ;;  %2859 = vrot.lane.b32.xlu0 %v11589_v10, %s10870_s20  ;;  %v14649_v34 = vld [vmem:[#allocation20_spill] sm:$0xff] }
 0x513   : > { %v2014_v50 = vpop.xlane.xlu1 %2013 }
 0x514   : > { %10258 = vrcp.f32 %v2014_v50  ;;  %9463 = vmatpush3.bf16.msra.mxu0 %v11915_v58  ;;  %2999 = vrot.lane.b32.xlu1 %v11608_v2, %s10870_s20  ;;  %v2005_v58 = vpop.xlane.xlu0 %2004 }
 0x515   : > { %10260 = vrcp.f32 %v2020_v6  ;;  %9476 = vmatprep.subr.bf16.mxu0 %v11921_v0  ;;  %2788 = vrot.lane.b32.xlu0 %v11570_v42, %s10871_s21  ;;  %v10249_v56 = vpop.eup %10248 }
 0x516   : > { %10262 = vrcp.f32 %v2017_v41  ;;  %v2100_v61 = vmul.f32 %v10249_v56, %v12007_v1 }
 0x518   : > { %2924 = vrot.lane.b32.xlu1 %v11599_v32, %s10871_s21  ;;  %v2041_v5 = vpop.xlane.xlu0 %2040 }
 0x519   : > { %2928 = vrot.lane.b32.xlu0 %v11599_v32, %s10870_s20 }
 0x51a   : > { %v10251_v38 = vpop.eup %10250 }
 0x51b   : > { %v10253_v15 = vpop.eup %10252  ;;  %v2097_v37 = vmul.f32 %v10251_v38, %v12018_v11 }
 0x51c   : > { %3068 = vrot.lane.b32.xlu1 %v11620_v18, %s10870_s20  ;;  %v2099_v19 = vmul.f32 %v10253_v15, %v12002_v22  ;;  %v14650_v15 = vld [vmem:[#allocation19_spill] sm:$0xff] }
 0x51d   : > { %v10255_v52 = vpop.eup %10254  ;;  %2857 = vrot.lane.b32.xlu0 %v11583_v55, %s10871_s21 }
 0x51e   : > { %v2098_v36 = vmul.f32 %v10255_v52, %v12026_v44  ;;  %v10257_v49 = vpop.eup %10256  ;;  %v2126_v41 = vpack.c.bf16 %v2100_v61, %v2099_v19 }
 0x51f   : > { %v2035_v4 = vpop.xlane.xlu1 %2034  ;;  %v2105_v1 = vmul.f32 %v10257_v49, %v12028_v21 }
 0x520   : > { %2993 = vrot.lane.b32.xlu1 %v11611_v48, %s10871_s21  ;;  %v2125_v47 = vpack.c.bf16 %v2098_v36, %v2097_v37 }
 0x521   : > { %v10259_v25 = vpop.eup %10258  ;;  %2997 = vrot.lane.b32.xlu0 %v11611_v48, %s10870_s20 }
 0x522   : > { %v10261_v13 = vpop.eup %10260  ;;  %9456 = vmatprep.mubr.msk.bf16.mxu1 %vm404_vm0, %v2125_v47  ;;  %v2106_v11 = vmul.f32 %v10259_v25, %v12035_v17  ;;  %v1999_v17 = vpop.xlane.xlu0 %1998 }
 0x523   : > { %9457 = vmatmul.mubr.msk.bf16.vlgmr.msra.gmra.mxu1 %vm404_vm0, %v2126_v41  ;;  %v10263_v22 = vpop.eup %10262  ;;  %v2008_v44 = vpop.xlane.xlu1 %2007  ;;  %v2108_v51 = vmul.f32 %v10261_v13, %v12016_v8 }
 0x524   : > { %9469 = vmatpush3.bf16.msra.mxu1 %v11764_v43  ;;  %3137 = vrot.lane.b32.xlu1 %v11634_v31, %s10870_s20  ;;  %v2129_v24 = vpack.c.bf16 %v2106_v11, %v2105_v1  ;;  %v2107_v21 = vmul.f32 %v10263_v22, %v12009_v54  ;;  %v14644_v43 = vld [vmem:[#allocation16_spill] sm:$0xff]  ;;  %10264 = vrcp.f32 %v2008_v44  ;;  %v14646_v54 = vld [vmem:[#allocation18_spill] sm:$0xff]  ;;  %v2804_v22 = vsel %vm1170_vm1, %v11932_v29, 0 }
 0x525   : > { %9470 = vmatprep.subr.bf16.mxu1 %v11917_v30  ;;  %2926 = vrot.lane.b32.xlu0 %v11596_v16, %s10871_s21  ;;  %10266 = vrcp.f32 %v1999_v17  ;;  %v14651_v11 = vld [vmem:[#allocation22_spill] sm:$0xff] }
 0x526   : > { %9472 = vmatprep.mubr.msk.bf16.mxu1 %vm404_vm0, %v2129_v24  ;;  %v2130_v62 = vpack.c.bf16 %v2108_v51, %v2107_v21  ;;  %10268 = vrcp.f32 %v2005_v58 }
 0x527   : > { %v2044_v6 = vpop.xlane.xlu1 %2043 }
 0x528   : > { %9471 = vmatpush3.bf16.msra.mxu1 %v11917_v30  ;;  %3062 = vrot.lane.b32.xlu1 %v14644_v43, %s10871_s21  ;;  %v14647_v30 = vld [vmem:[#allocation23_spill] sm:$0xff] }
 0x529   : > { %9484 = vmatprep.subr.bf16.mxu1 %v14645_v60  ;;  %3066 = vrot.lane.b32.xlu0 %v14644_v43, %s10870_s20 }
 0x52b   : > { %9473 = vmatmul.mubr.msk.bf16.vlgmr.msra.gmra.mxu1 %vm404_vm0, %v2130_v62  ;;  %v2002_v8 = vpop.xlane.xlu1 %2001 }
 0x52c   : > { %9485 = vmatpush3.bf16.msra.mxu1 %v14645_v60  ;;  %3206 = vrot.lane.b32.xlu1 %v14646_v54, %s10870_s20  ;;  %10270 = vrcp.f32 %v2002_v8  ;;  %v14653_v60 = vld [vmem:[#allocation25_spill] sm:$0xff] }
 0x52d   : > { %9486 = vmatprep.subr.bf16.mxu1 %v14647_v30  ;;  %10272 = vrcp.f32 %v2044_v6  ;;  %2995 = vrot.lane.b32.xlu0 %v11608_v2, %s10871_s21 }
 0x52e   : > { %10274 = vrcp.f32 %v2035_v4 }
 0x52f   : > { %10276 = vrcp.f32 %v2041_v5  ;;  %v2038_v27 = vpop.xlane.xlu1 %2037 }
 0x530   : > { %9487 = vmatpush3.bf16.msra.mxu1 %v14647_v30  ;;  %3131 = vrot.lane.b32.xlu1 %v14648_v40, %s10871_s21  ;;  %10278 = vrcp.f32 %v2038_v27 }
 0x531   : > { %9940 = vmatprep.subr.msk.bf16.mxu1 %vm1170_vm1, %v11932_v29  ;;  %3135 = vrot.lane.b32.xlu0 %v14648_v40, %s10870_s20  ;;  %v10265_v50 = vpop.eup %10264 }
 0x532   : > { %v10267_v56 = vpop.eup %10266  ;;  %v2104_v61 = vmul.f32 %v10265_v50, %v12059_v28 }
 0x533   : > { %v2029_v59 = vpop.xlane.xlu1 %2028  ;;  %v10269_v58 = vpop.eup %10268  ;;  %v2101_v36 = vmul.f32 %v10267_v56, %v12049_v23 }
 0x534   : > { %3275 = vrot.lane.b32.xlu1 %v14649_v34, %s10870_s20  ;;  %v2103_v47 = vmul.f32 %v10269_v58, %v12037_v46 }
 0x535   : > { %3064 = vrot.lane.b32.xlu0 %v11620_v18, %s10871_s21 }
 0x536   : > { %v2128_v28 = vpack.c.bf16 %v2104_v61, %v2103_v47 }
 0x537   : > { %v2023_v38 = vpop.xlane.xlu1 %2022 }
 0x538   : > { %3200 = vrot.lane.b32.xlu1 %v14650_v15, %s10871_s21 }
 0x539   : > { %v10271_v52 = vpop.eup %10270  ;;  %3204 = vrot.lane.b32.xlu0 %v14650_v15, %s10870_s20 }
 0x53a   : > { %v10273_v37 = vpop.eup %10272  ;;  %v2102_v49 = vmul.f32 %v10271_v52, %v12069_v63 }
 0x53b   : > { %v10275_v19 = vpop.eup %10274  ;;  %v2032_v4 = vpop.xlane.xlu1 %2031  ;;  %v2116_v5 = vmul.f32 %v10273_v37, %v12064_v39 }
 0x53c   : > { %3273 = vrot.lane.b32.xlu1 %v11677_v45, %s10870_s20  ;;  %v10277_v25 = vpop.eup %10276  ;;  %v2127_v41 = vpack.c.bf16 %v2102_v49, %v2101_v36  ;;  %10280 = vrcp.f32 %v2032_v4  ;;  %v2113_v23 = vmul.f32 %v10275_v19, %v12054_v7 }
 0x53d   : > { %v10279_v13 = vpop.eup %10278  ;;  %3133 = vrot.lane.b32.xlu0 %v11634_v31, %s10871_s21  ;;  %10282 = vrcp.f32 %v2023_v38  ;;  %v2115_v46 = vmul.f32 %v10277_v25, %v12044_v14 }
 0x53e   : > { %9464 = vmatprep.mubr.msk.bf16.mxu0 %vm404_vm0, %v2127_v41  ;;  %v2114_v63 = vmul.f32 %v10279_v13, %v12073_v53  ;;  %10284 = vrcp.f32 %v2029_v59 }
 0x53f   : > { %v2026_v1 = vpop.xlane.xlu1 %2025  ;;  %9465 = vmatmul.mubr.msk.bf16.vlgmr.msra.gmra.mxu0 %vm404_vm0, %v2128_v28  ;;  %v2134_v7 = vpack.c.bf16 %v2116_v5, %v2115_v46 }
 0x540   : > { %3271 = vrot.lane.b32.xlu1 %v14649_v34, %s10871_s21  ;;  %10286 = vrcp.f32 %v2026_v1  ;;  %9477 = vmatpush3.bf16.msra.mxu0 %v11921_v0  ;;  %v2133_v39 = vpack.c.bf16 %v2114_v63, %v2113_v23  ;;  %v14652_v0 = vld [vmem:[#allocation24_spill] sm:$0xff] }
 0x541   : > { %9478 = vmatprep.subr.bf16.mxu0 %v14651_v11  ;;  %3202 = vrot.lane.b32.xlu0 %v14646_v54, %s10871_s21 }
 0x542   : > { %9488 = vmatprep.mubr.msk.bf16.mxu1 %vm404_vm0, %v2133_v39 }
 0x543   : > { %v2791_v53 = vpop.permute.xlu1 %2790  ;;  %9489 = vmatmul.mubr.msk.bf16.vlgmr.msra.gmra.mxu1 %vm404_vm0, %v2134_v7 }
 0x544   : > { %3775 = vrot.lane.b32.xlu1 %v11573_v57, %s10872_s22  ;;  %9479 = vmatpush3.bf16.msra.mxu0 %v14651_v11  ;;  %v2801_v44 = vsel %vm1170_vm1, %v2791_v53, 0 }
 0x545   : > { %9501 = vmatpush3.bf16.xpose.msra.mxu1 %v2804_v22  ;;  %9492 = vmatprep.subr.bf16.mxu0 %v14652_v0 }
 0x546   : > { %9941 = vmatprep.subr.msk.bf16.mxu1 %vm1170_vm1, %v2791_v53  ;;  %3269 = vrot.lane.b32.xlu0 %v11677_v45, %s10871_s21  ;;  %s8529_s21 = sshll.u32 %s11070_s1, 7 }
 0x548   : > { %3838 = vrot.lane.b32.xlu1 %v11583_v55, %s10872_s22 }
 0x549   : > { %v10281_v14 = vpop.eup %10280 }
 0x54a   : > { %3777 = vrot.lane.b32.xlu0 %v11570_v42, %s10872_s22  ;;  %v10283_v29 = vpop.eup %10282  ;;  %v2112_v21 = vmul.f32 %v10281_v14, %v12087_v33 }
 0x54b   : > { %v10285_v24 = vpop.eup %10284  ;;  %v2109_v17 = vmul.f32 %v10283_v29, %v12083_v20  ;;  %v2565_v20 = vpop.permute.xlu0 %2564 }
 0x54c   : > { %3899 = vrot.lane.b32.xlu1 %v11596_v16, %s10872_s22  ;;  %v2111_v62 = vmul.f32 %v10285_v24, %v14653_v60 }
 0x54d   : > { %9503 = vmatpush3.bf16.xpose.msra.mxu1 %v2801_v44  ;;  %v10287_v51 = vpop.eup %10286 }
 0x54e   : > { %3836 = vrot.lane.b32.xlu0 %v11589_v10, %s10872_s22  ;;  %v2110_v6 = vmul.f32 %v10287_v51, %v12091_v9  ;;  %v2132_v30 = vpack.c.bf16 %v2112_v21, %v2111_v62 }
 0x550   : > { %3960 = vrot.lane.b32.xlu1 %v11608_v2, %s10872_s22  ;;  %v2131_v8 = vpack.c.bf16 %v2110_v6, %v2109_v17 }
 0x552   : > { %3897 = vrot.lane.b32.xlu0 %v11599_v32, %s10872_s22  ;;  %9480 = vmatprep.mubr.msk.bf16.mxu0 %vm404_vm0, %v2131_v8 }
 0x553   : > { %9481 = vmatmul.mubr.msk.bf16.vlgmr.msra.gmra.mxu0 %vm404_vm0, %v2132_v30 }
 0x554   : > { %4143 = vrot.lane.b32.xlu1 %v14646_v54, %s10872_s22  ;;  %9493 = vmatpush3.bf16.msra.mxu0 %v14652_v0 }
 0x555   : > { %9494 = vmatprep.subr.bf16.mxu0 %v2565_v20 }
 0x556   : > { %4021 = vrot.lane.b32.xlu0 %v11620_v18, %s10872_s22 }
 0x558   : > { %4141 = vrot.lane.b32.xlu1 %v14650_v15, %s10872_s22  ;;  %9495 = vmatpush3.bf16.msra.mxu0 %v2565_v20 }
 0x55a   : > { %3958 = vrot.lane.b32.xlu0 %v11611_v48, %s10872_s22 }
 0x55c   : > { %4494 = vrot.lane.b32.xlu1 %v11570_v42, %s10873_s4 }
 0x55e   : > { %4019 = vrot.lane.b32.xlu0 %v14644_v43, %s10872_s22 }
 0x562   : > { %4082 = vrot.lane.b32.xlu0 %v11634_v31, %s10872_s22 }
 0x566   : > { %4080 = vrot.lane.b32.xlu0 %v14648_v40, %s10872_s22 }
 0x56a   : > { %4204 = vrot.lane.b32.xlu0 %v14649_v34, %s10872_s22 }
 0x578   : > { %v2053_v33 = vpop.xlane.xlu0 %2052 }
 0x57c   : > { %v2047_v9 = vpop.xlane.xlu0 %2046 }
 0x57d   : > { %10288 = vrcp.f32 %v2047_v9 }
 0x57e   : > { %10290 = vrcp.f32 %v2053_v33 }
 0x580   : > { %v2050_v27 = vpop.xlane.xlu1 %2049  ;;  %v2056_v59 = vpop.xlane.xlu0 %2055 }
 0x581   : > { %10292 = vrcp.f32 %v2050_v27 }
 0x582   : > { %10294 = vrcp.f32 %v2056_v59 }
 0x584   : > { %v2787_v50 = vpop.permute.xlu1 %2786  ;;  %v2862_v56 = vpop.permute.xlu0 %2861 }
 0x585   : > { %9504 = vmatprep.mubr.msk.bf16.mxu1 %vm1170_vm1, %v2787_v50  ;;  %9942 = vmatprep.subr.msk.bf16.mxu0 %vm1170_vm1, %v2862_v56  ;;  %v2873_v46 = vsel %vm1170_vm1, %v2862_v56, 0 }
 0x588   : > { %v2931_v38 = vpop.permute.xlu1 %2930  ;;  %v2860_v58 = vpop.permute.xlu0 %2859 }
 0x589   : > { %9944 = vmatprep.subr.msk.bf16.mxu1 %vm1170_vm1, %v2931_v38  ;;  %v2942_v19 = vsel %vm1170_vm1, %v2931_v38, 0  ;;  %v2870_v11 = vsel %vm1170_vm1, %v2860_v58, 0 }
 0x58a   : > { %v10289_v52 = vpop.eup %10288 }
 0x58b   : > { %v10291_v37 = vpop.eup %10290  ;;  %v2117_v47 = vmul.f32 %v10289_v52, %v12105_v12 }
 0x58c   : > { %v2856_v61 = vpop.permute.xlu1 %2855  ;;  %v2789_v36 = vpop.permute.xlu0 %2788  ;;  %v2119_v13 = vmul.f32 %v10291_v37, %v12101_v35 }
 0x58d   : > { %9505 = vmatmul.mubr.msk.bf16.vlgmr.msra.gmra.mxu1 %vm1170_vm1, %v2789_v36 }
 0x58e   : > { %v10293_v49 = vpop.eup %10292  ;;  %9517 = vmatpush3.bf16.xpose.msra.mxu1 %v2942_v19 }
 0x58f   : > { %v10295_v4 = vpop.eup %10294  ;;  %v2118_v25 = vmul.f32 %v10293_v49, %v12111_v3 }
 0x590   : > { %v3000_v41 = vpop.permute.xlu1 %2999  ;;  %v2120_v28 = vmul.f32 %v10295_v4, %v12109_v26  ;;  %v2929_v5 = vpop.permute.xlu0 %2928 }
 0x591   : > { %v2135_v23 = vpack.c.bf16 %v2118_v25, %v2117_v47  ;;  %9945 = vmatprep.subr.msk.bf16.mxu1 %vm1170_vm1, %v2929_v5  ;;  %v2939_v35 = vsel %vm1170_vm1, %v2929_v5, 0  ;;  %v3011_v29 = vsel %vm1170_vm1, %v3000_v41, 0 }
 0x592   : > { %v2136_v63 = vpack.c.bf16 %v2120_v28, %v2119_v13 }
 0x593   : > { %9496 = vmatprep.mubr.msk.bf16.mxu0 %vm404_vm0, %v2135_v23 }
 0x594   : > { %v2925_v1 = vpop.permute.xlu1 %2924  ;;  %9497 = vmatmul.mubr.msk.bf16.vlgmr.msra.gmra.mxu0 %vm404_vm0, %v2136_v63  ;;  %v2858_v12 = vpop.permute.xlu0 %2857 }
 0x595   : > { %9509 = vmatpush3.bf16.xpose.msra.mxu0 %v2873_v46  ;;  %9512 = vmatprep.mubr.msk.bf16.mxu0 %vm1170_vm1, %v2856_v61 }
 0x596   : > { %9943 = vmatprep.subr.msk.bf16.mxu0 %vm1170_vm1, %v2860_v58  ;;  %9520 = vmatprep.mubr.msk.bf16.mxu1 %vm1170_vm1, %v2925_v1 }
 0x597   : > { %9519 = vmatpush3.bf16.xpose.msra.mxu1 %v2939_v35 }
 0x598   : > { %v3069_v26 = vpop.permute.xlu1 %3068  ;;  %v2998_v3 = vpop.permute.xlu0 %2997 }
 0x599   : > { %9948 = vmatprep.subr.msk.bf16.mxu1 %vm1170_vm1, %v3069_v26  ;;  %v3080_v53 = vsel %vm1170_vm1, %v3069_v26, 0  ;;  %v3008_v6 = vsel %vm1170_vm1, %v2998_v3, 0 }
 0x59c   : > { %v2994_v39 = vpop.permute.xlu1 %2993  ;;  %v2927_v7 = vpop.permute.xlu0 %2926 }
 0x59d   : > { %9511 = vmatpush3.bf16.xpose.msra.mxu0 %v2870_v11 }
 0x59e   : > { %9521 = vmatmul.mubr.msk.bf16.vlgmr.msra.gmra.mxu1 %vm1170_vm1, %v2927_v7  ;;  %9946 = vmatprep.subr.msk.bf16.mxu0 %vm1170_vm1, %v3000_v41 }
 0x59f   : > { %9533 = vmatpush3.bf16.xpose.msra.mxu1 %v3080_v53 }
 0x5a0   : > { %v3138_v22 = vpop.permute.xlu1 %3137  ;;  %v3067_v0 = vpop.permute.xlu0 %3066 }
 0x5a1   : > { %9949 = vmatprep.subr.msk.bf16.mxu1 %vm1170_vm1, %v3067_v0  ;;  %v3077_v24 = vsel %vm1170_vm1, %v3067_v0, 0  ;;  %v3149_v33 = vsel %vm1170_vm1, %v3138_v22, 0 }
 0x5a4   : > { %9513 = vmatmul.mubr.msk.bf16.vlgmr.msra.gmra.mxu0 %vm1170_vm1, %v2858_v12  ;;  %v3063_v14 = vpop.permute.xlu1 %3062  ;;  %v2996_v44 = vpop.permute.xlu0 %2995 }
 0x5a5   : > { %9525 = vmatpush3.bf16.xpose.msra.mxu0 %v3011_v29  ;;  %9528 = vmatprep.mubr.msk.bf16.mxu0 %vm1170_vm1, %v2994_v39 }
 0x5a6   : > { %9947 = vmatprep.subr.msk.bf16.mxu0 %vm1170_vm1, %v2998_v3  ;;  %9536 = vmatprep.mubr.msk.bf16.mxu1 %vm1170_vm1, %v3063_v14 }
 0x5a7   : > { %9535 = vmatpush3.bf16.xpose.msra.mxu1 %v3077_v24 }
 0x5a8   : > { %v3207_v51 = vpop.permute.xlu1 %3206  ;;  %v3136_v21 = vpop.permute.xlu0 %3135 }
 0x5a9   : > { %9952 = vmatprep.subr.msk.bf16.mxu1 %vm1170_vm1, %v3207_v51  ;;  %v3218_v62 = vsel %vm1170_vm1, %v3207_v51, 0  ;;  %v3146_v38 = vsel %vm1170_vm1, %v3136_v21, 0 }
 0x5ac   : > { %v3132_v17 = vpop.permute.xlu1 %3131  ;;  %v3065_v60 = vpop.permute.xlu0 %3064 }
 0x5ad   : > { %9527 = vmatpush3.bf16.xpose.msra.mxu0 %v3008_v6 }
 0x5ae   : > { %9537 = vmatmul.mubr.msk.bf16.vlgmr.msra.gmra.mxu1 %vm1170_vm1, %v3065_v60  ;;  %9950 = vmatprep.subr.msk.bf16.mxu0 %vm1170_vm1, %v3138_v22 }
 0x5af   : > { %9549 = vmatpush3.bf16.xpose.msra.mxu1 %v3218_v62 }
 0x5b0   : > { %v3276_v8 = vpop.permute.xlu1 %3275  ;;  %v3205_v30 = vpop.permute.xlu0 %3204 }
 0x5b1   : > { %9953 = vmatprep.subr.msk.bf16.mxu1 %vm1170_vm1, %v3205_v30  ;;  %v3215_v27 = vsel %vm1170_vm1, %v3205_v30, 0  ;;  %v3287_v49 = vsel %vm1170_vm1, %v3276_v8, 0 }
 0x5b4   : > { %9529 = vmatmul.mubr.msk.bf16.vlgmr.msra.gmra.mxu0 %vm1170_vm1, %v2996_v44  ;;  %v3201_v20 = vpop.permute.xlu1 %3200  ;;  %v3134_v9 = vpop.permute.xlu0 %3133 }
 0x5b5   : > { %9541 = vmatpush3.bf16.xpose.msra.mxu0 %v3149_v33  ;;  %9544 = vmatprep.mubr.msk.bf16.mxu0 %vm1170_vm1, %v3132_v17 }
 0x5b6   : > { %9951 = vmatprep.subr.msk.bf16.mxu0 %vm1170_vm1, %v3136_v21  ;;  %9552 = vmatprep.mubr.msk.bf16.mxu1 %vm1170_vm1, %v3201_v20 }
 0x5b7   : > { %9551 = vmatpush3.bf16.xpose.msra.mxu1 %v3215_v27 }
 0x5b8   : > { %v3274_v59 = vpop.permute.xlu1 %3273  ;;  %v3203_v50 = vpop.permute.xlu0 %3202 }
 0x5b9   : > { %v3284_v23 = vsel %vm1170_vm1, %v3274_v59, 0 }
 0x5bc   : > { %v3272_v56 = vpop.permute.xlu1 %3271  ;;  %v3270_v58 = vpop.permute.xlu0 %3269 }
 0x5bd   : > { %9543 = vmatpush3.bf16.xpose.msra.mxu0 %v3146_v38 }
 0x5be   : > { %9553 = vmatmul.mubr.msk.bf16.vlgmr.msra.gmra.mxu1 %vm1170_vm1, %v3203_v50  ;;  %9954 = vmatprep.subr.msk.bf16.mxu0 %vm1170_vm1, %v3276_v8 }
 0x5c0   : > { %v3776_v52 = vpop.permute.xlu1 %3775  ;;  %v3778_v61 = vpop.permute.xlu0 %3777 }
 0x5c1   : > { %9564 = vmatprep.subr.bf16.mxu1 %v3778_v61 }
 0x5c2   : > { %9565 = vmatpush3.bf16.msra.mxu1 %v3778_v61 }
 0x5c3   : > { %v9442_v37 = vpop.f32.mrf.mxu0  ;;  %9566 = vmatprep.subr.bf16.mxu1 %v3776_v52 }
 0x5c4   : > { %9545 = vmatmul.mubr.msk.bf16.vlgmr.msra.gmra.mxu0 %vm1170_vm1, %v3134_v9  ;;  %v3839_v36 = vpop.permute.xlu1 %3838  ;;  %v8884_v19 = vpack.c.bf16 %v9442_v37, %v9442_v37  ;;  %v3837_v3 = vpop.permute.xlu0 %3836 }
 0x5c5   : > { %9557 = vmatpush3.bf16.xpose.msra.mxu0 %v3287_v49  ;;  %9560 = vmatprep.mubr.msk.bf16.mxu0 %vm1170_vm1, %v3270_v58  ;;  %v2183_v4 = vpop.f32.mrf.mxu0 }
 0x5c6   : > { %9955 = vmatprep.subr.msk.bf16.mxu0 %vm1170_vm1, %v3274_v59  ;;  %2756 = vst.msk [vmem:[#allocation2 + $0x8] sm:$0xf] %vm2753_vm2, %v8884_v19  ;;  %v8882_v47 = vpack.c.bf16 %v2183_v4, %v2183_v4  ;;  %9567 = vmatpush3.bf16.msra.mxu1 %v3776_v52 }
 0x5c7   : > { %v9443_v25 = vpop.f32.mrf.mxu0 }
 0x5c8   : > { %v12326_v41 = vpop.permute.xlu1 %3899  ;;  %2754 = vst.msk [vmem:[#allocation2] sm:$0xf] %vm2753_vm2, %v8882_v47  ;;  %v8885_v13 = vpack.c.bf16 %v9443_v25, %v9443_v25 }
 0x5c9   : > { %9580 = vmatprep.subr.bf16.mxu1 %v12326_v41  ;;  %v2186_v28 = vpop.f32.mrf.mxu0 }
 0x5ca   : > { %2757 = vst.msk [vmem:[#allocation2 + $0xc] sm:$0xf] %vm2753_vm2, %v8885_v13  ;;  %v8883_v5 = vpack.c.bf16 %v2186_v28, %v2186_v28 }
 0x5cc   : > { %2755 = vst.msk [vmem:[#allocation2 + $0x4] sm:$0xf] %vm2753_vm2, %v8883_v5  ;;  %v12338_v7 = vpop.permute.xlu1 %3960 }
 0x5cd   : > { %9559 = vmatpush3.bf16.xpose.msra.mxu0 %v3284_v23  ;;  %14654 = vst [vmem:[#allocation16_spill] sm:$0xff] %v12338_v7 }
 0x5ce   : > { %9572 = vmatprep.subr.bf16.mxu0 %v3839_v36 }
 0x5cf   : > { %v9450_v63 = vpop.f32.mrf.mxu0 }
 0x5d0   : > { %v8888_v1 = vpack.c.bf16 %v9450_v63, %v9450_v63 }
 0x5d1   : > { %v2244_v46 = vpop.f32.mrf.mxu0 }
 0x5d2   : > { %2760 = vst.msk [vmem:[#allocation2 + $0x18] sm:$0xf] %vm2753_vm2, %v8888_v1  ;;  %v8886_v12 = vpack.c.bf16 %v2244_v46, %v2244_v46 }
 0x5d3   : > { %v9451_v35 = vpop.f32.mrf.mxu0 }
 0x5d4   : > { %2758 = vst.msk [vmem:[#allocation2 + $0x10] sm:$0xf] %vm2753_vm2, %v8886_v12  ;;  %v8889_v26 = vpack.c.bf16 %v9451_v35, %v9451_v35  ;;  %9561 = vmatmul.mubr.msk.bf16.vlgmr.msra.gmra.mxu0 %vm1170_vm1, %v3272_v56  ;;  %v12361_v35 = vld [vmem:[#allocation6 + $0x30] sm:$0xff] }
 0x5d5   : > { %9573 = vmatpush3.bf16.msra.mxu0 %v3839_v36  ;;  %v2247_v39 = vpop.f32.mrf.mxu0 }
 0x5d6   : > { %2761 = vst.msk [vmem:[#allocation2 + $0x1c] sm:$0xf] %vm2753_vm2, %v8889_v26  ;;  %v8887_v11 = vpack.c.bf16 %v2247_v39, %v2247_v39  ;;  %9574 = vmatprep.subr.bf16.mxu0 %v3837_v3  ;;  %v12363_v39 = vld [vmem:[#allocation6 + $0x20] sm:$0xff] }
 0x5d8   : > { %2759 = vst.msk [vmem:[#allocation2 + $0x14] sm:$0xf] %vm2753_vm2, %v8887_v11 }
 0x5d9   : > { %9575 = vmatpush3.bf16.msra.mxu0 %v3837_v3 }
 0x5da   : > { %9588 = vmatprep.subr.bf16.mxu0 %v12338_v7 }
 0x5e3   : > { %v9458_v53 = vpop.f32.mrf.mxu1 }
 0x5e4   : > { %v8892_v22 = vpack.c.bf16 %v9458_v53, %v9458_v53 }
 0x5e5   : > { %v2305_v0 = vpop.f32.mrf.mxu1 }
 0x5e6   : > { %2764 = vst.msk [vmem:[#allocation2 + $0x28] sm:$0xf] %vm2753_vm2, %v8892_v22  ;;  %v8890_v14 = vpack.c.bf16 %v2305_v0, %v2305_v0 }
 0x5e7   : > { %v9459_v29 = vpop.f32.mrf.mxu1 }
 0x5e8   : > { %2762 = vst.msk [vmem:[#allocation2 + $0x20] sm:$0xf] %vm2753_vm2, %v8890_v14  ;;  %v8893_v44 = vpack.c.bf16 %v9459_v29, %v9459_v29 }
 0x5e9   : > { %v2308_v24 = vpop.f32.mrf.mxu1 }
 0x5ea   : > { %2765 = vst.msk [vmem:[#allocation2 + $0x2c] sm:$0xf] %vm2753_vm2, %v8893_v44  ;;  %v8891_v51 = vpack.c.bf16 %v2308_v24, %v2308_v24  ;;  %v12373_v44 = vld [vmem:[#allocation6 + $0x38] sm:$0xff] }
 0x5eb   : > { %v9474_v21 = vpop.f32.mrf.mxu1 }
 0x5ec   : > { %2763 = vst.msk [vmem:[#allocation2 + $0x24] sm:$0xf] %vm2753_vm2, %v8891_v51  ;;  %v8900_v17 = vpack.c.bf16 %v9474_v21, %v9474_v21  ;;  %v12375_v21 = vld [vmem:[#allocation6 + $0x28] sm:$0xff] }
 0x5ed   : > { %v2427_v6 = vpop.f32.mrf.mxu1 }
 0x5ee   : > { %2772 = vst.msk [vmem:[#allocation2 + $0x48] sm:$0xf] %vm2753_vm2, %v8900_v17  ;;  %v8898_v60 = vpack.c.bf16 %v2427_v6, %v2427_v6 }
 0x5ef   : > { %v9475_v62 = vpop.f32.mrf.mxu1 }
 0x5f0   : > { %2770 = vst.msk [vmem:[#allocation2 + $0x40] sm:$0xf] %vm2753_vm2, %v8898_v60  ;;  %v8901_v8 = vpack.c.bf16 %v9475_v62, %v9475_v62 }
 0x5f1   : > { %v2430_v30 = vpop.f32.mrf.mxu1 }
 0x5f2   : > { %2773 = vst.msk [vmem:[#allocation2 + $0x4c] sm:$0xf] %vm2753_vm2, %v8901_v8  ;;  %v8899_v20 = vpack.c.bf16 %v2430_v30, %v2430_v30 }
 0x5f4   : > { %2771 = vst.msk [vmem:[#allocation2 + $0x44] sm:$0xf] %vm2753_vm2, %v8899_v20 }
 0x5ff   : > { %v9466_v33 = vpop.f32.mrf.mxu0 }
 0x600   : > { %v8896_v9 = vpack.c.bf16 %v9466_v33, %v9466_v33 }
 0x601   : > { %v2366_v27 = vpop.f32.mrf.mxu0 }
 0x602   : > { %2768 = vst.msk [vmem:[#allocation2 + $0x38] sm:$0xf] %vm2753_vm2, %v8896_v9  ;;  %v8894_v59 = vpack.c.bf16 %v2366_v27, %v2366_v27 }
 0x603   : > { %v9467_v50 = vpop.f32.mrf.mxu0  ;;  %v9490_v56 = vpop.f32.mrf.mxu1 }
 0x604   : > { %2766 = vst.msk [vmem:[#allocation2 + $0x30] sm:$0xf] %vm2753_vm2, %v8894_v59  ;;  %v8897_v38 = vpack.c.bf16 %v9467_v50, %v9467_v50  ;;  %v8908_v58 = vpack.c.bf16 %v9490_v56, %v9490_v56 }
 0x605   : > { %v2369_v52 = vpop.f32.mrf.mxu0  ;;  %v2549_v61 = vpop.f32.mrf.mxu1 }
 0x606   : > { %2769 = vst.msk [vmem:[#allocation2 + $0x3c] sm:$0xf] %vm2753_vm2, %v8897_v38  ;;  %2780 = vst.msk [vmem:[#allocation2 + $0x68] sm:$0xf] %vm2753_vm2, %v8908_v58  ;;  %v8895_v37 = vpack.c.bf16 %v2369_v52, %v2369_v52  ;;  %v8906_v36 = vpack.c.bf16 %v2549_v61, %v2549_v61 }
 0x607   : > { %v9491_v49 = vpop.f32.mrf.mxu1 }
 0x608   : > { %2767 = vst.msk [vmem:[#allocation2 + $0x34] sm:$0xf] %vm2753_vm2, %v8895_v37  ;;  %2778 = vst.msk [vmem:[#allocation2 + $0x60] sm:$0xf] %vm2753_vm2, %v8906_v36  ;;  %v8909_v19 = vpack.c.bf16 %v9491_v49, %v9491_v49 }
 0x609   : > { %v2552_v4 = vpop.f32.mrf.mxu1 }
 0x60a   : > { %2781 = vst.msk [vmem:[#allocation2 + $0x6c] sm:$0xf] %vm2753_vm2, %v8909_v19  ;;  %v8907_v47 = vpack.c.bf16 %v2552_v4, %v2552_v4 }
 0x60c   : > { %2779 = vst.msk [vmem:[#allocation2 + $0x64] sm:$0xf] %vm2753_vm2, %v8907_v47 }
 0x613   : > { %v9482_v25 = vpop.f32.mrf.mxu0 }
 0x614   : > { %v8904_v13 = vpack.c.bf16 %v9482_v25, %v9482_v25 }
 0x615   : > { %v2488_v28 = vpop.f32.mrf.mxu0 }
 0x616   : > { %2776 = vst.msk [vmem:[#allocation2 + $0x58] sm:$0xf] %vm2753_vm2, %v8904_v13  ;;  %v8902_v5 = vpack.c.bf16 %v2488_v28, %v2488_v28 }
 0x617   : > { %v9483_v23 = vpop.f32.mrf.mxu0 }
 0x618   : > { %2774 = vst.msk [vmem:[#allocation2 + $0x50] sm:$0xf] %vm2753_vm2, %v8902_v5  ;;  %v8905_v63 = vpack.c.bf16 %v9483_v23, %v9483_v23 }
 0x619   : > { %v2491_v1 = vpop.f32.mrf.mxu0 }
 0x61a   : > { %2777 = vst.msk [vmem:[#allocation2 + $0x5c] sm:$0xf] %vm2753_vm2, %v8905_v63  ;;  %v8903_v46 = vpack.c.bf16 %v2491_v1, %v2491_v1 }
 0x61c   : > { %2775 = vst.msk [vmem:[#allocation2 + $0x54] sm:$0xf] %vm2753_vm2, %v8903_v46 }
 0x64d   : > { %v9506_v12 = vpop.f32.mrf.mxu1 }
 0x64e   : > { %v3340_v26 = vmul.f32 0.35355338, %v9506_v12 }
 0x64f   : > { %v2840_v3 = vpop.f32.mrf.mxu1 }
 0x650   : > { %v12366_v11 = vadd.f32 %v12361_v35, %v3340_v26  ;;  %v3338_v53 = vmul.f32 0.35355338, %v2840_v3 }
 0x651   : > { %v9507_v22 = vpop.f32.mrf.mxu1 }
 0x652   : > { %v12369_v0 = vadd.f32 %v12363_v39, %v3338_v53  ;;  %v3341_v14 = vmul.f32 0.35355338, %v9507_v22  ;;  %v3413_v29 = vsel %vm404_vm0, %v12366_v11, -inf }
 0x653   : > { %3414 = vmax.xlane.f32.xlu0 %v3413_v29  ;;  %v2843_v24 = vpop.f32.mrf.mxu1 }
 0x654   : > { %v9498_v51 = vpop.f32.mrf.mxu0  ;;  %v3339_v17 = vmul.f32 0.35355338, %v2843_v24  ;;  %v12378_v62 = vadd.f32 %v12373_v44, %v3341_v14  ;;  %v3407_v30 = vsel %vm404_vm0, %v12369_v0, -inf }
 0x655   : > { %v8912_v6 = vpack.c.bf16 %v9498_v51, %v9498_v51 }
 0x656   : > { %v2610_v60 = vpop.f32.mrf.mxu0  ;;  %v12384_v20 = vadd.f32 %v12375_v21, %v3339_v17  ;;  %v3416_v56 = vsel %vm404_vm0, %v12378_v62, -inf }
 0x657   : > { %2784 = vst.msk [vmem:[#allocation2 + $0x78] sm:$0xf] %vm2753_vm2, %v8912_v6  ;;  %v8910_v8 = vpack.c.bf16 %v2610_v60, %v2610_v60  ;;  %3408 = vmax.xlane.f32.xlu0 %v3407_v30 }
 0x658   : > { %v9499_v33 = vpop.f32.mrf.mxu0  ;;  %v3410_v27 = vsel %vm404_vm0, %v12384_v20, -inf }
 0x659   : > { %2782 = vst.msk [vmem:[#allocation2 + $0x70] sm:$0xf] %vm2753_vm2, %v8910_v8  ;;  %v8913_v9 = vpack.c.bf16 %v9499_v33, %v9499_v33  ;;  %3411 = vmax.xlane.f32.xlu1 %v3410_v27 }
 0x65a   : > { %v2613_v59 = vpop.f32.mrf.mxu0 }
 0x65b   : > { %2785 = vst.msk [vmem:[#allocation2 + $0x7c] sm:$0xf] %vm2753_vm2, %v8913_v9  ;;  %v8911_v50 = vpack.c.bf16 %v2613_v59, %v2613_v59  ;;  %3417 = vmax.xlane.f32.xlu0 %v3416_v56 }
 0x65d   : > { %2783 = vst.msk [vmem:[#allocation2 + $0x74] sm:$0xf] %vm2753_vm2, %v8911_v50 }
 0x65e   : > { %v9522_v38 = vpop.f32.mrf.mxu1 }
 0x65f   : > { %v3348_v58 = vmul.f32 0.35355338, %v9522_v38 }
 0x660   : > { %v2978_v52 = vpop.f32.mrf.mxu1 }
 0x661   : > { %v12394_v61 = vadd.f32 %v12361_v35, %v3348_v58  ;;  %v3346_v37 = vmul.f32 0.35355338, %v2978_v52 }
 0x662   : > { %v9523_v36 = vpop.f32.mrf.mxu1 }
 0x663   : > { %v12397_v49 = vadd.f32 %v12363_v39, %v3346_v37  ;;  %v3349_v19 = vmul.f32 0.35355338, %v9523_v36  ;;  %v3437_v4 = vsel %vm404_vm0, %v12394_v61, -inf }
 0x664   : > { %v9514_v47 = vpop.f32.mrf.mxu0  ;;  %3438 = vmax.xlane.f32.xlu0 %v3437_v4  ;;  %v2981_v25 = vpop.f32.mrf.mxu1 }
 0x665   : > { %v12402_v13 = vadd.f32 %v12373_v44, %v3349_v19  ;;  %v3344_v28 = vmul.f32 0.35355338, %v9514_v47  ;;  %v3347_v5 = vmul.f32 0.35355338, %v2981_v25  ;;  %v3431_v46 = vsel %vm404_vm0, %v12397_v49, -inf }
 0x666   : > { %v2909_v23 = vpop.f32.mrf.mxu0 }
 0x667   : > { %v12405_v63 = vadd.f32 %v12361_v35, %v3344_v28  ;;  %v12408_v1 = vadd.f32 %v12375_v21, %v3347_v5  ;;  %v3440_v12 = vsel %vm404_vm0, %v12402_v13, -inf  ;;  %v3342_v29 = vmul.f32 0.35355338, %v2909_v23 }
 0x668   : > { %v9515_v26 = vpop.f32.mrf.mxu0  ;;  %3432 = vmax.xlane.f32.xlu0 %v3431_v46  ;;  %3441 = vmax.xlane.f32.xlu1 %v3440_v12 }
 0x669   : > { %v3345_v3 = vmul.f32 0.35355338, %v9515_v26  ;;  %v3425_v22 = vsel %vm404_vm0, %v12405_v63, -inf  ;;  %v3434_v14 = vsel %vm404_vm0, %v12408_v1, -inf  ;;  %v12427_v30 = vadd.f32 %v12363_v39, %v3342_v29 }
 0x66a   : > { %v2912_v51 = vpop.f32.mrf.mxu0 }
 0x66b   : > { %v12415_v53 = vadd.f32 %v12373_v44, %v3345_v3  ;;  %v3343_v33 = vmul.f32 0.35355338, %v2912_v51  ;;  %v3419_v36 = vsel %vm404_vm0, %v12427_v30, -inf }
 0x66c   : > { %3426 = vmax.xlane.f32.xlu0 %v3425_v22  ;;  %3435 = vmax.xlane.f32.xlu1 %v3434_v14 }
 0x66d   : > { %v3428_v6 = vsel %vm404_vm0, %v12415_v53, -inf  ;;  %v12435_v52 = vadd.f32 %v12375_v21, %v3343_v33 }
 0x66e   : > { %v9538_v24 = vpop.f32.mrf.mxu1 }
 0x66f   : > { %v3356_v17 = vmul.f32 0.35355338, %v9538_v24  ;;  %v3422_v5 = vsel %vm404_vm0, %v12435_v52, -inf }
 0x670   : > { %3429 = vmax.xlane.f32.xlu1 %v3428_v6  ;;  %v3116_v60 = vpop.f32.mrf.mxu1 }
 0x671   : > { %v12424_v8 = vadd.f32 %v12361_v35, %v3356_v17  ;;  %v3354_v27 = vmul.f32 0.35355338, %v3116_v60 }
 0x672   : > { %v9539_v9 = vpop.f32.mrf.mxu1 }
 0x673   : > { %v3357_v59 = vmul.f32 0.35355338, %v9539_v9  ;;  %v3461_v50 = vsel %vm404_vm0, %v12424_v8, -inf  ;;  %v12440_v19 = vadd.f32 %v12363_v39, %v3354_v27 }
 0x674   : > { %v9530_v56 = vpop.f32.mrf.mxu0  ;;  %3462 = vmax.xlane.f32.xlu0 %v3461_v50  ;;  %v3119_v38 = vpop.f32.mrf.mxu1 }
 0x675   : > { %v12432_v58 = vadd.f32 %v12373_v44, %v3357_v59  ;;  %v3352_v4 = vmul.f32 0.35355338, %v9530_v56  ;;  %v3355_v47 = vmul.f32 0.35355338, %v3119_v38  ;;  %v3455_v26 = vsel %vm404_vm0, %v12440_v19, -inf }
 0x676   : > { %v3047_v37 = vpop.f32.mrf.mxu0 }
 0x677   : > { %v3464_v25 = vsel %vm404_vm0, %v12432_v58, -inf  ;;  %v12447_v23 = vadd.f32 %v12361_v35, %v3352_v4  ;;  %v12450_v46 = vadd.f32 %v12375_v21, %v3355_v47  ;;  %v3350_v3 = vmul.f32 0.35355338, %v3047_v37 }
 0x678   : > { %v9531_v28 = vpop.f32.mrf.mxu0  ;;  %3420 = vmax.xlane.f32.xlu0 %v3419_v36  ;;  %3465 = vmax.xlane.f32.xlu1 %v3464_v25 }
 0x679   : > { %v3353_v12 = vmul.f32 0.35355338, %v9531_v28  ;;  %v3449_v51 = vsel %vm404_vm0, %v12447_v23, -inf  ;;  %v3458_v17 = vsel %vm404_vm0, %v12450_v46, -inf  ;;  %v12465_v33 = vadd.f32 %v12363_v39, %v3350_v3 }
 0x67a   : > { %v3050_v29 = vpop.f32.mrf.mxu0 }
 0x67b   : > { %v12455_v14 = vadd.f32 %v12373_v44, %v3353_v12  ;;  %v3351_v9 = vmul.f32 0.35355338, %v3050_v29  ;;  %v3443_v28 = vsel %vm404_vm0, %v12465_v33, -inf }
 0x67c   : > { %3456 = vmax.xlane.f32.xlu0 %v3455_v26  ;;  %3423 = vmax.xlane.f32.xlu1 %v3422_v5 }
 0x67d   : > { %v3452_v56 = vsel %vm404_vm0, %v12455_v14, -inf  ;;  %v12475_v47 = vadd.f32 %v12375_v21, %v3351_v9 }
 0x67e   : > { %v9554_v22 = vpop.f32.mrf.mxu1 }
 0x67f   : > { %v3364_v24 = vmul.f32 0.35355338, %v9554_v22 }
 0x680   : > { %v3254_v6 = vpop.f32.mrf.mxu1  ;;  %3450 = vmax.xlane.f32.xlu0 %v3449_v51  ;;  %3459 = vmax.xlane.f32.xlu1 %v3458_v17 }
 0x681   : > { %v12462_v60 = vadd.f32 %v12361_v35, %v3364_v24  ;;  %v3362_v59 = vmul.f32 0.35355338, %v3254_v6  ;;  %v3446_v24 = vsel %vm404_vm0, %v12475_v47, -inf }
 0x682   : > { %v9555_v27 = vpop.f32.mrf.mxu1 }
 0x683   : > { %v3365_v50 = vmul.f32 0.35355338, %v9555_v27  ;;  %v3485_v38 = vsel %vm404_vm0, %v12462_v60, -inf  ;;  %v12480_v5 = vadd.f32 %v12363_v39, %v3362_v59 }
 0x684   : > { %v3257_v37 = vpop.f32.mrf.mxu1  ;;  %3453 = vmax.xlane.f32.xlu1 %v3452_v56  ;;  %v9546_v36 = vpop.f32.mrf.mxu0  ;;  %3486 = vmax.xlane.f32.xlu0 %v3485_v38 }
 0x685   : > { %v12472_v4 = vadd.f32 %v12373_v44, %v3365_v50  ;;  %v3363_v12 = vmul.f32 0.35355338, %v3257_v37  ;;  %v3360_v26 = vmul.f32 0.35355338, %v9546_v36  ;;  %v3479_v9 = vsel %vm404_vm0, %v12480_v5, -inf }
 0x686   : > { %v3185_v25 = vpop.f32.mrf.mxu0 }
 0x687   : > { %v3488_v3 = vsel %vm404_vm0, %v12472_v4, -inf  ;;  %v3358_v29 = vmul.f32 0.35355338, %v3185_v25  ;;  %v12487_v51 = vadd.f32 %v12375_v21, %v3363_v12  ;;  %v12490_v17 = vadd.f32 %v12361_v35, %v3360_v26 }
 0x688   : > { %v9547_v22 = vpop.f32.mrf.mxu0  ;;  %3444 = vmax.xlane.f32.xlu0 %v3443_v28  ;;  %3489 = vmax.xlane.f32.xlu1 %v3488_v3 }
 0x689   : > { %v3361_v6 = vmul.f32 0.35355338, %v9547_v22  ;;  %v12495_v59 = vadd.f32 %v12363_v39, %v3358_v29  ;;  %v3473_v38 = vsel %vm404_vm0, %v12490_v17, -inf  ;;  %v3482_v37 = vsel %vm404_vm0, %v12487_v51, -inf }
 0x68a   : > { %v3188_v27 = vpop.f32.mrf.mxu0 }
 0x68b   : > { %v12498_v50 = vadd.f32 %v12373_v44, %v3361_v6  ;;  %v3359_v56 = vmul.f32 0.35355338, %v3188_v27  ;;  %v3467_v25 = vsel %vm404_vm0, %v12495_v59, -inf }
 0x68c   : > { %3480 = vmax.xlane.f32.xlu0 %v3479_v9  ;;  %3447 = vmax.xlane.f32.xlu1 %v3446_v24 }
 0x68d   : > { %v12505_v36 = vadd.f32 %v12375_v21, %v3359_v56  ;;  %v3476_v28 = vsel %vm404_vm0, %v12498_v50, -inf }
 0x68f   : > { %v3470_v24 = vsel %vm404_vm0, %v12505_v36, -inf }
 0x690   : > { %3474 = vmax.xlane.f32.xlu0 %v3473_v38  ;;  %3483 = vmax.xlane.f32.xlu1 %v3482_v37 }
 0x694   : > { %3468 = vmax.xlane.f32.xlu0 %v3467_v25  ;;  %3477 = vmax.xlane.f32.xlu1 %v3476_v28  ;;  %v9562_v12 = vpop.f32.mrf.mxu0 }
 0x695   : > { %v3368_v26 = vmul.f32 0.35355338, %v9562_v12 }
 0x696   : > { %v3323_v3 = vpop.f32.mrf.mxu0 }
 0x697   : > { %v12512_v22 = vadd.f32 %v12361_v35, %v3368_v26  ;;  %v3366_v29 = vmul.f32 0.35355338, %v3323_v3  ;;  %v12533_v26 = vpop.permute.xlu0 %3897 }
 0x698   : > { %3471 = vmax.xlane.f32.xlu1 %v3470_v24  ;;  %v9563_v6 = vpop.f32.mrf.mxu0  ;;  %v12543_v24 = vpop.permute.xlu1 %4143 }
 0x699   : > { %v12517_v9 = vadd.f32 %v12363_v39, %v3366_v29  ;;  %v3369_v27 = vmul.f32 0.35355338, %v9563_v6  ;;  %v3497_v56 = vsel %vm404_vm0, %v12512_v22, -inf }
 0x69a   : > { %3498 = vmax.xlane.f32.xlu0 %v3497_v56  ;;  %v3326_v38 = vpop.f32.mrf.mxu0 }
 0x69b   : > { %v12522_v37 = vadd.f32 %v12373_v44, %v3369_v27  ;;  %v3367_v35 = vmul.f32 0.35355338, %v3326_v38  ;;  %v3491_v28 = vsel %vm404_vm0, %v12517_v9, -inf  ;;  %v12535_v44 = vpop.permute.xlu0 %4021 }
 0x69c   : > { %v12547_v27 = vpop.permute.xlu1 %4141 }
 0x69d   : > { %v12525_v25 = vadd.f32 %v12375_v21, %v3367_v35  ;;  %v3500_v39 = vsel %vm404_vm0, %v12522_v37, -inf  ;;  %14658 = vst [vmem:[#allocation24_spill] sm:$0xff] %v12547_v27 }
 0x69e   : > { %3492 = vmax.xlane.f32.xlu0 %v3491_v28  ;;  %3501 = vmax.xlane.f32.xlu1 %v3500_v39 }
 0x69f   : > { %v3494_v12 = vsel %vm404_vm0, %v12525_v25, -inf  ;;  %v12537_v3 = vpop.permute.xlu0 %3958 }
 0x6a0   : > { %14655 = vst [vmem:[#allocation21_spill] sm:$0xff] %v12537_v3  ;;  %v12552_v28 = vpop.permute.xlu1 %4494 }
 0x6a2   : > { %3495 = vmax.xlane.f32.xlu1 %v3494_v12 }
 0x6a3   : > { %v12539_v21 = vpop.permute.xlu0 %4019 }
 0x6a7   : > { %v12541_v29 = vpop.permute.xlu0 %4082 }
 0x6a8   : > { %14656 = vst [vmem:[#allocation23_spill] sm:$0xff] %v12541_v29 }
 0x6ab   : > { %v12545_v6 = vpop.permute.xlu0 %4080 }
 0x6ac   : > { %14657 = vst [vmem:[#allocation22_spill] sm:$0xff] %v12545_v6 }
 0x6af   : > { %v12549_v56 = vpop.permute.xlu0 %4204 }
 0x6b0   : > { %14659 = vst [vmem:[#allocation25_spill] sm:$0xff] %v12549_v56 }
 0x6dc   : > { %v3415_v38 = vpop.xlane.xlu0 %3414 }
 0x6dd   : > { %v3505_v35 = vsub.f32 %v12366_v11, %v3415_v38 }
 0x6df   : > { %v3539_v39 = vmul.f32 1.442695, %v3505_v35 }
 0x6e0   : > { %v3409_v12 = vpop.xlane.xlu0 %3408 }
 0x6e1   : > { %10296 = vpow2.f32 %v3539_v39  ;;  %v3503_v34 = vsub.f32 %v12369_v0, %v3409_v12 }
 0x6e2   : > { %v3412_v3 = vpop.xlane.xlu1 %3411 }
 0x6e3   : > { %v3535_v29 = vmul.f32 1.442695, %v3503_v34  ;;  %v3504_v7 = vsub.f32 %v12384_v20, %v3412_v3 }
 0x6e4   : > { %v3418_v54 = vpop.xlane.xlu0 %3417 }
 0x6e5   : > { %10298 = vpow2.f32 %v3535_v29  ;;  %v3506_v6 = vsub.f32 %v12378_v62, %v3418_v54  ;;  %v3537_v27 = vmul.f32 1.442695, %v3504_v7 }
 0x6e7   : > { %v3541_v56 = vmul.f32 1.442695, %v3506_v6 }
 0x6e9   : > { %10300 = vpow2.f32 %v3541_v56 }
 0x6ea   : > { %10302 = vpow2.f32 %v3537_v27 }
 0x6ed   : > { %v3439_v11 = vpop.xlane.xlu0 %3438 }
 0x6ee   : > { %v3513_v38 = vsub.f32 %v12394_v61, %v3439_v11  ;;  %v12558_v35 = vpop.eup %10296 }
 0x6ef   : > { %v3605_v0 = vsel %vm404_vm0, %v12558_v35, 0.0 }
 0x6f0   : > { %v3555_v39 = vmul.f32 1.442695, %v3513_v38  ;;  %3606 = vadd.xlane.f32.xlu0 %v3605_v0 }
 0x6f1   : > { %v3442_v34 = vpop.xlane.xlu1 %3441  ;;  %v3433_v20 = vpop.xlane.xlu0 %3432 }
 0x6f2   : > { %10304 = vpow2.f32 %v3555_v39  ;;  %v3514_v3 = vsub.f32 %v12402_v13, %v3442_v34  ;;  %v3511_v54 = vsub.f32 %v12397_v49, %v3433_v20  ;;  %v12564_v7 = vpop.eup %10298 }
 0x6f3   : > { %v3599_v61 = vsel %vm404_vm0, %v12564_v7, 0.0 }
 0x6f4   : > { %v3557_v62 = vmul.f32 1.442695, %v3514_v3  ;;  %v3551_v29 = vmul.f32 1.442695, %v3511_v54  ;;  %3600 = vadd.xlane.f32.xlu0 %v3599_v61 }
 0x6f5   : > { %v3436_v6 = vpop.xlane.xlu1 %3435  ;;  %v3427_v27 = vpop.xlane.xlu0 %3426 }
 0x6f6   : > { %10306 = vpow2.f32 %v3557_v62  ;;  %v3512_v56 = vsub.f32 %v12408_v1, %v3436_v6  ;;  %v3509_v12 = vsub.f32 %v12405_v63, %v3427_v27  ;;  %v12570_v11 = vpop.eup %10300 }
 0x6f7   : > { %10308 = vpow2.f32 %v3551_v29  ;;  %v3608_v38 = vsel %vm404_vm0, %v12570_v11, 0.0  ;;  %v12574_v39 = vpop.eup %10302 }
 0x6f8   : > { %v3553_v13 = vmul.f32 1.442695, %v3512_v56  ;;  %v3547_v49 = vmul.f32 1.442695, %v3509_v12  ;;  %3609 = vadd.xlane.f32.xlu1 %v3608_v38  ;;  %v3602_v63 = vsel %vm404_vm0, %v12574_v39, 0.0 }
 0x6f9   : > { %v3430_v0 = vpop.xlane.xlu1 %3429 }
 0x6fa   : > { %10310 = vpow2.f32 %v3553_v13  ;;  %v3510_v34 = vsub.f32 %v12415_v53, %v3430_v0 }
 0x6fb   : > { %10312 = vpow2.f32 %v3547_v49 }
 0x6fc   : > { %v3549_v20 = vmul.f32 1.442695, %v3510_v34  ;;  %3603 = vadd.xlane.f32.xlu1 %v3602_v63 }
 0x6fd   : > { %v3463_v1 = vpop.xlane.xlu0 %3462 }
 0x6fe   : > { %10314 = vpow2.f32 %v3549_v20  ;;  %v3521_v3 = vsub.f32 %v12424_v8, %v3463_v1 }
 0x6ff   : > { %v12580_v54 = vpop.eup %10304 }
 0x700   : > { %v3571_v62 = vmul.f32 1.442695, %v3521_v3  ;;  %v3629_v29 = vsel %vm404_vm0, %v12580_v54, 0.0 }
 0x701   : > { %v3466_v61 = vpop.xlane.xlu1 %3465  ;;  %3630 = vadd.xlane.f32.xlu0 %v3629_v29  ;;  %v3421_v6 = vpop.xlane.xlu0 %3420 }
 0x702   : > { %10316 = vpow2.f32 %v3571_v62  ;;  %v3522_v53 = vsub.f32 %v12432_v58, %v3466_v61  ;;  %v3507_v27 = vsub.f32 %v12427_v30, %v3421_v6 }
 0x703   : > { %v12586_v56 = vpop.eup %10306 }
 0x704   : > { %v12588_v12 = vpop.eup %10308  ;;  %v3573_v13 = vmul.f32 1.442695, %v3522_v53  ;;  %v3543_v8 = vmul.f32 1.442695, %v3507_v27  ;;  %v3632_v49 = vsel %vm404_vm0, %v12586_v56, 0.0 }
 0x705   : > { %v3424_v38 = vpop.xlane.xlu1 %3423  ;;  %3633 = vadd.xlane.f32.xlu1 %v3632_v49  ;;  %v3623_v0 = vsel %vm404_vm0, %v12588_v12, 0.0  ;;  %v3457_v34 = vpop.xlane.xlu0 %3456 }
 0x706   : > { %10318 = vpow2.f32 %v3573_v13  ;;  %v3508_v58 = vsub.f32 %v12435_v52, %v3424_v38  ;;  %3624 = vadd.xlane.f32.xlu0 %v3623_v0  ;;  %v3519_v30 = vsub.f32 %v12440_v19, %v3457_v34 }
 0x707   : > { %v12596_v20 = vpop.eup %10310  ;;  %10320 = vpow2.f32 %v3543_v8 }
 0x708   : > { %v12598_v63 = vpop.eup %10312  ;;  %v3545_v1 = vmul.f32 1.442695, %v3508_v58  ;;  %v3567_v3 = vmul.f32 1.442695, %v3519_v30  ;;  %v3626_v62 = vsel %vm404_vm0, %v12596_v20, 0.0 }
 0x709   : > { %v3460_v29 = vpop.xlane.xlu1 %3459  ;;  %3627 = vadd.xlane.f32.xlu1 %v3626_v62  ;;  %v3617_v61 = vsel %vm404_vm0, %v12598_v63, 0.0  ;;  %v3451_v6 = vpop.xlane.xlu0 %3450 }
 0x70a   : > { %10322 = vpow2.f32 %v3545_v1  ;;  %v3520_v52 = vsub.f32 %v12450_v46, %v3460_v29  ;;  %3618 = vadd.xlane.f32.xlu0 %v3617_v61  ;;  %v3517_v19 = vsub.f32 %v12447_v23, %v3451_v6 }
 0x70b   : > { %v12606_v53 = vpop.eup %10314  ;;  %10324 = vpow2.f32 %v3567_v3 }
 0x70c   : > { %v3569_v27 = vmul.f32 1.442695, %v3520_v52  ;;  %v3563_v13 = vmul.f32 1.442695, %v3517_v19  ;;  %v3620_v8 = vsel %vm404_vm0, %v12606_v53, 0.0 }
 0x70d   : > { %v3454_v49 = vpop.xlane.xlu1 %3453  ;;  %3621 = vadd.xlane.f32.xlu1 %v3620_v8  ;;  %v3487_v38 = vpop.xlane.xlu0 %3486 }
 0x70e   : > { %10326 = vpow2.f32 %v3569_v27  ;;  %v3529_v0 = vsub.f32 %v12462_v60, %v3487_v38  ;;  %v3518_v61 = vsub.f32 %v12455_v14, %v3454_v49 }
 0x70f   : > { %v12611_v34 = vpop.eup %10316  ;;  %10328 = vpow2.f32 %v3563_v13 }
 0x710   : > { %v3587_v46 = vmul.f32 1.442695, %v3529_v0  ;;  %v3653_v23 = vsel %vm404_vm0, %v12611_v34, 0.0  ;;  %v3565_v0 = vmul.f32 1.442695, %v3518_v61 }
 0x711   : > { %3654 = vadd.xlane.f32.xlu0 %v3653_v23  ;;  %v3445_v58 = vpop.xlane.xlu0 %3444  ;;  %v3490_v30 = vpop.xlane.xlu1 %3489 }
 0x712   : > { %v3515_v1 = vsub.f32 %v12465_v33, %v3445_v58  ;;  %10330 = vpow2.f32 %v3587_v46  ;;  %v3530_v14 = vsub.f32 %v12472_v4, %v3490_v30 }
 0x713   : > { %v12616_v3 = vpop.eup %10318 }
 0x714   : > { %v12618_v62 = vpop.eup %10320  ;;  %v3559_v29 = vmul.f32 1.442695, %v3515_v1  ;;  %v3656_v60 = vsel %vm404_vm0, %v12616_v3, 0.0  ;;  %v3589_v58 = vmul.f32 1.442695, %v3530_v14 }
 0x715   : > { %3657 = vadd.xlane.f32.xlu1 %v3656_v60  ;;  %v3611_v6 = vsel %vm404_vm0, %v12618_v62, 0.0  ;;  %v3481_v52 = vpop.xlane.xlu0 %3480  ;;  %v3448_v13 = vpop.xlane.xlu1 %3447 }
 0x716   : > { %3612 = vadd.xlane.f32.xlu0 %v3611_v6  ;;  %v3527_v19 = vsub.f32 %v12480_v5, %v3481_v52  ;;  %10332 = vpow2.f32 %v3559_v29  ;;  %v3516_v1 = vsub.f32 %v12475_v47, %v3448_v13 }
 0x717   : > { %v12626_v33 = vpop.eup %10322 }
 0x718   : > { %v12628_v27 = vpop.eup %10324  ;;  %v3583_v8 = vmul.f32 1.442695, %v3527_v19  ;;  %v3614_v38 = vsel %vm404_vm0, %v12626_v33, 0.0  ;;  %v3561_v61 = vmul.f32 1.442695, %v3516_v1 }
 0x719   : > { %3615 = vadd.xlane.f32.xlu1 %v3614_v38  ;;  %v3647_v49 = vsel %vm404_vm0, %v12628_v27, 0.0  ;;  %v3484_v30 = vpop.xlane.xlu1 %3483  ;;  %v3475_v60 = vpop.xlane.xlu0 %3474 }
 0x71a   : > { %3648 = vadd.xlane.f32.xlu0 %v3647_v49  ;;  %10334 = vpow2.f32 %v3583_v8  ;;  %v3528_v6 = vsub.f32 %v12487_v51, %v3484_v30  ;;  %v3525_v13 = vsub.f32 %v12490_v17, %v3475_v60 }
 0x71b   : > { %v12635_v46 = vpop.eup %10326  ;;  %10336 = vpow2.f32 %v3565_v0 }
 0x71c   : > { %v12637_v5 = vpop.eup %10328  ;;  %v3650_v23 = vsel %vm404_vm0, %v12635_v46, 0.0  ;;  %10338 = vpow2.f32 %v3589_v58  ;;  %v3585_v47 = vmul.f32 1.442695, %v3528_v6  ;;  %v3579_v51 = vmul.f32 1.442695, %v3525_v13 }
 0x71d   : > { %3651 = vadd.xlane.f32.xlu1 %v3650_v23  ;;  %v3641_v4 = vsel %vm404_vm0, %v12637_v5, 0.0  ;;  %10340 = vpow2.f32 %v3561_v61  ;;  %v3469_v38 = vpop.xlane.xlu0 %3468  ;;  %v3478_v14 = vpop.xlane.xlu1 %3477 }
 0x71e   : > { %3642 = vadd.xlane.f32.xlu0 %v3641_v4  ;;  %10342 = vpow2.f32 %v3585_v47  ;;  %v3523_v49 = vsub.f32 %v12495_v59, %v3469_v38  ;;  %v3526_v17 = vsub.f32 %v12498_v50, %v3478_v14 }
 0x71f   : > { %v12644_v29 = vpop.eup %10330  ;;  %10344 = vpow2.f32 %v3579_v51 }
 0x720   : > { %v3677_v52 = vsel %vm404_vm0, %v12644_v29, 0.0  ;;  %v3575_v1 = vmul.f32 1.442695, %v3523_v49  ;;  %v3581_v61 = vmul.f32 1.442695, %v3526_v17 }
 0x721   : > { %v3472_v60 = vpop.xlane.xlu1 %3471 }
 0x722   : > { %3678 = vadd.xlane.f32.xlu0 %v3677_v52  ;;  %10346 = vpow2.f32 %v3575_v1  ;;  %v3524_v59 = vsub.f32 %v12505_v36, %v3472_v60 }
 0x723   : > { %v12649_v19 = vpop.eup %10332  ;;  %10348 = vpow2.f32 %v3581_v61  ;;  %v3499_v36 = vpop.xlane.xlu0 %3498 }
 0x724   : > { %v3635_v8 = vsel %vm404_vm0, %v12649_v19, 0.0  ;;  %v3577_v50 = vmul.f32 1.442695, %v3524_v59  ;;  %v3533_v17 = vsub.f32 %v12512_v22, %v3499_v36 }
 0x726   : > { %3636 = vadd.xlane.f32.xlu0 %v3635_v8  ;;  %10350 = vpow2.f32 %v3577_v50  ;;  %v3595_v61 = vmul.f32 1.442695, %v3533_v17 }
 0x727   : > { %v12654_v0 = vpop.eup %10334  ;;  %v3493_v1 = vpop.xlane.xlu0 %3492 }
 0x728   : > { %v3671_v23 = vsel %vm404_vm0, %v12654_v0, 0.0  ;;  %v12659_v58 = vpop.eup %10336  ;;  %v3531_v59 = vsub.f32 %v12517_v9, %v3493_v1  ;;  %10352 = vpow2.f32 %v3595_v61 }
 0x729   : > { %3672 = vadd.xlane.f32.xlu1 %v3671_v23  ;;  %v3644_v4 = vsel %vm404_vm0, %v12659_v58, 0.0  ;;  %v12664_v30 = vpop.eup %10338 }
 0x72a   : > { %v3680_v6 = vsel %vm404_vm0, %v12664_v30, 0.0  ;;  %v12669_v52 = vpop.eup %10340 }
 0x72b   : > { %v3638_v47 = vsel %vm404_vm0, %v12669_v52, 0.0  ;;  %v12673_v13 = vpop.eup %10342 }
 0x72c   : > { %v3674_v8 = vsel %vm404_vm0, %v12673_v13, 0.0  ;;  %v12677_v38 = vpop.eup %10344 }
 0x72d   : > { %3645 = vadd.xlane.f32.xlu1 %v3644_v4  ;;  %v3665_v14 = vsel %vm404_vm0, %v12677_v38, 0.0 }
 0x72f   : > { %v12683_v51 = vpop.eup %10346 }
 0x730   : > { %v3659_v49 = vsel %vm404_vm0, %v12683_v51, 0.0  ;;  %v12687_v23 = vpop.eup %10348 }
 0x731   : > { %3681 = vadd.xlane.f32.xlu1 %v3680_v6  ;;  %v3668_v4 = vsel %vm404_vm0, %v12687_v23, 0.0  ;;  %v3502_v6 = vpop.xlane.xlu1 %3501 }
 0x733   : > { %v12692_v60 = vpop.eup %10350 }
 0x734   : > { %v3662_v50 = vsel %vm404_vm0, %v12692_v60, 0.0 }
 0x735   : > { %3639 = vadd.xlane.f32.xlu1 %v3638_v47  ;;  %v3534_v47 = vsub.f32 %v12522_v37, %v3502_v6  ;;  %v12698_v36 = vpop.eup %10352  ;;  %v3496_v1 = vpop.xlane.xlu1 %3495 }
 0x737   : > { %v3597_v22 = vmul.f32 1.442695, %v3534_v47 }
 0x739   : > { %3675 = vadd.xlane.f32.xlu1 %v3674_v8  ;;  %v3591_v8 = vmul.f32 1.442695, %v3531_v59 }
 0x73b   : > { %10354 = vpow2.f32 %v3591_v8 }
 0x73c   : > { %4202 = vrot.lane.b32.xlu0 %v11677_v45, %s10872_s22  ;;  %10356 = vpow2.f32 %v3597_v22  ;;  %s14417_s22 = scalar_lea.vmem [#allocation11], %s8529_s21 }
 0x73d   : > { %3666 = vadd.xlane.f32.xlu1 %v3665_v14  ;;  %v3689_v14 = vsel %vm404_vm0, %v12698_v36, 0.0 }
 0x741   : > { %3660 = vadd.xlane.f32.xlu1 %v3659_v49 }
 0x745   : > { %3669 = vadd.xlane.f32.xlu1 %v3668_v4  ;;  %v3532_v4 = vsub.f32 %v12525_v25, %v3496_v1 }
 0x747   : > { %v3593_v61 = vmul.f32 1.442695, %v3532_v4 }
 0x748   : > { %v12702_v49 = vpop.eup %10354 }
 0x749   : > { %3663 = vadd.xlane.f32.xlu1 %v3662_v50  ;;  %v3683_v9 = vsel %vm404_vm0, %v12702_v49, 0.0  ;;  %v12708_v37 = vpop.eup %10356  ;;  %10358 = vpow2.f32 %v3593_v61 }
 0x74a   : > { %v3692_v17 = vsel %vm404_vm0, %v12708_v37, 0.0 }
 0x756   : > { %v12715_v59 = vpop.eup %10358 }
 0x757   : > { %v3686_v50 = vsel %vm404_vm0, %v12715_v59, 0.0 }
 0x75a   : > { %4492 = vrot.lane.b32.xlu1 %v11573_v57, %s10873_s4 }
 0x75b   : > { %3690 = vadd.xlane.f32.xlu0 %v3689_v14 }
 0x75f   : > { %3684 = vadd.xlane.f32.xlu0 %v3683_v9 }
 0x763   : > { %3693 = vadd.xlane.f32.xlu0 %v3692_v17 }
 0x779   : > { %4563 = vrot.lane.b32.xlu0 %v11583_v55, %s10873_s4  ;;  %v3607_v6 = vpop.xlane.xlu0 %3606 }
 0x77d   : > { %4561 = vrot.lane.b32.xlu0 %v11589_v10, %s10873_s4  ;;  %v3601_v25 = vpop.xlane.xlu0 %3600 }
 0x77e   : > { %3687 = vadd.xlane.f32.xlu1 %v3686_v50 }
 0x781   : > { %4490 = vrot.lane.b32.xlu0 %v11570_v42, %s10874_s23  ;;  %v3610_v47 = vpop.xlane.xlu1 %3609 }
 0x782   : > { %10360 = vrcp.f32 %v3610_v47 }
 0x783   : > { %10362 = vrcp.f32 %v3601_v25 }
 0x784   : > { %10364 = vrcp.f32 %v3607_v6 }
 0x785   : > { %4630 = vrot.lane.b32.xlu0 %v11599_v32, %s10873_s4  ;;  %v3604_v8 = vpop.xlane.xlu1 %3603 }
 0x786   : > { %10366 = vrcp.f32 %v3604_v8 }
 0x789   : > { %4559 = vrot.lane.b32.xlu0 %v11583_v55, %s10874_s23 }
 0x78a   : > { %v3631_v22 = vpop.xlane.xlu0 %3630 }
 0x78d   : > { %4699 = vrot.lane.b32.xlu0 %v11611_v48, %s10873_s4 }
 0x78e   : > { %v3634_v14 = vpop.xlane.xlu1 %3633 }
 0x78f   : > { %v3625_v9 = vpop.xlane.xlu0 %3624  ;;  %10368 = vrcp.f32 %v3634_v14  ;;  %4488 = vrot.lane.b32.xlu1 %v11573_v57, %s10874_s23  ;;  %v10361_v17 = vpop.eup %10360 }
 0x790   : > { %10370 = vrcp.f32 %v3625_v9  ;;  %v10363_v1 = vpop.eup %10362  ;;  %v3730_v50 = vmul.f32 %v10361_v17, %v12570_v11 }
 0x791   : > { %4628 = vrot.lane.b32.xlu0 %v11596_v16, %s10874_s23  ;;  %10372 = vrcp.f32 %v3631_v22  ;;  %v10365_v61 = vpop.eup %10364  ;;  %v3727_v25 = vmul.f32 %v10363_v1, %v12564_v7 }
 0x792   : > { %v3628_v4 = vpop.xlane.xlu1 %3627  ;;  %v3729_v14 = vmul.f32 %v10365_v61, %v12558_v35 }
 0x793   : > { %10374 = vrcp.f32 %v3628_v4  ;;  %v10367_v6 = vpop.eup %10366  ;;  %4632 = vrot.lane.b32.xlu1 %v11596_v16, %s10873_s4  ;;  %v3619_v8 = vpop.xlane.xlu0 %3618 }
 0x794   : > { %v3728_v47 = vmul.f32 %v10367_v6, %v12574_v39  ;;  %v3760_v9 = vpack.c.bf16 %v3730_v50, %v3729_v14 }
 0x795   : > { %4768 = vrot.lane.b32.xlu0 %v14644_v43, %s10873_s4 }
 0x796   : > { %v3759_v22 = vpack.c.bf16 %v3728_v47, %v3727_v25  ;;  %v3622_v11 = vpop.xlane.xlu1 %3621 }
 0x797   : > { %4557 = vrot.lane.b32.xlu1 %v11589_v10, %s10874_s23  ;;  %10376 = vrcp.f32 %v3622_v11 }
 0x798   : > { %9568 = vmatprep.mubr.msk.bf16.mxu1 %vm404_vm0, %v3759_v22 }
 0x799   : > { %4697 = vrot.lane.b32.xlu0 %v11608_v2, %s10874_s23  ;;  %9569 = vmatmul.mubr.msk.bf16.vlgmr.msra.gmra.mxu1 %vm404_vm0, %v3760_v9 }
 0x79a   : > { %v3655_v17 = vpop.xlane.xlu0 %3654  ;;  %9581 = vmatpush3.bf16.msra.mxu1 %v12326_v41 }
 0x79b   : > { %4701 = vrot.lane.b32.xlu1 %v11608_v2, %s10873_s4  ;;  %9582 = vmatprep.subr.bf16.mxu1 %v12533_v26 }
 0x79c   : > { %v10369_v35 = vpop.eup %10368 }
 0x79d   : > { %4837 = vrot.lane.b32.xlu0 %v14648_v40, %s10873_s4  ;;  %v10371_v7 = vpop.eup %10370  ;;  %v3738_v41 = vmul.f32 %v10369_v35, %v12586_v56 }
 0x79e   : > { %v3658_v39 = vpop.xlane.xlu1 %3657  ;;  %v10373_v1 = vpop.eup %10372  ;;  %9583 = vmatpush3.bf16.msra.mxu1 %v12533_v26  ;;  %v3735_v6 = vmul.f32 %v10371_v7, %v12588_v12 }
 0x79f   : > { %v3613_v4 = vpop.xlane.xlu0 %3612  ;;  %4626 = vrot.lane.b32.xlu1 %v11599_v32, %s10874_s23  ;;  %9596 = vmatprep.subr.bf16.mxu1 %v12535_v44  ;;  %v3737_v25 = vmul.f32 %v10373_v1, %v12580_v54 }
 0x7a0   : > { %v10375_v61 = vpop.eup %10374  ;;  %10378 = vrcp.f32 %v3613_v4 }
 0x7a1   : > { %4766 = vrot.lane.b32.xlu0 %v11620_v18, %s10874_s23  ;;  %v3736_v50 = vmul.f32 %v10375_v61, %v12596_v20  ;;  %10380 = vrcp.f32 %v3619_v8  ;;  %v3764_v56 = vpack.c.bf16 %v3738_v41, %v3737_v25  ;;  %v14660_v20 = vld [vmem:[#allocation18_spill] sm:$0xff]  ;;  %v14661_v25 = vld [vmem:[#allocation16_spill] sm:$0xff] }
 0x7a2   : > { %v3616_v26 = vpop.xlane.xlu1 %3615 }
 0x7a3   : > { %10382 = vrcp.f32 %v3616_v26  ;;  %v3649_v47 = vpop.xlane.xlu0 %3648  ;;  %v3763_v14 = vpack.c.bf16 %v3736_v50, %v3735_v6  ;;  %4770 = vrot.lane.b32.xlu1 %v11620_v18, %s10873_s4 }
 0x7a4   : > { %10384 = vrcp.f32 %v3658_v39  ;;  %v10377_v54 = vpop.eup %10376 }
 0x7a5   : > { %10386 = vrcp.f32 %v3649_v47  ;;  %4906 = vrot.lane.b32.xlu0 %v14650_v15, %s10873_s4  ;;  %9584 = vmatprep.mubr.msk.bf16.mxu1 %vm404_vm0, %v3763_v14  ;;  %v3734_v11 = vmul.f32 %v10377_v54, %v12606_v53 }
 0x7a6   : > { %10388 = vrcp.f32 %v3655_v17  ;;  %v3652_v12 = vpop.xlane.xlu1 %3651  ;;  %9585 = vmatmul.mubr.msk.bf16.vlgmr.msra.gmra.mxu1 %vm404_vm0, %v3764_v56  ;;  %v14664_v56 = vld [vmem:[#allocation23_spill] sm:$0xff] }
 0x7a7   : > { %10390 = vrcp.f32 %v3652_v12  ;;  %9597 = vmatpush3.bf16.msra.mxu1 %v12535_v44  ;;  %4695 = vrot.lane.b32.xlu1 %v11611_v48, %s10874_s23  ;;  %v3643_v22 = vpop.xlane.xlu0 %3642  ;;  %v14665_v12 = vld [vmem:[#allocation24_spill] sm:$0xff] }
 0x7a8   : > { %9598 = vmatprep.subr.bf16.mxu1 %v12539_v21 }
 0x7a9   : > { %4835 = vrot.lane.b32.xlu0 %v11634_v31, %s10874_s23 }
 0x7ab   : > { %9599 = vmatpush3.bf16.msra.mxu1 %v12539_v21  ;;  %4839 = vrot.lane.b32.xlu1 %v11634_v31, %s10873_s4  ;;  %v3679_v50 = vpop.xlane.xlu0 %3678 }
 0x7ac   : > { %9612 = vmatprep.subr.bf16.mxu1 %v12543_v24 }
 0x7ad   : > { %4904 = vrot.lane.b32.xlu0 %v14660_v20, %s10874_s23  ;;  %v10379_v44 = vpop.eup %10378 }
 0x7ae   : > { %v10381_v8 = vpop.eup %10380  ;;  %v3731_v21 = vmul.f32 %v10379_v44, %v12618_v62 }
 0x7af   : > { %4764 = vrot.lane.b32.xlu1 %v14644_v43, %s10874_s23  ;;  %v3733_v39 = vmul.f32 %v10381_v8, %v12598_v63 }
 0x7b0   : > { %v10383_v9 = vpop.eup %10382 }
 0x7b1   : > { %v10385_v17 = vpop.eup %10384  ;;  %4971 = vrot.lane.b32.xlu0 %v11677_v45, %s10874_s23  ;;  %v3732_v35 = vmul.f32 %v10383_v9, %v12626_v33  ;;  %v3762_v6 = vpack.c.bf16 %v3734_v11, %v3733_v39 }
 0x7b2   : > { %v10387_v7 = vpop.eup %10386  ;;  %v3673_v4 = vpop.xlane.xlu1 %3672  ;;  %v3746_v53 = vmul.f32 %v10385_v17, %v12616_v3  ;;  %v14662_v3 = vld [vmem:[#allocation21_spill] sm:$0xff] }
 0x7b3   : > { %v10389_v1 = vpop.eup %10388  ;;  %v3761_v61 = vpack.c.bf16 %v3732_v35, %v3731_v21  ;;  %4908 = vrot.lane.b32.xlu1 %v14660_v20, %s10873_s4  ;;  %v3743_v62 = vmul.f32 %v10387_v7, %v12628_v27  ;;  %v3637_v27 = vpop.xlane.xlu0 %3636 }
 0x7b4   : > { %v10391_v41 = vpop.eup %10390  ;;  %v3745_v33 = vmul.f32 %v10389_v1, %v12611_v34  ;;  %v14663_v34 = vld [vmem:[#allocation20_spill] sm:$0xff] }
 0x7b5   : > { %5479 = vrot.lane.b32.xlu0 %v11570_v42, %s10875_s18  ;;  %9576 = vmatprep.mubr.msk.bf16.mxu0 %vm404_vm0, %v3761_v61  ;;  %v3744_v63 = vmul.f32 %v10391_v41, %v12635_v46 }
 0x7b6   : > { %9577 = vmatmul.mubr.msk.bf16.vlgmr.msra.gmra.mxu0 %vm404_vm0, %v3762_v6  ;;  %v3646_v26 = vpop.xlane.xlu1 %3645  ;;  %v3768_v14 = vpack.c.bf16 %v3746_v53, %v3745_v33  ;;  %v14667_v33 = vld [vmem:[#allocation25_spill] sm:$0xff] }
 0x7b7   : > { %9589 = vmatpush3.bf16.msra.mxu0 %v14661_v25  ;;  %v3767_v47 = vpack.c.bf16 %v3744_v63, %v3743_v62  ;;  %4833 = vrot.lane.b32.xlu1 %v14648_v40, %s10874_s23  ;;  %10392 = vrcp.f32 %v3646_v26  ;;  %v14666_v63 = vld [vmem:[#allocation22_spill] sm:$0xff] }
 0x7b8   : > { %9590 = vmatprep.subr.bf16.mxu0 %v14662_v3  ;;  %10394 = vrcp.f32 %v3637_v27 }
 0x7b9   : > { %5538 = vrot.lane.b32.xlu0 %v11589_v10, %s10875_s18  ;;  %9600 = vmatprep.mubr.msk.bf16.mxu1 %vm404_vm0, %v3767_v47  ;;  %10396 = vrcp.f32 %v3643_v22 }
 0x7ba   : > { %9601 = vmatmul.mubr.msk.bf16.vlgmr.msra.gmra.mxu1 %vm404_vm0, %v3768_v14  ;;  %v3682_v46 = vpop.xlane.xlu1 %3681  ;;  %v4203_v14 = vpop.permute.xlu0 %4202 }
 0x7bb   : > { %9591 = vmatpush3.bf16.msra.mxu0 %v14662_v3  ;;  %9613 = vmatpush3.bf16.msra.mxu1 %v12543_v24 }
 0x7bc   : > { %4977 = vrot.lane.b32.xlu1 %v14663_v34, %s10873_s4  ;;  %9604 = vmatprep.subr.bf16.mxu0 %v14664_v56 }
 0x7bd   : > { %9614 = vmatprep.subr.bf16.mxu1 %v14665_v12  ;;  %5599 = vrot.lane.b32.xlu0 %v11599_v32, %s10875_s18 }
 0x7be   : > { %v3640_v54 = vpop.xlane.xlu1 %3639 }
 0x7bf   : > { %9615 = vmatpush3.bf16.msra.mxu1 %v14665_v12  ;;  %10398 = vrcp.f32 %v3640_v54 }
 0x7c0   : > { %4902 = vrot.lane.b32.xlu1 %v14650_v15, %s10874_s23  ;;  %9956 = vmatprep.subr.msk.bf16.mxu1 %vm1170_vm1, %v12552_v28  ;;  %10400 = vrcp.f32 %v3682_v46 }
 0x7c1   : > { %5723 = vrot.lane.b32.xlu0 %v11620_v18, %s10875_s18  ;;  %10402 = vrcp.f32 %v3673_v4 }
 0x7c2   : > { %10404 = vrcp.f32 %v3679_v50  ;;  %v3676_v24 = vpop.xlane.xlu1 %3675 }
 0x7c3   : > { %10406 = vrcp.f32 %v3676_v24 }
 0x7c4   : > { %4975 = vrot.lane.b32.xlu1 %v11677_v45, %s10873_s4  ;;  %v10393_v8 = vpop.eup %10392  ;;  %s9043_s4 = sshll.u32 %s10950_s9, 11  ;;  %s8398_s9 = scalar_lea.sflag [#allocation5], %s11070_s1 }
 0x7c5   : > { %5660 = vrot.lane.b32.xlu0 %v11611_v48, %s10875_s18  ;;  %v10395_v22 = vpop.eup %10394  ;;  %v3742_v21 = vmul.f32 %v10393_v8, %v12659_v58 }
 0x7c6   : > { %v3667_v44 = vpop.xlane.xlu1 %3666  ;;  %v10397_v11 = vpop.eup %10396  ;;  %v3739_v7 = vmul.f32 %v10395_v22, %v12649_v19 }
 0x7c7   : > { %v3741_v61 = vmul.f32 %v10397_v11, %v12637_v5 }
 0x7c8   : > { %4973 = vrot.lane.b32.xlu1 %v14663_v34, %s10874_s23  ;;  %s8412_s23 = sshll.u32 %s14417_s22, 4  ;;  %s14518_s23 = int_to_ptr.vmem [resolvable:$true] %s8412_s23 }
 0x7c9   : > { %5721 = vrot.lane.b32.xlu0 %v14644_v43, %s10875_s18  ;;  %v3766_v58 = vpack.c.bf16 %v3742_v21, %v3741_v61 }
 0x7ca   : > { %v3661_v9 = vpop.xlane.xlu1 %3660 }
 0x7cc   : > { %5477 = vrot.lane.b32.xlu1 %v11573_v57, %s10875_s18  ;;  %v10399_v17 = vpop.eup %10398 }
 0x7cd   : > { %5784 = vrot.lane.b32.xlu0 %v11634_v31, %s10875_s18  ;;  %v10401_v35 = vpop.eup %10400  ;;  %v3740_v39 = vmul.f32 %v10399_v17, %v12669_v52 }
 0x7ce   : > { %v10403_v1 = vpop.eup %10402  ;;  %v3670_v4 = vpop.xlane.xlu1 %3669  ;;  %v3754_v50 = vmul.f32 %v10401_v35, %v12664_v30 }
 0x7cf   : > { %v10405_v41 = vpop.eup %10404  ;;  %v3765_v6 = vpack.c.bf16 %v3740_v39, %v3739_v7  ;;  %10408 = vrcp.f32 %v3670_v4  ;;  %v3751_v19 = vmul.f32 %v10403_v1, %v12654_v0 }
 0x7d0   : > { %5540 = vrot.lane.b32.xlu1 %v11583_v55, %s10875_s18  ;;  %v10407_v53 = vpop.eup %10406  ;;  %10410 = vrcp.f32 %v3661_v9  ;;  %v3753_v62 = vmul.f32 %v10405_v41, %v12644_v29  ;;  %v4506_v29 = vsel %vm1170_vm1, %v12552_v28, 0 }
 0x7d1   : > { %5782 = vrot.lane.b32.xlu0 %v14648_v40, %s10875_s18  ;;  %9592 = vmatprep.mubr.msk.bf16.mxu0 %vm404_vm0, %v3765_v6  ;;  %v3752_v5 = vmul.f32 %v10407_v53, %v12673_v13  ;;  %10412 = vrcp.f32 %v3667_v44 }
 0x7d2   : > { %v3664_v52 = vpop.xlane.xlu1 %3663  ;;  %9593 = vmatmul.mubr.msk.bf16.vlgmr.msra.gmra.mxu0 %vm404_vm0, %v3766_v58  ;;  %v3772_v0 = vpack.c.bf16 %v3754_v50, %v3753_v62 }
 0x7d3   : > { %10414 = vrcp.f32 %v3664_v52  ;;  %9605 = vmatpush3.bf16.msra.mxu0 %v14664_v56  ;;  %v3771_v30 = vpack.c.bf16 %v3752_v5, %v3751_v19 }
 0x7d4   : > { %5601 = vrot.lane.b32.xlu1 %v11596_v16, %s10875_s18  ;;  %9606 = vmatprep.subr.bf16.mxu0 %v14666_v63 }
 0x7d5   : > { %5906 = vrot.lane.b32.xlu0 %v14663_v34, %s10875_s18  ;;  %9616 = vmatprep.mubr.msk.bf16.mxu1 %vm404_vm0, %v3771_v30 }
 0x7d6   : > { %v4493_v13 = vpop.permute.xlu1 %4492  ;;  %9617 = vmatmul.mubr.msk.bf16.vlgmr.msra.gmra.mxu1 %vm404_vm0, %v3772_v0 }
 0x7d7   : > { %9607 = vmatpush3.bf16.msra.mxu0 %v14666_v63  ;;  %9629 = vmatpush3.bf16.xpose.msra.mxu1 %v4506_v29  ;;  %v4503_v47 = vsel %vm1170_vm1, %v4493_v13, 0 }
 0x7d8   : > { %5662 = vrot.lane.b32.xlu1 %v11608_v2, %s10875_s18  ;;  %9620 = vmatprep.subr.bf16.mxu0 %v14667_v33 }
 0x7d9   : > { %9957 = vmatprep.subr.msk.bf16.mxu1 %vm1170_vm1, %v4493_v13 }
 0x7dc   : > { %5845 = vrot.lane.b32.xlu1 %v14660_v20, %s10875_s18  ;;  %v10409_v26 = vpop.eup %10408 }
 0x7dd   : > { %v10411_v25 = vpop.eup %10410  ;;  %v3750_v27 = vmul.f32 %v10409_v26, %v12687_v23 }
 0x7de   : > { %v10413_v3 = vpop.eup %10412  ;;  %v3747_v46 = vmul.f32 %v10411_v25, %v12683_v51 }
 0x7df   : > { %9631 = vmatpush3.bf16.xpose.msra.mxu1 %v4503_v47  ;;  %v3749_v12 = vmul.f32 %v10413_v3, %v12677_v38 }
 0x7e0   : > { %v10415_v28 = vpop.eup %10414  ;;  %5843 = vrot.lane.b32.xlu1 %v14650_v15, %s10875_s18 }
 0x7e1   : > { %v3748_v56 = vmul.f32 %v10415_v28, %v12692_v60  ;;  %v3770_v44 = vpack.c.bf16 %v3750_v27, %v3749_v12 }
 0x7e3   : > { %v3769_v24 = vpack.c.bf16 %v3748_v56, %v3747_v46 }
 0x7e4   : > { %v3691_v54 = vpop.xlane.xlu0 %3690  ;;  %6196 = vrot.lane.b32.xlu1 %v11570_v42, %s10876_s11 }
 0x7e5   : > { %9608 = vmatprep.mubr.msk.bf16.mxu0 %vm404_vm0, %v3769_v24 }
 0x7e6   : > { %9609 = vmatmul.mubr.msk.bf16.vlgmr.msra.gmra.mxu0 %vm404_vm0, %v3770_v44 }
 0x7e7   : > { %9621 = vmatpush3.bf16.msra.mxu0 %v14667_v33 }
 0x7e8   : > { %v3685_v23 = vpop.xlane.xlu0 %3684  ;;  %9622 = vmatprep.subr.bf16.mxu0 %v4203_v14 }
 0x7eb   : > { %9623 = vmatpush3.bf16.msra.mxu0 %v4203_v14 }
 0x7ec   : > { %v3694_v51 = vpop.xlane.xlu0 %3693 }
 0x7ed   : > { %10416 = vrcp.f32 %v3694_v51 }
 0x7ee   : > { %10418 = vrcp.f32 %v3685_v23 }
 0x7ef   : > { %10420 = vrcp.f32 %v3691_v54 }
 0x7f0   : > { %v4564_v60 = vpop.permute.xlu0 %4563 }
 0x7f1   : > { %9958 = vmatprep.subr.msk.bf16.mxu0 %vm1170_vm1, %v4564_v60 }
 0x7f4   : > { %v4562_v38 = vpop.permute.xlu0 %4561 }
 0x7f5   : > { %v4572_v25 = vsel %vm1170_vm1, %v4562_v38, 0 }
 0x7f8   : > { %v4491_v8 = vpop.permute.xlu0 %4490 }
 0x7fa   : > { %v10417_v61 = vpop.eup %10416 }
 0x7fb   : > { %v10419_v41 = vpop.eup %10418  ;;  %v3758_v19 = vmul.f32 %v10417_v61, %v12708_v37  ;;  %v4575_v37 = vsel %vm1170_vm1, %v4564_v60, 0 }
 0x7fc   : > { %v4631_v22 = vpop.permute.xlu0 %4630  ;;  %v10421_v53 = vpop.eup %10420  ;;  %v3755_v5 = vmul.f32 %v10419_v41, %v12702_v49 }
 0x7fd   : > { %v3757_v30 = vmul.f32 %v10421_v53, %v12698_v36  ;;  %v4641_v63 = vsel %vm1170_vm1, %v4631_v22, 0 }
 0x7ff   : > { %v3774_v13 = vpack.c.bf16 %v3758_v19, %v3757_v30 }
 0x800   : > { %v4560_v9 = vpop.permute.xlu0 %4559 }
 0x804   : > { %v12878_v11 = vpop.permute.xlu0 %4699 }
 0x805   : > { %v4710_v44 = vsel %vm1170_vm1, %v12878_v11, 0 }
 0x807   : > { %v3688_v17 = vpop.xlane.xlu1 %3687 }
 0x808   : > { %v4629_v21 = vpop.permute.xlu0 %4628  ;;  %10422 = vrcp.f32 %v3688_v17 }
 0x80b   : > { %v4489_v35 = vpop.permute.xlu1 %4488 }
 0x80c   : > { %v4769_v7 = vpop.permute.xlu0 %4768  ;;  %9632 = vmatprep.mubr.msk.bf16.mxu1 %vm1170_vm1, %v4489_v35 }
 0x80d   : > { %9633 = vmatmul.mubr.msk.bf16.vlgmr.msra.gmra.mxu1 %vm1170_vm1, %v4491_v8  ;;  %v4779_v14 = vsel %vm1170_vm1, %v4769_v7, 0 }
 0x80f   : > { %v4633_v39 = vpop.permute.xlu1 %4632 }
 0x810   : > { %v12882_v1 = vpop.permute.xlu0 %4697  ;;  %9960 = vmatprep.subr.msk.bf16.mxu1 %vm1170_vm1, %v4633_v39  ;;  %v4644_v4 = vsel %vm1170_vm1, %v4633_v39, 0 }
 0x811   : > { %9645 = vmatpush3.bf16.xpose.msra.mxu1 %v4644_v4 }
 0x812   : > { %9961 = vmatprep.subr.msk.bf16.mxu1 %vm1170_vm1, %v4631_v22 }
 0x813   : > { %v4558_v6 = vpop.permute.xlu1 %4557 }
 0x814   : > { %v12887_v50 = vpop.permute.xlu0 %4837 }
 0x815   : > { %v10423_v58 = vpop.eup %10422 }
 0x816   : > { %v3756_v52 = vmul.f32 %v10423_v58, %v12715_v59 }
 0x817   : > { %v4702_v62 = vpop.permute.xlu1 %4701 }
 0x818   : > { %v3773_v0 = vpack.c.bf16 %v3756_v52, %v3755_v5  ;;  %v4767_v29 = vpop.permute.xlu0 %4766  ;;  %v4713_v27 = vsel %vm1170_vm1, %v4702_v62, 0 }
 0x819   : > { %9647 = vmatpush3.bf16.xpose.msra.mxu1 %v4641_v63 }
 0x81a   : > { %9624 = vmatprep.mubr.msk.bf16.mxu0 %vm404_vm0, %v3773_v0 }
 0x81b   : > { %v4627_v33 = vpop.permute.xlu1 %4626  ;;  %9625 = vmatmul.mubr.msk.bf16.vlgmr.msra.gmra.mxu0 %vm404_vm0, %v3774_v13 }
 0x81c   : > { %9637 = vmatpush3.bf16.xpose.msra.mxu0 %v4575_v37  ;;  %9640 = vmatprep.mubr.msk.bf16.mxu0 %vm1170_vm1, %v4558_v6  ;;  %v4907_v59 = vpop.permute.xlu0 %4906 }
 0x81d   : > { %9959 = vmatprep.subr.msk.bf16.mxu0 %vm1170_vm1, %v4562_v38  ;;  %9648 = vmatprep.mubr.msk.bf16.mxu1 %vm1170_vm1, %v4627_v33  ;;  %v4917_v51 = vsel %vm1170_vm1, %v4907_v59, 0 }
 0x81f   : > { %v4771_v36 = vpop.permute.xlu1 %4770 }
 0x820   : > { %9649 = vmatmul.mubr.msk.bf16.vlgmr.msra.gmra.mxu1 %vm1170_vm1, %v4629_v21  ;;  %9964 = vmatprep.subr.msk.bf16.mxu1 %vm1170_vm1, %v4771_v36  ;;  %v4782_v49 = vsel %vm1170_vm1, %v4771_v36, 0  ;;  %v4836_v47 = vpop.permute.xlu0 %4835 }
 0x821   : > { %9661 = vmatpush3.bf16.xpose.msra.mxu1 %v4782_v49 }
 0x822   : > { %9965 = vmatprep.subr.msk.bf16.mxu1 %vm1170_vm1, %v4769_v7 }
 0x823   : > { %v4696_v26 = vpop.permute.xlu1 %4695 }
 0x824   : > { %9639 = vmatpush3.bf16.xpose.msra.mxu0 %v4572_v25  ;;  %v4905_v46 = vpop.permute.xlu0 %4904 }
 0x825   : > { %9962 = vmatprep.subr.msk.bf16.mxu0 %vm1170_vm1, %v4702_v62 }
 0x827   : > { %v4840_v3 = vpop.permute.xlu1 %4839 }
 0x828   : > { %v4972_v54 = vpop.permute.xlu0 %4971  ;;  %v4851_v8 = vsel %vm1170_vm1, %v4840_v3, 0 }
 0x829   : > { %9663 = vmatpush3.bf16.xpose.msra.mxu1 %v4779_v14 }
 0x82b   : > { %9641 = vmatmul.mubr.msk.bf16.vlgmr.msra.gmra.mxu0 %vm1170_vm1, %v4560_v9  ;;  %v4765_v28 = vpop.permute.xlu1 %4764 }
 0x82c   : > { %9653 = vmatpush3.bf16.xpose.msra.mxu0 %v4713_v27  ;;  %9656 = vmatprep.mubr.msk.bf16.mxu0 %vm1170_vm1, %v4696_v26  ;;  %v5480_v60 = vpop.permute.xlu0 %5479 }
 0x82d   : > { %9963 = vmatprep.subr.msk.bf16.mxu0 %vm1170_vm1, %v12878_v11  ;;  %9664 = vmatprep.mubr.msk.bf16.mxu1 %vm1170_vm1, %v4765_v28  ;;  %v4848_v11 = vsel %vm1170_vm1, %v12887_v50, 0  ;;  %v12992_v28 = vld [vmem:[#allocation6 + $0x50] sm:$0xff] }
 0x82f   : > { %v4909_v56 = vpop.permute.xlu1 %4908 }
 0x830   : > { %9665 = vmatmul.mubr.msk.bf16.vlgmr.msra.gmra.mxu1 %vm1170_vm1, %v4767_v29  ;;  %9968 = vmatprep.subr.msk.bf16.mxu1 %vm1170_vm1, %v4909_v56  ;;  %v4920_v12 = vsel %vm1170_vm1, %v4909_v56, 0 }
 0x831   : > { %9677 = vmatpush3.bf16.xpose.msra.mxu1 %v4920_v12  ;;  %v12996_v12 = vld [vmem:[#allocation6 + $0x40] sm:$0xff] }
 0x832   : > { %9969 = vmatprep.subr.msk.bf16.mxu1 %vm1170_vm1, %v4907_v59 }
 0x833   : > { %v4834_v24 = vpop.permute.xlu1 %4833 }
 0x834   : > { %9655 = vmatpush3.bf16.xpose.msra.mxu0 %v4710_v44 }
 0x835   : > { %9966 = vmatprep.subr.msk.bf16.mxu0 %vm1170_vm1, %v4840_v3 }
 0x837   : > { %v4978_v23 = vpop.permute.xlu1 %4977 }
 0x838   : > { %v4989_v35 = vsel %vm1170_vm1, %v4978_v23, 0 }
 0x839   : > { %9679 = vmatpush3.bf16.xpose.msra.mxu1 %v4917_v51 }
 0x83a   : > { %9692 = vmatprep.subr.bf16.mxu1 %v5480_v60 }
 0x83b   : > { %9657 = vmatmul.mubr.msk.bf16.vlgmr.msra.gmra.mxu0 %vm1170_vm1, %v12882_v1  ;;  %v4903_v38 = vpop.permute.xlu1 %4902  ;;  %v5539_v1 = vpop.permute.xlu0 %5538 }
 0x83c   : > { %9669 = vmatpush3.bf16.xpose.msra.mxu0 %v4851_v8  ;;  %9672 = vmatprep.mubr.msk.bf16.mxu0 %vm1170_vm1, %v4834_v24  ;;  %v13008_v8 = vld [vmem:[#allocation6 + $0x58] sm:$0xff] }
 0x83d   : > { %9967 = vmatprep.subr.msk.bf16.mxu0 %vm1170_vm1, %v12887_v50  ;;  %9680 = vmatprep.mubr.msk.bf16.mxu1 %vm1170_vm1, %v4903_v38 }
 0x83f   : > { %v4976_v22 = vpop.permute.xlu1 %4975 }
 0x840   : > { %9681 = vmatmul.mubr.msk.bf16.vlgmr.msra.gmra.mxu1 %vm1170_vm1, %v4905_v46  ;;  %v4986_v39 = vsel %vm1170_vm1, %v4976_v22, 0 }
 0x841   : > { %9693 = vmatpush3.bf16.msra.mxu1 %v5480_v60 }
 0x843   : > { %v4974_v9 = vpop.permute.xlu1 %4973 }
 0x844   : > { %9671 = vmatpush3.bf16.xpose.msra.mxu0 %v4848_v11 }
 0x845   : > { %9970 = vmatprep.subr.msk.bf16.mxu0 %vm1170_vm1, %v4978_v23 }
 0x847   : > { %v5478_v17 = vpop.permute.xlu1 %5477 }
 0x848   : > { %9694 = vmatprep.subr.bf16.mxu1 %v5478_v17 }
 0x849   : > { %9695 = vmatpush3.bf16.msra.mxu1 %v5478_v17 }
 0x84b   : > { %9673 = vmatmul.mubr.msk.bf16.vlgmr.msra.gmra.mxu0 %vm1170_vm1, %v4836_v47  ;;  %v5541_v21 = vpop.permute.xlu1 %5540 }
 0x84c   : > { %9685 = vmatpush3.bf16.xpose.msra.mxu0 %v4989_v35  ;;  %9688 = vmatprep.mubr.msk.bf16.mxu0 %vm1170_vm1, %v4972_v54 }
 0x84d   : > { %9971 = vmatprep.subr.msk.bf16.mxu0 %vm1170_vm1, %v4976_v22 }
 0x84f   : > { %v12936_v7 = vpop.permute.xlu1 %5601 }
 0x850   : > { %9708 = vmatprep.subr.bf16.mxu1 %v12936_v7 }
 0x853   : > { %v12941_v4 = vpop.permute.xlu1 %5662 }
 0x854   : > { %9687 = vmatpush3.bf16.xpose.msra.mxu0 %v4986_v39  ;;  %14668 = vst [vmem:[#allocation18_spill] sm:$0xff] %v12941_v4 }
 0x855   : > { %9700 = vmatprep.subr.bf16.mxu0 %v5541_v21 }
 0x859   : > { %v12944_v61 = vpop.f32.mrf.mxu1 }
 0x85a   : > { %14669 = vst [vmem:[#allocation16_spill] sm:$0xff] %v12944_v61 }
 0x85b   : > { %9689 = vmatmul.mubr.msk.bf16.vlgmr.msra.gmra.mxu0 %vm1170_vm1, %v4974_v9  ;;  %v12946_v41 = vpop.f32.mrf.mxu1  ;;  %v13010_v9 = vld [vmem:[#allocation6 + $0x48] sm:$0xff] }
 0x85c   : > { %9701 = vmatpush3.bf16.msra.mxu0 %v5541_v21  ;;  %14670 = vst [vmem:[#allocation21_spill] sm:$0xff] %v12946_v41 }
 0x85d   : > { %9702 = vmatprep.subr.bf16.mxu0 %v5539_v1  ;;  %v12948_v6 = vpop.f32.mrf.mxu1 }
 0x85e   : > { %14671 = vst [vmem:[#allocation20_spill] sm:$0xff] %v12948_v6 }
 0x85f   : > { %v12950_v53 = vpop.f32.mrf.mxu1 }
 0x860   : > { %9703 = vmatpush3.bf16.msra.mxu0 %v5539_v1  ;;  %14672 = vst [vmem:[#allocation23_spill] sm:$0xff] %v12950_v53 }
 0x861   : > { %9716 = vmatprep.subr.bf16.mxu0 %v12941_v4 }
 0x866   : > { %v12952_v58 = vpop.f32.mrf.mxu1 }
 0x867   : > { %14673 = vst [vmem:[#allocation24_spill] sm:$0xff] %v12952_v58 }
 0x868   : > { %v12954_v50 = vpop.f32.mrf.mxu1 }
 0x869   : > { %14674 = vst [vmem:[#allocation22_spill] sm:$0xff] %v12954_v50 }
 0x86a   : > { %v12956_v19 = vpop.f32.mrf.mxu1 }
 0x86b   : > { %14675 = vst [vmem:[#allocation25_spill] sm:$0xff] %v12956_v19 }
 0x86c   : > { %v12958_v5 = vpop.f32.mrf.mxu1 }
 0x86d   : > { %14676 = vst [vmem:[#allocation26_spill] sm:$0xff] %v12958_v5 }
 0x876   : > { %v12962_v62 = vpop.f32.mrf.mxu0 }
 0x877   : > { %14678 = vst [vmem:[#allocation28_spill] sm:$0xff] %v12962_v62 }
 0x878   : > { %v12966_v63 = vpop.f32.mrf.mxu0 }
 0x879   : > { %14680 = vst [vmem:[#allocation30_spill] sm:$0xff] %v12966_v63 }
 0x87a   : > { %v12960_v52 = vpop.f32.mrf.mxu1  ;;  %v12970_v13 = vpop.f32.mrf.mxu0 }
 0x87b   : > { %14677 = vst [vmem:[#allocation27_spill] sm:$0xff] %v12960_v52  ;;  %14682 = vst [vmem:[#allocation32_spill] sm:$0xff] %v12970_v13 }
 0x87c   : > { %v12964_v30 = vpop.f32.mrf.mxu1  ;;  %v12974_v33 = vpop.f32.mrf.mxu0 }
 0x87d   : > { %14679 = vst [vmem:[#allocation29_spill] sm:$0xff] %v12964_v30  ;;  %14684 = vst [vmem:[#allocation34_spill] sm:$0xff] %v12974_v33 }
 0x87e   : > { %v12968_v0 = vpop.f32.mrf.mxu1 }
 0x87f   : > { %14681 = vst [vmem:[#allocation31_spill] sm:$0xff] %v12968_v0 }
 0x880   : > { %v12972_v29 = vpop.f32.mrf.mxu1 }
 0x881   : > { %14683 = vst [vmem:[#allocation33_spill] sm:$0xff] %v12972_v29 }
 0x892   : > { %v12978_v36 = vpop.f32.mrf.mxu0 }
 0x893   : > { %14686 = vst [vmem:[#allocation36_spill] sm:$0xff] %v12978_v36 }
 0x894   : > { %v12982_v59 = vpop.f32.mrf.mxu0 }
 0x895   : > { %14688 = vst [vmem:[#allocation38_spill] sm:$0xff] %v12982_v59 }
 0x896   : > { %v12976_v37 = vpop.f32.mrf.mxu1  ;;  %v12986_v25 = vpop.f32.mrf.mxu0 }
 0x897   : > { %14685 = vst [vmem:[#allocation35_spill] sm:$0xff] %v12976_v37  ;;  %14690 = vst [vmem:[#allocation40_spill] sm:$0xff] %v12986_v25 }
 0x898   : > { %v12980_v49 = vpop.f32.mrf.mxu1  ;;  %v12990_v3 = vpop.f32.mrf.mxu0 }
 0x899   : > { %14687 = vst [vmem:[#allocation37_spill] sm:$0xff] %v12980_v49  ;;  %14692 = vst [vmem:[#allocation42_spill] sm:$0xff] %v12990_v3 }
 0x89a   : > { %v12984_v26 = vpop.f32.mrf.mxu1 }
 0x89b   : > { %14689 = vst [vmem:[#allocation39_spill] sm:$0xff] %v12984_v26 }
 0x89c   : > { %v12988_v47 = vpop.f32.mrf.mxu1 }
 0x89d   : > { %14691 = vst [vmem:[#allocation41_spill] sm:$0xff] %v12988_v47 }
 0x8a6   : > { %v12994_v46 = vpop.f32.mrf.mxu0 }
 0x8a7   : > { %14693 = vst [vmem:[#allocation43_spill] sm:$0xff] %v12994_v46 }
 0x8a8   : > { %v13006_v38 = vpop.f32.mrf.mxu0 }
 0x8a9   : > { %14694 = vst [vmem:[#allocation44_spill] sm:$0xff] %v13006_v38 }
 0x8aa   : > { %v13020_v39 = vpop.f32.mrf.mxu0 }
 0x8ab   : > { %14695 = vst [vmem:[#allocation45_spill] sm:$0xff] %v13020_v39 }
 0x8cd   : > { %v9634_v14 = vpop.f32.mrf.mxu1 }
 0x8ce   : > { %v5042_v27 = vmul.f32 0.35355338, %v9634_v14 }
 0x8cf   : > { %v4542_v56 = vpop.f32.mrf.mxu1 }
 0x8d0   : > { %v12999_v54 = vadd.f32 %v12992_v28, %v5042_v27  ;;  %v5040_v24 = vmul.f32 0.35355338, %v4542_v56  ;;  %v13026_v27 = vpop.f32.mrf.mxu0 }
 0x8d1   : > { %v9635_v44 = vpop.f32.mrf.mxu1  ;;  %14696 = vst [vmem:[#allocation46_spill] sm:$0xff] %v13026_v27 }
 0x8d2   : > { %v13002_v23 = vadd.f32 %v12996_v12, %v5040_v24  ;;  %v5043_v51 = vmul.f32 0.35355338, %v9635_v44  ;;  %v5115_v60 = vsel %vm404_vm0, %v12999_v54, -inf }
 0x8d3   : > { %5116 = vmax.xlane.f32.xlu0 %v5115_v60  ;;  %v4545_v22 = vpop.f32.mrf.mxu1 }
 0x8d4   : > { %v5041_v11 = vmul.f32 0.35355338, %v4545_v22  ;;  %v13013_v17 = vadd.f32 %v13008_v8, %v5043_v51  ;;  %v5109_v35 = vsel %vm404_vm0, %v13002_v23, -inf }
 0x8d6   : > { %v13016_v21 = vadd.f32 %v13010_v9, %v5041_v11  ;;  %v5118_v14 = vsel %vm404_vm0, %v13013_v17, -inf }
 0x8d7   : > { %5110 = vmax.xlane.f32.xlu0 %v5109_v35 }
 0x8d8   : > { %v5112_v1 = vsel %vm404_vm0, %v13016_v21, -inf }
 0x8d9   : > { %5113 = vmax.xlane.f32.xlu1 %v5112_v1 }
 0x8db   : > { %5119 = vmax.xlane.f32.xlu0 %v5118_v14  ;;  %v13028_v56 = vpop.f32.mrf.mxu0 }
 0x8dc   : > { %14697 = vst [vmem:[#allocation47_spill] sm:$0xff] %v13028_v56 }
 0x8dd   : > { %v13030_v44 = vpop.f32.mrf.mxu0 }
 0x8de   : > { %14698 = vst [vmem:[#allocation48_spill] sm:$0xff] %v13030_v44 }
 0x8df   : > { %v13035_v58 = vpop.f32.mrf.mxu0 }
 0x8e0   : > { %v9650_v24 = vpop.f32.mrf.mxu1  ;;  %14699 = vst [vmem:[#allocation49_spill] sm:$0xff] %v13035_v58 }
 0x8e1   : > { %v5050_v51 = vmul.f32 0.35355338, %v9650_v24  ;;  %v13045_v19 = vpop.f32.mrf.mxu0 }
 0x8e2   : > { %v4680_v60 = vpop.f32.mrf.mxu1  ;;  %14700 = vst [vmem:[#allocation50_spill] sm:$0xff] %v13045_v19 }
 0x8e3   : > { %v13033_v22 = vadd.f32 %v12992_v28, %v5050_v51  ;;  %v5048_v11 = vmul.f32 0.35355338, %v4680_v60 }
 0x8e4   : > { %v9651_v35 = vpop.f32.mrf.mxu1 }
 0x8e5   : > { %v13038_v1 = vadd.f32 %v12996_v12, %v5048_v11  ;;  %v5051_v50 = vmul.f32 0.35355338, %v9651_v35  ;;  %v5139_v14 = vsel %vm404_vm0, %v13033_v22, -inf }
 0x8e6   : > { %5140 = vmax.xlane.f32.xlu0 %v5139_v14  ;;  %v4683_v56 = vpop.f32.mrf.mxu1 }
 0x8e7   : > { %v13043_v44 = vadd.f32 %v13008_v8, %v5051_v50  ;;  %v5049_v24 = vmul.f32 0.35355338, %v4683_v56  ;;  %v5133_v60 = vsel %vm404_vm0, %v13038_v1, -inf }
 0x8e9   : > { %v13048_v51 = vadd.f32 %v13010_v9, %v5049_v24  ;;  %v5142_v11 = vsel %vm404_vm0, %v13043_v44, -inf }
 0x8ea   : > { %5134 = vmax.xlane.f32.xlu0 %v5133_v60  ;;  %5143 = vmax.xlane.f32.xlu1 %v5142_v11 }
 0x8eb   : > { %v9642_v35 = vpop.f32.mrf.mxu0  ;;  %v5136_v50 = vsel %vm404_vm0, %v13048_v51, -inf }
 0x8ec   : > { %v5046_v14 = vmul.f32 0.35355338, %v9642_v35 }
 0x8ed   : > { %v4611_v58 = vpop.f32.mrf.mxu0 }
 0x8ee   : > { %v13057_v56 = vadd.f32 %v12992_v28, %v5046_v14  ;;  %5137 = vmax.xlane.f32.xlu1 %v5136_v50  ;;  %v5044_v19 = vmul.f32 0.35355338, %v4611_v58 }
 0x8ef   : > { %v9643_v24 = vpop.f32.mrf.mxu0 }
 0x8f0   : > { %v5047_v5 = vmul.f32 0.35355338, %v9643_v24  ;;  %v5127_v37 = vsel %vm404_vm0, %v13057_v56, -inf  ;;  %v9666_v62 = vpop.f32.mrf.mxu1  ;;  %v13068_v14 = vadd.f32 %v12996_v12, %v5044_v19 }
 0x8f1   : > { %v4614_v49 = vpop.f32.mrf.mxu0  ;;  %5128 = vmax.xlane.f32.xlu0 %v5127_v37  ;;  %v5058_v60 = vmul.f32 0.35355338, %v9666_v62 }
 0x8f2   : > { %v13062_v11 = vadd.f32 %v13008_v8, %v5047_v5  ;;  %v4818_v35 = vpop.f32.mrf.mxu1  ;;  %v5045_v50 = vmul.f32 0.35355338, %v4614_v49  ;;  %v5121_v19 = vsel %vm404_vm0, %v13068_v14, -inf }
 0x8f3   : > { %v13065_v26 = vadd.f32 %v12992_v28, %v5058_v60  ;;  %v5056_v63 = vmul.f32 0.35355338, %v4818_v35 }
 0x8f4   : > { %v5130_v58 = vsel %vm404_vm0, %v13062_v11, -inf  ;;  %v9667_v24 = vpop.f32.mrf.mxu1  ;;  %v13080_v49 = vadd.f32 %v13010_v9, %v5045_v50 }
 0x8f5   : > { %5131 = vmax.xlane.f32.xlu1 %v5130_v58  ;;  %v5059_v13 = vmul.f32 0.35355338, %v9667_v24  ;;  %v5163_v62 = vsel %vm404_vm0, %v13065_v26, -inf  ;;  %v13083_v60 = vadd.f32 %v12996_v12, %v5056_v63 }
 0x8f6   : > { %5164 = vmax.xlane.f32.xlu0 %v5163_v62  ;;  %v4821_v5 = vpop.f32.mrf.mxu1  ;;  %v5124_v50 = vsel %vm404_vm0, %v13080_v49, -inf }
 0x8f7   : > { %v13075_v37 = vadd.f32 %v13008_v8, %v5059_v13  ;;  %v5057_v35 = vmul.f32 0.35355338, %v4821_v5  ;;  %v5157_v33 = vsel %vm404_vm0, %v13083_v60, -inf }
 0x8f9   : > { %v5166_v58 = vsel %vm404_vm0, %v13075_v37, -inf  ;;  %v13088_v13 = vadd.f32 %v13010_v9, %v5057_v35 }
 0x8fa   : > { %5122 = vmax.xlane.f32.xlu0 %v5121_v19  ;;  %5167 = vmax.xlane.f32.xlu1 %v5166_v58 }
 0x8fb   : > { %v9658_v24 = vpop.f32.mrf.mxu0  ;;  %v5160_v38 = vsel %vm404_vm0, %v13088_v13, -inf }
 0x8fc   : > { %v5054_v62 = vmul.f32 0.35355338, %v9658_v24 }
 0x8fd   : > { %v4749_v47 = vpop.f32.mrf.mxu0 }
 0x8fe   : > { %v13095_v63 = vadd.f32 %v12992_v28, %v5054_v62  ;;  %5158 = vmax.xlane.f32.xlu0 %v5157_v33  ;;  %5125 = vmax.xlane.f32.xlu1 %v5124_v50  ;;  %v5052_v19 = vmul.f32 0.35355338, %v4749_v47 }
 0x8ff   : > { %v9659_v5 = vpop.f32.mrf.mxu0 }
 0x900   : > { %v5055_v58 = vmul.f32 0.35355338, %v9659_v5  ;;  %v9682_v46 = vpop.f32.mrf.mxu1  ;;  %v5151_v35 = vsel %vm404_vm0, %v13095_v63, -inf  ;;  %v13108_v47 = vadd.f32 %v12996_v12, %v5052_v19 }
 0x901   : > { %v4752_v24 = vpop.f32.mrf.mxu0  ;;  %v5066_v61 = vmul.f32 0.35355338, %v9682_v46 }
 0x902   : > { %v13102_v39 = vadd.f32 %v13008_v8, %v5055_v58  ;;  %5152 = vmax.xlane.f32.xlu0 %v5151_v35  ;;  %5161 = vmax.xlane.f32.xlu1 %v5160_v38  ;;  %v4956_v62 = vpop.f32.mrf.mxu1  ;;  %v5053_v50 = vmul.f32 0.35355338, %v4752_v24 }
 0x903   : > { %v13105_v33 = vadd.f32 %v12992_v28, %v5066_v61  ;;  %v5064_v5 = vmul.f32 0.35355338, %v4956_v62  ;;  %v5145_v61 = vsel %vm404_vm0, %v13108_v47, -inf }
 0x904   : > { %v9683_v46 = vpop.f32.mrf.mxu1  ;;  %v5154_v6 = vsel %vm404_vm0, %v13102_v39, -inf  ;;  %v13120_v19 = vadd.f32 %v13010_v9, %v5053_v50 }
 0x905   : > { %v5067_v41 = vmul.f32 0.35355338, %v9683_v46  ;;  %v5187_v58 = vsel %vm404_vm0, %v13105_v33, -inf  ;;  %v13123_v24 = vadd.f32 %v12996_v12, %v5064_v5 }
 0x906   : > { %5155 = vmax.xlane.f32.xlu1 %v5154_v6  ;;  %5188 = vmax.xlane.f32.xlu0 %v5187_v58  ;;  %v4959_v38 = vpop.f32.mrf.mxu1  ;;  %v5148_v50 = vsel %vm404_vm0, %v13120_v19, -inf }
 0x907   : > { %v13115_v35 = vadd.f32 %v13008_v8, %v5067_v41  ;;  %v5065_v62 = vmul.f32 0.35355338, %v4959_v38  ;;  %v5181_v53 = vsel %vm404_vm0, %v13123_v24, -inf }
 0x909   : > { %v5190_v46 = vsel %vm404_vm0, %v13115_v35, -inf  ;;  %v13128_v41 = vadd.f32 %v13010_v9, %v5065_v62 }
 0x90a   : > { %5146 = vmax.xlane.f32.xlu0 %v5145_v61  ;;  %5191 = vmax.xlane.f32.xlu1 %v5190_v46 }
 0x90b   : > { %v9674_v6 = vpop.f32.mrf.mxu0  ;;  %v5184_v30 = vsel %vm404_vm0, %v13128_v41, -inf }
 0x90c   : > { %v5062_v58 = vmul.f32 0.35355338, %v9674_v6 }
 0x90d   : > { %v4887_v27 = vpop.f32.mrf.mxu0 }
 0x90e   : > { %v13135_v5 = vadd.f32 %v12992_v28, %v5062_v58  ;;  %v5060_v38 = vmul.f32 0.35355338, %v4887_v27  ;;  %5182 = vmax.xlane.f32.xlu0 %v5181_v53  ;;  %5149 = vmax.xlane.f32.xlu1 %v5148_v50 }
 0x90f   : > { %v9675_v61 = vpop.f32.mrf.mxu0 }
 0x910   : > { %v5063_v46 = vmul.f32 0.35355338, %v9675_v61  ;;  %v13138_v6 = vadd.f32 %v12996_v12, %v5060_v38  ;;  %v5175_v52 = vsel %vm404_vm0, %v13135_v5, -inf }
 0x911   : > { %v4890_v62 = vpop.f32.mrf.mxu0 }
 0x912   : > { %v13145_v0 = vadd.f32 %v13008_v8, %v5063_v46  ;;  %v5061_v58 = vmul.f32 0.35355338, %v4890_v62  ;;  %5176 = vmax.xlane.f32.xlu0 %v5175_v52  ;;  %5185 = vmax.xlane.f32.xlu1 %v5184_v30  ;;  %v5169_v27 = vsel %vm404_vm0, %v13138_v6, -inf }
 0x914   : > { %v13148_v53 = vadd.f32 %v13010_v9, %v5061_v58  ;;  %v5178_v50 = vsel %vm404_vm0, %v13145_v0, -inf }
 0x916   : > { %5170 = vmax.xlane.f32.xlu0 %v5169_v27  ;;  %5179 = vmax.xlane.f32.xlu1 %v5178_v50  ;;  %v5172_v38 = vsel %vm404_vm0, %v13148_v53, -inf }
 0x91a   : > { %5173 = vmax.xlane.f32.xlu1 %v5172_v38 }
 0x91b   : > { %v9690_v61 = vpop.f32.mrf.mxu0 }
 0x91c   : > { %v5070_v46 = vmul.f32 0.35355338, %v9690_v61 }
 0x91d   : > { %v5025_v62 = vpop.f32.mrf.mxu0 }
 0x91e   : > { %v13157_v52 = vadd.f32 %v12992_v28, %v5070_v46  ;;  %v5068_v30 = vmul.f32 0.35355338, %v5025_v62  ;;  %v13176_v62 = vpop.permute.xlu0 %5599 }
 0x91f   : > { %v9691_v58 = vpop.f32.mrf.mxu0 }
 0x920   : > { %v13160_v29 = vadd.f32 %v12996_v12, %v5068_v30  ;;  %v5071_v36 = vmul.f32 0.35355338, %v9691_v58  ;;  %v5199_v27 = vsel %vm404_vm0, %v13157_v52, -inf }
 0x921   : > { %5200 = vmax.xlane.f32.xlu0 %v5199_v27  ;;  %v5028_v50 = vpop.f32.mrf.mxu0  ;;  %v13188_v27 = vpop.permute.xlu1 %5845 }
 0x922   : > { %v13165_v59 = vadd.f32 %v13008_v8, %v5071_v36  ;;  %v5069_v38 = vmul.f32 0.35355338, %v5028_v50  ;;  %v5193_v28 = vsel %vm404_vm0, %v13160_v29, -inf  ;;  %v13178_v36 = vpop.permute.xlu0 %5723 }
 0x924   : > { %v13168_v61 = vadd.f32 %v13010_v9, %v5069_v38  ;;  %v5202_v12 = vsel %vm404_vm0, %v13165_v59, -inf }
 0x925   : > { %5194 = vmax.xlane.f32.xlu0 %v5193_v28  ;;  %5203 = vmax.xlane.f32.xlu1 %v5202_v12  ;;  %v13192_v38 = vpop.permute.xlu1 %5843 }
 0x926   : > { %v5196_v46 = vsel %vm404_vm0, %v13168_v61, -inf  ;;  %v13180_v8 = vpop.permute.xlu0 %5660  ;;  %14705 = vst [vmem:[#allocation55_spill] sm:$0xff] %v13192_v38 }
 0x927   : > { %14701 = vst [vmem:[#allocation51_spill] sm:$0xff] %v13180_v8 }
 0x929   : > { %5197 = vmax.xlane.f32.xlu1 %v5196_v46  ;;  %v13195_v46 = vpop.permute.xlu1 %6196 }
 0x92a   : > { %v13182_v9 = vpop.permute.xlu0 %5721 }
 0x92e   : > { %v13184_v30 = vpop.permute.xlu0 %5784 }
 0x92f   : > { %14702 = vst [vmem:[#allocation52_spill] sm:$0xff] %v13184_v30 }
 0x932   : > { %v13186_v58 = vpop.permute.xlu0 %5782 }
 0x933   : > { %14703 = vst [vmem:[#allocation53_spill] sm:$0xff] %v13186_v58 }
 0x936   : > { %v13190_v50 = vpop.permute.xlu0 %5906 }
 0x937   : > { %14704 = vst [vmem:[#allocation54_spill] sm:$0xff] %v13190_v50 }
 0x95c   : > { %v5117_v28 = vpop.xlane.xlu0 %5116 }
 0x95d   : > { %v5207_v12 = vsub.f32 %v12999_v54, %v5117_v28 }
 0x95f   : > { %v5241_v25 = vmul.f32 1.442695, %v5207_v12 }
 0x960   : > { %v5111_v3 = vpop.xlane.xlu0 %5110 }
 0x961   : > { %10424 = vpow2.f32 %v5241_v25  ;;  %v5205_v15 = vsub.f32 %v13002_v23, %v5111_v3 }
 0x962   : > { %v5114_v8 = vpop.xlane.xlu1 %5113 }
 0x963   : > { %v5237_v30 = vmul.f32 1.442695, %v5205_v15  ;;  %v5206_v58 = vsub.f32 %v13016_v21, %v5114_v8 }
 0x964   : > { %v5120_v4 = vpop.xlane.xlu0 %5119 }
 0x965   : > { %10426 = vpow2.f32 %v5237_v30  ;;  %v5208_v50 = vsub.f32 %v13013_v17, %v5120_v4  ;;  %v5239_v40 = vmul.f32 1.442695, %v5206_v58 }
 0x967   : > { %v5243_v38 = vmul.f32 1.442695, %v5208_v50 }
 0x969   : > { %10428 = vpow2.f32 %v5243_v38 }
 0x96a   : > { %10430 = vpow2.f32 %v5239_v40 }
 0x96e   : > { %v13200_v54 = vpop.eup %10424 }
 0x96f   : > { %v5141_v28 = vpop.xlane.xlu0 %5140  ;;  %v5307_v25 = vsel %vm404_vm0, %v13200_v54, 0.0 }
 0x970   : > { %v5215_v3 = vsub.f32 %v13033_v22, %v5141_v28  ;;  %5308 = vadd.xlane.f32.xlu0 %v5307_v25 }
 0x972   : > { %v13205_v15 = vpop.eup %10426  ;;  %v5257_v23 = vmul.f32 1.442695, %v5215_v3 }
 0x973   : > { %v5144_v21 = vpop.xlane.xlu1 %5143  ;;  %v5135_v8 = vpop.xlane.xlu0 %5134  ;;  %v5301_v4 = vsel %vm404_vm0, %v13205_v15, 0.0 }
 0x974   : > { %10432 = vpow2.f32 %v5257_v23  ;;  %v5216_v40 = vsub.f32 %v13043_v44, %v5144_v21  ;;  %v5213_v17 = vsub.f32 %v13038_v1, %v5135_v8  ;;  %5302 = vadd.xlane.f32.xlu0 %v5301_v4 }
 0x976   : > { %v13211_v30 = vpop.eup %10428  ;;  %v5259_v58 = vmul.f32 1.442695, %v5216_v40  ;;  %v5253_v50 = vmul.f32 1.442695, %v5213_v17 }
 0x977   : > { %v5138_v22 = vpop.xlane.xlu1 %5137  ;;  %v5310_v38 = vsel %vm404_vm0, %v13211_v30, 0.0  ;;  %v13215_v12 = vpop.eup %10430 }
 0x978   : > { %10434 = vpow2.f32 %v5259_v58  ;;  %v5214_v28 = vsub.f32 %v13048_v51, %v5138_v22  ;;  %5311 = vadd.xlane.f32.xlu1 %v5310_v38  ;;  %v5304_v3 = vsel %vm404_vm0, %v13215_v12, 0.0 }
 0x979   : > { %10436 = vpow2.f32 %v5253_v50 }
 0x97a   : > { %v5255_v25 = vmul.f32 1.442695, %v5214_v28  ;;  %v5129_v44 = vpop.xlane.xlu0 %5128 }
 0x97b   : > { %v5211_v1 = vsub.f32 %v13057_v56, %v5129_v44 }
 0x97c   : > { %10438 = vpow2.f32 %v5255_v25  ;;  %5305 = vadd.xlane.f32.xlu1 %v5304_v3 }
 0x97d   : > { %v5249_v23 = vmul.f32 1.442695, %v5211_v1 }
 0x97e   : > { %v5132_v21 = vpop.xlane.xlu1 %5131 }
 0x97f   : > { %10440 = vpow2.f32 %v5249_v23  ;;  %v5212_v8 = vsub.f32 %v13062_v11, %v5132_v21  ;;  %v5165_v4 = vpop.xlane.xlu0 %5164 }
 0x980   : > { %v5223_v40 = vsub.f32 %v13065_v26, %v5165_v4 }
 0x981   : > { %v13223_v51 = vpop.eup %10432  ;;  %v5251_v17 = vmul.f32 1.442695, %v5212_v8 }
 0x982   : > { %v5273_v58 = vmul.f32 1.442695, %v5223_v40  ;;  %v5331_v56 = vsel %vm404_vm0, %v13223_v51, 0.0 }
 0x983   : > { %10442 = vpow2.f32 %v5251_v17  ;;  %v5168_v50 = vpop.xlane.xlu1 %5167  ;;  %5332 = vadd.xlane.f32.xlu0 %v5331_v56  ;;  %v5123_v22 = vpop.xlane.xlu0 %5122 }
 0x984   : > { %10444 = vpow2.f32 %v5273_v58  ;;  %v5224_v38 = vsub.f32 %v13075_v37, %v5168_v50  ;;  %v5209_v28 = vsub.f32 %v13068_v14, %v5123_v22 }
 0x985   : > { %v13229_v11 = vpop.eup %10434 }
 0x986   : > { %v13231_v25 = vpop.eup %10436  ;;  %v5275_v26 = vmul.f32 1.442695, %v5224_v38  ;;  %v5245_v44 = vmul.f32 1.442695, %v5209_v28  ;;  %v5334_v1 = vsel %vm404_vm0, %v13229_v11, 0.0 }
 0x987   : > { %v5126_v3 = vpop.xlane.xlu1 %5125  ;;  %5335 = vadd.xlane.f32.xlu1 %v5334_v1  ;;  %v5325_v23 = vsel %vm404_vm0, %v13231_v25, 0.0  ;;  %v5159_v21 = vpop.xlane.xlu0 %5158 }
 0x988   : > { %10446 = vpow2.f32 %v5275_v26  ;;  %v5210_v37 = vsub.f32 %v13080_v49, %v5126_v3  ;;  %5326 = vadd.xlane.f32.xlu0 %v5325_v23  ;;  %v5221_v14 = vsub.f32 %v13083_v60, %v5159_v21 }
 0x989   : > { %v13239_v8 = vpop.eup %10438  ;;  %10448 = vpow2.f32 %v5245_v44 }
 0x98a   : > { %v5247_v4 = vmul.f32 1.442695, %v5210_v37  ;;  %v5269_v40 = vmul.f32 1.442695, %v5221_v14  ;;  %v5328_v17 = vsel %vm404_vm0, %v13239_v8, 0.0 }
 0x98b   : > { %v5162_v58 = vpop.xlane.xlu1 %5161  ;;  %5329 = vadd.xlane.f32.xlu1 %v5328_v17  ;;  %v5153_v56 = vpop.xlane.xlu0 %5152 }
 0x98c   : > { %v13243_v50 = vpop.eup %10440  ;;  %10450 = vpow2.f32 %v5247_v4  ;;  %v5222_v22 = vsub.f32 %v13088_v13, %v5162_v58  ;;  %v5219_v49 = vsub.f32 %v13095_v63, %v5153_v56 }
 0x98d   : > { %10452 = vpow2.f32 %v5269_v40  ;;  %v5319_v60 = vsel %vm404_vm0, %v13243_v50, 0.0 }
 0x98e   : > { %v5271_v38 = vmul.f32 1.442695, %v5222_v22  ;;  %v5265_v28 = vmul.f32 1.442695, %v5219_v49  ;;  %5320 = vadd.xlane.f32.xlu0 %v5319_v60 }
 0x98f   : > { %v5156_v26 = vpop.xlane.xlu1 %5155  ;;  %v5189_v44 = vpop.xlane.xlu0 %5188 }
 0x990   : > { %v13249_v1 = vpop.eup %10442  ;;  %10454 = vpow2.f32 %v5271_v38  ;;  %v5231_v3 = vsub.f32 %v13105_v33, %v5189_v44  ;;  %v5220_v56 = vsub.f32 %v13102_v39, %v5156_v26 }
 0x991   : > { %v13252_v23 = vpop.eup %10444  ;;  %10456 = vpow2.f32 %v5265_v28  ;;  %v5322_v13 = vsel %vm404_vm0, %v13249_v1, 0.0 }
 0x992   : > { %v5289_v63 = vmul.f32 1.442695, %v5231_v3  ;;  %5323 = vadd.xlane.f32.xlu1 %v5322_v13  ;;  %v5355_v21 = vsel %vm404_vm0, %v13252_v23, 0.0  ;;  %v5267_v13 = vmul.f32 1.442695, %v5220_v56 }
 0x993   : > { %5356 = vadd.xlane.f32.xlu0 %v5355_v21  ;;  %v5147_v37 = vpop.xlane.xlu0 %5146  ;;  %v5192_v14 = vpop.xlane.xlu1 %5191 }
 0x994   : > { %v5217_v4 = vsub.f32 %v13108_v47, %v5147_v37  ;;  %10458 = vpow2.f32 %v5289_v63  ;;  %v5232_v39 = vsub.f32 %v13115_v35, %v5192_v14 }
 0x995   : > { %v13259_v40 = vpop.eup %10446 }
 0x996   : > { %v13261_v33 = vpop.eup %10448  ;;  %v5261_v17 = vmul.f32 1.442695, %v5217_v4  ;;  %v5358_v58 = vsel %vm404_vm0, %v13259_v40, 0.0  ;;  %v5291_v37 = vmul.f32 1.442695, %v5232_v39 }
 0x997   : > { %5359 = vadd.xlane.f32.xlu1 %v5358_v58  ;;  %v5313_v22 = vsel %vm404_vm0, %v13261_v33, 0.0  ;;  %v5183_v49 = vpop.xlane.xlu0 %5182  ;;  %v5150_v28 = vpop.xlane.xlu1 %5149 }
 0x998   : > { %5314 = vadd.xlane.f32.xlu0 %v5313_v22  ;;  %v5229_v60 = vsub.f32 %v13123_v24, %v5183_v49  ;;  %10460 = vpow2.f32 %v5261_v17  ;;  %v5218_v4 = vsub.f32 %v13120_v19, %v5150_v28 }
 0x999   : > { %v13269_v47 = vpop.eup %10450 }
 0x99a   : > { %v13271_v38 = vpop.eup %10452  ;;  %v5285_v44 = vmul.f32 1.442695, %v5229_v60  ;;  %v5316_v3 = vsel %vm404_vm0, %v13269_v47, 0.0  ;;  %v5263_v56 = vmul.f32 1.442695, %v5218_v4 }
 0x99b   : > { %5317 = vadd.xlane.f32.xlu1 %v5316_v3  ;;  %v5349_v26 = vsel %vm404_vm0, %v13271_v38, 0.0  ;;  %v5186_v14 = vpop.xlane.xlu1 %5185  ;;  %v5177_v58 = vpop.xlane.xlu0 %5176 }
 0x99c   : > { %5350 = vadd.xlane.f32.xlu0 %v5349_v26  ;;  %10462 = vpow2.f32 %v5285_v44  ;;  %v5230_v22 = vsub.f32 %v13128_v41, %v5186_v14  ;;  %v5227_v28 = vsub.f32 %v13135_v5, %v5177_v58 }
 0x99d   : > { %v13278_v63 = vpop.eup %10454  ;;  %10464 = vpow2.f32 %v5267_v13 }
 0x99e   : > { %v13280_v24 = vpop.eup %10456  ;;  %v5352_v21 = vsel %vm404_vm0, %v13278_v63, 0.0  ;;  %10466 = vpow2.f32 %v5291_v37  ;;  %v5287_v19 = vmul.f32 1.442695, %v5230_v22  ;;  %v5281_v41 = vmul.f32 1.442695, %v5227_v28 }
 0x99f   : > { %5353 = vadd.xlane.f32.xlu1 %v5352_v21  ;;  %v5343_v35 = vsel %vm404_vm0, %v13280_v24, 0.0  ;;  %10468 = vpow2.f32 %v5263_v56  ;;  %v5171_v3 = vpop.xlane.xlu0 %5170  ;;  %v5180_v39 = vpop.xlane.xlu1 %5179 }
 0x9a0   : > { %5344 = vadd.xlane.f32.xlu0 %v5343_v35  ;;  %10470 = vpow2.f32 %v5287_v19  ;;  %v5225_v26 = vsub.f32 %v13138_v6, %v5171_v3  ;;  %v5228_v5 = vsub.f32 %v13145_v0, %v5180_v39 }
 0x9a1   : > { %v13287_v17 = vpop.eup %10458  ;;  %10472 = vpow2.f32 %v5281_v41 }
 0x9a2   : > { %v5379_v49 = vsel %vm404_vm0, %v13287_v17, 0.0  ;;  %v5277_v4 = vmul.f32 1.442695, %v5225_v26  ;;  %v5283_v56 = vmul.f32 1.442695, %v5228_v5 }
 0x9a3   : > { %v5174_v58 = vpop.xlane.xlu1 %5173 }
 0x9a4   : > { %5380 = vadd.xlane.f32.xlu0 %v5379_v49  ;;  %10474 = vpow2.f32 %v5277_v4  ;;  %v5226_v6 = vsub.f32 %v13148_v53, %v5174_v58 }
 0x9a5   : > { %v13292_v60 = vpop.eup %10460  ;;  %10476 = vpow2.f32 %v5283_v56 }
 0x9a6   : > { %v5337_v44 = vsel %vm404_vm0, %v13292_v60, 0.0  ;;  %v5279_v0 = vmul.f32 1.442695, %v5226_v6 }
 0x9a8   : > { %5338 = vadd.xlane.f32.xlu0 %v5337_v44  ;;  %10478 = vpow2.f32 %v5279_v0 }
 0x9a9   : > { %v13297_v13 = vpop.eup %10462 }
 0x9aa   : > { %v5373_v21 = vsel %vm404_vm0, %v13297_v13, 0.0  ;;  %v13302_v37 = vpop.eup %10464  ;;  %v5201_v53 = vpop.xlane.xlu0 %5200 }
 0x9ab   : > { %5374 = vadd.xlane.f32.xlu1 %v5373_v21  ;;  %v5346_v35 = vsel %vm404_vm0, %v13302_v37, 0.0  ;;  %v13307_v14 = vpop.eup %10466  ;;  %v5235_v5 = vsub.f32 %v13157_v52, %v5201_v53 }
 0x9ac   : > { %v5382_v22 = vsel %vm404_vm0, %v13307_v14, 0.0  ;;  %v13312_v49 = vpop.eup %10468 }
 0x9ad   : > { %v5340_v19 = vsel %vm404_vm0, %v13312_v49, 0.0  ;;  %v13316_v28 = vpop.eup %10470  ;;  %v5297_v56 = vmul.f32 1.442695, %v5235_v5 }
 0x9ae   : > { %v5376_v44 = vsel %vm404_vm0, %v13316_v28, 0.0  ;;  %v13320_v3 = vpop.eup %10472  ;;  %v5195_v4 = vpop.xlane.xlu0 %5194 }
 0x9af   : > { %5347 = vadd.xlane.f32.xlu1 %v5346_v35  ;;  %v5367_v39 = vsel %vm404_vm0, %v13320_v3, 0.0  ;;  %v5233_v6 = vsub.f32 %v13160_v29, %v5195_v4  ;;  %10480 = vpow2.f32 %v5297_v56 }
 0x9b1   : > { %v13326_v41 = vpop.eup %10474 }
 0x9b2   : > { %v5361_v26 = vsel %vm404_vm0, %v13326_v41, 0.0  ;;  %v13330_v21 = vpop.eup %10476 }
 0x9b3   : > { %5383 = vadd.xlane.f32.xlu1 %v5382_v22  ;;  %v5370_v35 = vsel %vm404_vm0, %v13330_v21, 0.0  ;;  %v5204_v22 = vpop.xlane.xlu1 %5203 }
 0x9b5   : > { %v13335_v58 = vpop.eup %10478 }
 0x9b6   : > { %v5364_v0 = vsel %vm404_vm0, %v13335_v58, 0.0 }
 0x9b7   : > { %5341 = vadd.xlane.f32.xlu1 %v5340_v19  ;;  %v5236_v19 = vsub.f32 %v13165_v59, %v5204_v22  ;;  %v5198_v4 = vpop.xlane.xlu1 %5197 }
 0x9b9   : > { %v5299_v52 = vmul.f32 1.442695, %v5236_v19 }
 0x9bb   : > { %5377 = vadd.xlane.f32.xlu1 %v5376_v44  ;;  %v5293_v44 = vmul.f32 1.442695, %v5233_v6 }
 0x9bc   : > { %v13341_v53 = vpop.eup %10480 }
 0x9bd   : > { %10482 = vpow2.f32 %v5293_v44  ;;  %14706 = vst [vmem:[#allocation56_spill] sm:$0xff] %v13341_v53 }
 0x9be   : > { %5904 = vrot.lane.b32.xlu0 %v11677_v45, %s10875_s18  ;;  %10484 = vpow2.f32 %v5299_v52 }
 0x9bf   : > { %5368 = vadd.xlane.f32.xlu1 %v5367_v39  ;;  %v5391_v39 = vsel %vm404_vm0, %v13341_v53, 0.0 }
 0x9c3   : > { %5362 = vadd.xlane.f32.xlu1 %v5361_v26 }
 0x9c7   : > { %5371 = vadd.xlane.f32.xlu1 %v5370_v35  ;;  %v5234_v35 = vsub.f32 %v13168_v61, %v5198_v4 }
 0x9c9   : > { %v5295_v56 = vmul.f32 1.442695, %v5234_v35 }
 0x9ca   : > { %v13345_v26 = vpop.eup %10482 }
 0x9cb   : > { %5365 = vadd.xlane.f32.xlu1 %v5364_v0  ;;  %v5385_v29 = vsel %vm404_vm0, %v13345_v26, 0.0  ;;  %v13351_v59 = vpop.eup %10484  ;;  %10486 = vpow2.f32 %v5295_v56 }
 0x9cc   : > { %v5394_v5 = vsel %vm404_vm0, %v13351_v59, 0.0 }
 0x9d8   : > { %v13358_v22 = vpop.eup %10486 }
 0x9d9   : > { %v5388_v0 = vsel %vm404_vm0, %v13358_v22, 0.0 }
 0x9dc   : > { %6194 = vrot.lane.b32.xlu1 %v11573_v57, %s10876_s11 }
 0x9dd   : > { %5392 = vadd.xlane.f32.xlu0 %v5391_v39 }
 0x9e1   : > { %5386 = vadd.xlane.f32.xlu0 %v5385_v29 }
 0x9e5   : > { %5395 = vadd.xlane.f32.xlu0 %v5394_v5 }
 0x9f9   : > { %v5309_v6 = vpop.xlane.xlu0 %5308 }
 0x9fb   : > { %6265 = vrot.lane.b32.xlu0 %v11583_v55, %s10876_s11 }
 0x9fd   : > { %v5303_v19 = vpop.xlane.xlu0 %5302 }
 0x9ff   : > { %6263 = vrot.lane.b32.xlu0 %v11589_v10, %s10876_s11 }
 0xa00   : > { %5389 = vadd.xlane.f32.xlu1 %v5388_v0 }
 0xa01   : > { %v5312_v44 = vpop.xlane.xlu1 %5311 }
 0xa02   : > { %10488 = vrcp.f32 %v5312_v44 }
 0xa03   : > { %6192 = vrot.lane.b32.xlu0 %v11570_v42, %s10877_s13  ;;  %10490 = vrcp.f32 %v5303_v19 }
 0xa04   : > { %10492 = vrcp.f32 %v5309_v6 }
 0xa05   : > { %v5306_v61 = vpop.xlane.xlu1 %5305 }
 0xa06   : > { %10494 = vrcp.f32 %v5306_v61 }
 0xa07   : > { %6332 = vrot.lane.b32.xlu0 %v11599_v32, %s10876_s11 }
 0xa0b   : > { %6261 = vrot.lane.b32.xlu0 %v11583_v55, %s10877_s13 }
 0xa0c   : > { %v5333_v52 = vpop.xlane.xlu0 %5332 }
 0xa0f   : > { %6401 = vrot.lane.b32.xlu0 %v11611_v48, %s10876_s11  ;;  %v10489_v39 = vpop.eup %10488 }
 0xa10   : > { %v5336_v29 = vpop.xlane.xlu1 %5335  ;;  %v10491_v5 = vpop.eup %10490  ;;  %v5432_v6 = vmul.f32 %v10489_v39, %v13211_v30 }
 0xa11   : > { %v5327_v4 = vpop.xlane.xlu0 %5326  ;;  %v10493_v35 = vpop.eup %10492  ;;  %10496 = vrcp.f32 %v5336_v29  ;;  %6190 = vrot.lane.b32.xlu1 %v11573_v57, %s10877_s13  ;;  %v5429_v19 = vmul.f32 %v10491_v5, %v13205_v15 }
 0xa12   : > { %10498 = vrcp.f32 %v5327_v4  ;;  %v5431_v61 = vmul.f32 %v10493_v35, %v13200_v54 }
 0xa13   : > { %v10495_v56 = vpop.eup %10494  ;;  %6330 = vrot.lane.b32.xlu0 %v11596_v16, %s10877_s13  ;;  %10500 = vrcp.f32 %v5333_v52 }
 0xa14   : > { %v5330_v0 = vpop.xlane.xlu1 %5329  ;;  %v5430_v44 = vmul.f32 %v10495_v56, %v13215_v12  ;;  %v5462_v4 = vpack.c.bf16 %v5432_v6, %v5431_v61 }
 0xa15   : > { %10502 = vrcp.f32 %v5330_v0  ;;  %6334 = vrot.lane.b32.xlu1 %v11596_v16, %s10876_s11 }
 0xa16   : > { %v5461_v29 = vpack.c.bf16 %v5430_v44, %v5429_v19 }
 0xa17   : > { %6399 = vrot.lane.b32.xlu0 %v11608_v2, %s10877_s13  ;;  %v5321_v53 = vpop.xlane.xlu0 %5320 }
 0xa18   : > { %9696 = vmatprep.mubr.msk.bf16.mxu1 %vm404_vm0, %v5461_v29 }
 0xa19   : > { %9697 = vmatmul.mubr.msk.bf16.vlgmr.msra.gmra.mxu1 %vm404_vm0, %v5462_v4  ;;  %6259 = vrot.lane.b32.xlu1 %v11589_v10, %s10877_s13 }
 0xa1a   : > { %9709 = vmatpush3.bf16.msra.mxu1 %v12936_v7 }
 0xa1b   : > { %6541 = vrot.lane.b32.xlu0 %v11634_v31, %s10876_s11  ;;  %9710 = vmatprep.subr.bf16.mxu1 %v13176_v62  ;;  %v5324_v54 = vpop.xlane.xlu1 %5323 }
 0xa1c   : > { %v5357_v15 = vpop.xlane.xlu0 %5356  ;;  %10504 = vrcp.f32 %v5324_v54 }
 0xa1d   : > { %6403 = vrot.lane.b32.xlu1 %v11608_v2, %s10876_s11 }
 0xa1e   : > { %9711 = vmatpush3.bf16.msra.mxu1 %v13176_v62  ;;  %v10497_v30 = vpop.eup %10496 }
 0xa1f   : > { %6468 = vrot.lane.b32.xlu0 %v11620_v18, %s10877_s13  ;;  %9724 = vmatprep.subr.bf16.mxu1 %v13178_v36  ;;  %v10499_v12 = vpop.eup %10498  ;;  %v5440_v35 = vmul.f32 %v10497_v30, %v13229_v11 }
 0xa20   : > { %v5360_v7 = vpop.xlane.xlu1 %5359  ;;  %v10501_v52 = vpop.eup %10500  ;;  %v5437_v62 = vmul.f32 %v10499_v12, %v13231_v25 }
 0xa21   : > { %v5315_v39 = vpop.xlane.xlu0 %5314  ;;  %6328 = vrot.lane.b32.xlu1 %v11599_v32, %s10877_s13  ;;  %v5439_v0 = vmul.f32 %v10501_v52, %v13223_v51 }
 0xa22   : > { %v10503_v5 = vpop.eup %10502  ;;  %10506 = vrcp.f32 %v5315_v39 }
 0xa23   : > { %6610 = vrot.lane.b32.xlu0 %v14660_v20, %s10876_s11  ;;  %v5438_v56 = vmul.f32 %v10503_v5, %v13239_v8  ;;  %10508 = vrcp.f32 %v5321_v53  ;;  %v5466_v11 = vpack.c.bf16 %v5440_v35, %v5439_v0  ;;  %v14707_v5 = vld [vmem:[#allocation17_spill] sm:$0xff] }
 0xa24   : > { %v5318_v6 = vpop.xlane.xlu1 %5317 }
 0xa25   : > { %10510 = vrcp.f32 %v5318_v6  ;;  %v5351_v19 = vpop.xlane.xlu0 %5350  ;;  %v5465_v44 = vpack.c.bf16 %v5438_v56, %v5437_v62  ;;  %6472 = vrot.lane.b32.xlu1 %v11620_v18, %s10876_s11  ;;  %v14708_v6 = vld [vmem:[#allocation18_spill] sm:$0xff] }
 0xa26   : > { %10512 = vrcp.f32 %v5360_v7 }
 0xa27   : > { %10514 = vrcp.f32 %v5351_v19  ;;  %6537 = vrot.lane.b32.xlu0 %v11634_v31, %s10877_s13  ;;  %9712 = vmatprep.mubr.msk.bf16.mxu1 %vm404_vm0, %v5465_v44  ;;  %v14711_v19 = vld [vmem:[#allocation52_spill] sm:$0xff]  ;;  %v14712_v44 = vld [vmem:[#allocation55_spill] sm:$0xff] }
 0xa28   : > { %10516 = vrcp.f32 %v5357_v15  ;;  %v5354_v25 = vpop.xlane.xlu1 %5353  ;;  %9713 = vmatmul.mubr.msk.bf16.vlgmr.msra.gmra.mxu1 %vm404_vm0, %v5466_v11 }
 0xa29   : > { %10518 = vrcp.f32 %v5354_v25  ;;  %9725 = vmatpush3.bf16.msra.mxu1 %v13178_v36  ;;  %6397 = vrot.lane.b32.xlu1 %v11611_v48, %s10877_s13  ;;  %v10505_v51 = vpop.eup %10504  ;;  %v5345_v53 = vpop.xlane.xlu0 %5344 }
 0xa2a   : > { %9726 = vmatprep.subr.bf16.mxu1 %v13182_v9  ;;  %v5436_v29 = vmul.f32 %v10505_v51, %v13249_v1 }
 0xa2b   : > { %6679 = vrot.lane.b32.xlu0 %v14663_v34, %s10876_s11 }
 0xa2d   : > { %9727 = vmatpush3.bf16.msra.mxu1 %v13182_v9  ;;  %6470 = vrot.lane.b32.xlu1 %v14644_v43, %s10876_s11  ;;  %v5381_v62 = vpop.xlane.xlu0 %5380 }
 0xa2e   : > { %9740 = vmatprep.subr.bf16.mxu1 %v13188_v27 }
 0xa2f   : > { %6606 = vrot.lane.b32.xlu0 %v14660_v20, %s10877_s13  ;;  %v10507_v36 = vpop.eup %10506 }
 0xa30   : > { %v10509_v8 = vpop.eup %10508  ;;  %v5433_v9 = vmul.f32 %v10507_v36, %v13261_v33 }
 0xa31   : > { %6466 = vrot.lane.b32.xlu1 %v14644_v43, %s10877_s13  ;;  %v5435_v30 = vmul.f32 %v10509_v8, %v13243_v50 }
 0xa32   : > { %v10511_v61 = vpop.eup %10510 }
 0xa33   : > { %v10513_v4 = vpop.eup %10512  ;;  %6673 = vrot.lane.b32.xlu0 %v11677_v45, %s10877_s13  ;;  %v5434_v54 = vmul.f32 %v10511_v61, %v13269_v47  ;;  %v5464_v35 = vpack.c.bf16 %v5436_v29, %v5435_v30 }
 0xa34   : > { %v10515_v15 = vpop.eup %10514  ;;  %v5375_v7 = vpop.xlane.xlu1 %5374  ;;  %v5448_v1 = vmul.f32 %v10513_v4, %v13259_v40  ;;  %v14709_v40 = vld [vmem:[#allocation51_spill] sm:$0xff] }
 0xa35   : > { %v10517_v12 = vpop.eup %10516  ;;  %v5463_v52 = vpack.c.bf16 %v5434_v54, %v5433_v9  ;;  %6539 = vrot.lane.b32.xlu1 %v14707_v5, %s10876_s11  ;;  %v5445_v33 = vmul.f32 %v10515_v15, %v13271_v38  ;;  %v5339_v38 = vpop.xlane.xlu0 %5338 }
 0xa36   : > { %v10519_v39 = vpop.eup %10518  ;;  %v5447_v47 = vmul.f32 %v10517_v12, %v13252_v23  ;;  %v14710_v23 = vld [vmem:[#allocation19_spill] sm:$0xff] }
 0xa37   : > { %7181 = vrot.lane.b32.xlu0 %v11570_v42, %s10878_s25  ;;  %9704 = vmatprep.mubr.msk.bf16.mxu0 %vm404_vm0, %v5463_v52  ;;  %v5446_v50 = vmul.f32 %v10519_v39, %v13278_v63 }
 0xa38   : > { %9705 = vmatmul.mubr.msk.bf16.vlgmr.msra.gmra.mxu0 %vm404_vm0, %v5464_v35  ;;  %v5348_v56 = vpop.xlane.xlu1 %5347  ;;  %v5470_v42 = vpack.c.bf16 %v5448_v1, %v5447_v47 }
 0xa39   : > { %9717 = vmatpush3.bf16.msra.mxu0 %v14708_v6  ;;  %v5469_v0 = vpack.c.bf16 %v5446_v50, %v5445_v33  ;;  %6535 = vrot.lane.b32.xlu1 %v14707_v5, %s10877_s13  ;;  %10520 = vrcp.f32 %v5348_v56  ;;  %v5905_v33 = vpop.permute.xlu0 %5904 }
 0xa3a   : > { %9718 = vmatprep.subr.bf16.mxu0 %v14709_v40  ;;  %10522 = vrcp.f32 %v5339_v38 }
 0xa3b   : > { %7179 = vrot.lane.b32.xlu0 %v11573_v57, %s10878_s25  ;;  %9728 = vmatprep.mubr.msk.bf16.mxu1 %vm404_vm0, %v5469_v0  ;;  %10524 = vrcp.f32 %v5345_v53 }
 0xa3c   : > { %9729 = vmatmul.mubr.msk.bf16.vlgmr.msra.gmra.mxu1 %vm404_vm0, %v5470_v42  ;;  %v5384_v63 = vpop.xlane.xlu1 %5383 }
 0xa3d   : > { %9719 = vmatpush3.bf16.msra.mxu0 %v14709_v40  ;;  %9741 = vmatpush3.bf16.msra.mxu1 %v13188_v27 }
 0xa3e   : > { %6608 = vrot.lane.b32.xlu1 %v14710_v23, %s10876_s11  ;;  %9732 = vmatprep.subr.bf16.mxu0 %v14711_v19 }
 0xa3f   : > { %9742 = vmatprep.subr.bf16.mxu1 %v14712_v44  ;;  %7301 = vrot.lane.b32.xlu0 %v11599_v32, %s10878_s25 }
 0xa40   : > { %v5342_v57 = vpop.xlane.xlu1 %5341 }
 0xa41   : > { %9743 = vmatpush3.bf16.msra.mxu1 %v14712_v44  ;;  %10526 = vrcp.f32 %v5342_v57 }
 0xa42   : > { %6604 = vrot.lane.b32.xlu1 %v14710_v23, %s10877_s13  ;;  %9972 = vmatprep.subr.msk.bf16.mxu1 %vm1170_vm1, %v13195_v46  ;;  %10528 = vrcp.f32 %v5384_v63 }
 0xa43   : > { %10530 = vrcp.f32 %v5375_v7 }
 0xa44   : > { %10532 = vrcp.f32 %v5381_v62  ;;  %v5378_v27 = vpop.xlane.xlu1 %5377 }
 0xa45   : > { %10534 = vrcp.f32 %v5378_v27 }
 0xa46   : > { %6677 = vrot.lane.b32.xlu1 %v11677_v45, %s10876_s11  ;;  %v10521_v11 = vpop.eup %10520 }
 0xa47   : > { %v10523_v25 = vpop.eup %10522  ;;  %v5444_v53 = vmul.f32 %v10521_v11, %v13302_v37 }
 0xa48   : > { %v5369_v32 = vpop.xlane.xlu1 %5368  ;;  %v10525_v36 = vpop.eup %10524  ;;  %v5441_v29 = vmul.f32 %v10523_v25, %v13292_v60 }
 0xa49   : > { %v5443_v54 = vmul.f32 %v10525_v36, %v13280_v24 }
 0xa4a   : > { %6675 = vrot.lane.b32.xlu1 %v14663_v34, %s10877_s13  ;;  %s14514_s13 = scalar_lea.hbm %s14573_s8, %s9043_s4 }
 0xa4c   : > { %v5363_v51 = vpop.xlane.xlu1 %5362 }
 0xa4e   : > { %7242 = vrot.lane.b32.xlu1 %v11583_v55, %s10878_s25  ;;  %v10527_v8 = vpop.eup %10526  ;;  %v5468_v55 = vpack.c.bf16 %v5444_v53, %v5443_v54 }
 0xa4f   : > { %v10529_v61 = vpop.eup %10528  ;;  %v5442_v4 = vmul.f32 %v10527_v8, %v13312_v49 }
 0xa50   : > { %v10531_v9 = vpop.eup %10530  ;;  %v5372_v15 = vpop.xlane.xlu1 %5371  ;;  %v5456_v52 = vmul.f32 %v10529_v61, %v13307_v14  ;;  %v14713_v14 = vld [vmem:[#allocation53_spill] sm:$0xff] }
 0xa51   : > { %v10533_v30 = vpop.eup %10532  ;;  %v5467_v12 = vpack.c.bf16 %v5442_v4, %v5441_v29  ;;  %10536 = vrcp.f32 %v5372_v15  ;;  %v5453_v60 = vmul.f32 %v10531_v9, %v13297_v13  ;;  %v14715_v9 = vld [vmem:[#allocation56_spill] sm:$0xff] }
 0xa52   : > { %7240 = vrot.lane.b32.xlu1 %v11589_v10, %s10878_s25  ;;  %v10535_v7 = vpop.eup %10534  ;;  %10538 = vrcp.f32 %v5363_v51  ;;  %v5455_v49 = vmul.f32 %v10533_v30, %v13287_v17  ;;  %v14714_v17 = vld [vmem:[#allocation54_spill] sm:$0xff] }
 0xa53   : > { %9720 = vmatprep.mubr.msk.bf16.mxu0 %vm404_vm0, %v5467_v12  ;;  %v5454_v37 = vmul.f32 %v10535_v7, %v13316_v28  ;;  %10540 = vrcp.f32 %v5369_v32  ;;  %v6208_v28 = vsel %vm1170_vm1, %v13195_v46, 0 }
 0xa54   : > { %v5366_v24 = vpop.xlane.xlu1 %5365  ;;  %9721 = vmatmul.mubr.msk.bf16.vlgmr.msra.gmra.mxu0 %vm404_vm0, %v5468_v55  ;;  %v5474_v39 = vpack.c.bf16 %v5456_v52, %v5455_v49 }
 0xa55   : > { %10542 = vrcp.f32 %v5366_v24  ;;  %9733 = vmatpush3.bf16.msra.mxu0 %v14711_v19  ;;  %v5473_v10 = vpack.c.bf16 %v5454_v37, %v5453_v60 }
 0xa56   : > { %7303 = vrot.lane.b32.xlu1 %v11596_v16, %s10878_s25  ;;  %9734 = vmatprep.subr.bf16.mxu0 %v14713_v14 }
 0xa57   : > { %9744 = vmatprep.mubr.msk.bf16.mxu1 %vm404_vm0, %v5473_v10 }
 0xa58   : > { %v6195_v13 = vpop.permute.xlu1 %6194  ;;  %9745 = vmatmul.mubr.msk.bf16.vlgmr.msra.gmra.mxu1 %vm404_vm0, %v5474_v39 }
 0xa59   : > { %9735 = vmatpush3.bf16.msra.mxu0 %v14713_v14  ;;  %9757 = vmatpush3.bf16.xpose.msra.mxu1 %v6208_v28  ;;  %v6205_v1 = vsel %vm1170_vm1, %v6195_v13, 0 }
 0xa5a   : > { %7364 = vrot.lane.b32.xlu1 %v11608_v2, %s10878_s25  ;;  %9748 = vmatprep.subr.bf16.mxu0 %v14714_v17 }
 0xa5b   : > { %9973 = vmatprep.subr.msk.bf16.mxu1 %vm1170_vm1, %v6195_v13 }
 0xa5e   : > { %7362 = vrot.lane.b32.xlu1 %v11611_v48, %s10878_s25  ;;  %v10537_v16 = vpop.eup %10536 }
 0xa5f   : > { %v10539_v35 = vpop.eup %10538  ;;  %v5452_v50 = vmul.f32 %v10537_v16, %v13330_v21 }
 0xa60   : > { %v10541_v62 = vpop.eup %10540  ;;  %v5449_v2 = vmul.f32 %v10539_v35, %v13326_v41 }
 0xa61   : > { %9759 = vmatpush3.bf16.xpose.msra.mxu1 %v6205_v1  ;;  %v5451_v56 = vmul.f32 %v10541_v62, %v13320_v3 }
 0xa62   : > { %v10543_v46 = vpop.eup %10542  ;;  %7425 = vrot.lane.b32.xlu1 %v11620_v18, %s10878_s25 }
 0xa63   : > { %v5450_v47 = vmul.f32 %v10543_v46, %v13335_v58  ;;  %v5472_v0 = vpack.c.bf16 %v5452_v50, %v5451_v56 }
 0xa65   : > { %v5471_v6 = vpack.c.bf16 %v5450_v47, %v5449_v2 }
 0xa66   : > { %v5393_v48 = vpop.xlane.xlu0 %5392  ;;  %7423 = vrot.lane.b32.xlu1 %v14644_v43, %s10878_s25 }
 0xa67   : > { %9736 = vmatprep.mubr.msk.bf16.mxu0 %vm404_vm0, %v5471_v6 }
 0xa68   : > { %9737 = vmatmul.mubr.msk.bf16.vlgmr.msra.gmra.mxu0 %vm404_vm0, %v5472_v0 }
 0xa69   : > { %9749 = vmatpush3.bf16.msra.mxu0 %v14714_v17 }
 0xa6a   : > { %v5387_v21 = vpop.xlane.xlu0 %5386  ;;  %9750 = vmatprep.subr.bf16.mxu0 %v5905_v33 }
 0xa6d   : > { %9751 = vmatpush3.bf16.msra.mxu0 %v5905_v33 }
 0xa6e   : > { %v5396_v18 = vpop.xlane.xlu0 %5395 }
 0xa6f   : > { %10544 = vrcp.f32 %v5396_v18 }
 0xa70   : > { %10546 = vrcp.f32 %v5387_v21 }
 0xa71   : > { %10548 = vrcp.f32 %v5393_v48 }
 0xa72   : > { %v6266_v41 = vpop.permute.xlu0 %6265 }
 0xa73   : > { %9974 = vmatprep.subr.msk.bf16.mxu0 %vm1170_vm1, %v6266_v41 }
 0xa76   : > { %v6264_v3 = vpop.permute.xlu0 %6263 }
 0xa77   : > { %v6274_v24 = vsel %vm1170_vm1, %v6264_v3, 0 }
 0xa7a   : > { %v6193_v58 = vpop.permute.xlu0 %6192 }
 0xa7c   : > { %v10545_v11 = vpop.eup %10544 }
 0xa7d   : > { %v10547_v25 = vpop.eup %10546  ;;  %v5460_v53 = vmul.f32 %v10545_v11, %v13351_v59  ;;  %v6277_v59 = vsel %vm1170_vm1, %v6266_v41, 0 }
 0xa7e   : > { %v6333_v40 = vpop.permute.xlu0 %6332  ;;  %v10549_v36 = vpop.eup %10548  ;;  %v5457_v29 = vmul.f32 %v10547_v25, %v13345_v26 }
 0xa7f   : > { %v5459_v54 = vmul.f32 %v10549_v36, %v14715_v9  ;;  %v6343_v30 = vsel %vm1170_vm1, %v6333_v40, 0 }
 0xa81   : > { %v5476_v7 = vpack.c.bf16 %v5460_v53, %v5459_v54 }
 0xa82   : > { %v6262_v42 = vpop.permute.xlu0 %6261 }
 0xa86   : > { %v13509_v38 = vpop.permute.xlu0 %6401 }
 0xa87   : > { %v6412_v62 = vsel %vm1170_vm1, %v13509_v38, 0 }
 0xa89   : > { %v5390_v43 = vpop.xlane.xlu1 %5389 }
 0xa8a   : > { %v6331_v63 = vpop.permute.xlu0 %6330  ;;  %10550 = vrcp.f32 %v5390_v43 }
 0xa8d   : > { %v6191_v19 = vpop.permute.xlu1 %6190 }
 0xa8e   : > { %v13511_v44 = vpop.permute.xlu0 %6399  ;;  %9760 = vmatprep.mubr.msk.bf16.mxu1 %vm1170_vm1, %v6191_v19 }
 0xa8f   : > { %9761 = vmatmul.mubr.msk.bf16.vlgmr.msra.gmra.mxu1 %vm1170_vm1, %v6193_v58 }
 0xa91   : > { %v6335_v57 = vpop.permute.xlu1 %6334 }
 0xa92   : > { %v13515_v27 = vpop.permute.xlu0 %6541  ;;  %9976 = vmatprep.subr.msk.bf16.mxu1 %vm1170_vm1, %v6335_v57  ;;  %v6346_v32 = vsel %vm1170_vm1, %v6335_v57, 0 }
 0xa93   : > { %9773 = vmatpush3.bf16.xpose.msra.mxu1 %v6346_v32  ;;  %v6553_v47 = vsel %vm1170_vm1, %v13515_v27, 0 }
 0xa94   : > { %9977 = vmatprep.subr.msk.bf16.mxu1 %vm1170_vm1, %v6333_v40 }
 0xa95   : > { %v6260_v51 = vpop.permute.xlu1 %6259 }
 0xa96   : > { %v6469_v61 = vpop.permute.xlu0 %6468 }
 0xa97   : > { %v10551_v8 = vpop.eup %10550 }
 0xa98   : > { %v5458_v4 = vmul.f32 %v10551_v8, %v13358_v22 }
 0xa99   : > { %v6404_v15 = vpop.permute.xlu1 %6403 }
 0xa9a   : > { %v5475_v12 = vpack.c.bf16 %v5458_v4, %v5457_v29  ;;  %v6611_v55 = vpop.permute.xlu0 %6610  ;;  %v6415_v13 = vsel %vm1170_vm1, %v6404_v15, 0 }
 0xa9b   : > { %9775 = vmatpush3.bf16.xpose.msra.mxu1 %v6343_v30  ;;  %v6622_v16 = vsel %vm1170_vm1, %v6611_v55, 0 }
 0xa9c   : > { %9752 = vmatprep.mubr.msk.bf16.mxu0 %vm404_vm0, %v5475_v12 }
 0xa9d   : > { %v6329_v52 = vpop.permute.xlu1 %6328  ;;  %9753 = vmatmul.mubr.msk.bf16.vlgmr.msra.gmra.mxu0 %vm404_vm0, %v5476_v7 }
 0xa9e   : > { %9765 = vmatpush3.bf16.xpose.msra.mxu0 %v6277_v59  ;;  %9768 = vmatprep.mubr.msk.bf16.mxu0 %vm1170_vm1, %v6260_v51  ;;  %v6538_v60 = vpop.permute.xlu0 %6537 }
 0xa9f   : > { %9975 = vmatprep.subr.msk.bf16.mxu0 %vm1170_vm1, %v6264_v3  ;;  %9776 = vmatprep.mubr.msk.bf16.mxu1 %vm1170_vm1, %v6329_v52  ;;  %v13623_v52 = vld [vmem:[#allocation6 + $0x70] sm:$0xff] }
 0xaa1   : > { %v6473_v26 = vpop.permute.xlu1 %6472 }
 0xaa2   : > { %9777 = vmatmul.mubr.msk.bf16.vlgmr.msra.gmra.mxu1 %vm1170_vm1, %v6331_v63  ;;  %9980 = vmatprep.subr.msk.bf16.mxu1 %vm1170_vm1, %v6473_v26  ;;  %v6484_v22 = vsel %vm1170_vm1, %v6473_v26, 0  ;;  %v6680_v49 = vpop.permute.xlu0 %6679 }
 0xaa3   : > { %9789 = vmatpush3.bf16.xpose.msra.mxu1 %v6484_v22  ;;  %v6691_v41 = vsel %vm1170_vm1, %v6680_v49, 0 }
 0xaa5   : > { %v6398_v37 = vpop.permute.xlu1 %6397 }
 0xaa6   : > { %9767 = vmatpush3.bf16.xpose.msra.mxu0 %v6274_v24  ;;  %v6607_v28 = vpop.permute.xlu0 %6606 }
 0xaa7   : > { %9978 = vmatprep.subr.msk.bf16.mxu0 %vm1170_vm1, %v6404_v15 }
 0xaa9   : > { %v6471_v10 = vpop.permute.xlu1 %6470 }
 0xaaa   : > { %9981 = vmatprep.subr.msk.bf16.mxu1 %vm1170_vm1, %v6471_v10  ;;  %v6481_v14 = vsel %vm1170_vm1, %v6471_v10, 0  ;;  %v6674_v35 = vpop.permute.xlu0 %6673  ;;  %v13632_v10 = vld [vmem:[#allocation6 + $0x78] sm:$0xff] }
 0xaab   : > { %9791 = vmatpush3.bf16.xpose.msra.mxu1 %v6481_v14 }
 0xaac   : > { %9984 = vmatprep.subr.msk.bf16.mxu1 %vm1170_vm1, %v6611_v55 }
 0xaad   : > { %9769 = vmatmul.mubr.msk.bf16.vlgmr.msra.gmra.mxu0 %vm1170_vm1, %v6262_v42  ;;  %v6467_v39 = vpop.permute.xlu1 %6466 }
 0xaae   : > { %9781 = vmatpush3.bf16.xpose.msra.mxu0 %v6415_v13  ;;  %9784 = vmatprep.mubr.msk.bf16.mxu0 %vm1170_vm1, %v6398_v37  ;;  %v7182_v50 = vpop.permute.xlu0 %7181 }
 0xaaf   : > { %9979 = vmatprep.subr.msk.bf16.mxu0 %vm1170_vm1, %v13509_v38  ;;  %9792 = vmatprep.mubr.msk.bf16.mxu1 %vm1170_vm1, %v6467_v39 }
 0xab1   : > { %v6540_v17 = vpop.permute.xlu1 %6539 }
 0xab2   : > { %9793 = vmatmul.mubr.msk.bf16.vlgmr.msra.gmra.mxu1 %vm1170_vm1, %v6469_v61  ;;  %v7180_v48 = vpop.permute.xlu0 %7179  ;;  %v6550_v0 = vsel %vm1170_vm1, %v6540_v17, 0 }
 0xab3   : > { %9805 = vmatpush3.bf16.xpose.msra.mxu1 %v6622_v16  ;;  %v13641_v16 = vld [vmem:[#allocation6 + $0x68] sm:$0xff] }
 0xab5   : > { %v6536_v1 = vpop.permute.xlu1 %6535 }
 0xab6   : > { %9783 = vmatpush3.bf16.xpose.msra.mxu0 %v6412_v62 }
 0xab7   : > { %9982 = vmatprep.subr.msk.bf16.mxu0 %vm1170_vm1, %v13515_v27 }
 0xab9   : > { %v6609_v33 = vpop.permute.xlu1 %6608 }
 0xaba   : > { %9985 = vmatprep.subr.msk.bf16.mxu1 %vm1170_vm1, %v6609_v33  ;;  %v6619_v46 = vsel %vm1170_vm1, %v6609_v33, 0 }
 0xabb   : > { %9807 = vmatpush3.bf16.xpose.msra.mxu1 %v6619_v46 }
 0xabc   : > { %9820 = vmatprep.subr.bf16.mxu1 %v7182_v50 }
 0xabd   : > { %9785 = vmatmul.mubr.msk.bf16.vlgmr.msra.gmra.mxu0 %vm1170_vm1, %v13511_v44  ;;  %v6605_v2 = vpop.permute.xlu1 %6604 }
 0xabe   : > { %9797 = vmatpush3.bf16.xpose.msra.mxu0 %v6553_v47  ;;  %9800 = vmatprep.mubr.msk.bf16.mxu0 %vm1170_vm1, %v6536_v1 }
 0xabf   : > { %9983 = vmatprep.subr.msk.bf16.mxu0 %vm1170_vm1, %v6540_v17  ;;  %9808 = vmatprep.mubr.msk.bf16.mxu1 %vm1170_vm1, %v6605_v2 }
 0xac1   : > { %v6678_v56 = vpop.permute.xlu1 %6677 }
 0xac2   : > { %9809 = vmatmul.mubr.msk.bf16.vlgmr.msra.gmra.mxu1 %vm1170_vm1, %v6607_v28  ;;  %v6688_v58 = vsel %vm1170_vm1, %v6678_v56, 0 }
 0xac3   : > { %9821 = vmatpush3.bf16.msra.mxu1 %v7182_v50 }
 0xac4   : > { %9822 = vmatprep.subr.bf16.mxu1 %v7180_v48 }
 0xac5   : > { %v6676_v6 = vpop.permute.xlu1 %6675 }
 0xac6   : > { %9799 = vmatpush3.bf16.xpose.msra.mxu0 %v6550_v0 }
 0xac7   : > { %9986 = vmatprep.subr.msk.bf16.mxu0 %vm1170_vm1, %v6680_v49  ;;  %9823 = vmatpush3.bf16.msra.mxu1 %v7180_v48 }
 0xac9   : > { %v7243_v21 = vpop.permute.xlu1 %7242 }
 0xacd   : > { %9801 = vmatmul.mubr.msk.bf16.vlgmr.msra.gmra.mxu0 %vm1170_vm1, %v6538_v60  ;;  %v7241_v18 = vpop.permute.xlu1 %7240  ;;  %v13627_v60 = vld [vmem:[#allocation6 + $0x60] sm:$0xff] }
 0xace   : > { %9813 = vmatpush3.bf16.xpose.msra.mxu0 %v6691_v41  ;;  %9816 = vmatprep.mubr.msk.bf16.mxu0 %vm1170_vm1, %v6674_v35 }
 0xacf   : > { %9987 = vmatprep.subr.msk.bf16.mxu0 %vm1170_vm1, %v6678_v56 }
 0xad1   : > { %v13567_v3 = vpop.permute.xlu1 %7303 }
 0xad2   : > { %9836 = vmatprep.subr.bf16.mxu1 %v13567_v3 }
 0xad5   : > { %v13572_v40 = vpop.permute.xlu1 %7364 }
 0xad6   : > { %9815 = vmatpush3.bf16.xpose.msra.mxu0 %v6688_v58  ;;  %14716 = vst [vmem:[#allocation17_spill] sm:$0xff] %v13572_v40 }
 0xad7   : > { %9828 = vmatprep.subr.bf16.mxu0 %v7243_v21 }
 0xad9   : > { %v13575_v42 = vpop.f32.mrf.mxu1 }
 0xada   : > { %14717 = vst [vmem:[#allocation18_spill] sm:$0xff] %v13575_v42 }
 0xadb   : > { %v13577_v38 = vpop.f32.mrf.mxu1 }
 0xadd   : > { %9817 = vmatmul.mubr.msk.bf16.vlgmr.msra.gmra.mxu0 %vm1170_vm1, %v6676_v6  ;;  %v13579_v43 = vpop.f32.mrf.mxu1 }
 0xade   : > { %9829 = vmatpush3.bf16.msra.mxu0 %v7243_v21 }
 0xadf   : > { %9830 = vmatprep.subr.bf16.mxu0 %v7241_v18  ;;  %v13581_v63 = vpop.f32.mrf.mxu1 }
 0xae2   : > { %9831 = vmatpush3.bf16.msra.mxu0 %v7241_v18 }
 0xae3   : > { %9844 = vmatprep.subr.bf16.mxu0 %v13572_v40 }
 0xae8   : > { %v13583_v19 = vpop.f32.mrf.mxu1 }
 0xae9   : > { %14718 = vst [vmem:[#allocation51_spill] sm:$0xff] %v13583_v19 }
 0xaea   : > { %v13585_v44 = vpop.f32.mrf.mxu1 }
 0xaeb   : > { %14719 = vst [vmem:[#allocation19_spill] sm:$0xff] %v13585_v44 }
 0xaec   : > { %v13587_v57 = vpop.f32.mrf.mxu1 }
 0xaed   : > { %14720 = vst [vmem:[#allocation52_spill] sm:$0xff] %v13587_v57 }
 0xaee   : > { %v13589_v27 = vpop.f32.mrf.mxu1 }
 0xaef   : > { %14721 = vst [vmem:[#allocation55_spill] sm:$0xff] %v13589_v27 }
 0xaf8   : > { %v13593_v11 = vpop.f32.mrf.mxu0 }
 0xaf9   : > { %14722 = vst [vmem:[#allocation53_spill] sm:$0xff] %v13593_v11 }
 0xafa   : > { %v13597_v51 = vpop.f32.mrf.mxu0 }
 0xafb   : > { %14723 = vst [vmem:[#allocation54_spill] sm:$0xff] %v13597_v51 }
 0xafc   : > { %v13591_v32 = vpop.f32.mrf.mxu1  ;;  %v13601_v8 = vpop.f32.mrf.mxu0 }
 0xafd   : > { %14724 = vst [vmem:[#allocation56_spill] sm:$0xff] %v13601_v8 }
 0xafe   : > { %v13595_v25 = vpop.f32.mrf.mxu1  ;;  %v13605_v61 = vpop.f32.mrf.mxu0 }
 0xaff   : > { %14725 = vst [vmem:[#allocation57_spill] sm:$0xff] %v13605_v61 }
 0xb00   : > { %v13599_v36 = vpop.f32.mrf.mxu1 }
 0xb02   : > { %v13603_v53 = vpop.f32.mrf.mxu1 }
 0xb14   : > { %v13609_v4 = vpop.f32.mrf.mxu0 }
 0xb16   : > { %v13613_v54 = vpop.f32.mrf.mxu0 }
 0xb18   : > { %v13607_v29 = vpop.f32.mrf.mxu1  ;;  %v13617_v30 = vpop.f32.mrf.mxu0 }
 0xb19   : > { %14726 = vst [vmem:[#allocation58_spill] sm:$0xff] %v13607_v29 }
 0xb1a   : > { %v13611_v9 = vpop.f32.mrf.mxu1  ;;  %v13621_v7 = vpop.f32.mrf.mxu0 }
 0xb1b   : > { %14727 = vst [vmem:[#allocation59_spill] sm:$0xff] %v13611_v9 }
 0xb1c   : > { %v13615_v15 = vpop.f32.mrf.mxu1 }
 0xb1d   : > { %14728 = vst [vmem:[#allocation60_spill] sm:$0xff] %v13615_v15 }
 0xb1e   : > { %v13619_v12 = vpop.f32.mrf.mxu1 }
 0xb1f   : > { %14729 = vst [vmem:[#allocation61_spill] sm:$0xff] %v13619_v12 }
 0xb28   : > { %v13625_v26 = vpop.f32.mrf.mxu0 }
 0xb29   : > { %14730 = vst [vmem:[#allocation62_spill] sm:$0xff] %v13625_v26 }
 0xb2a   : > { %v13639_v28 = vpop.f32.mrf.mxu0 }
 0xb2b   : > { %14731 = vst [vmem:[#allocation63_spill] sm:$0xff] %v13639_v28 }
 0xb2c   : > { %v13653_v50 = vpop.f32.mrf.mxu0 }
 0xb2d   : > { %14732 = vst [vmem:[#allocation64_spill] sm:$0xff] %v13653_v50 }
 0xb2e   : > { %v13657_v47 = vpop.f32.mrf.mxu0 }
 0xb4f   : > { %v9762_v55 = vpop.f32.mrf.mxu1 }
 0xb50   : > { %v6744_v59 = vmul.f32 0.35355338, %v9762_v55 }
 0xb51   : > { %v6244_v22 = vpop.f32.mrf.mxu1 }
 0xb52   : > { %v13630_v37 = vadd.f32 %v13623_v52, %v6744_v59  ;;  %v6742_v24 = vmul.f32 0.35355338, %v6244_v22 }
 0xb53   : > { %v9763_v49 = vpop.f32.mrf.mxu1 }
 0xb54   : > { %v13635_v14 = vadd.f32 %v13627_v60, %v6742_v24  ;;  %v6745_v39 = vmul.f32 0.35355338, %v9763_v49  ;;  %v6817_v13 = vsel %vm404_vm0, %v13630_v37, -inf }
 0xb55   : > { %6818 = vmax.xlane.f32.xlu0 %v6817_v13  ;;  %v6247_v17 = vpop.f32.mrf.mxu1 }
 0xb56   : > { %v13644_v35 = vadd.f32 %v13632_v10, %v6745_v39  ;;  %v6743_v1 = vmul.f32 0.35355338, %v6247_v17  ;;  %v6811_v33 = vsel %vm404_vm0, %v13635_v14, -inf }
 0xb58   : > { %v13647_v62 = vadd.f32 %v13641_v16, %v6743_v1  ;;  %v6820_v46 = vsel %vm404_vm0, %v13644_v35, -inf }
 0xb59   : > { %6812 = vmax.xlane.f32.xlu0 %v6811_v33  ;;  %6821 = vmax.xlane.f32.xlu1 %v6820_v46 }
 0xb5a   : > { %v6814_v2 = vsel %vm404_vm0, %v13647_v62, -inf }
 0xb5d   : > { %6815 = vmax.xlane.f32.xlu1 %v6814_v2  ;;  %v13659_v56 = vpop.f32.mrf.mxu0 }
 0xb5e   : > { %14733 = vst [vmem:[#allocation65_spill] sm:$0xff] %v13659_v56 }
 0xb5f   : > { %v13661_v6 = vpop.f32.mrf.mxu0 }
 0xb60   : > { %14734 = vst [vmem:[#allocation66_spill] sm:$0xff] %v13661_v6 }
 0xb61   : > { %v13666_v55 = vpop.f32.mrf.mxu0 }
 0xb62   : > { %v9778_v48 = vpop.f32.mrf.mxu1  ;;  %14735 = vst [vmem:[#allocation67_spill] sm:$0xff] %v13666_v55 }
 0xb63   : > { %v6752_v0 = vmul.f32 0.35355338, %v9778_v48  ;;  %v13676_v17 = vpop.f32.mrf.mxu0 }
 0xb64   : > { %v6382_v21 = vpop.f32.mrf.mxu1  ;;  %14736 = vst [vmem:[#allocation68_spill] sm:$0xff] %v13676_v17 }
 0xb65   : > { %v13664_v18 = vadd.f32 %v13623_v52, %v6752_v0  ;;  %v6750_v41 = vmul.f32 0.35355338, %v6382_v21 }
 0xb66   : > { %v9779_v58 = vpop.f32.mrf.mxu1 }
 0xb67   : > { %v13669_v59 = vadd.f32 %v13627_v60, %v6750_v41  ;;  %v6753_v22 = vmul.f32 0.35355338, %v9779_v58  ;;  %v6841_v24 = vsel %vm404_vm0, %v13664_v18, -inf }
 0xb68   : > { %6842 = vmax.xlane.f32.xlu0 %v6841_v24  ;;  %v6385_v49 = vpop.f32.mrf.mxu1 }
 0xb69   : > { %v13674_v39 = vadd.f32 %v13632_v10, %v6753_v22  ;;  %v6751_v13 = vmul.f32 0.35355338, %v6385_v49  ;;  %v6835_v33 = vsel %vm404_vm0, %v13669_v59, -inf }
 0xb6b   : > { %v13679_v1 = vadd.f32 %v13641_v16, %v6751_v13  ;;  %v6844_v46 = vsel %vm404_vm0, %v13674_v39, -inf }
 0xb6c   : > { %6836 = vmax.xlane.f32.xlu0 %v6835_v33  ;;  %6845 = vmax.xlane.f32.xlu1 %v6844_v46 }
 0xb6d   : > { %v9770_v2 = vpop.f32.mrf.mxu0  ;;  %v6838_v21 = vsel %vm404_vm0, %v13679_v1, -inf }
 0xb6e   : > { %v6748_v48 = vmul.f32 0.35355338, %v9770_v2 }
 0xb6f   : > { %v6313_v0 = vpop.f32.mrf.mxu0 }
 0xb70   : > { %v13688_v41 = vadd.f32 %v13623_v52, %v6748_v48  ;;  %6839 = vmax.xlane.f32.xlu1 %v6838_v21  ;;  %v6746_v13 = vmul.f32 0.35355338, %v6313_v0 }
 0xb71   : > { %v9771_v58 = vpop.f32.mrf.mxu0 }
 0xb72   : > { %v6749_v22 = vmul.f32 0.35355338, %v9771_v58  ;;  %v6829_v24 = vsel %vm404_vm0, %v13688_v41, -inf  ;;  %v9794_v49 = vpop.f32.mrf.mxu1  ;;  %v13701_v58 = vadd.f32 %v13627_v60, %v6746_v13 }
 0xb73   : > { %6830 = vmax.xlane.f32.xlu0 %v6829_v24  ;;  %v6760_v33 = vmul.f32 0.35355338, %v9794_v49  ;;  %v6316_v56 = vpop.f32.mrf.mxu0 }
 0xb74   : > { %v13693_v46 = vadd.f32 %v13632_v10, %v6749_v22  ;;  %v6520_v2 = vpop.f32.mrf.mxu1  ;;  %v6747_v19 = vmul.f32 0.35355338, %v6316_v56 }
 0xb75   : > { %v13696_v55 = vadd.f32 %v13623_v52, %v6760_v33  ;;  %v6758_v57 = vmul.f32 0.35355338, %v6520_v2  ;;  %v6823_v2 = vsel %vm404_vm0, %v13701_v58, -inf }
 0xb76   : > { %v6832_v48 = vsel %vm404_vm0, %v13693_v46, -inf  ;;  %v9795_v21 = vpop.f32.mrf.mxu1 }
 0xb77   : > { %6833 = vmax.xlane.f32.xlu1 %v6832_v48  ;;  %v6761_v0 = vmul.f32 0.35355338, %v9795_v21  ;;  %v6865_v24 = vsel %vm404_vm0, %v13696_v55, -inf  ;;  %v13709_v6 = vadd.f32 %v13627_v60, %v6758_v57 }
 0xb78   : > { %6866 = vmax.xlane.f32.xlu0 %v6865_v24  ;;  %v6523_v22 = vpop.f32.mrf.mxu1 }
 0xb79   : > { %v13706_v49 = vadd.f32 %v13632_v10, %v6761_v0  ;;  %v6759_v33 = vmul.f32 0.35355338, %v6523_v22  ;;  %v13719_v0 = vadd.f32 %v13641_v16, %v6747_v19  ;;  %v6859_v57 = vsel %vm404_vm0, %v13709_v6, -inf }
 0xb7b   : > { %v13712_v13 = vadd.f32 %v13641_v16, %v6759_v33  ;;  %v6868_v48 = vsel %vm404_vm0, %v13706_v49, -inf  ;;  %v6826_v19 = vsel %vm404_vm0, %v13719_v0, -inf }
 0xb7c   : > { %6824 = vmax.xlane.f32.xlu0 %v6823_v2  ;;  %6869 = vmax.xlane.f32.xlu1 %v6868_v48 }
 0xb7d   : > { %v9786_v21 = vpop.f32.mrf.mxu0  ;;  %v6862_v22 = vsel %vm404_vm0, %v13712_v13, -inf }
 0xb7e   : > { %v6756_v24 = vmul.f32 0.35355338, %v9786_v21 }
 0xb7f   : > { %v6451_v56 = vpop.f32.mrf.mxu0 }
 0xb80   : > { %6860 = vmax.xlane.f32.xlu0 %v6859_v57  ;;  %6863 = vmax.xlane.f32.xlu1 %v6862_v22  ;;  %v13726_v2 = vadd.f32 %v13623_v52, %v6756_v24  ;;  %v6754_v11 = vmul.f32 0.35355338, %v6451_v56 }
 0xb81   : > { %v9787_v33 = vpop.f32.mrf.mxu0 }
 0xb82   : > { %v6757_v44 = vmul.f32 0.35355338, %v9787_v33  ;;  %v9810_v17 = vpop.f32.mrf.mxu1  ;;  %v6853_v24 = vsel %vm404_vm0, %v13726_v2, -inf  ;;  %v13744_v56 = vadd.f32 %v13627_v60, %v6754_v11 }
 0xb83   : > { %v6768_v48 = vmul.f32 0.35355338, %v9810_v17  ;;  %v6454_v27 = vpop.f32.mrf.mxu0 }
 0xb84   : > { %v13731_v21 = vadd.f32 %v13632_v10, %v6757_v44  ;;  %6827 = vmax.xlane.f32.xlu0 %v6826_v19  ;;  %v6658_v29 = vpop.f32.mrf.mxu1  ;;  %v6755_v33 = vmul.f32 0.35355338, %v6454_v27 }
 0xb85   : > { %v13736_v9 = vadd.f32 %v13623_v52, %v6768_v48  ;;  %v6766_v19 = vmul.f32 0.35355338, %v6658_v29 }
 0xb86   : > { %v6856_v57 = vsel %vm404_vm0, %v13731_v21, -inf  ;;  %v9811_v22 = vpop.f32.mrf.mxu1  ;;  %v13747_v51 = vadd.f32 %v13641_v16, %v6755_v33 }
 0xb87   : > { %6857 = vmax.xlane.f32.xlu1 %v6856_v57  ;;  %v6769_v17 = vmul.f32 0.35355338, %v9811_v22  ;;  %v6889_v48 = vsel %vm404_vm0, %v13736_v9, -inf  ;;  %v13756_v11 = vadd.f32 %v13627_v60, %v6766_v19 }
 0xb88   : > { %6854 = vmax.xlane.f32.xlu0 %v6853_v24  ;;  %v6661_v44 = vpop.f32.mrf.mxu1 }
 0xb89   : > { %v13741_v15 = vadd.f32 %v13632_v10, %v6769_v17  ;;  %v6767_v27 = vmul.f32 0.35355338, %v6661_v44  ;;  %v6847_v17 = vsel %vm404_vm0, %v13744_v56, -inf  ;;  %v6850_v44 = vsel %vm404_vm0, %v13747_v51, -inf }
 0xb8a   : > { %v6883_v19 = vsel %vm404_vm0, %v13756_v11, -inf }
 0xb8b   : > { %v6892_v57 = vsel %vm404_vm0, %v13741_v15, -inf  ;;  %v13759_v29 = vadd.f32 %v13641_v16, %v6767_v27 }
 0xb8c   : > { %6890 = vmax.xlane.f32.xlu0 %v6889_v48  ;;  %6893 = vmax.xlane.f32.xlu1 %v6892_v57 }
 0xb8d   : > { %v9802_v22 = vpop.f32.mrf.mxu0  ;;  %v6886_v27 = vsel %vm404_vm0, %v13759_v29, -inf }
 0xb8e   : > { %v6764_v33 = vmul.f32 0.35355338, %v9802_v22 }
 0xb8f   : > { %v6589_v24 = vpop.f32.mrf.mxu0 }
 0xb90   : > { %6848 = vmax.xlane.f32.xlu0 %v6847_v17  ;;  %6851 = vmax.xlane.f32.xlu1 %v6850_v44  ;;  %v13764_v57 = vadd.f32 %v13623_v52, %v6764_v33  ;;  %v6762_v12 = vmul.f32 0.35355338, %v6589_v24 }
 0xb91   : > { %v9803_v8 = vpop.f32.mrf.mxu0 }
 0xb92   : > { %v6765_v48 = vmul.f32 0.35355338, %v9803_v8  ;;  %v13774_v17 = vadd.f32 %v13627_v60, %v6762_v12  ;;  %v6877_v33 = vsel %vm404_vm0, %v13764_v57, -inf }
 0xb93   : > { %v6592_v61 = vpop.f32.mrf.mxu0 }
 0xb94   : > { %v13771_v22 = vadd.f32 %v13632_v10, %v6765_v48  ;;  %v6763_v26 = vmul.f32 0.35355338, %v6592_v61  ;;  %6884 = vmax.xlane.f32.xlu0 %v6883_v19  ;;  %6887 = vmax.xlane.f32.xlu1 %v6886_v27  ;;  %v6871_v44 = vsel %vm404_vm0, %v13774_v17, -inf }
 0xb96   : > { %v13777_v8 = vadd.f32 %v13641_v16, %v6763_v26  ;;  %v6880_v24 = vsel %vm404_vm0, %v13771_v22, -inf }
 0xb98   : > { %6878 = vmax.xlane.f32.xlu0 %v6877_v33  ;;  %6881 = vmax.xlane.f32.xlu1 %v6880_v24  ;;  %v6874_v61 = vsel %vm404_vm0, %v13777_v8, -inf }
 0xb9c   : > { %6872 = vmax.xlane.f32.xlu0 %v6871_v44  ;;  %6875 = vmax.xlane.f32.xlu1 %v6874_v61 }
 0xb9d   : > { %v9818_v12 = vpop.f32.mrf.mxu0 }
 0xb9e   : > { %v6772_v48 = vmul.f32 0.35355338, %v9818_v12 }
 0xb9f   : > { %v6727_v26 = vpop.f32.mrf.mxu0 }
 0xba0   : > { %v13788_v19 = vadd.f32 %v13623_v52, %v6772_v48  ;;  %v6770_v27 = vmul.f32 0.35355338, %v6727_v26  ;;  %v13806_v48 = vpop.permute.xlu1 %7362 }
 0xba1   : > { %v9819_v52 = vpop.f32.mrf.mxu0  ;;  %14737 = vst [vmem:[#allocation69_spill] sm:$0xff] %v13806_v48 }
 0xba2   : > { %v13791_v42 = vadd.f32 %v13627_v60, %v6770_v27  ;;  %v6901_v33 = vsel %vm404_vm0, %v13788_v19, -inf  ;;  %v6773_v60 = vmul.f32 0.35355338, %v9819_v52  ;;  %v13817_v27 = vpop.permute.xlu0 %7301 }
 0xba3   : > { %6902 = vmax.xlane.f32.xlu0 %v6901_v33  ;;  %v6730_v44 = vpop.f32.mrf.mxu0 }
 0xba4   : > { %v6895_v24 = vsel %vm404_vm0, %v13791_v42, -inf  ;;  %v13804_v61 = vadd.f32 %v13632_v10, %v6773_v60  ;;  %v6771_v12 = vmul.f32 0.35355338, %v6730_v44 }
 0xba6   : > { %v13809_v26 = vadd.f32 %v13641_v16, %v6771_v12 }
 0xba7   : > { %6896 = vmax.xlane.f32.xlu0 %v6895_v24 }
 0xbad   : > { %7484 = vrot.lane.b32.xlu1 %v14707_v5, %s10878_s25  ;;  %v6904_v5 = vsel %vm404_vm0, %v13804_v61, -inf }
 0xbb1   : > { %7547 = vrot.lane.b32.xlu1 %v14660_v20, %s10878_s25  ;;  %v13813_v20 = vpop.permute.xlu1 %7425 }
 0xbb5   : > { %v13819_v10 = vpop.permute.xlu1 %7423 }
 0xbbd   : > { %7486 = vrot.lane.b32.xlu0 %v11634_v31, %s10878_s25  ;;  %v6898_v31 = vsel %vm404_vm0, %v13809_v26, -inf }
 0xbd5   : > { %6905 = vmax.xlane.f32.xlu1 %v6904_v5 }
 0xbd9   : > { %6899 = vmax.xlane.f32.xlu1 %v6898_v31 }
 0xbde   : > { %v6819_v33 = vpop.xlane.xlu0 %6818 }
 0xbdf   : > { %v6909_v24 = vsub.f32 %v13630_v37, %v6819_v33 }
 0xbe1   : > { %v6943_v52 = vmul.f32 1.442695, %v6909_v24 }
 0xbe2   : > { %v6822_v16 = vpop.xlane.xlu1 %6821  ;;  %v6813_v60 = vpop.xlane.xlu0 %6812 }
 0xbe3   : > { %10552 = vpow2.f32 %v6943_v52  ;;  %v6910_v44 = vsub.f32 %v13644_v35, %v6822_v16  ;;  %v6907_v12 = vsub.f32 %v13635_v14, %v6813_v60 }
 0xbe5   : > { %v6945_v5 = vmul.f32 1.442695, %v6910_v44  ;;  %v6939_v28 = vmul.f32 1.442695, %v6907_v12 }
 0xbe6   : > { %v6816_v50 = vpop.xlane.xlu1 %6815 }
 0xbe7   : > { %10554 = vpow2.f32 %v6945_v5  ;;  %v6908_v31 = vsub.f32 %v13647_v62, %v6816_v50 }
 0xbe8   : > { %10556 = vpow2.f32 %v6939_v28 }
 0xbe9   : > { %v6941_v48 = vmul.f32 1.442695, %v6908_v31 }
 0xbeb   : > { %10558 = vpow2.f32 %v6941_v48 }
 0xbf0   : > { %v13825_v40 = vpop.eup %10552 }
 0xbf1   : > { %v6843_v37 = vpop.xlane.xlu0 %6842  ;;  %v7009_v33 = vsel %vm404_vm0, %v13825_v40, 0.0 }
 0xbf2   : > { %v6917_v24 = vsub.f32 %v13664_v18, %v6843_v37  ;;  %7010 = vadd.xlane.f32.xlu0 %v7009_v33 }
 0xbf4   : > { %v13830_v35 = vpop.eup %10554  ;;  %v6959_v14 = vmul.f32 1.442695, %v6917_v24 }
 0xbf5   : > { %v13832_v52 = vpop.eup %10556  ;;  %v6846_v16 = vpop.xlane.xlu1 %6845  ;;  %v7012_v28 = vsel %vm404_vm0, %v13830_v35, 0.0 }
 0xbf6   : > { %v6837_v60 = vpop.xlane.xlu0 %6836  ;;  %10560 = vpow2.f32 %v6959_v14  ;;  %v6918_v62 = vsub.f32 %v13674_v39, %v6846_v16  ;;  %7013 = vadd.xlane.f32.xlu1 %v7012_v28  ;;  %v7003_v18 = vsel %vm404_vm0, %v13832_v52, 0.0 }
 0xbf7   : > { %v6915_v50 = vsub.f32 %v13669_v59, %v6837_v60  ;;  %7004 = vadd.xlane.f32.xlu0 %v7003_v18 }
 0xbf8   : > { %v13840_v48 = vpop.eup %10558  ;;  %v6961_v44 = vmul.f32 1.442695, %v6918_v62 }
 0xbf9   : > { %v6955_v12 = vmul.f32 1.442695, %v6915_v50  ;;  %v6840_v5 = vpop.xlane.xlu1 %6839  ;;  %v7006_v31 = vsel %vm404_vm0, %v13840_v48, 0.0 }
 0xbfa   : > { %10562 = vpow2.f32 %v6961_v44  ;;  %v6916_v37 = vsub.f32 %v13679_v1, %v6840_v5  ;;  %7007 = vadd.xlane.f32.xlu1 %v7006_v31 }
 0xbfb   : > { %10564 = vpow2.f32 %v6955_v12 }
 0xbfc   : > { %v6957_v39 = vmul.f32 1.442695, %v6916_v37  ;;  %v6831_v59 = vpop.xlane.xlu0 %6830 }
 0xbfd   : > { %v6913_v33 = vsub.f32 %v13688_v41, %v6831_v59 }
 0xbfe   : > { %10566 = vpow2.f32 %v6957_v39 }
 0xbff   : > { %v6951_v24 = vmul.f32 1.442695, %v6913_v33 }
 0xc00   : > { %v6834_v14 = vpop.xlane.xlu1 %6833 }
 0xc01   : > { %10568 = vpow2.f32 %v6951_v24  ;;  %v6914_v16 = vsub.f32 %v13693_v46, %v6834_v14  ;;  %v6867_v60 = vpop.xlane.xlu0 %6866 }
 0xc02   : > { %v6925_v28 = vsub.f32 %v13696_v55, %v6867_v60 }
 0xc03   : > { %v13848_v62 = vpop.eup %10560  ;;  %v6953_v50 = vmul.f32 1.442695, %v6914_v16 }
 0xc04   : > { %v6975_v18 = vmul.f32 1.442695, %v6925_v28  ;;  %v7033_v1 = vsel %vm404_vm0, %v13848_v62, 0.0 }
 0xc05   : > { %10570 = vpow2.f32 %v6953_v50  ;;  %v6870_v44 = vpop.xlane.xlu1 %6869  ;;  %7034 = vadd.xlane.f32.xlu0 %v7033_v1  ;;  %v6825_v41 = vpop.xlane.xlu0 %6824 }
 0xc06   : > { %10572 = vpow2.f32 %v6975_v18  ;;  %v6926_v12 = vsub.f32 %v13706_v49, %v6870_v44  ;;  %v6911_v5 = vsub.f32 %v13701_v58, %v6825_v41 }
 0xc07   : > { %v13854_v46 = vpop.eup %10562 }
 0xc08   : > { %v13856_v31 = vpop.eup %10564  ;;  %v6977_v55 = vmul.f32 1.442695, %v6926_v12  ;;  %v6947_v37 = vmul.f32 1.442695, %v6911_v5  ;;  %v7036_v39 = vsel %vm404_vm0, %v13854_v46, 0.0 }
 0xc09   : > { %v6864_v59 = vpop.xlane.xlu1 %6863  ;;  %7037 = vadd.xlane.f32.xlu1 %v7036_v39  ;;  %v7027_v33 = vsel %vm404_vm0, %v13856_v31, 0.0  ;;  %v6861_v24 = vpop.xlane.xlu0 %6860 }
 0xc0a   : > { %10574 = vpow2.f32 %v6977_v55  ;;  %7028 = vadd.xlane.f32.xlu0 %v7027_v33  ;;  %v6923_v49 = vsub.f32 %v13709_v6, %v6861_v24  ;;  %v6924_v14 = vsub.f32 %v13712_v13, %v6864_v59 }
 0xc0b   : > { %v13863_v58 = vpop.eup %10566  ;;  %10576 = vpow2.f32 %v6947_v37 }
 0xc0c   : > { %v6971_v16 = vmul.f32 1.442695, %v6923_v49  ;;  %v7030_v60 = vsel %vm404_vm0, %v13863_v58, 0.0  ;;  %v6973_v6 = vmul.f32 1.442695, %v6924_v14 }
 0xc0d   : > { %7031 = vadd.xlane.f32.xlu1 %v7030_v60  ;;  %v6828_v28 = vpop.xlane.xlu0 %6827 }
 0xc0e   : > { %v13868_v50 = vpop.eup %10568  ;;  %v6912_v18 = vsub.f32 %v13719_v0, %v6828_v28  ;;  %10578 = vpow2.f32 %v6971_v16 }
 0xc0f   : > { %v7021_v1 = vsel %vm404_vm0, %v13868_v50, 0.0 }
 0xc10   : > { %v6949_v44 = vmul.f32 1.442695, %v6912_v18  ;;  %v6858_v41 = vpop.xlane.xlu1 %6857  ;;  %7022 = vadd.xlane.f32.xlu0 %v7021_v1 }
 0xc11   : > { %v6922_v13 = vsub.f32 %v13731_v21, %v6858_v41  ;;  %v6855_v12 = vpop.xlane.xlu0 %6854 }
 0xc12   : > { %v13874_v5 = vpop.eup %10570  ;;  %10580 = vpow2.f32 %v6949_v44  ;;  %v6921_v55 = vsub.f32 %v13726_v2, %v6855_v12 }
 0xc13   : > { %v13877_v37 = vpop.eup %10572  ;;  %v7024_v0 = vsel %vm404_vm0, %v13874_v5, 0.0  ;;  %10582 = vpow2.f32 %v6973_v6  ;;  %v6969_v39 = vmul.f32 1.442695, %v6922_v13 }
 0xc14   : > { %v6967_v59 = vmul.f32 1.442695, %v6921_v55  ;;  %7025 = vadd.xlane.f32.xlu1 %v7024_v0  ;;  %v7057_v33 = vsel %vm404_vm0, %v13877_v37, 0.0 }
 0xc15   : > { %v6894_v24 = vpop.xlane.xlu1 %6893  ;;  %7058 = vadd.xlane.f32.xlu0 %v7057_v33  ;;  %v6891_v21 = vpop.xlane.xlu0 %6890 }
 0xc16   : > { %10584 = vpow2.f32 %v6967_v59  ;;  %v6933_v49 = vsub.f32 %v13736_v9, %v6891_v21  ;;  %v6934_v12 = vsub.f32 %v13741_v15, %v6894_v24 }
 0xc17   : > { %v13884_v14 = vpop.eup %10574  ;;  %10586 = vpow2.f32 %v6969_v39 }
 0xc18   : > { %v13886_v2 = vpop.eup %10576  ;;  %v6991_v16 = vmul.f32 1.442695, %v6933_v49  ;;  %v7060_v60 = vsel %vm404_vm0, %v13884_v14, 0.0  ;;  %v6993_v24 = vmul.f32 1.442695, %v6934_v12 }
 0xc19   : > { %v6852_v28 = vpop.xlane.xlu1 %6851  ;;  %7061 = vadd.xlane.f32.xlu1 %v7060_v60  ;;  %v7015_v18 = vsel %vm404_vm0, %v13886_v2, 0.0  ;;  %v6849_v1 = vpop.xlane.xlu0 %6848 }
 0xc1a   : > { %v6920_v6 = vsub.f32 %v13747_v51, %v6852_v28  ;;  %7016 = vadd.xlane.f32.xlu0 %v7015_v18  ;;  %v6919_v9 = vsub.f32 %v13744_v56, %v6849_v1  ;;  %10588 = vpow2.f32 %v6991_v16 }
 0xc1b   : > { %v13894_v44 = vpop.eup %10578 }
 0xc1c   : > { %v6965_v41 = vmul.f32 1.442695, %v6920_v6  ;;  %v6963_v13 = vmul.f32 1.442695, %v6919_v9  ;;  %v7051_v0 = vsel %vm404_vm0, %v13894_v44, 0.0 }
 0xc1d   : > { %v6888_v55 = vpop.xlane.xlu1 %6887  ;;  %v6885_v39 = vpop.xlane.xlu0 %6884 }
 0xc1e   : > { %10590 = vpow2.f32 %v6965_v41  ;;  %v6932_v59 = vsub.f32 %v13759_v29, %v6888_v55  ;;  %7052 = vadd.xlane.f32.xlu0 %v7051_v0  ;;  %v6931_v51 = vsub.f32 %v13756_v11, %v6885_v39 }
 0xc1f   : > { %v13901_v33 = vpop.eup %10580  ;;  %10592 = vpow2.f32 %v6963_v13 }
 0xc20   : > { %v6989_v56 = vmul.f32 1.442695, %v6932_v59  ;;  %v6987_v21 = vmul.f32 1.442695, %v6931_v51  ;;  %v7018_v49 = vsel %vm404_vm0, %v13901_v33, 0.0  ;;  %v13905_v15 = vpop.eup %10582 }
 0xc21   : > { %v6882_v16 = vpop.xlane.xlu1 %6881  ;;  %7019 = vadd.xlane.f32.xlu1 %v7018_v49  ;;  %v6879_v60 = vpop.xlane.xlu0 %6878  ;;  %v7054_v18 = vsel %vm404_vm0, %v13905_v15, 0.0 }
 0xc22   : > { %10594 = vpow2.f32 %v6989_v56  ;;  %v6929_v29 = vsub.f32 %v13764_v57, %v6879_v60  ;;  %v6930_v11 = vsub.f32 %v13771_v22, %v6882_v16 }
 0xc23   : > { %v13908_v28 = vpop.eup %10584  ;;  %10596 = vpow2.f32 %v6987_v21 }
 0xc24   : > { %v7045_v1 = vsel %vm404_vm0, %v13908_v28, 0.0  ;;  %v13915_v6 = vpop.eup %10586  ;;  %10598 = vpow2.f32 %v6993_v24  ;;  %v6983_v9 = vmul.f32 1.442695, %v6929_v29  ;;  %v6985_v22 = vmul.f32 1.442695, %v6930_v11 }
 0xc25   : > { %v6876_v41 = vpop.xlane.xlu1 %6875  ;;  %7055 = vadd.xlane.f32.xlu1 %v7054_v18  ;;  %7046 = vadd.xlane.f32.xlu0 %v7045_v1  ;;  %v6873_v13 = vpop.xlane.xlu0 %6872  ;;  %v7048_v39 = vsel %vm404_vm0, %v13915_v6, 0.0 }
 0xc26   : > { %v6928_v57 = vsub.f32 %v13777_v8, %v6876_v41  ;;  %v6927_v12 = vsub.f32 %v13774_v17, %v6873_v13  ;;  %10600 = vpow2.f32 %v6983_v9 }
 0xc27   : > { %v13919_v55 = vpop.eup %10588 }
 0xc28   : > { %v6979_v0 = vmul.f32 1.442695, %v6927_v12  ;;  %v6981_v59 = vmul.f32 1.442695, %v6928_v57  ;;  %v7081_v51 = vsel %vm404_vm0, %v13919_v55, 0.0 }
 0xc29   : > { %7049 = vadd.xlane.f32.xlu1 %v7048_v39  ;;  %7082 = vadd.xlane.f32.xlu0 %v7081_v51 }
 0xc2a   : > { %10602 = vpow2.f32 %v6979_v0 }
 0xc2b   : > { %v13925_v56 = vpop.eup %10590  ;;  %10604 = vpow2.f32 %v6985_v22 }
 0xc2c   : > { %v13927_v8 = vpop.eup %10592  ;;  %v6903_v17 = vpop.xlane.xlu0 %6902  ;;  %v7042_v21 = vsel %vm404_vm0, %v13925_v56, 0.0  ;;  %10606 = vpow2.f32 %v6981_v59 }
 0xc2d   : > { %v6937_v49 = vsub.f32 %v13788_v19, %v6903_v17  ;;  %7043 = vadd.xlane.f32.xlu1 %v7042_v21  ;;  %v7039_v24 = vsel %vm404_vm0, %v13927_v8, 0.0  ;;  %v13968_v17 = vpop.permute.xlu1 %7484 }
 0xc2e   : > { %7040 = vadd.xlane.f32.xlu0 %v7039_v24 }
 0xc2f   : > { %v13934_v16 = vpop.eup %10594  ;;  %v6999_v60 = vmul.f32 1.442695, %v6937_v49 }
 0xc30   : > { %v13936_v29 = vpop.eup %10596  ;;  %v7078_v11 = vsel %vm404_vm0, %v13934_v16, 0.0  ;;  %v6897_v21 = vpop.xlane.xlu0 %6896 }
 0xc31   : > { %10608 = vpow2.f32 %v6999_v60  ;;  %7079 = vadd.xlane.f32.xlu1 %v7078_v11  ;;  %v7075_v18 = vsel %vm404_vm0, %v13936_v29, 0.0  ;;  %v13942_v1 = vpop.eup %10598  ;;  %v13970_v49 = vpop.permute.xlu1 %7547  ;;  %v6935_v24 = vsub.f32 %v13791_v42, %v6897_v21 }
 0xc32   : > { %7076 = vadd.xlane.f32.xlu0 %v7075_v18  ;;  %v7084_v19 = vsel %vm404_vm0, %v13942_v1, 0.0 }
 0xc33   : > { %v13946_v9 = vpop.eup %10600  ;;  %v6995_v60 = vmul.f32 1.442695, %v6935_v24 }
 0xc34   : > { %v7069_v57 = vsel %vm404_vm0, %v13946_v9, 0.0 }
 0xc35   : > { %10610 = vpow2.f32 %v6995_v60 }
 0xc36   : > { %7085 = vadd.xlane.f32.xlu0 %v7084_v19 }
 0xc37   : > { %v13948_v41 = vpop.eup %10602 }
 0xc38   : > { %v13950_v13 = vpop.eup %10604  ;;  %v7063_v12 = vsel %vm404_vm0, %v13948_v41, 0.0 }
 0xc39   : > { %v13956_v22 = vpop.eup %10606  ;;  %7064 = vadd.xlane.f32.xlu1 %v7063_v12  ;;  %v7072_v39 = vsel %vm404_vm0, %v13950_v13, 0.0 }
 0xc3a   : > { %7070 = vadd.xlane.f32.xlu0 %v7069_v57  ;;  %v7066_v0 = vsel %vm404_vm0, %v13956_v22, 0.0 }
 0xc3d   : > { %7073 = vadd.xlane.f32.xlu1 %v7072_v39 }
 0xc3e   : > { %v13962_v59 = vpop.eup %10608  ;;  %7067 = vadd.xlane.f32.xlu0 %v7066_v0 }
 0xc3f   : > { %14738 = vst [vmem:[#allocation70_spill] sm:$0xff] %v13962_v59  ;;  %v7093_v51 = vsel %vm404_vm0, %v13962_v59, 0.0 }
 0xc42   : > { %7094 = vadd.xlane.f32.xlu0 %v7093_v51 }
 0xc4e   : > { %7545 = vrot.lane.b32.xlu1 %v14710_v23, %s10878_s25  ;;  %v13975_v23 = vpop.eup %10610 }
 0xc4f   : > { %v7087_v42 = vsel %vm404_vm0, %v13975_v23, 0.0 }
 0xc5e   : > { %v6906_v11 = vpop.xlane.xlu1 %6905 }
 0xc5f   : > { %v6938_v18 = vsub.f32 %v13804_v61, %v6906_v11 }
 0xc61   : > { %v7001_v19 = vmul.f32 1.442695, %v6938_v18 }
 0xc62   : > { %v6900_v57 = vpop.xlane.xlu1 %6899 }
 0xc63   : > { %10612 = vpow2.f32 %v7001_v19  ;;  %v6936_v12 = vsub.f32 %v13809_v26, %v6900_v57  ;;  %v13987_v26 = vpop.permute.xlu0 %7486  ;;  %v14740_v19 = vld [vmem:[#allocation42_spill] sm:$0xff] }
 0xc64   : > { %v8927_v57 = vpack.c.bf16 %v14740_v19, %v14740_v19 }
 0xc65   : > { %v6997_v0 = vmul.f32 1.442695, %v6936_v12  ;;  %v14741_v12 = vld [vmem:[#allocation40_spill] sm:$0xff] }
 0xc67   : > { %10614 = vpow2.f32 %v6997_v0  ;;  %v8929_v0 = vpack.c.bf16 %v14741_v12, %v14741_v12  ;;  %v8961_v12 = vpack.c.bf16 %v13617_v30, %v13617_v30 }
 0xc70   : > { %v13977_v39 = vpop.eup %10612 }
 0xc71   : > { %v7096_v51 = vsel %vm404_vm0, %v13977_v39, 0.0 }
 0xc72   : > { %7097 = vadd.xlane.f32.xlu0 %v7096_v51  ;;  %7088 = vadd.xlane.f32.xlu1 %v7087_v42  ;;  %v14742_v42 = vld [vmem:[#allocation38_spill] sm:$0xff] }
 0xc74   : > { %v13983_v61 = vpop.eup %10614 }
 0xc75   : > { %14739 = vst [vmem:[#allocation71_spill] sm:$0xff] %v13983_v61  ;;  %v7090_v21 = vsel %vm404_vm0, %v13983_v61, 0.0 }
 0xc76   : > { %7091 = vadd.xlane.f32.xlu0 %v7090_v21  ;;  %v8926_v21 = vpack.c.bf16 %v14742_v42, %v14742_v42 }
 0xc7b   : > { %v7011_v24 = vpop.xlane.xlu0 %7010 }
 0xc7f   : > { %v7014_v60 = vpop.xlane.xlu1 %7013 }
 0xc80   : > { %v7005_v11 = vpop.xlane.xlu0 %7004  ;;  %10616 = vrcp.f32 %v7014_v60 }
 0xc81   : > { %10618 = vrcp.f32 %v7005_v11 }
 0xc82   : > { %10620 = vrcp.f32 %v7011_v24 }
 0xc83   : > { %v7008_v18 = vpop.xlane.xlu1 %7007  ;;  %7606 = vrot.lane.b32.xlu1 %v11677_v45, %s10878_s25  ;;  %v8959_v45 = vpack.c.bf16 %v13621_v7, %v13621_v7 }
 0xc84   : > { %10622 = vrcp.f32 %v7008_v18 }
 0xc87   : > { %4385 = vrot.lane.b32.xlu1 %v8927_v57, %s10879_s17  ;;  %v14743_v57 = vld [vmem:[#allocation36_spill] sm:$0xff] }
 0xc8b   : > { %4389 = vrot.lane.b32.xlu1 %v8929_v0, %s10879_s17 }
 0xc8c   : > { %7608 = vrot.lane.b32.xlu0 %v14663_v34, %s10878_s25  ;;  %v8928_v34 = vpack.c.bf16 %v14743_v57, %v14743_v57  ;;  %v14747_v57 = vld [vmem:[#allocation27_spill] sm:$0xff]  ;;  %s10786_s25 = scalar_lea.vmem %s14518_s23, 2048 }
 0xc8d   : > { %v10617_v51 = vpop.eup %10616  ;;  %p10787_p7 = scmp.ne.s32.totalorder %s14518_s23, %s10786_s25 }
 0xc8e   : > { %v7035_v24 = vpop.xlane.xlu0 %7034  ;;  %v10619_v60 = vpop.eup %10618  ;;  %v7134_v19 = vmul.f32 %v10617_v51, %v13830_v35 }
 0xc8f   : > { %v10621_v11 = vpop.eup %10620  ;;  %6087 = vrot.lane.b32.xlu1 %v8959_v45, %s10880_s24  ;;  %v7131_v7 = vmul.f32 %v10619_v60, %v13832_v52  ;;  %v8958_v52 = vpack.c.bf16 %v13613_v54, %v13613_v54  ;;  %p10788_p13 = pnand %p10787_p7, %p14796_p12 }
 0xc90   : > { %4383 = vrot.lane.b32.xlu0 %v8926_v21, %s10879_s17  ;;  %v7133_v59 = vmul.f32 %v10621_v11, %v13825_v40  ;;  %v14744_v21 = vld [vmem:[#allocation33_spill] sm:$0xff]  ;;  %v14745_v40 = vld [vmem:[#allocation31_spill] sm:$0xff] }
 0xc91   : > { %v10623_v18 = vpop.eup %10622  ;;  %v8931_v45 = vpack.c.bf16 %v14744_v21, %v14744_v21  ;;  %p10789_p0 = pneg %p10788_p13 }
 0xc92   : > { %v7038_v0 = vpop.xlane.xlu1 %7037  ;;  %v7132_v42 = vmul.f32 %v10623_v18, %v13840_v48  ;;  %v7164_v51 = vpack.c.bf16 %v7134_v19, %v7133_v59  ;;  %v8933_v48 = vpack.c.bf16 %v14745_v40, %v14745_v40  ;;  %v14750_v40 = vld [vmem:[#allocation20_spill] sm:$0xff] }
 0xc93   : > { %v7029_v61 = vpop.xlane.xlu0 %7028  ;;  %10624 = vrcp.f32 %v7038_v0  ;;  %6091 = vrot.lane.b32.xlu1 %v8961_v12, %s10880_s24 }
 0xc94   : > { %4387 = vrot.lane.b32.xlu0 %v8928_v34, %s10879_s17  ;;  %v7163_v35 = vpack.c.bf16 %v7132_v42, %v7131_v7  ;;  %10626 = vrcp.f32 %v7029_v61  ;;  %v8960_v61 = vpack.c.bf16 %v13609_v4, %v13609_v4  ;;  %v8932_v34 = vpack.c.bf16 %v14747_v57, %v14747_v57 }
 0xc95   : > { %10628 = vrcp.f32 %v7035_v24  ;;  %v14746_v24 = vld [vmem:[#allocation29_spill] sm:$0xff] }
 0xc96   : > { %v7032_v30 = vpop.xlane.xlu1 %7031  ;;  %9824 = vmatprep.mubr.msk.bf16.mxu1 %vm404_vm0, %v7163_v35  ;;  %v8930_v60 = vpack.c.bf16 %v14746_v24, %v14746_v24  ;;  %v14748_v35 = vld [vmem:[#allocation23_spill] sm:$0xff] }
 0xc97   : > { %10630 = vrcp.f32 %v7032_v30  ;;  %9825 = vmatmul.mubr.msk.bf16.vlgmr.msra.gmra.mxu1 %vm404_vm0, %v7164_v51  ;;  %4393 = vrot.lane.b32.xlu1 %v8931_v45, %s10879_s17  ;;  %v8962_v45 = vpack.c.bf16 %v13595_v25, %v13595_v25  ;;  %v8964_v25 = vpack.c.bf16 %v13591_v32, %v13591_v32 }
 0xc98   : > { %9837 = vmatpush3.bf16.msra.mxu1 %v13567_v3  ;;  %6085 = vrot.lane.b32.xlu0 %v8958_v52, %s10880_s24  ;;  %v8963_v3 = vpack.c.bf16 %v13603_v53, %v13603_v53 }
 0xc99   : > { %9838 = vmatprep.subr.bf16.mxu1 %v13817_v27  ;;  %v7023_v59 = vpop.xlane.xlu0 %7022 }
 0xc9b   : > { %4397 = vrot.lane.b32.xlu1 %v8933_v48, %s10879_s17  ;;  %v8917_v48 = vpack.c.bf16 %v14750_v40, %v14750_v40  ;;  %v14756_v40 = vld [vmem:[#allocation17_spill] sm:$0xff] }
 0xc9c   : > { %9839 = vmatpush3.bf16.msra.mxu1 %v13817_v27  ;;  %6089 = vrot.lane.b32.xlu0 %v8960_v61, %s10880_s24  ;;  %v8965_v27 = vpack.c.bf16 %v13599_v36, %v13599_v36  ;;  %v8915_v36 = vpack.c.bf16 %v14748_v35, %v14748_v35 }
 0xc9d   : > { %9852 = vmatprep.subr.bf16.mxu1 %v13813_v20  ;;  %v7026_v18 = vpop.xlane.xlu1 %7025 }
 0xc9e   : > { %v7059_v54 = vpop.xlane.xlu0 %7058  ;;  %10632 = vrcp.f32 %v7026_v18  ;;  %v8947_v18 = vpack.c.bf16 %v13581_v63, %v13581_v63 }
 0xc9f   : > { %6095 = vrot.lane.b32.xlu1 %v8963_v3, %s10880_s24  ;;  %v14751_v3 = vld [vmem:[#allocation21_spill] sm:$0xff] }
 0xca0   : > { %v10625_v11 = vpop.eup %10624  ;;  %4391 = vrot.lane.b32.xlu0 %v8930_v60, %s10879_s17  ;;  %v8914_v32 = vpack.c.bf16 %v14751_v3, %v14751_v3  ;;  %v14759_v3 = vld [vmem:[#allocation63_spill] sm:$0xff] }
 0xca1   : > { %v10627_v4 = vpop.eup %10626  ;;  %v7142_v53 = vmul.f32 %v10625_v11, %v13854_v46  ;;  %v14753_v11 = vld [vmem:[#allocation44_spill] sm:$0xff] }
 0xca2   : > { %v10629_v19 = vpop.eup %10628  ;;  %v7139_v7 = vmul.f32 %v10627_v4, %v13856_v31  ;;  %v7062_v21 = vpop.xlane.xlu1 %7061  ;;  %v14749_v31 = vld [vmem:[#allocation46_spill] sm:$0xff] }
 0xca3   : > { %v7017_v0 = vpop.xlane.xlu0 %7016  ;;  %6099 = vrot.lane.b32.xlu1 %v8965_v27, %s10880_s24  ;;  %v7141_v51 = vmul.f32 %v10629_v19, %v13848_v62 }
 0xca4   : > { %v10631_v12 = vpop.eup %10630  ;;  %4395 = vrot.lane.b32.xlu0 %v8932_v34, %s10879_s17  ;;  %10634 = vrcp.f32 %v7017_v0  ;;  %v14754_v34 = vld [vmem:[#allocation16_spill] sm:$0xff] }
 0xca5   : > { %v7140_v42 = vmul.f32 %v10631_v12, %v13863_v58  ;;  %v7168_v46 = vpack.c.bf16 %v7142_v53, %v7141_v51  ;;  %v8935_v58 = vpack.c.bf16 %v14749_v31, %v14749_v31  ;;  %10636 = vrcp.f32 %v7023_v59 }
 0xca6   : > { %v8916_v12 = vpack.c.bf16 %v14754_v34, %v14754_v34  ;;  %v8967_v51 = vpack.c.bf16 %v13657_v47, %v13657_v47 }
 0xca7   : > { %v7167_v30 = vpack.c.bf16 %v7140_v42, %v7139_v7  ;;  %4361 = vrot.lane.b32.xlu1 %v8915_v36, %s10879_s17  ;;  %v7053_v52 = vpop.xlane.xlu0 %7052 }
 0xca8   : > { %6093 = vrot.lane.b32.xlu0 %v8962_v45, %s10880_s24 }
 0xca9   : > { %9840 = vmatprep.mubr.msk.bf16.mxu1 %vm404_vm0, %v7167_v30 }
 0xcaa   : > { %v7020_v62 = vpop.xlane.xlu1 %7019  ;;  %9841 = vmatmul.mubr.msk.bf16.vlgmr.msra.gmra.mxu1 %vm404_vm0, %v7168_v46  ;;  %v14755_v46 = vld [vmem:[#allocation43_spill] sm:$0xff] }
 0xcab   : > { %10638 = vrcp.f32 %v7020_v62  ;;  %9853 = vmatpush3.bf16.msra.mxu1 %v13813_v20  ;;  %4401 = vrot.lane.b32.xlu1 %v8935_v58, %s10879_s17  ;;  %v14752_v20 = vld [vmem:[#allocation45_spill] sm:$0xff]  ;;  %v10633_v27 = vpop.eup %10632 }
 0xcac   : > { %10640 = vrcp.f32 %v7062_v21  ;;  %9854 = vmatprep.subr.bf16.mxu1 %v13819_v10  ;;  %6097 = vrot.lane.b32.xlu0 %v8964_v25, %s10880_s24  ;;  %v8937_v24 = vpack.c.bf16 %v14752_v20, %v14752_v20  ;;  %v7138_v7 = vmul.f32 %v10633_v27, %v13874_v5  ;;  %v8936_v5 = vpack.c.bf16 %v14755_v46, %v14755_v46  ;;  %v14760_v27 = vld [vmem:[#allocation34_spill] sm:$0xff] }
 0xcad   : > { %10642 = vrcp.f32 %v7053_v52 }
 0xcae   : > { %10644 = vrcp.f32 %v7059_v54  ;;  %v7056_v59 = vpop.xlane.xlu1 %7055  ;;  %v7047_v61 = vpop.xlane.xlu0 %7046  ;;  %v8934_v54 = vpack.c.bf16 %v14753_v11, %v14753_v11 }
 0xcaf   : > { %10646 = vrcp.f32 %v7056_v59  ;;  %9855 = vmatpush3.bf16.msra.mxu1 %v13819_v10  ;;  %4365 = vrot.lane.b32.xlu1 %v8917_v48, %s10879_s17 }
 0xcb0   : > { %9868 = vmatprep.subr.bf16.mxu1 %v13970_v49  ;;  %4359 = vrot.lane.b32.xlu0 %v8914_v32, %s10879_s17  ;;  %v8966_v32 = vpack.c.bf16 %v14759_v3, %v14759_v3 }
 0xcb1   : > { %v10635_v10 = vpop.eup %10634 }
 0xcb2   : > { %v7050_v60 = vpop.xlane.xlu1 %7049  ;;  %v7083_v4 = vpop.xlane.xlu0 %7082  ;;  %v7135_v35 = vmul.f32 %v10635_v10, %v13886_v2  ;;  %v8919_v10 = vpack.c.bf16 %v14760_v27, %v14760_v27 }
 0xcb3   : > { %4405 = vrot.lane.b32.xlu1 %v8937_v24, %s10879_s17  ;;  %10648 = vrcp.f32 %v7050_v60  ;;  %v10637_v57 = vpop.eup %10636 }
 0xcb4   : > { %4399 = vrot.lane.b32.xlu0 %v8934_v54, %s10879_s17  ;;  %10650 = vrcp.f32 %v7047_v61  ;;  %v7137_v21 = vmul.f32 %v10637_v57, %v13868_v50 }
 0xcb6   : > { %v7044_v19 = vpop.xlane.xlu1 %7043  ;;  %v7166_v2 = vpack.c.bf16 %v7138_v7, %v7137_v21  ;;  %v14762_v7 = vld [vmem:[#allocation41_spill] sm:$0xff] }
 0xcb7   : > { %10652 = vrcp.f32 %v7044_v19  ;;  %v7041_v53 = vpop.xlane.xlu0 %7040  ;;  %6063 = vrot.lane.b32.xlu1 %v8947_v18, %s10880_s24 }
 0xcb8   : > { %v10639_v0 = vpop.eup %10638  ;;  %10654 = vrcp.f32 %v7041_v53  ;;  %4363 = vrot.lane.b32.xlu0 %v8916_v12, %s10879_s17 }
 0xcb9   : > { %v10641_v42 = vpop.eup %10640  ;;  %v7136_v63 = vmul.f32 %v10639_v0, %v13901_v33  ;;  %v8949_v33 = vpack.c.bf16 %v13579_v43, %v13579_v43 }
 0xcba   : > { %v10643_v36 = vpop.eup %10642  ;;  %v7080_v45 = vpop.xlane.xlu1 %7079  ;;  %v7150_v62 = vmul.f32 %v10641_v42, %v13884_v14  ;;  %v8946_v14 = vpack.c.bf16 %v13577_v38, %v13577_v38  ;;  %v8939_v42 = vpack.c.bf16 %v14762_v7, %v14762_v7  ;;  %v14784_v7 = vld [vmem:[#allocation55_spill] sm:$0xff] }
 0xcbb   : > { %v10645_v30 = vpop.eup %10644  ;;  %10656 = vrcp.f32 %v7080_v45  ;;  %v7077_v31 = vpop.xlane.xlu0 %7076  ;;  %v7165_v58 = vpack.c.bf16 %v7136_v63, %v7135_v35  ;;  %6103 = vrot.lane.b32.xlu1 %v8967_v51, %s10880_s24  ;;  %v7147_v47 = vmul.f32 %v10643_v36, %v13894_v44  ;;  %v14757_v44 = vld [vmem:[#allocation69_spill] sm:$0xff]  ;;  %v14763_v36 = vld [vmem:[#allocation62_spill] sm:$0xff]  ;;  %v14764_v45 = vld [vmem:[#allocation32_spill] sm:$0xff] }
 0xcbc   : > { %v10647_v52 = vpop.eup %10646  ;;  %10658 = vrcp.f32 %v7077_v31  ;;  %4403 = vrot.lane.b32.xlu0 %v8936_v5, %s10879_s17  ;;  %v7149_v25 = vmul.f32 %v10645_v30, %v13877_v37  ;;  %v14758_v37 = vld [vmem:[#allocation64_spill] sm:$0xff]  ;;  %v8968_v51 = vpack.c.bf16 %v14763_v36, %v14763_v36  ;;  %v8921_v30 = vpack.c.bf16 %v14764_v45, %v14764_v45 }
 0xcbd   : > { %9832 = vmatprep.mubr.msk.bf16.mxu0 %vm404_vm0, %v7165_v58  ;;  %v7148_v50 = vmul.f32 %v10647_v52, %v13905_v15  ;;  %10660 = vrcp.f32 %v7083_v4  ;;  %v8969_v61 = vpack.c.bf16 %v14758_v37, %v14758_v37  ;;  %v14766_v58 = vld [vmem:[#allocation39_spill] sm:$0xff]  ;;  %v14770_v37 = vld [vmem:[#allocation61_spill] sm:$0xff]  ;;  %v14786_v36 = vld [vmem:[#allocation68_spill] sm:$0xff] }
 0xcbe   : > { %9833 = vmatmul.mubr.msk.bf16.vlgmr.msra.gmra.mxu0 %vm404_vm0, %v7166_v2  ;;  %v7172_v15 = vpack.c.bf16 %v7150_v62, %v7149_v25  ;;  %v8941_v52 = vpack.c.bf16 %v14766_v58, %v14766_v58  ;;  %v14767_v62 = vld [vmem:[#allocation37_spill] sm:$0xff]  ;;  %v14789_v58 = vld [vmem:[#allocation66_spill] sm:$0xff] }
 0xcbf   : > { %9845 = vmatpush3.bf16.msra.mxu0 %v14756_v40  ;;  %v7086_v48 = vpop.xlane.xlu0 %7085  ;;  %v7171_v59 = vpack.c.bf16 %v7148_v50, %v7147_v47  ;;  %6067 = vrot.lane.b32.xlu1 %v8949_v33, %s10880_s24  ;;  %v8938_v2 = vpack.c.bf16 %v14767_v62, %v14767_v62 }
 0xcc0   : > { %10662 = vrcp.f32 %v7086_v48  ;;  %9846 = vmatprep.subr.bf16.mxu0 %v14757_v44  ;;  %6061 = vrot.lane.b32.xlu0 %v8946_v14, %s10880_s24  ;;  %v10649_v43 = vpop.eup %10648 }
 0xcc1   : > { %9856 = vmatprep.mubr.msk.bf16.mxu1 %vm404_vm0, %v7171_v59  ;;  %v10651_v38 = vpop.eup %10650  ;;  %v7146_v54 = vmul.f32 %v10649_v43, %v13915_v6  ;;  %v14769_v59 = vld [vmem:[#allocation28_spill] sm:$0xff] }
 0xcc2   : > { %9857 = vmatmul.mubr.msk.bf16.vlgmr.msra.gmra.mxu1 %vm404_vm0, %v7172_v15  ;;  %v7065_v20 = vpop.xlane.xlu1 %7064  ;;  %v7145_v57 = vmul.f32 %v10651_v38, %v13908_v28  ;;  %v14773_v38 = vld [vmem:[#allocation54_spill] sm:$0xff] }
 0xcc3   : > { %9847 = vmatpush3.bf16.msra.mxu0 %v14757_v44  ;;  %9869 = vmatpush3.bf16.msra.mxu1 %v13970_v49  ;;  %v7071_v24 = vpop.xlane.xlu0 %7070  ;;  %v14761_v49 = vld [vmem:[#allocation18_spill] sm:$0xff]  ;;  %v8920_v44 = vpack.c.bf16 %v14769_v59, %v14769_v59  ;;  %v8950_v3 = vpack.c.bf16 %v14773_v38, %v14773_v38 }
 0xcc4   : > { %v10653_v60 = vpop.eup %10652  ;;  %6107 = vrot.lane.b32.xlu1 %v8969_v61, %s10880_s24  ;;  %9860 = vmatprep.subr.bf16.mxu0 %v13987_v26  ;;  %10664 = vrcp.f32 %v7071_v24  ;;  %v8948_v19 = vpack.c.bf16 %v14761_v49, %v14761_v49  ;;  %v7170_v0 = vpack.c.bf16 %v7146_v54, %v7145_v57  ;;  %v8971_v61 = vpack.c.bf16 %v14770_v37, %v14770_v37  ;;  %v14775_v24 = vld [vmem:[#allocation59_spill] sm:$0xff]  ;;  %v14779_v49 = vld [vmem:[#allocation58_spill] sm:$0xff]  ;;  %v14780_v57 = vld [vmem:[#allocation25_spill] sm:$0xff] }
 0xcc5   : > { %v10655_v11 = vpop.eup %10654  ;;  %6101 = vrot.lane.b32.xlu0 %v8966_v32, %s10880_s24  ;;  %v7144_v4 = vmul.f32 %v10653_v60, %v13925_v56  ;;  %10666 = vrcp.f32 %v7065_v20  ;;  %v14774_v32 = vld [vmem:[#allocation60_spill] sm:$0xff]  ;;  %v8970_v60 = vpack.c.bf16 %v14775_v24, %v14775_v24 }
 0xcc6   : > { %v7143_v18 = vmul.f32 %v10655_v11, %v13927_v8  ;;  %v7074_v34 = vpop.xlane.xlu1 %7073  ;;  %v8973_v20 = vpack.c.bf16 %v14774_v32, %v14774_v32  ;;  %v14776_v11 = vld [vmem:[#allocation26_spill] sm:$0xff] }
 0xcc7   : > { %v7068_v12 = vpop.xlane.xlu0 %7067  ;;  %10668 = vrcp.f32 %v7074_v34  ;;  %v8923_v54 = vpack.c.bf16 %v14776_v11, %v14776_v11  ;;  %v8925_v34 = vpack.c.bf16 %v14780_v57, %v14780_v57 }
 0xcc8   : > { %v10657_v53 = vpop.eup %10656  ;;  %4369 = vrot.lane.b32.xlu1 %v8919_v10, %s10879_s17  ;;  %v7169_v6 = vpack.c.bf16 %v7144_v4, %v7143_v18  ;;  %10670 = vrcp.f32 %v7068_v12  ;;  %v14777_v4 = vld [vmem:[#allocation53_spill] sm:$0xff]  ;;  %v14778_v10 = vld [vmem:[#allocation50_spill] sm:$0xff] }
 0xcc9   : > { %v10659_v56 = vpop.eup %10658  ;;  %6065 = vrot.lane.b32.xlu0 %v8948_v19, %s10880_s24  ;;  %v7156_v8 = vmul.f32 %v10657_v53, %v13934_v16  ;;  %v8952_v27 = vpack.c.bf16 %v14777_v4, %v14777_v4  ;;  %v8943_v18 = vpack.c.bf16 %v14778_v10, %v14778_v10  ;;  %v8972_v19 = vpack.c.bf16 %v14779_v49, %v14779_v49  ;;  %v14781_v12 = vld [vmem:[#allocation22_spill] sm:$0xff] }
 0xcca   : > { %9848 = vmatprep.mubr.msk.bf16.mxu0 %vm404_vm0, %v7169_v6  ;;  %v7155_v28 = vmul.f32 %v10659_v56, %v13936_v29  ;;  %v10661_v35 = vpop.eup %10660  ;;  %v7546_v63 = vpop.permute.xlu1 %7545  ;;  %v8922_v53 = vpack.c.bf16 %v14781_v12, %v14781_v12  ;;  %v14782_v6 = vld [vmem:[#allocation49_spill] sm:$0xff] }
 0xccb   : > { %9849 = vmatmul.mubr.msk.bf16.vlgmr.msra.gmra.mxu0 %vm404_vm0, %v7170_v0  ;;  %9870 = vmatprep.subr.bf16.mxu1 %v7546_v63  ;;  %v7157_v29 = vmul.f32 %v10661_v35, %v13919_v55  ;;  %v8945_v56 = vpack.c.bf16 %v14782_v6, %v14782_v6  ;;  %v14783_v0 = vld [vmem:[#allocation48_spill] sm:$0xff] }
 0xccc   : > { %9861 = vmatpush3.bf16.msra.mxu0 %v13987_v26  ;;  %4409 = vrot.lane.b32.xlu1 %v8939_v42, %s10879_s17  ;;  %v7175_v21 = vpack.c.bf16 %v7156_v8, %v7155_v28  ;;  %v14765_v26 = vld [vmem:[#allocation30_spill] sm:$0xff]  ;;  %v8942_v8 = vpack.c.bf16 %v14783_v0, %v14783_v0  ;;  %v8955_v42 = vpack.c.bf16 %v14784_v7, %v14784_v7  ;;  %v7095_v28 = vpop.xlane.xlu0 %7094  ;;  %v14785_v35 = vld [vmem:[#allocation24_spill] sm:$0xff] }
 0xccd   : > { %v10663_v16 = vpop.eup %10662  ;;  %9862 = vmatprep.subr.bf16.mxu0 %v13968_v17  ;;  %6105 = vrot.lane.b32.xlu0 %v8968_v51, %s10880_s24  ;;  %v8918_v5 = vpack.c.bf16 %v14765_v26, %v14765_v26  ;;  %v8975_v51 = vpack.c.bf16 %v14786_v36, %v14786_v36 }
 0xcce   : > { %v7158_v46 = vmul.f32 %v10663_v16, %v13942_v1  ;;  %9871 = vmatpush3.bf16.msra.mxu1 %v7546_v63  ;;  %9872 = vmatprep.mubr.msk.bf16.mxu1 %vm404_vm0, %v7175_v21  ;;  %v8924_v63 = vpack.c.bf16 %v14785_v35, %v14785_v35  ;;  %v14787_v16 = vld [vmem:[#allocation47_spill] sm:$0xff] }
 0xccf   : > { %v8944_v45 = vpack.c.bf16 %v14787_v16, %v14787_v16 }
 0xcd0   : > { %9863 = vmatpush3.bf16.msra.mxu0 %v13968_v17  ;;  %4373 = vrot.lane.b32.xlu1 %v8921_v30, %s10879_s17  ;;  %v7176_v31 = vpack.c.bf16 %v7158_v46, %v7157_v29  ;;  %v14768_v17 = vld [vmem:[#allocation57_spill] sm:$0xff]  ;;  %v14788_v46 = vld [vmem:[#allocation19_spill] sm:$0xff] }
 0xcd1   : > { %4367 = vrot.lane.b32.xlu0 %v8918_v5, %s10879_s17  ;;  %v10665_v55 = vpop.eup %10664  ;;  %v8951_v33 = vpack.c.bf16 %v14768_v17, %v14768_v17  ;;  %v8954_v26 = vpack.c.bf16 %v14788_v46, %v14788_v46 }
 0xcd2   : > { %9873 = vmatmul.mubr.msk.bf16.vlgmr.msra.gmra.mxu1 %vm404_vm0, %v7176_v31  ;;  %v10667_v1 = vpop.eup %10666  ;;  %v7153_v25 = vmul.f32 %v10665_v55, %v13946_v9  ;;  %v14771_v9 = vld [vmem:[#allocation35_spill] sm:$0xff] }
 0xcd3   : > { %v7151_v40 = vmul.f32 %v10667_v1, %v13948_v41  ;;  %v14772_v41 = vld [vmem:[#allocation56_spill] sm:$0xff] }
 0xcd4   : > { %4413 = vrot.lane.b32.xlu1 %v8941_v52, %s10879_s17  ;;  %v10669_v47 = vpop.eup %10668  ;;  %v8974_v52 = vpack.c.bf16 %v14789_v58, %v14789_v58 }
 0xcd5   : > { %v10671_v50 = vpop.eup %10670  ;;  %v7154_v14 = vmul.f32 %v10669_v47, %v13950_v13  ;;  %4407 = vrot.lane.b32.xlu0 %v8938_v2, %s10879_s17  ;;  %v8940_v13 = vpack.c.bf16 %v14771_v9, %v14771_v9 }
 0xcd6   : > { %v7152_v48 = vmul.f32 %v10671_v50, %v13956_v22  ;;  %v8953_v22 = vpack.c.bf16 %v14772_v41, %v14772_v41 }
 0xcd7   : > { %v7174_v15 = vpack.c.bf16 %v7154_v14, %v7153_v25 }
 0xcd8   : > { %6071 = vrot.lane.b32.xlu1 %v8951_v33, %s10880_s24  ;;  %v7173_v43 = vpack.c.bf16 %v7152_v48, %v7151_v40  ;;  %v14790_v48 = vld [vmem:[#allocation71_spill] sm:$0xff] }
 0xcd9   : > { %4371 = vrot.lane.b32.xlu0 %v8920_v44, %s10879_s17  ;;  %v14791_v44 = vld [vmem:[#allocation70_spill] sm:$0xff] }
 0xcda   : > { %9864 = vmatprep.mubr.msk.bf16.mxu0 %vm404_vm0, %v7173_v43 }
 0xcdb   : > { %9865 = vmatmul.mubr.msk.bf16.vlgmr.msra.gmra.mxu0 %vm404_vm0, %v7174_v15 }
 0xcdc   : > { %6111 = vrot.lane.b32.xlu1 %v8971_v61, %s10880_s24 }
 0xcdd   : > { %4411 = vrot.lane.b32.xlu0 %v8940_v13, %s10879_s17 }
 0xce0   : > { %6075 = vrot.lane.b32.xlu1 %v8953_v22, %s10880_s24 }
 0xce1   : > { %6069 = vrot.lane.b32.xlu0 %v8950_v3, %s10880_s24 }
 0xce4   : > { %6115 = vrot.lane.b32.xlu1 %v8973_v20, %s10880_s24 }
 0xce5   : > { %6109 = vrot.lane.b32.xlu0 %v8970_v60, %s10880_s24 }
 0xce8   : > { %4377 = vrot.lane.b32.xlu1 %v8923_v54, %s10879_s17 }
 0xce9   : > { %6073 = vrot.lane.b32.xlu0 %v8952_v27, %s10880_s24 }
 0xcec   : > { %4417 = vrot.lane.b32.xlu1 %v8943_v18, %s10879_s17 }
 0xced   : > { %6113 = vrot.lane.b32.xlu0 %v8972_v19, %s10880_s24 }
 0xcf0   : > { %4381 = vrot.lane.b32.xlu1 %v8925_v34, %s10879_s17 }
 0xcf1   : > { %4375 = vrot.lane.b32.xlu0 %v8922_v53, %s10879_s17 }
 0xcf4   : > { %4421 = vrot.lane.b32.xlu1 %v8945_v56, %s10879_s17 }
 0xcf5   : > { %4415 = vrot.lane.b32.xlu0 %v8942_v8, %s10879_s17 }
 0xcf8   : > { %6079 = vrot.lane.b32.xlu1 %v8955_v42, %s10880_s24 }
 0xcf9   : > { %4379 = vrot.lane.b32.xlu0 %v8924_v63, %s10879_s17 }
 0xcfb   : > { %v7098_v21 = vpop.xlane.xlu0 %7097  ;;  %v7089_v30 = vpop.xlane.xlu1 %7088 }
 0xcfc   : > { %6119 = vrot.lane.b32.xlu1 %v8975_v51, %s10880_s24  ;;  %10672 = vrcp.f32 %v7098_v21 }
 0xcfd   : > { %10674 = vrcp.f32 %v7089_v30  ;;  %4419 = vrot.lane.b32.xlu0 %v8944_v45, %s10879_s17  ;;  %v10086_v45 = vld [vmem:[#allocation9 + $0x8] sm:$0xff]   ;;  %s10882_s17 = smov [#allocation11]  }
 0xcfe   : > { %10676 = vrcp.f32 %v7095_v28  ;;  %9920 = vmatprep.subr.bf16.mxu1 %v10086_v45 }
 0xcff   : > { %v7092_v29 = vpop.xlane.xlu0 %7091  ;;  %v7607_v5 = vpop.permute.xlu1 %7606  ;;  %9922 = vmatpush3.bf16.msra.mxu1 %v10086_v45 }
 0xd00   : > { %10678 = vrcp.f32 %v7092_v29 }
 0xd01   : > { %6077 = vrot.lane.b32.xlu0 %v8954_v26, %s10880_s24  ;;  %v10087_v26 = vld [vmem:[#allocation9] sm:$0xff]  }
 0xd02   : > { %9921 = vmatprep.subr.bf16.mxu1 %v10087_v26 }
 0xd03   : > { %v7609_v31 = vpop.permute.xlu0 %7608  ;;  %v4386_v55 = vpop.permute.xlu1 %4385  ;;  %9923 = vmatpush3.bf16.msra.mxu1 %v10087_v26 }
 0xd04   : > { %9876 = vmatprep.subr.bf16.mxu0 %v7609_v31  ;;  %4469 = vst.msk [vmem:[#allocation2 + $0x34] sm:$0xf] %vm4455_vm3, %v4386_v55 }
 0xd05   : > { %9877 = vmatpush3.bf16.msra.mxu0 %v7609_v31  ;;  %6117 = vrot.lane.b32.xlu0 %v8974_v52, %s10880_s24 }
 0xd06   : > { %9878 = vmatprep.subr.bf16.mxu0 %v7607_v5 }
 0xd07   : > { %v4384_v1 = vpop.permute.xlu0 %4383  ;;  %v4390_v62 = vpop.permute.xlu1 %4389 }
 0xd08   : > { %4468 = vst.msk [vmem:[#allocation2 + $0x30] sm:$0xf] %vm4455_vm3, %v4384_v1  ;;  %4471 = vst.msk [vmem:[#allocation2 + $0x3c] sm:$0xf] %vm4455_vm3, %v4390_v62 }
 0xd09   : > { %9879 = vmatpush3.bf16.msra.mxu0 %v7607_v5  ;;  %v10673_v2 = vpop.eup %10672 }
 0xd0a   : > { %v10675_v47 = vpop.eup %10674  ;;  %v7162_v14 = vmul.f32 %v10673_v2, %v13977_v39  ;;  %9884 = vmatprep.subr.bf16.mxu0 %v10086_v45 }
 0xd0b   : > { %v4388_v50 = vpop.permute.xlu0 %4387  ;;  %v10677_v17 = vpop.eup %10676  ;;  %v7159_v40 = vmul.f32 %v10675_v47, %v13975_v23 }
 0xd0c   : > { %v6088_v33 = vpop.permute.xlu1 %6087  ;;  %4470 = vst.msk [vmem:[#allocation2 + $0x38] sm:$0xf] %vm4455_vm3, %v4388_v50  ;;  %v7161_v15 = vmul.f32 %v10677_v17, %v14791_v44 }
 0xd0d   : > { %v10679_v25 = vpop.eup %10678  ;;  %6171 = vst.msk [vmem:[#allocation2 + $0x34] sm:$0xf] %vm6157_vm4, %v6088_v33 }
 0xd0e   : > { %v7160_v59 = vmul.f32 %v10679_v25, %v14790_v48  ;;  %v7178_v9 = vpack.c.bf16 %v7162_v14, %v7161_v15 }
 0xd0f   : > { %v6086_v43 = vpop.permute.xlu0 %6085 }
 0xd10   : > { %v6092_v37 = vpop.permute.xlu1 %6091  ;;  %6170 = vst.msk [vmem:[#allocation2 + $0x30] sm:$0xf] %vm6157_vm4, %v6086_v43  ;;  %v7177_v61 = vpack.c.bf16 %v7160_v59, %v7159_v40 }
 0xd11   : > { %6173 = vst.msk [vmem:[#allocation2 + $0x3c] sm:$0xf] %vm6157_vm4, %v6092_v37 }
 0xd12   : > { %9880 = vmatprep.mubr.msk.bf16.mxu0 %vm404_vm0, %v7177_v61 }
 0xd13   : > { %9881 = vmatmul.mubr.msk.bf16.vlgmr.msra.gmra.mxu0 %vm404_vm0, %v7178_v9  ;;  %v6090_v39 = vpop.permute.xlu0 %6089 }
 0xd14   : > { %v4394_v13 = vpop.permute.xlu1 %4393  ;;  %6172 = vst.msk [vmem:[#allocation2 + $0x38] sm:$0xf] %vm6157_vm4, %v6090_v39  ;;  %9885 = vmatpush3.bf16.msra.mxu0 %v10086_v45 }
 0xd15   : > { %4473 = vst.msk [vmem:[#allocation2 + $0x44] sm:$0xf] %vm4455_vm3, %v4394_v13  ;;  %9886 = vmatprep.subr.bf16.mxu0 %v10087_v26 }
 0xd17   : > { %v4392_v23 = vpop.permute.xlu0 %4391 }
 0xd18   : > { %v4398_v41 = vpop.permute.xlu1 %4397  ;;  %4472 = vst.msk [vmem:[#allocation2 + $0x40] sm:$0xf] %vm4455_vm3, %v4392_v23  ;;  %9887 = vmatpush3.bf16.msra.mxu0 %v10087_v26 }
 0xd19   : > { %4475 = vst.msk [vmem:[#allocation2 + $0x4c] sm:$0xf] %vm4455_vm3, %v4398_v41 }
 0xd1b   : > { %v4396_v22 = vpop.permute.xlu0 %4395 }
 0xd1c   : > { %v6096_v38 = vpop.permute.xlu1 %6095  ;;  %4474 = vst.msk [vmem:[#allocation2 + $0x48] sm:$0xf] %vm4455_vm3, %v4396_v22 }
 0xd1d   : > { %6175 = vst.msk [vmem:[#allocation2 + $0x44] sm:$0xf] %vm6157_vm4, %v6096_v38 }
 0xd1f   : > { %v6094_v3 = vpop.permute.xlu0 %6093 }
 0xd20   : > { %v6100_v32 = vpop.permute.xlu1 %6099  ;;  %6174 = vst.msk [vmem:[#allocation2 + $0x40] sm:$0xf] %vm6157_vm4, %v6094_v3 }
 0xd21   : > { %6177 = vst.msk [vmem:[#allocation2 + $0x4c] sm:$0xf] %vm6157_vm4, %v6100_v32 }
 0xd23   : > { %v6098_v20 = vpop.permute.xlu0 %6097 }
 0xd24   : > { %v4362_v24 = vpop.permute.xlu1 %4361  ;;  %6176 = vst.msk [vmem:[#allocation2 + $0x48] sm:$0xf] %vm6157_vm4, %v6098_v20 }
 0xd25   : > { %4457 = vst.msk [vmem:[#allocation2 + $0x4] sm:$0xf] %vm4455_vm3, %v4362_v24 }
 0xd27   : > { %v4360_v60 = vpop.permute.xlu0 %4359 }
 0xd28   : > { %v4402_v11 = vpop.permute.xlu1 %4401  ;;  %4456 = vst.msk [vmem:[#allocation2] sm:$0xf] %vm4455_vm3, %v4360_v60 }
 0xd29   : > { %4477 = vst.msk [vmem:[#allocation2 + $0x54] sm:$0xf] %vm4455_vm3, %v4402_v11 }
 0xd2b   : > { %v4400_v54 = vpop.permute.xlu0 %4399 }
 0xd2c   : > { %v4366_v4 = vpop.permute.xlu1 %4365  ;;  %4476 = vst.msk [vmem:[#allocation2 + $0x50] sm:$0xf] %vm4455_vm3, %v4400_v54 }
 0xd2d   : > { %4459 = vst.msk [vmem:[#allocation2 + $0xc] sm:$0xf] %vm4455_vm3, %v4366_v4 }
 0xd2f   : > { %v4364_v27 = vpop.permute.xlu0 %4363 }
 0xd30   : > { %v4406_v10 = vpop.permute.xlu1 %4405  ;;  %4458 = vst.msk [vmem:[#allocation2 + $0x8] sm:$0xf] %vm4455_vm3, %v4364_v27 }
 0xd31   : > { %4479 = vst.msk [vmem:[#allocation2 + $0x5c] sm:$0xf] %vm4455_vm3, %v4406_v10 }
 0xd33   : > { %v4404_v18 = vpop.permute.xlu0 %4403 }
 0xd34   : > { %v6064_v49 = vpop.permute.xlu1 %6063  ;;  %4478 = vst.msk [vmem:[#allocation2 + $0x58] sm:$0xf] %vm4455_vm3, %v4404_v18 }
 0xd35   : > { %6159 = vst.msk [vmem:[#allocation2 + $0x4] sm:$0xf] %vm6157_vm4, %v6064_v49 }
 0xd37   : > { %v6062_v19 = vpop.permute.xlu0 %6061 }
 0xd38   : > { %v6104_v57 = vpop.permute.xlu1 %6103  ;;  %6158 = vst.msk [vmem:[#allocation2] sm:$0xf] %vm6157_vm4, %v6062_v19 }
 0xd39   : > { %6179 = vst.msk [vmem:[#allocation2 + $0x54] sm:$0xf] %vm6157_vm4, %v6104_v57 }
 0xd3b   : > { %v6102_v34 = vpop.permute.xlu0 %6101 }
 0xd3c   : > { %v6068_v12 = vpop.permute.xlu1 %6067  ;;  %6178 = vst.msk [vmem:[#allocation2 + $0x50] sm:$0xf] %vm6157_vm4, %v6102_v34 }
 0xd3d   : > { %6161 = vst.msk [vmem:[#allocation2 + $0xc] sm:$0xf] %vm6157_vm4, %v6068_v12 }
 0xd3f   : > { %v6066_v53 = vpop.permute.xlu0 %6065 }
 0xd40   : > { %v6108_v6 = vpop.permute.xlu1 %6107  ;;  %6160 = vst.msk [vmem:[#allocation2 + $0x8] sm:$0xf] %vm6157_vm4, %v6066_v53 }
 0xd41   : > { %6181 = vst.msk [vmem:[#allocation2 + $0x5c] sm:$0xf] %vm6157_vm4, %v6108_v6 }
 0xd43   : > { %v6106_v56 = vpop.permute.xlu0 %6105 }
 0xd44   : > { %v4370_v0 = vpop.permute.xlu1 %4369  ;;  %6180 = vst.msk [vmem:[#allocation2 + $0x58] sm:$0xf] %vm6157_vm4, %v6106_v56 }
 0xd45   : > { %4461 = vst.msk [vmem:[#allocation2 + $0x14] sm:$0xf] %vm4455_vm3, %v4370_v0 }
 0xd47   : > { %v4368_v8 = vpop.permute.xlu0 %4367 }
 0xd48   : > { %v4410_v7 = vpop.permute.xlu1 %4409  ;;  %4460 = vst.msk [vmem:[#allocation2 + $0x10] sm:$0xf] %vm4455_vm3, %v4368_v8 }
 0xd49   : > { %4481 = vst.msk [vmem:[#allocation2 + $0x64] sm:$0xf] %vm4455_vm3, %v4410_v7 }
 0xd4b   : > { %v4408_v42 = vpop.permute.xlu0 %4407 }
 0xd4c   : > { %v4374_v28 = vpop.permute.xlu1 %4373  ;;  %4480 = vst.msk [vmem:[#allocation2 + $0x60] sm:$0xf] %vm4455_vm3, %v4408_v42 }
 0xd4d   : > { %4463 = vst.msk [vmem:[#allocation2 + $0x1c] sm:$0xf] %vm4455_vm3, %v4374_v28 }
 0xd4f   : > { %v4372_v35 = vpop.permute.xlu0 %4371 }
 0xd50   : > { %v4414_v63 = vpop.permute.xlu1 %4413  ;;  %4462 = vst.msk [vmem:[#allocation2 + $0x18] sm:$0xf] %vm4455_vm3, %v4372_v35 }
 0xd51   : > { %4483 = vst.msk [vmem:[#allocation2 + $0x6c] sm:$0xf] %vm4455_vm3, %v4414_v63  ;;  %v14792_v63 = vld [vmem:[#allocation51_spill] sm:$0xff] }
 0xd53   : > { %v4412_v36 = vpop.permute.xlu0 %4411 }
 0xd54   : > { %v6072_v51 = vpop.permute.xlu1 %6071  ;;  %4482 = vst.msk [vmem:[#allocation2 + $0x68] sm:$0xf] %vm4455_vm3, %v4412_v36  ;;  %v8956_v36 = vpack.c.bf16 %v14792_v63, %v14792_v63 }
 0xd55   : > { %6163 = vst.msk [vmem:[#allocation2 + $0x14] sm:$0xf] %vm6157_vm4, %v6072_v51 }
 0xd57   : > { %v9826_v21 = vpop.f32.mrf.mxu1  ;;  %v6070_v16 = vpop.permute.xlu0 %6069 }
 0xd58   : > { %v6112_v30 = vpop.permute.xlu1 %6111  ;;  %v8980_v29 = vpack.c.bf16 %v9826_v21, %v9826_v21  ;;  %6162 = vst.msk [vmem:[#allocation2 + $0x10] sm:$0xf] %vm6157_vm4, %v6070_v16  ;;  %v14793_v16 = vld [vmem:[#allocation52_spill] sm:$0xff] }
 0xd59   : > { %6183 = vst.msk [vmem:[#allocation2 + $0x64] sm:$0xf] %vm6157_vm4, %v6112_v30  ;;  %v7225_v46 = vpop.f32.mrf.mxu1  ;;  %v8957_v45 = vpack.c.bf16 %v14793_v16, %v14793_v16 }
 0xd5a   : > { %7767 = vrot.lane.b32.xlu0 %v8980_v29, %s10881_s10  ;;  %v8978_v58 = vpack.c.bf16 %v7225_v46, %v7225_v46 }
 0xd5b   : > { %v9827_v5 = vpop.f32.mrf.mxu1  ;;  %v6110_v31 = vpop.permute.xlu0 %6109 }
 0xd5c   : > { %v6076_v52 = vpop.permute.xlu1 %6075  ;;  %v8981_v55 = vpack.c.bf16 %v9827_v5, %v9827_v5  ;;  %6182 = vst.msk [vmem:[#allocation2 + $0x60] sm:$0xf] %vm6157_vm4, %v6110_v31 }
 0xd5d   : > { %6165 = vst.msk [vmem:[#allocation2 + $0x1c] sm:$0xf] %vm6157_vm4, %v6076_v52  ;;  %v7228_v1 = vpop.f32.mrf.mxu1 }
 0xd5e   : > { %7763 = vrot.lane.b32.xlu0 %v8978_v58, %s10881_s10  ;;  %7769 = vrot.lane.b32.xlu1 %v8981_v55, %s10881_s10  ;;  %v8979_v2 = vpack.c.bf16 %v7228_v1, %v7228_v1  ;;  %v14794_v1 = vld [vmem:[#allocation65_spill] sm:$0xff] }
 0xd5f   : > { %v6074_v62 = vpop.permute.xlu0 %6073 }
 0xd60   : > { %v6116_v47 = vpop.permute.xlu1 %6115  ;;  %6164 = vst.msk [vmem:[#allocation2 + $0x18] sm:$0xf] %vm6157_vm4, %v6074_v62  ;;  %v8976_v62 = vpack.c.bf16 %v14794_v1, %v14794_v1 }
 0xd61   : > { %6185 = vst.msk [vmem:[#allocation2 + $0x6c] sm:$0xf] %vm6157_vm4, %v6116_v47  ;;  %v14795_v47 = vld [vmem:[#allocation67_spill] sm:$0xff] }
 0xd62   : > { %7765 = vrot.lane.b32.xlu1 %v8979_v2, %s10881_s10 }
 0xd63   : > { %v6114_v50 = vpop.permute.xlu0 %6113 }
 0xd64   : > { %v4378_v17 = vpop.permute.xlu1 %4377  ;;  %6184 = vst.msk [vmem:[#allocation2 + $0x68] sm:$0xf] %vm6157_vm4, %v6114_v50  ;;  %v8977_v50 = vpack.c.bf16 %v14795_v47, %v14795_v47 }
 0xd65   : > { %4465 = vst.msk [vmem:[#allocation2 + $0x24] sm:$0xf] %vm4455_vm3, %v4378_v17 }
 0xd67   : > { %v4376_v33 = vpop.permute.xlu0 %4375 }
 0xd68   : > { %v4418_v25 = vpop.permute.xlu1 %4417  ;;  %4464 = vst.msk [vmem:[#allocation2 + $0x20] sm:$0xf] %vm4455_vm3, %v4376_v33 }
 0xd69   : > { %4485 = vst.msk [vmem:[#allocation2 + $0x74] sm:$0xf] %vm4455_vm3, %v4418_v25 }
 0xd6a   : > { %v14296_v15 = vpop.f32.mrf.mxu1 }
 0xd6b   : > { %v4416_v14 = vpop.permute.xlu0 %4415  ;;  %v8988_v33 = vpack.c.bf16 %v14296_v15, %v14296_v15 }
 0xd6c   : > { %v4382_v40 = vpop.permute.xlu1 %4381  ;;  %4484 = vst.msk [vmem:[#allocation2 + $0x70] sm:$0xf] %vm4455_vm3, %v4416_v14  ;;  %v14300_v61 = vpop.f32.mrf.mxu1 }
 0xd6d   : > { %4467 = vst.msk [vmem:[#allocation2 + $0x2c] sm:$0xf] %vm4455_vm3, %v4382_v40  ;;  %v8986_v17 = vpack.c.bf16 %v14300_v61, %v14300_v61 }
 0xd6e   : > { %v14304_v13 = vpop.f32.mrf.mxu1 }
 0xd6f   : > { %v4380_v48 = vpop.permute.xlu0 %4379  ;;  %v8989_v14 = vpack.c.bf16 %v14304_v13, %v14304_v13 }
 0xd70   : > { %v4422_v59 = vpop.permute.xlu1 %4421  ;;  %4466 = vst.msk [vmem:[#allocation2 + $0x28] sm:$0xf] %vm4455_vm3, %v4380_v48  ;;  %v14307_v41 = vpop.f32.mrf.mxu1 }
 0xd71   : > { %4487 = vst.msk [vmem:[#allocation2 + $0x7c] sm:$0xf] %vm4455_vm3, %v4422_v59  ;;  %v8987_v25 = vpack.c.bf16 %v14307_v41, %v14307_v41 }
 0xd73   : > { %v4420_v44 = vpop.permute.xlu0 %4419 }
 0xd74   : > { %v6080_v43 = vpop.permute.xlu1 %6079  ;;  %4486 = vst.msk [vmem:[#allocation2 + $0x78] sm:$0xf] %vm4455_vm3, %v4420_v44 }
 0xd75   : > { %6167 = vst.msk [vmem:[#allocation2 + $0x24] sm:$0xf] %vm6157_vm4, %v6080_v43 }
 0xd77   : > { %v6078_v37 = vpop.permute.xlu0 %6077 }
 0xd78   : > { %v6120_v9 = vpop.permute.xlu1 %6119  ;;  %6166 = vst.msk [vmem:[#allocation2 + $0x20] sm:$0xf] %vm6157_vm4, %v6078_v37 }
 0xd79   : > { %6187 = vst.msk [vmem:[#allocation2 + $0x74] sm:$0xf] %vm6157_vm4, %v6120_v9 }
 0xd7b   : > { %v6118_v39 = vpop.permute.xlu0 %6117 }
 0xd7c   : > { %6186 = vst.msk [vmem:[#allocation2 + $0x70] sm:$0xf] %vm6157_vm4, %v6118_v39 }
 0xd7e   : > { %v9834_v23 = vpop.f32.mrf.mxu0 }
 0xd7f   : > { %v8984_v60 = vpack.c.bf16 %v9834_v23, %v9834_v23 }
 0xd80   : > { %v7286_v22 = vpop.f32.mrf.mxu0 }
 0xd81   : > { %v8982_v49 = vpack.c.bf16 %v7286_v22, %v7286_v22 }
 0xd82   : > { %v9858_v38 = vpop.f32.mrf.mxu1  ;;  %v9835_v20 = vpop.f32.mrf.mxu0 }
 0xd83   : > { %v8996_v3 = vpack.c.bf16 %v9858_v38, %v9858_v38  ;;  %v8985_v4 = vpack.c.bf16 %v9835_v20, %v9835_v20 }
 0xd84   : > { %v7469_v32 = vpop.f32.mrf.mxu1  ;;  %v7289_v54 = vpop.f32.mrf.mxu0 }
 0xd85   : > { %7799 = vrot.lane.b32.xlu0 %v8996_v3, %s10881_s10  ;;  %v8994_v27 = vpack.c.bf16 %v7469_v32, %v7469_v32  ;;  %v8983_v12 = vpack.c.bf16 %v7289_v54, %v7289_v54 }
 0xd86   : > { %v9859_v24 = vpop.f32.mrf.mxu1 }
 0xd87   : > { %v8997_v11 = vpack.c.bf16 %v9859_v24, %v9859_v24 }
 0xd88   : > { %v7472_v10 = vpop.f32.mrf.mxu1 }
 0xd89   : > { %7775 = vrot.lane.b32.xlu0 %v8984_v60, %s10881_s10  ;;  %7801 = vrot.lane.b32.xlu1 %v8997_v11, %s10881_s10  ;;  %v8995_v19 = vpack.c.bf16 %v7472_v10, %v7472_v10 }
 0xd8b   : > { %v9850_v18 = vpop.f32.mrf.mxu0 }
 0xd8c   : > { %v8992_v53 = vpack.c.bf16 %v9850_v18, %v9850_v18 }
 0xd8d   : > { %7795 = vrot.lane.b32.xlu0 %v8994_v27, %s10881_s10  ;;  %7777 = vrot.lane.b32.xlu1 %v8985_v4, %s10881_s10  ;;  %v7408_v57 = vpop.f32.mrf.mxu0 }
 0xd8e   : > { %v8990_v42 = vpack.c.bf16 %v7408_v57, %v7408_v57 }
 0xd8f   : > { %v9851_v6 = vpop.f32.mrf.mxu0 }
 0xd90   : > { %v8993_v0 = vpack.c.bf16 %v9851_v6, %v9851_v6 }
 0xd91   : > { %7771 = vrot.lane.b32.xlu0 %v8982_v49, %s10881_s10  ;;  %7797 = vrot.lane.b32.xlu1 %v8995_v19, %s10881_s10  ;;  %v7411_v35 = vpop.f32.mrf.mxu0 }
 0xd92   : > { %v9874_v34 = vpop.f32.mrf.mxu1  ;;  %v8991_v51 = vpack.c.bf16 %v7411_v35, %v7411_v35 }
 0xd93   : > { %v9004_v8 = vpack.c.bf16 %v9874_v34, %v9874_v34 }
 0xd94   : > { %v7591_v56 = vpop.f32.mrf.mxu1 }
 0xd95   : > { %7773 = vrot.lane.b32.xlu1 %v8983_v12, %s10881_s10  ;;  %7791 = vrot.lane.b32.xlu0 %v8992_v53, %s10881_s10  ;;  %v9002_v30 = vpack.c.bf16 %v7591_v56, %v7591_v56 }
 0xd96   : > { %v9875_v7 = vpop.f32.mrf.mxu1 }
 0xd97   : > { %v9005_v28 = vpack.c.bf16 %v9875_v7, %v9875_v7 }
 0xd98   : > { %v7594_v29 = vpop.f32.mrf.mxu1 }
 0xd99   : > { %7793 = vrot.lane.b32.xlu1 %v8993_v0, %s10881_s10  ;;  %7815 = vrot.lane.b32.xlu0 %v9004_v8, %s10881_s10  ;;  %v9003_v26 = vpack.c.bf16 %v7594_v29, %v7594_v29 }
 0xd9b   : > { %v9866_v21 = vpop.f32.mrf.mxu0 }
 0xd9c   : > { %v9000_v5 = vpack.c.bf16 %v9866_v21, %v9866_v21 }
 0xd9d   : > { %7787 = vrot.lane.b32.xlu0 %v8990_v42, %s10881_s10  ;;  %7817 = vrot.lane.b32.xlu1 %v9005_v28, %s10881_s10  ;;  %v7530_v46 = vpop.f32.mrf.mxu0 }
 0xd9e   : > { %v8998_v58 = vpack.c.bf16 %v7530_v46, %v7530_v46 }
 0xd9f   : > { %v9867_v31 = vpop.f32.mrf.mxu0 }
 0xda0   : > { %v9001_v52 = vpack.c.bf16 %v9867_v31, %v9867_v31 }
 0xda1   : > { %6081 = vrot.lane.b32.xlu0 %v8956_v36, %s10880_s24  ;;  %7789 = vrot.lane.b32.xlu1 %v8991_v51, %s10881_s10  ;;  %v7533_v55 = vpop.f32.mrf.mxu0 }
 0xda2   : > { %v8999_v2 = vpack.c.bf16 %v7533_v55, %v7533_v55 }
 0xda5   : > { %7811 = vrot.lane.b32.xlu0 %v9002_v30, %s10881_s10  ;;  %6083 = vrot.lane.b32.xlu1 %v8957_v45, %s10880_s24 }
 0xda9   : > { %7813 = vrot.lane.b32.xlu1 %v9003_v26, %s10881_s10  ;;  %7807 = vrot.lane.b32.xlu0 %v9000_v5, %s10881_s10 }
 0xdad   : > { %7803 = vrot.lane.b32.xlu0 %v8998_v58, %s10881_s10  ;;  %7809 = vrot.lane.b32.xlu1 %v9001_v52, %s10881_s10 }
 0xdb1   : > { %6121 = vrot.lane.b32.xlu0 %v8976_v62, %s10880_s24  ;;  %7805 = vrot.lane.b32.xlu1 %v8999_v2, %s10881_s10 }
 0xdb5   : > { %7779 = vrot.lane.b32.xlu0 %v8986_v17, %s10881_s10  ;;  %6123 = vrot.lane.b32.xlu1 %v8977_v50, %s10880_s24  ;;  %v14412_v17 = vld [vmem:[%s14572_s7] ss:$0 sm:$0xff]  ;;  %s10790_s24 = sshll.u32 %s10882_s17, 4  ;;  %s10791_s24 = int_to_ptr.vmem [resolvable:$false] %s10790_s24 }
 0xdb6   : > { %p10793_p5 = scmp.lt.s32.totalorder %s14518_s23, %s10791_s24 }
 0xdb9   : > { %7781 = vrot.lane.b32.xlu1 %v8987_v25, %s10881_s10  ;;  %7783 = vrot.lane.b32.xlu0 %v8988_v33, %s10881_s10 }
 0xdbd   : > { %7785 = vrot.lane.b32.xlu1 %v8989_v14, %s10881_s10 }
 0xdcc   : > { %v7768_v40 = vpop.permute.xlu0 %7767 }
 0xdcd   : > { %7862 = vst.msk [vmem:[#allocation2 + $0x8] sm:$0xf] %vm7859_vm5, %v7768_v40 }
 0xdd0   : > { %v7770_v48 = vpop.permute.xlu1 %7769  ;;  %v7764_v59 = vpop.permute.xlu0 %7763 }
 0xdd1   : > { %7863 = vst.msk [vmem:[#allocation2 + $0xc] sm:$0xf] %vm7859_vm5, %v7770_v48  ;;  %7860 = vst.msk [vmem:[#allocation2] sm:$0xf] %vm7859_vm5, %v7764_v59 }
 0xdd3   : > { %v9882_v44 = vpop.f32.mrf.mxu0 }
 0xdd4   : > { %v7766_v15 = vpop.permute.xlu1 %7765  ;;  %v9008_v39 = vpack.c.bf16 %v9882_v44, %v9882_v44 }
 0xdd5   : > { %7861 = vst.msk [vmem:[#allocation2 + $0x4] sm:$0xf] %vm7859_vm5, %v7766_v15  ;;  %v7652_v43 = vpop.f32.mrf.mxu0 }
 0xdd6   : > { %v9006_v37 = vpack.c.bf16 %v7652_v43, %v7652_v43 }
 0xdd7   : > { %v9883_v61 = vpop.f32.mrf.mxu0 }
 0xdd8   : > { %7819 = vrot.lane.b32.xlu0 %v9006_v37, %s10881_s10  ;;  %v10089_v41 = vld [vmem:[#allocation2 + $0x8] sm:$0xff]   ;;  %v9009_v22 = vpack.c.bf16 %v9883_v61, %v9883_v61 }
 0xdd9   : > { %v7655_v9 = vpop.f32.mrf.mxu0 }
 0xdda   : > { %v9007_v13 = vpack.c.bf16 %v7655_v9, %v7655_v9 }
 0xddc   : > { %7823 = vrot.lane.b32.xlu0 %v9008_v39, %s10881_s10  ;;  %7821 = vrot.lane.b32.xlu1 %v9007_v13, %s10881_s10  ;;  %v10088_v23 = vld [vmem:[#allocation2] sm:$0xff]  }
 0xddd   : > { %9888 = vmatprep.mubr.msk.bf16.mxu0 %vm404_vm0, %v10088_v23 }
 0xdde   : > { %9889 = vmatmul.mubr.msk.bf16.vlgmr.msra.gmra.mxu0 %vm404_vm0, %v10089_v41 }
 0xde0   : > { %7825 = vrot.lane.b32.xlu1 %v9009_v22, %s10881_s10  ;;  %s10792_s10 = scalar_lea.vmem %s10791_s24, 4096 }
 0xde1   : > { %p10794_p10 = scmp.lt.s32.totalorder %s10792_s10, %s10786_s25 }
 0xde3   : > { %p10795_p2 = por %p10794_p10, %p10793_p5 }
 0xde5   : > { %p10796_p9 = pnand %p10795_p2, %p10789_p0 }
 0xdf7   : > { %v7800_v38 = vpop.permute.xlu0 %7799 }
 0xdf8   : > { %7878 = vst.msk [vmem:[#allocation2 + $0x48] sm:$0xf] %vm7859_vm5, %v7800_v38 }
 0xdfb   : > { %v7802_v3 = vpop.permute.xlu1 %7801  ;;  %v7776_v32 = vpop.permute.xlu0 %7775 }
 0xdfc   : > { %7879 = vst.msk [vmem:[#allocation2 + $0x4c] sm:$0xf] %vm7859_vm5, %v7802_v3  ;;  %7866 = vst.msk [vmem:[#allocation2 + $0x18] sm:$0xf] %vm7859_vm5, %v7776_v32 }
 0xdff   : > { %v7778_v20 = vpop.permute.xlu1 %7777  ;;  %v7796_v24 = vpop.permute.xlu0 %7795 }
 0xe00   : > { %7867 = vst.msk [vmem:[#allocation2 + $0x1c] sm:$0xf] %vm7859_vm5, %v7778_v20  ;;  %7876 = vst.msk [vmem:[#allocation2 + $0x40] sm:$0xf] %vm7859_vm5, %v7796_v24 }
 0xe03   : > { %v7798_v60 = vpop.permute.xlu1 %7797  ;;  %v7772_v11 = vpop.permute.xlu0 %7771  ;;  %v10095_v51 = vld [vmem:[#allocation2 + $0x48] sm:$0xff]  }
 0xe04   : > { %7877 = vst.msk [vmem:[#allocation2 + $0x44] sm:$0xf] %vm7859_vm5, %v7798_v60  ;;  %7864 = vst.msk [vmem:[#allocation2 + $0x10] sm:$0xf] %vm7859_vm5, %v7772_v11 }
 0xe07   : > { %v7774_v54 = vpop.permute.xlu1 %7773  ;;  %v7792_v4 = vpop.permute.xlu0 %7791  ;;  %v10091_v57 = vld [vmem:[#allocation2 + $0x18] sm:$0xff]  }
 0xe08   : > { %7865 = vst.msk [vmem:[#allocation2 + $0x14] sm:$0xf] %vm7859_vm5, %v7774_v54  ;;  %7874 = vst.msk [vmem:[#allocation2 + $0x38] sm:$0xf] %vm7859_vm5, %v7792_v4 }
 0xe0b   : > { %v7794_v27 = vpop.permute.xlu1 %7793  ;;  %v7816_v10 = vpop.permute.xlu0 %7815  ;;  %v10094_v42 = vld [vmem:[#allocation2 + $0x40] sm:$0xff]  }
 0xe0c   : > { %7875 = vst.msk [vmem:[#allocation2 + $0x3c] sm:$0xf] %vm7859_vm5, %v7794_v27  ;;  %7886 = vst.msk [vmem:[#allocation2 + $0x68] sm:$0xf] %vm7859_vm5, %v7816_v10 }
 0xe0f   : > { %v7818_v18 = vpop.permute.xlu1 %7817  ;;  %v7788_v49 = vpop.permute.xlu0 %7787  ;;  %v10090_v19 = vld [vmem:[#allocation2 + $0x10] sm:$0xff]  }
 0xe10   : > { %7887 = vst.msk [vmem:[#allocation2 + $0x6c] sm:$0xf] %vm7859_vm5, %v7818_v18  ;;  %7872 = vst.msk [vmem:[#allocation2 + $0x30] sm:$0xf] %vm7859_vm5, %v7788_v49  ;;  %9892 = vmatprep.mubr.msk.bf16.mxu0 %vm404_vm0, %v10090_v19 }
 0xe11   : > { %9893 = vmatmul.mubr.msk.bf16.gmra.mxu0 %vm404_vm0, %v10091_v57 }
 0xe13   : > { %v7790_v34 = vpop.permute.xlu1 %7789  ;;  %v6082_v12 = vpop.permute.xlu0 %6081  ;;  %v10093_v7 = vld [vmem:[#allocation2 + $0x38] sm:$0xff]  }
 0xe14   : > { %7873 = vst.msk [vmem:[#allocation2 + $0x34] sm:$0xf] %vm7859_vm5, %v7790_v34 }
 0xe15   : > { %6168 = vst.msk [vmem:[#allocation2 + $0x28] sm:$0xf] %vm6157_vm4, %v6082_v12 }
 0xe17   : > { %v6084_v53 = vpop.permute.xlu1 %6083  ;;  %v7812_v6 = vpop.permute.xlu0 %7811  ;;  %v10100_v58 = vld [vmem:[#allocation2 + $0x68] sm:$0xff]  }
 0xe18   : > { %6169 = vst.msk [vmem:[#allocation2 + $0x2c] sm:$0xf] %vm6157_vm4, %v6084_v53 }
 0xe19   : > { %7884 = vst.msk [vmem:[#allocation2 + $0x60] sm:$0xf] %vm7859_vm5, %v7812_v6 }
 0xe1b   : > { %v7814_v56 = vpop.permute.xlu1 %7813  ;;  %v7808_v0 = vpop.permute.xlu0 %7807  ;;  %v10092_v8 = vld [vmem:[#allocation2 + $0x30] sm:$0xff]  }
 0xe1c   : > { %7885 = vst.msk [vmem:[#allocation2 + $0x64] sm:$0xf] %vm7859_vm5, %v7814_v56  ;;  %7882 = vst.msk [vmem:[#allocation2 + $0x58] sm:$0xf] %vm7859_vm5, %v7808_v0  ;;  %9900 = vmatprep.mubr.msk.bf16.mxu1 %vm404_vm0, %v10092_v8 }
 0xe1d   : > { %9901 = vmatmul.mubr.msk.bf16.vlgmr.msra.gmra.mxu1 %vm404_vm0, %v10093_v7 }
 0xe1e   : > { %9904 = vmatprep.mubr.msk.bf16.mxu1 %vm404_vm0, %v10094_v42 }
 0xe1f   : > { %v7810_v28 = vpop.permute.xlu1 %7809  ;;  %v7804_v35 = vpop.permute.xlu0 %7803 }
 0xe20   : > { %7883 = vst.msk [vmem:[#allocation2 + $0x5c] sm:$0xf] %vm7859_vm5, %v7810_v28  ;;  %7880 = vst.msk [vmem:[#allocation2 + $0x50] sm:$0xf] %vm7859_vm5, %v7804_v35 }
 0xe23   : > { %v7806_v63 = vpop.permute.xlu1 %7805  ;;  %v6122_v36 = vpop.permute.xlu0 %6121  ;;  %v10098_v26 = vld [vmem:[#allocation2 + $0x60] sm:$0xff]  }
 0xe24   : > { %7881 = vst.msk [vmem:[#allocation2 + $0x54] sm:$0xf] %vm7859_vm5, %v7806_v63 }
 0xe25   : > { %6188 = vst.msk [vmem:[#allocation2 + $0x78] sm:$0xf] %vm6157_vm4, %v6122_v36  ;;  %9905 = vmatmul.mubr.msk.bf16.gmra.mxu1 %vm404_vm0, %v10095_v51 }
 0xe27   : > { %v6124_v21 = vpop.permute.xlu1 %6123  ;;  %v7780_v16 = vpop.permute.xlu0 %7779  ;;  %v10097_v46 = vld [vmem:[#allocation2 + $0x58] sm:$0xff]  }
 0xe28   : > { %6189 = vst.msk [vmem:[#allocation2 + $0x7c] sm:$0xf] %vm6157_vm4, %v6124_v21 }
 0xe29   : > { %7868 = vst.msk [vmem:[#allocation2 + $0x20] sm:$0xf] %vm7859_vm5, %v7780_v16 }
 0xe2b   : > { %v7782_v45 = vpop.permute.xlu1 %7781  ;;  %v7784_v30 = vpop.permute.xlu0 %7783  ;;  %v10096_v29 = vld [vmem:[#allocation2 + $0x50] sm:$0xff]  }
 0xe2c   : > { %7869 = vst.msk [vmem:[#allocation2 + $0x24] sm:$0xf] %vm7859_vm5, %v7782_v45  ;;  %7870 = vst.msk [vmem:[#allocation2 + $0x28] sm:$0xf] %vm7859_vm5, %v7784_v30  ;;  %9908 = vmatprep.mubr.msk.bf16.mxu1 %vm404_vm0, %v10096_v29 }
 0xe2d   : > { %9909 = vmatmul.mubr.msk.bf16.gmra.mxu1 %vm404_vm0, %v10097_v46 }
 0xe2e   : > { %9912 = vmatprep.mubr.msk.bf16.mxu1 %vm404_vm0, %v10098_v26 }
 0xe2f   : > { %v7786_v5 = vpop.permute.xlu1 %7785 }
 0xe30   : > { %7871 = vst.msk [vmem:[#allocation2 + $0x2c] sm:$0xf] %vm7859_vm5, %v7786_v5 }
 0xe33   : > { %v10099_v31 = vld [vmem:[#allocation2 + $0x20] sm:$0xff]  }
 0xe34   : > { %9896 = vmatprep.mubr.msk.bf16.mxu0 %vm404_vm0, %v10099_v31 }
 0xe35   : > { %9913 = vmatmul.mubr.msk.bf16.gmra.mxu1 %vm404_vm0, %v10100_v58 }
 0xe37   : > { %v10101_v52 = vld [vmem:[#allocation2 + $0x28] sm:$0xff]  }
 0xe38   : > { %9897 = vmatmul.mubr.msk.bf16.gmra.mxu0 %vm404_vm0, %v10101_v52 }
 0xe4a   : > { %v7820_v55 = vpop.permute.xlu0 %7819 }
 0xe4b   : > { %7888 = vst.msk [vmem:[#allocation2 + $0x70] sm:$0xf] %vm7859_vm5, %v7820_v55 }
 0xe4e   : > { %v7822_v1 = vpop.permute.xlu1 %7821  ;;  %v7824_v62 = vpop.permute.xlu0 %7823 }
 0xe4f   : > { %7889 = vst.msk [vmem:[#allocation2 + $0x74] sm:$0xf] %vm7859_vm5, %v7822_v1  ;;  %7890 = vst.msk [vmem:[#allocation2 + $0x78] sm:$0xf] %vm7859_vm5, %v7824_v62 }
 0xe52   : > { %v7826_v2 = vpop.permute.xlu1 %7825 }
 0xe53   : > { %7891 = vst.msk [vmem:[#allocation2 + $0x7c] sm:$0xf] %vm7859_vm5, %v7826_v2 }
 0xe56   : > { %v10102_v47 = vld [vmem:[#allocation2 + $0x70] sm:$0xff]  }
 0xe57   : > { %9916 = vmatprep.mubr.msk.bf16.mxu1 %vm404_vm0, %v10102_v47 }
 0xe5a   : > { %v10103_v50 = vld [vmem:[#allocation2 + $0x78] sm:$0xff]  }
 0xe5b   : > { %9917 = vmatmul.mubr.msk.bf16.gmra.mxu1 %vm404_vm0, %v10103_v50 }
 0xe9e   : > { %v9890_v33 = vpop.f32.mrf.mxu0 }
 0xe9f   : > { %v8118_v25 = vadd.f32 %v9890_v33, %v14412_v17 }
 0xea0   : > { %v8109_v14 = vpop.f32.mrf.mxu0 }
 0xea1   : > { %v9012_v40 = vpack.c.bf16 %v8118_v25, %v8118_v25  ;;  %v8110_v48 = vadd.f32 %v14412_v17, %v8109_v14 }
 0xea2   : > { %v9891_v59 = vpop.f32.mrf.mxu0 }
 0xea3   : > { %8367 = vst.msk [vmem:[%s14417_s22 + $0x8] sm:$0xf] %vm8364_vm6, %v9012_v40  ;;  %v9010_v44 = vpack.c.bf16 %v8110_v48, %v8110_v48  ;;  %v8121_v15 = vadd.f32 %v9891_v59, %v14412_v17 }
 0xea4   : > { %v8112_v43 = vpop.f32.mrf.mxu0 }
 0xea5   : > { %8365 = vst.msk [vmem:[%s14417_s22] sm:$0xf] %vm8364_vm6, %v9010_v44  ;;  %v9013_v37 = vpack.c.bf16 %v8121_v15, %v8121_v15  ;;  %v8113_v61 = vadd.f32 %v14412_v17, %v8112_v43 }
 0xea7   : > { %8368 = vst.msk [vmem:[%s14417_s22 + $0xc] sm:$0xf] %vm8364_vm6, %v9013_v37  ;;  %v9011_v9 = vpack.c.bf16 %v8113_v61, %v8113_v61 }
 0xea9   : > { %8366 = vst.msk [vmem:[%s14417_s22 + $0x4] sm:$0xf] %vm8364_vm6, %v9011_v9 }
 0xed1   : > { %v9894_v39 = vpop.f32.mrf.mxu0 }
 0xed2   : > { %v8134_v13 = vadd.f32 %v9894_v39, %v14412_v17 }
 0xed3   : > { %v8125_v23 = vpop.f32.mrf.mxu0 }
 0xed4   : > { %v9016_v41 = vpack.c.bf16 %v8134_v13, %v8134_v13  ;;  %v8126_v22 = vadd.f32 %v14412_v17, %v8125_v23 }
 0xed5   : > { %v9895_v38 = vpop.f32.mrf.mxu0 }
 0xed6   : > { %8371 = vst.msk [vmem:[%s14417_s22 + $0x18] sm:$0xf] %vm8364_vm6, %v9016_v41  ;;  %v9014_v3 = vpack.c.bf16 %v8126_v22, %v8126_v22  ;;  %v8137_v32 = vadd.f32 %v9895_v38, %v14412_v17 }
 0xed7   : > { %v8128_v20 = vpop.f32.mrf.mxu0 }
 0xed8   : > { %8369 = vst.msk [vmem:[%s14417_s22 + $0x10] sm:$0xf] %vm8364_vm6, %v9014_v3  ;;  %v9017_v24 = vpack.c.bf16 %v8137_v32, %v8137_v32  ;;  %v8129_v60 = vadd.f32 %v14412_v17, %v8128_v20 }
 0xeda   : > { %8372 = vst.msk [vmem:[%s14417_s22 + $0x1c] sm:$0xf] %vm8364_vm6, %v9017_v24  ;;  %v9015_v11 = vpack.c.bf16 %v8129_v60, %v8129_v60 }
 0xedc   : > { %8370 = vst.msk [vmem:[%s14417_s22 + $0x14] sm:$0xf] %vm8364_vm6, %v9015_v11 }
 0xedd   : > { %v9902_v54 = vpop.f32.mrf.mxu1 }
 0xede   : > { %v8166_v4 = vadd.f32 %v9902_v54, %v14412_v17 }
 0xedf   : > { %v8157_v27 = vpop.f32.mrf.mxu1 }
 0xee0   : > { %v9024_v10 = vpack.c.bf16 %v8166_v4, %v8166_v4  ;;  %v8158_v18 = vadd.f32 %v14412_v17, %v8157_v27 }
 0xee1   : > { %v9903_v49 = vpop.f32.mrf.mxu1 }
 0xee2   : > { %8379 = vst.msk [vmem:[%s14417_s22 + $0x38] sm:$0xf] %vm8364_vm6, %v9024_v10  ;;  %v9022_v19 = vpack.c.bf16 %v8158_v18, %v8158_v18  ;;  %v8169_v57 = vadd.f32 %v9903_v49, %v14412_v17 }
 0xee3   : > { %v8160_v34 = vpop.f32.mrf.mxu1 }
 0xee4   : > { %8377 = vst.msk [vmem:[%s14417_s22 + $0x30] sm:$0xf] %vm8364_vm6, %v9022_v19  ;;  %v9025_v12 = vpack.c.bf16 %v8169_v57, %v8169_v57  ;;  %v8161_v53 = vadd.f32 %v14412_v17, %v8160_v34 }
 0xee5   : > { %v9906_v6 = vpop.f32.mrf.mxu1 }
 0xee6   : > { %8380 = vst.msk [vmem:[%s14417_s22 + $0x3c] sm:$0xf] %vm8364_vm6, %v9025_v12  ;;  %v9023_v56 = vpack.c.bf16 %v8161_v53, %v8161_v53  ;;  %v8182_v0 = vadd.f32 %v9906_v6, %v14412_v17 }
 0xee7   : > { %v8173_v8 = vpop.f32.mrf.mxu1 }
 0xee8   : > { %8378 = vst.msk [vmem:[%s14417_s22 + $0x34] sm:$0xf] %vm8364_vm6, %v9023_v56  ;;  %v9028_v7 = vpack.c.bf16 %v8182_v0, %v8182_v0  ;;  %v8174_v42 = vadd.f32 %v14412_v17, %v8173_v8 }
 0xee9   : > { %v9907_v28 = vpop.f32.mrf.mxu1 }
 0xeea   : > { %8383 = vst.msk [vmem:[%s14417_s22 + $0x48] sm:$0xf] %vm8364_vm6, %v9028_v7  ;;  %v9026_v35 = vpack.c.bf16 %v8174_v42, %v8174_v42  ;;  %v8185_v63 = vadd.f32 %v9907_v28, %v14412_v17 }
 0xeeb   : > { %v8176_v36 = vpop.f32.mrf.mxu1 }
 0xeec   : > { %8381 = vst.msk [vmem:[%s14417_s22 + $0x40] sm:$0xf] %vm8364_vm6, %v9026_v35  ;;  %v9029_v51 = vpack.c.bf16 %v8185_v63, %v8185_v63  ;;  %v8177_v21 = vadd.f32 %v14412_v17, %v8176_v36 }
 0xeed   : > { %v9910_v16 = vpop.f32.mrf.mxu1 }
 0xeee   : > { %8384 = vst.msk [vmem:[%s14417_s22 + $0x4c] sm:$0xf] %vm8364_vm6, %v9029_v51  ;;  %v9027_v45 = vpack.c.bf16 %v8177_v21, %v8177_v21  ;;  %v8198_v30 = vadd.f32 %v9910_v16, %v14412_v17 }
 0xeef   : > { %v8189_v29 = vpop.f32.mrf.mxu1 }
 0xef0   : > { %8382 = vst.msk [vmem:[%s14417_s22 + $0x44] sm:$0xf] %vm8364_vm6, %v9027_v45  ;;  %v9032_v46 = vpack.c.bf16 %v8198_v30, %v8198_v30  ;;  %v8190_v26 = vadd.f32 %v14412_v17, %v8189_v29 }
 0xef1   : > { %v9911_v5 = vpop.f32.mrf.mxu1 }
 0xef2   : > { %8387 = vst.msk [vmem:[%s14417_s22 + $0x58] sm:$0xf] %vm8364_vm6, %v9032_v46  ;;  %v9030_v31 = vpack.c.bf16 %v8190_v26, %v8190_v26  ;;  %v8201_v58 = vadd.f32 %v9911_v5, %v14412_v17 }
 0xef3   : > { %v8192_v52 = vpop.f32.mrf.mxu1 }
 0xef4   : > { %8385 = vst.msk [vmem:[%s14417_s22 + $0x50] sm:$0xf] %vm8364_vm6, %v9030_v31  ;;  %v9033_v55 = vpack.c.bf16 %v8201_v58, %v8201_v58  ;;  %v8193_v1 = vadd.f32 %v14412_v17, %v8192_v52 }
 0xef5   : > { %v9914_v62 = vpop.f32.mrf.mxu1 }
 0xef6   : > { %8388 = vst.msk [vmem:[%s14417_s22 + $0x5c] sm:$0xf] %vm8364_vm6, %v9033_v55  ;;  %v9031_v2 = vpack.c.bf16 %v8193_v1, %v8193_v1  ;;  %v8214_v47 = vadd.f32 %v9914_v62, %v14412_v17 }
 0xef7   : > { %v8205_v50 = vpop.f32.mrf.mxu1 }
 0xef8   : > { %8386 = vst.msk [vmem:[%s14417_s22 + $0x54] sm:$0xf] %vm8364_vm6, %v9031_v2  ;;  %v9036_v33 = vpack.c.bf16 %v8214_v47, %v8214_v47  ;;  %v8206_v25 = vadd.f32 %v14412_v17, %v8205_v50  ;;  %v9898_v14 = vpop.f32.mrf.mxu0 }
 0xef9   : > { %v8150_v40 = vadd.f32 %v9898_v14, %v14412_v17  ;;  %v9915_v48 = vpop.f32.mrf.mxu1 }
 0xefa   : > { %8391 = vst.msk [vmem:[%s14417_s22 + $0x68] sm:$0xf] %vm8364_vm6, %v9036_v33  ;;  %v9034_v59 = vpack.c.bf16 %v8206_v25, %v8206_v25  ;;  %v8217_v44 = vadd.f32 %v9915_v48, %v14412_v17  ;;  %v8141_v15 = vpop.f32.mrf.mxu0 }
 0xefb   : > { %v9020_v43 = vpack.c.bf16 %v8150_v40, %v8150_v40  ;;  %v8142_v37 = vadd.f32 %v14412_v17, %v8141_v15  ;;  %v8208_v61 = vpop.f32.mrf.mxu1 }
 0xefc   : > { %8389 = vst.msk [vmem:[%s14417_s22 + $0x60] sm:$0xf] %vm8364_vm6, %v9034_v59  ;;  %v9037_v9 = vpack.c.bf16 %v8217_v44, %v8217_v44  ;;  %v8209_v39 = vadd.f32 %v14412_v17, %v8208_v61  ;;  %v9899_v13 = vpop.f32.mrf.mxu0 }
 0xefd   : > { %8375 = vst.msk [vmem:[%s14417_s22 + $0x28] sm:$0xf] %vm8364_vm6, %v9020_v43  ;;  %v9018_v23 = vpack.c.bf16 %v8142_v37, %v8142_v37  ;;  %v8153_v41 = vadd.f32 %v9899_v13, %v14412_v17 }
 0xefe   : > { %8392 = vst.msk [vmem:[%s14417_s22 + $0x6c] sm:$0xf] %vm8364_vm6, %v9037_v9  ;;  %v9035_v22 = vpack.c.bf16 %v8209_v39, %v8209_v39  ;;  %v8144_v38 = vpop.f32.mrf.mxu0 }
 0xeff   : > { %8373 = vst.msk [vmem:[%s14417_s22 + $0x20] sm:$0xf] %vm8364_vm6, %v9018_v23  ;;  %v9021_v3 = vpack.c.bf16 %v8153_v41, %v8153_v41  ;;  %v8145_v32 = vadd.f32 %v14412_v17, %v8144_v38 }
 0xf00   : > { %8390 = vst.msk [vmem:[%s14417_s22 + $0x64] sm:$0xf] %vm8364_vm6, %v9035_v22 }
 0xf01   : > { %8376 = vst.msk [vmem:[%s14417_s22 + $0x2c] sm:$0xf] %vm8364_vm6, %v9021_v3  ;;  %v9019_v20 = vpack.c.bf16 %v8145_v32, %v8145_v32 }
 0xf03   : > { %8374 = vst.msk [vmem:[%s14417_s22 + $0x24] sm:$0xf] %vm8364_vm6, %v9019_v20 }
 0xf1b   : > { %v9918_v24 = vpop.f32.mrf.mxu1 }
 0xf1c   : > { %v8230_v60 = vadd.f32 %v9918_v24, %v14412_v17 }
 0xf1d   : > { %v8221_v11 = vpop.f32.mrf.mxu1 }
 0xf1e   : > { %v9040_v54 = vpack.c.bf16 %v8230_v60, %v8230_v60  ;;  %v8222_v4 = vadd.f32 %v14412_v17, %v8221_v11 }
 0xf1f   : > { %v9919_v27 = vpop.f32.mrf.mxu1 }
 0xf20   : > { %8395 = vst.msk [vmem:[%s14417_s22 + $0x78] sm:$0xf] %vm8364_vm6, %v9040_v54  ;;  %v9038_v10 = vpack.c.bf16 %v8222_v4, %v8222_v4  ;;  %v8233_v18 = vadd.f32 %v9919_v27, %v14412_v17 }
 0xf21   : > { %v8224_v49 = vpop.f32.mrf.mxu1 }
 0xf22   : > { %8393 = vst.msk [vmem:[%s14417_s22 + $0x70] sm:$0xf] %vm8364_vm6, %v9038_v10  ;;  %v9041_v19 = vpack.c.bf16 %v8233_v18, %v8233_v18  ;;  %v8225_v57 = vadd.f32 %v14412_v17, %v8224_v49 }
 0xf24   : > { %8396 = vst.msk [vmem:[%s14417_s22 + $0x7c] sm:$0xf] %vm8364_vm6, %v9041_v19  ;;  %v9039_v34 = vpack.c.bf16 %v8225_v57, %v8225_v57 }
 0xf26   : > { %8394 = vst.msk [vmem:[%s14417_s22 + $0x74] sm:$0xf] %vm8364_vm6, %v9039_v34 }
 0xf27   : > { %10799 = shalt.err (!%p10796_p9)
}
 0xf28   : > { %s10800_s26 = scalar_lea.hbm %s14514_s13, 2048  ;;  %s10804_s22 = scalar_lea.hbm %s14573_s8, 4096 }
 0xf29   : > { %p10801_p1 = scmp.ne.s32.totalorder %s14514_s13, %s10800_s26  ;;  %p10805_p8 = scmp.lt.s32.totalorder %s14514_s13, %s14573_s8 }
 0xf2a   : > { %p10806_p3 = scmp.lt.s32.totalorder %s10804_s22, %s10800_s26 }
 0xf2b   : > { %p10802_p4 = pnand %p10801_p1, %p14796_p12 }
 0xf2c   : > { %p10807_p11 = por %p10806_p3, %p10805_p8 }
 0xf2d   : > { %p10803_p6 = pneg %p10802_p4 }
 0xf2f   : > { %p10808_p7 = pnand %p10807_p11, %p10803_p6 }
 0xf31   : > { %10811 = shalt.err (!%p10808_p7)
}
 0xf32   : > { %s10883_s11 = smov 4  }
 0xf33   : > { %10002 = dma.vmem_to_hbm [thread:$0]  (%p14796_p12), %s14518_s23, 2048, %s14514_s13, %s8398_s9, %s10869_s15, %s10869_s15, %s10883_s11  }
 0xf34 PF: > { %s8427_s25 = sand.u32 1, %s10846_s27   ;;  %p14797_p13 = scmp.ne.s32.totalorder %s14619_s12, 0 }
 0xf35   : > { %p14798_p0 = scmp.ge.s32.totalorder %s10858_s30, 2  ;;  %s8428_s17 = scalar_lea.sflag [#allocation5], %s8427_s25 }
 0xf37   : > { %p10019_p5 = pnand %p14798_p0, %p14797_p13 }
 0xf39   : > { %p10020_p10 = pneg %p10019_p5 }
 0xf3b   : > { %10841 = dma.done.wait (%p10020_p10), %s8428_s17, 2048  }
 0xf3c   : > { %10843 = vsyncadd (%p10020_p10), %s8428_s17, 4294965248  ;;  %p23_p2 = scmp.ge.s32.totalorder %s11004_s19, 4   ;;  %s14799_s27 = smov %s10850_s28 }
 0xf3d   : > { %s14800_s28 = smov %s10854_s29  ;;  %s14801_s29 = smov %s11022_s16 }
 0xf3e   : > { %s14802_s30 = smov %s11004_s19  ;;  %25 = sbr.rel (!%p23_p2) target bundleno = 10 (0xa), region = 112 }
 0xf43   :  { %8433 = vsyncpa [#allocation4], 1 }
 0xf44   :  { %8435 = vsyncpa [#allocation4 + $0x1], 1 }
 0xf45   :  { %8436 = vsyncpa [#allocation7], 1 }
 0xf46   :  { %8437 = vsyncpa [#allocation10], 1 }
 0xf47   :  { %8438 = vsyncpa [#allocation5], 1 }
 0xf48   :  { %8440 = vsyncpa [#allocation5 + $0x1], 1 }

</bundles_post_ra>
